<compile_context>
chip_gen: v6e
topology: v6e:2x2x1
jax: 0.10.0
libtpu: 0.0.40
codegen_flags: <defaults>
</compile_context>

<pallas_src>
import functools

import jax
import jax.numpy as jnp
from jax import lax
from jax.experimental import pallas as pl
from jax.experimental.pallas import tpu as pltpu

FINAL_DIM = 410
MAX_SENTENCE_LEN = 100
POS_DIM = 80
POS_EMBD_LEN = 204
WORD_DIM = 250
FILTER_NUM = 140
FILTER_SIZE = 3
HIDDEN = 50
NUM_CLASSES = 11
OUT_PAD = 128          # lane-dense padded logits width (sliced to 11 outside)
VOCAB_SIZE = 1000      # synthetic vocab (wordembedding.npy is not loaded)

# Per-sentence frame: 2 zero rows + 100 data rows + 2 zero rows = 104 rows
# (multiple of 8 keeps every per-sentence base sublane-aligned, and the zero
# rows realize Conv1d(padding=1) with no jnp.pad of the big activation).
PAD_BEFORE = 2
PAD_AFTER = 2
LPAD = PAD_BEFORE + MAX_SENTENCE_LEN + PAD_AFTER   # 104

CM = 128                    # lane-aligned "main" conv channels
CT = FILTER_NUM - CM        # 12 "tail" conv channels


def net_kernel(x_ref, wcat_ref, bc_ref, wd1_ref, bd1_ref, wd2_ref, bd2_ref,
               o_ref):
    """One grid step processes a block of Bt sentences.

    x_ref   : (Bt*LPAD, 410) bf16  zero-framed embedded sentences
    wcat_ref: (410, 420) bf16      packed conv taps (see header)
    bc_ref  : (1, 140) f32
    wd1_ref : (140, 50) bf16, bd1_ref: (1, 50) f32
    wd2_ref : (50, 128) bf16 zero-padded head, bd2_ref: (1, 128) f32
    o_ref   : (Bt, 128) f32        padded logits
    """
    R = x_ref.shape[0]
    Bt = R // LPAD

    X = x_ref[...]                                                    # (R, 410)

    # Conv1d(410 -> 140, k=3, pad=1) as ONE fused MXU matmul (N = 420).
    Z = jnp.dot(X, wcat_ref[...], preferred_element_type=jnp.float32)  # (R, 420)

    # conv[r] = w0.x[r-1] + w1.x[r] + w2.x[r+1]; the zero frame rows make the
    # plain row shift (sublane relayout on the narrow f32 tap outputs) exact
    # for every data row.
    zero_m = jnp.zeros((1, CM), jnp.float32)
    zero_t = jnp.zeros((1, CT), jnp.float32)

    cm = (Z[:, CM:2 * CM]                                              # tap1
          + jnp.concatenate([zero_m, Z[:-1, 0:CM]], axis=0)            # tap0 @ x[r-1]
          + jnp.concatenate([Z[1:, 2 * CM:3 * CM], zero_m], axis=0))   # tap2 @ x[r+1]

    zt = Z[:, 3 * CM:3 * CM + 3 * CT]                                  # (R, 36)
    ct = (zt[:, CT:2 * CT]
          + jnp.concatenate([zero_t, zt[:-1, 0:CT]], axis=0)
          + jnp.concatenate([zt[1:, 2 * CT:3 * CT], zero_t], axis=0))  # (R, 12)

    # MaxPool1d(100): single batched reduction over the sublane axis; the 4
    # frame pad rows per sentence are pushed to -inf. LPAD % 8 == 0 so the
    # reshape is tile-preserving.
    l_idx = lax.broadcasted_iota(jnp.int32, (LPAD, 1), 0)
    is_data = (l_idx >= PAD_BEFORE) & (l_idx < PAD_BEFORE + MAX_SENTENCE_LEN)
    neg = jnp.where(is_data, 0.0, -1e30).astype(jnp.float32).reshape(1, LPAD, 1)

    pm = jnp.max(cm.reshape(Bt, LPAD, CM) + neg, axis=1)               # (Bt, 128)
    pt = jnp.max(ct.reshape(Bt, LPAD, CT) + neg, axis=1)               # (Bt, 12)
    pooled = jnp.concatenate([pm, pt], axis=1)                         # (Bt, 140)

    # Conv bias + ReLU after the max (exact: per-channel constant add commutes
    # with max, ReLU is monotone). Dropout(0.25) layers are identity in eval.
    pooled = jnp.maximum(pooled + bc_ref[...], 0.0)

    h = jnp.dot(pooled.astype(wd1_ref.dtype), wd1_ref[...],
                preferred_element_type=jnp.float32) + bd1_ref[...]
    h = jnp.maximum(h, 0.0)                                            # (Bt, 50)
    out = jnp.dot(h.astype(wd2_ref.dtype), wd2_ref[...],
                  preferred_element_type=jnp.float32) + bd2_ref[...]
    # Output kept f32 (tiny: <1% of step HBM traffic) for a tight self-check.
    o_ref[...] = out                                                   # (Bt, 128)


def net_forward_pallas(x2d_bf16, wcat_bf16, conv_b, wd1_bf16, bd1,
                       wd2p_bf16, bd2p, *, block_b=32,
                       vmem_limit_bytes=40 * 1024 * 1024):
    """x2d_bf16: (Bp*LPAD, 410) bf16 zero-framed sentences; wcat: (410, 420)."""
    Rtot, D = x2d_bf16.shape
    assert D == FINAL_DIM and Rtot % LPAD == 0
    Bp = Rtot // LPAD
    assert Bp % block_b == 0

    const2 = lambda i: (0, 0)
    # TODO(synk): mark the constant-index weight specs pipeline_mode=pl.Buffered(1)
    # (saves ~0.7 MiB of duplicated weight buffers when pushing block_b on v7x).
    return pl.pallas_call(
        net_kernel,
        out_shape=jax.ShapeDtypeStruct((Bp, OUT_PAD), jnp.float32),
        grid_spec=pltpu.PrefetchScalarGridSpec(
            num_scalar_prefetch=0,
            grid=(Bp // block_b,),
            in_specs=[
                pl.BlockSpec((block_b * LPAD, FINAL_DIM), lambda i: (i, 0)),
                pl.BlockSpec((FINAL_DIM, 3 * FILTER_NUM), const2),
                pl.BlockSpec((1, FILTER_NUM), const2),
                pl.BlockSpec((FILTER_NUM, HIDDEN), const2),
                pl.BlockSpec((1, HIDDEN), const2),
                pl.BlockSpec((HIDDEN, OUT_PAD), const2),
                pl.BlockSpec((1, OUT_PAD), const2),
            ],
            out_specs=pl.BlockSpec((block_b, OUT_PAD), lambda i: (i, 0)),
        ),
        compiler_params=pltpu.CompilerParams(
            dimension_semantics=("parallel",),
            vmem_limit_bytes=vmem_limit_bytes),
    )(x2d_bf16, wcat_bf16, conv_b, wd1_bf16, bd1, wd2p_bf16, bd2p)


def make_params(key):
    ks = jax.random.split(key, 9)
    s = 0.02

    def emb(k, n, d):
        t = s * jax.random.normal(k, (n, d), jnp.float32)
        # Append one all-zero row used only as the conv-padding frame index.
        return jnp.concatenate([t, jnp.zeros((1, d), jnp.float32)], 0
                               ).astype(jnp.bfloat16)

    return dict(
        word_emb=emb(ks[0], VOCAB_SIZE, WORD_DIM),       # (V+1, 250) bf16
        pos1_emb=emb(ks[1], POS_EMBD_LEN, POS_DIM),      # (205, 80)  bf16
        pos2_emb=emb(ks[2], POS_EMBD_LEN, POS_DIM),
        # conv weight stored as (tap, in_ch, out_ch) == PyTorch (out, in, k)
        # permuted with .transpose(2, 1, 0)
        conv_w=(s * jax.random.normal(
            ks[3], (FILTER_SIZE, FINAL_DIM, FILTER_NUM), jnp.float32)
            ).astype(jnp.bfloat16),
        conv_b=s * jax.random.normal(ks[4], (1, FILTER_NUM), jnp.float32),
        wd1=(s * jax.random.normal(ks[5], (FILTER_NUM, HIDDEN), jnp.float32)
             ).astype(jnp.bfloat16),
        bd1=s * jax.random.normal(ks[6], (1, HIDDEN), jnp.float32),
        wd2=(s * jax.random.normal(ks[7], (HIDDEN, NUM_CLASSES), jnp.float32)
             ).astype(jnp.bfloat16),
        bd2=s * jax.random.normal(ks[8], (1, NUM_CLASSES), jnp.float32),
    )


def net_forward(params, tokens, pos1, pos2, *, block_b=32,
                vmem_limit_bytes=40 * 1024 * 1024):
    """Embedding gathers + concat are glue in plain JAX (bf16 end-to-end)."""
    # TODO(synk): optionally fuse the embedding gather into the kernel via a
    # manual DMA row-gather (memory_space=pl.ANY tables + scalar-prefetched
    # ids) to remove the (B, 104, 410) HBM round trip on memory-bound v6e.
    B, L = tokens.shape
    assert L == MAX_SENTENCE_LEN
    Bp = ((B + block_b - 1) // block_b) * block_b

    # Pad only the tiny int32 index matrices: batch -> Bp and 2+2 frame columns
    # pointing at the all-zero embedding row (realizes Conv1d padding=1).
    def pad_idx(idx, zero_row):
        return jnp.pad(idx, ((0, Bp - B), (PAD_BEFORE, PAD_AFTER)),
                       constant_values=zero_row)

    tok_p = pad_idx(tokens, VOCAB_SIZE)
    p1_p = pad_idx(pos1, POS_EMBD_LEN)
    p2_p = pad_idx(pos2, POS_EMBD_LEN)

    word_in = jnp.take(params["word_emb"], tok_p, axis=0)   # (Bp, 104, 250) bf16
    pos1_in = jnp.take(params["pos1_emb"], p1_p, axis=0)    # (Bp, 104, 80)
    pos2_in = jnp.take(params["pos2_emb"], p2_p, axis=0)    # (Bp, 104, 80)
    x = jnp.concatenate([word_in, pos1_in, pos2_in], axis=2)  # (Bp, 104, 410)
    x2d = x.reshape(Bp * LPAD, FINAL_DIM)                     # free reshape

    # Packed conv weight: lane-aligned 128-wide tap groups + 3x12 tails.
    cw = params["conv_w"]                                     # (3, 410, 140) bf16
    wcat = jnp.concatenate(
        [cw[0][:, :CM], cw[1][:, :CM], cw[2][:, :CM],
         cw[0][:, CM:], cw[1][:, CM:], cw[2][:, CM:]], axis=1)  # (410, 420)

    # Lane-dense classifier head: zero-pad 11 -> 128 output columns.
    wd2p = jnp.pad(params["wd2"], ((0, 0), (0, OUT_PAD - NUM_CLASSES)))
    bd2p = jnp.pad(params["bd2"], ((0, 0), (0, OUT_PAD - NUM_CLASSES)))

    out = net_forward_pallas(x2d, wcat, params["conv_b"], params["wd1"],
                             params["bd1"], wd2p, bd2p,
                             block_b=block_b,
                             vmem_limit_bytes=vmem_limit_bytes)
    return out[:B, :NUM_CLASSES]


def net_forward_ref(params, tokens, pos1, pos2):
    """Pure-JAX reference (original op order, same bf16 rounding points)."""
    we = params["word_emb"].astype(jnp.float32)
    p1e = params["pos1_emb"].astype(jnp.float32)
    p2e = params["pos2_emb"].astype(jnp.float32)
    word_in = jnp.take(we, tokens, axis=0)
    pos1_in = jnp.take(p1e, pos1, axis=0)
    pos2_in = jnp.take(p2e, pos2, axis=0)
    x = jnp.concatenate([word_in, pos1_in, pos2_in], axis=2)   # (B, 100, 410)

    cw = params["conv_w"].astype(jnp.float32)                  # (3, 410, 140)
    x_pad = jnp.pad(x, ((0, 0), (1, 1), (0, 0)))
    L = MAX_SENTENCE_LEN
    y = (jnp.einsum("blc,cf->blf", x_pad[:, 0:L], cw[0])
         + jnp.einsum("blc,cf->blf", x_pad[:, 1:L + 1], cw[1])
         + jnp.einsum("blc,cf->blf", x_pad[:, 2:L + 2], cw[2])
         + params["conv_b"][None])
    y = jnp.maximum(y, 0.0)
    pooled = jnp.max(y, axis=1)                                # (B, 140)

    wd1 = params["wd1"].astype(jnp.float32)
    wd2 = params["wd2"].astype(jnp.float32)
    h = jnp.maximum(pooled.astype(jnp.bfloat16).astype(jnp.float32) @ wd1
                    + params["bd1"], 0.0)
    return h.astype(jnp.bfloat16).astype(jnp.float32) @ wd2 + params["bd2"]


if __name__ == "__main__":
    key = jax.random.PRNGKey(0)
    pkey, k_tok, k_p1, k_p2 = jax.random.split(key, 4)
    params = make_params(pkey)

    B, L = 10, MAX_SENTENCE_LEN
    tokens = jax.random.randint(k_tok, (B, L), 0, VOCAB_SIZE, dtype=jnp.int32)
    pos1 = jax.random.randint(k_p1, (B, L), 0, POS_EMBD_LEN, dtype=jnp.int32)
    pos2 = jax.random.randint(k_p2, (B, L), 0, POS_EMBD_LEN, dtype=jnp.int32)

    ref = jax.block_until_ready(net_forward_ref(params, tokens, pos1, pos2))

    # Small-block run: exercises a 2-step grid plus a padded final batch block.
    fwd_small = jax.jit(functools.partial(net_forward, block_b=8))
    out_small = jax.block_until_ready(fwd_small(params, tokens, pos1, pos2))
    assert out_small.shape == (B, NUM_CLASSES), out_small.shape
    assert jnp.allclose(out_small, ref, atol=5e-4, rtol=5e-3), (out_small, ref)

    # Default (performance-tuned) configuration: block_b=32, 40 MiB VMEM.
    fwd = jax.jit(net_forward)
    out = jax.block_until_ready(fwd(params, tokens, pos1, pos2))
    assert out.shape == (B, NUM_CLASSES), out.shape
    assert jnp.allclose(out, ref, atol=5e-4, rtol=5e-3), (out, ref)

    print("KERNEL_OK")
</pallas_src>

<mosaic_0001>
module attributes {stable_mosaic.version = 11 : i64} {
  func.func @net_kernel(%arg0: i32, %arg1: memref<832x410xbf16, #tpu.memory_space<vmem>>, %arg2: memref<410x420xbf16, #tpu.memory_space<vmem>>, %arg3: memref<1x140xf32, #tpu.memory_space<vmem>>, %arg4: memref<140x50xbf16, #tpu.memory_space<vmem>>, %arg5: memref<1x50xf32, #tpu.memory_space<vmem>>, %arg6: memref<50x128xbf16, #tpu.memory_space<vmem>>, %arg7: memref<1x128xf32, #tpu.memory_space<vmem>>, %arg8: memref<8x128xf32, #tpu.memory_space<vmem>>) attributes {dimension_semantics = [#tpu.dimension_semantics<parallel>], iteration_bounds = array<i64: 2>, scalar_prefetch = 0 : i64, scratch_operands = 0 : i64, tpu.core_type = #tpu.core_type<tc>, window_params = [{transform_indices = @transform_0, window_bounds = array<i64: 832, 410>}, {pipeline_mode = #tpu.pipeline_mode<synchronous>, transform_indices = @transform_1, window_bounds = array<i64: 410, 420>}, {pipeline_mode = #tpu.pipeline_mode<synchronous>, transform_indices = @transform_2, window_bounds = array<i64: 1, 140>}, {pipeline_mode = #tpu.pipeline_mode<synchronous>, transform_indices = @transform_3, window_bounds = array<i64: 140, 50>}, {pipeline_mode = #tpu.pipeline_mode<synchronous>, transform_indices = @transform_4, window_bounds = array<i64: 1, 50>}, {pipeline_mode = #tpu.pipeline_mode<synchronous>, transform_indices = @transform_5, window_bounds = array<i64: 50, 128>}, {pipeline_mode = #tpu.pipeline_mode<synchronous>, transform_indices = @transform_6, window_bounds = array<i64: 1, 128>}, {transform_indices = @transform_7, window_bounds = array<i64: 8, 128>}]} {
    %c0 = arith.constant 0 : index
    %c0_0 = arith.constant 0 : index
    %0 = vector.load %arg1[%c0, %c0_0] : memref<832x410xbf16, #tpu.memory_space<vmem>>, vector<832x410xbf16>
    %c0_1 = arith.constant 0 : index
    %c0_2 = arith.constant 0 : index
    %1 = vector.load %arg2[%c0_1, %c0_2] : memref<410x420xbf16, #tpu.memory_space<vmem>>, vector<410x420xbf16>
    %cst = arith.constant dense<0.000000e+00> : vector<832x420xf32>
    %2 = tpu.matmul %0, %1, %cst {dimension_numbers = #tpu.dot_dimension_numbers<[1], [0], [0], [1], [0, 0, 1, 1], [], []>} : vector<832x410xbf16>, vector<410x420xbf16>, vector<832x420xf32> -> vector<832x420xf32>
    %cst_3 = arith.constant 0.000000e+00 : f32
    %3 = vector.broadcast %cst_3 : f32 to vector<1x128xf32>
    %cst_4 = arith.constant 0.000000e+00 : f32
    %4 = vector.broadcast %cst_4 : f32 to vector<1x12xf32>
    %5 = vector.extract_strided_slice %2 {offsets = [0, 128], sizes = [832, 128], strides = [1, 1]} : vector<832x420xf32> to vector<832x128xf32>
    %6 = vector.extract_strided_slice %2 {offsets = [0, 0], sizes = [831, 128], strides = [1, 1]} : vector<832x420xf32> to vector<831x128xf32>
    %7 = tpu.concatenate %3, %6 in 0 : vector<1x128xf32>, vector<831x128xf32> -> vector<832x128xf32>
    %8 = arith.addf %5, %7 : vector<832x128xf32>
    %9 = vector.extract_strided_slice %2 {offsets = [1, 256], sizes = [831, 128], strides = [1, 1]} : vector<832x420xf32> to vector<831x128xf32>
    %10 = tpu.concatenate %9, %3 in 0 : vector<831x128xf32>, vector<1x128xf32> -> vector<832x128xf32>
    %11 = arith.addf %8, %10 : vector<832x128xf32>
    %12 = vector.extract_strided_slice %2 {offsets = [0, 384], sizes = [832, 36], strides = [1, 1]} : vector<832x420xf32> to vector<832x36xf32>
    %13 = vector.extract_strided_slice %12 {offsets = [0, 12], sizes = [832, 12], strides = [1, 1]} : vector<832x36xf32> to vector<832x12xf32>
    %14 = vector.extract_strided_slice %12 {offsets = [0, 0], sizes = [831, 12], strides = [1, 1]} : vector<832x36xf32> to vector<831x12xf32>
    %15 = tpu.concatenate %4, %14 in 0 : vector<1x12xf32>, vector<831x12xf32> -> vector<832x12xf32>
    %16 = arith.addf %13, %15 : vector<832x12xf32>
    %17 = vector.extract_strided_slice %12 {offsets = [1, 24], sizes = [831, 12], strides = [1, 1]} : vector<832x36xf32> to vector<831x12xf32>
    %18 = tpu.concatenate %17, %4 in 0 : vector<831x12xf32>, vector<1x12xf32> -> vector<832x12xf32>
    %19 = arith.addf %16, %18 : vector<832x12xf32>
    %20 = tpu.iota {dimensions = array<i32: 0>} : vector<104x1xi32>
    %c2_i32 = arith.constant 2 : i32
    %21 = vector.broadcast %c2_i32 : i32 to vector<104x1xi32>
    %22 = arith.cmpi sge, %20, %21 : vector<104x1xi32>
    %c102_i32 = arith.constant 102 : i32
    %23 = vector.broadcast %c102_i32 : i32 to vector<104x1xi32>
    %24 = arith.cmpi slt, %20, %23 : vector<104x1xi32>
    %25 = arith.andi %22, %24 : vector<104x1xi1>
    %cst_5 = arith.constant 0.000000e+00 : f32
    %cst_6 = arith.constant -1.000000e+30 : f32
    %26 = vector.broadcast %cst_5 : f32 to vector<104x1xf32>
    %27 = vector.broadcast %cst_6 : f32 to vector<104x1xf32>
    %28 = arith.select %25, %26, %27 : vector<104x1xi1>, vector<104x1xf32>
    %29 = vector.shape_cast %28 : vector<104x1xf32> to vector<1x104x1xf32>
    %30 = vector.shape_cast %11 : vector<832x128xf32> to vector<8x104x128xf32>
    %31 = vector.broadcast %29 : vector<1x104x1xf32> to vector<8x104x128xf32>
    %32 = arith.addf %30, %31 : vector<8x104x128xf32>
    %cst_7 = arith.constant dense<0xFF800000> : vector<8x128xf32>
    %33 = vector.multi_reduction <maximumf>, %32, %cst_7 [1] : vector<8x104x128xf32> to vector<8x128xf32>
    %34 = vector.shape_cast %19 : vector<832x12xf32> to vector<8x104x12xf32>
    %35 = vector.broadcast %29 : vector<1x104x1xf32> to vector<8x104x12xf32>
    %36 = arith.addf %34, %35 : vector<8x104x12xf32>
    %cst_8 = arith.constant dense<0xFF800000> : vector<8x12xf32>
    %37 = vector.multi_reduction <maximumf>, %36, %cst_8 [1] : vector<8x104x12xf32> to vector<8x12xf32>
    %38 = tpu.concatenate %33, %37 in 1 : vector<8x128xf32>, vector<8x12xf32> -> vector<8x140xf32>
    %c0_9 = arith.constant 0 : index
    %c0_10 = arith.constant 0 : index
    %39 = vector.load %arg3[%c0_9, %c0_10] : memref<1x140xf32, #tpu.memory_space<vmem>>, vector<1x140xf32>
    %40 = vector.broadcast %39 : vector<1x140xf32> to vector<8x140xf32>
    %41 = arith.addf %38, %40 : vector<8x140xf32>
    %cst_11 = arith.constant 0.000000e+00 : f32
    %42 = vector.broadcast %cst_11 : f32 to vector<8x140xf32>
    %43 = arith.maximumf %41, %42 : vector<8x140xf32>
    %44 = arith.truncf %43 : vector<8x140xf32> to vector<8x140xbf16>
    %c0_12 = arith.constant 0 : index
    %c0_13 = arith.constant 0 : index
    %45 = vector.load %arg4[%c0_12, %c0_13] : memref<140x50xbf16, #tpu.memory_space<vmem>>, vector<140x50xbf16>
    %cst_14 = arith.constant dense<0.000000e+00> : vector<8x50xf32>
    %46 = tpu.matmul %44, %45, %cst_14 {dimension_numbers = #tpu.dot_dimension_numbers<[1], [0], [0], [1], [0, 0, 1, 1], [], []>} : vector<8x140xbf16>, vector<140x50xbf16>, vector<8x50xf32> -> vector<8x50xf32>
    %c0_15 = arith.constant 0 : index
    %c0_16 = arith.constant 0 : index
    %47 = vector.load %arg5[%c0_15, %c0_16] : memref<1x50xf32, #tpu.memory_space<vmem>>, vector<1x50xf32>
    %48 = vector.broadcast %47 : vector<1x50xf32> to vector<8x50xf32>
    %49 = arith.addf %46, %48 : vector<8x50xf32>
    %cst_17 = arith.constant 0.000000e+00 : f32
    %50 = vector.broadcast %cst_17 : f32 to vector<8x50xf32>
    %51 = arith.maximumf %49, %50 : vector<8x50xf32>
    %52 = arith.truncf %51 : vector<8x50xf32> to vector<8x50xbf16>
    %c0_18 = arith.constant 0 : index
    %c0_19 = arith.constant 0 : index
    %53 = vector.load %arg6[%c0_18, %c0_19] : memref<50x128xbf16, #tpu.memory_space<vmem>>, vector<50x128xbf16>
    %cst_20 = arith.constant dense<0.000000e+00> : vector<8x128xf32>
    %54 = tpu.matmul %52, %53, %cst_20 {dimension_numbers = #tpu.dot_dimension_numbers<[1], [0], [0], [1], [0, 0, 1, 1], [], []>} : vector<8x50xbf16>, vector<50x128xbf16>, vector<8x128xf32> -> vector<8x128xf32>
    %c0_21 = arith.constant 0 : index
    %c0_22 = arith.constant 0 : index
    %55 = vector.load %arg7[%c0_21, %c0_22] : memref<1x128xf32, #tpu.memory_space<vmem>>, vector<1x128xf32>
    %56 = vector.broadcast %55 : vector<1x128xf32> to vector<8x128xf32>
    %57 = arith.addf %54, %56 : vector<8x128xf32>
    %c0_23 = arith.constant 0 : index
    %c0_24 = arith.constant 0 : index
    %58 = vector.load %arg8[%c0_23, %c0_24] : memref<8x128xf32, #tpu.memory_space<vmem>>, vector<8x128xf32>
    tpu.vector_store %arg8[%c0_23, %c0_24], %57 {strides = array<i32>} : memref<8x128xf32, #tpu.memory_space<vmem>>, vector<8x128xf32>,
    return
  }
  func.func @transform_0(%arg0: i32) -> (i32, i32) {
    %c0_i32 = arith.constant 0 : i32
    %c0_i32_0 = arith.constant 0 : i32
    return %arg0, %c0_i32 : i32, i32
  }
  func.func @transform_1(%arg0: i32) -> (i32, i32) {
    %c0_i32 = arith.constant 0 : i32
    %c0_i32_0 = arith.constant 0 : i32
    %c0_i32_1 = arith.constant 0 : i32
    return %c0_i32, %c0_i32_0 : i32, i32
  }
  func.func @transform_2(%arg0: i32) -> (i32, i32) {
    %c0_i32 = arith.constant 0 : i32
    %c0_i32_0 = arith.constant 0 : i32
    %c0_i32_1 = arith.constant 0 : i32
    return %c0_i32, %c0_i32_0 : i32, i32
  }
  func.func @transform_3(%arg0: i32) -> (i32, i32) {
    %c0_i32 = arith.constant 0 : i32
    %c0_i32_0 = arith.constant 0 : i32
    %c0_i32_1 = arith.constant 0 : i32
    return %c0_i32, %c0_i32_0 : i32, i32
  }
  func.func @transform_4(%arg0: i32) -> (i32, i32) {
    %c0_i32 = arith.constant 0 : i32
    %c0_i32_0 = arith.constant 0 : i32
    %c0_i32_1 = arith.constant 0 : i32
    return %c0_i32, %c0_i32_0 : i32, i32
  }
  func.func @transform_5(%arg0: i32) -> (i32, i32) {
    %c0_i32 = arith.constant 0 : i32
    %c0_i32_0 = arith.constant 0 : i32
    %c0_i32_1 = arith.constant 0 : i32
    return %c0_i32, %c0_i32_0 : i32, i32
  }
  func.func @transform_6(%arg0: i32) -> (i32, i32) {
    %c0_i32 = arith.constant 0 : i32
    %c0_i32_0 = arith.constant 0 : i32
    %c0_i32_1 = arith.constant 0 : i32
    return %c0_i32, %c0_i32_0 : i32, i32
  }
  func.func @transform_7(%arg0: i32) -> (i32, i32) {
    %c0_i32 = arith.constant 0 : i32
    %c0_i32_0 = arith.constant 0 : i32
    return %arg0, %c0_i32 : i32, i32
  }
}

</mosaic_0001>

<bundles_post_ra>
// kernel: net_forward.1
= control target key start
LH: loop header
LB: loop body
LE: loop exit
PB: predicated region body
PF: predicated region fallthrough
CT: control target
= control target key end

     0   :  { %12 = vsyncpa [#allocation3], 0  ;;  %s13053_s0 = inlined_call_operand.vmem [shape: bf16[1664,410], index: 0, kind: input, shape index: {}]   ;;  %s13054_s1 = inlined_call_operand.vmem [shape: bf16[410,420], index: 1, kind: input, shape index: {}]   ;;  %s13055_s2 = inlined_call_operand.vmem [shape: f32[1,140], index: 2, kind: input, shape index: {}]   ;;  %s13056_s3 = inlined_call_operand.vmem [shape: bf16[140,50], index: 3, kind: input, shape index: {}]   ;;  %s13057_s4 = inlined_call_operand.vmem [shape: f32[1,50], index: 4, kind: input, shape index: {}]   ;;  %s13058_s5 = inlined_call_operand.vmem [shape: bf16[50,128], index: 5, kind: input, shape index: {}]   ;;  %s13059_s6 = inlined_call_operand.vmem [shape: f32[1,128], index: 6, kind: input, shape index: {}]   ;;  %s13060_s7 = inlined_call_operand.hbm [shape: f32[16,128], index: 7, kind: output, shape index: {}]  }
   0x1   :  { %14 = vsyncpa [#allocation3 + $0x1], 0  ;;  %s9196_s24 = smov 0   ;;  %s9198_s25 = smov 0  }
   0x2   :  { %s9200_s26 = smov 0   ;;  %s9202_s27 = smov 0  }
   0x3 LB: > { %s9217_s28 = sadd.s32 4294967295, %s9147_s27   ;;  %s7889_s29 = sadd.s32 4294967294, %s9147_s27   ;;  %s9147_s27 = sphi %s9202_s27, %s13621_s27   ;;  %s9143_s26 = sphi %s9200_s26, %s13620_s26   ;;  %s9139_s25 = sphi %s9198_s25, %s13619_s25   ;;  %s9135_s24 = sphi %s9196_s24, %s13618_s24  }
   0x4   : > { %s9221_s30 = sadd.s32 1, %s9147_s27   ;;  %s179_s8 = sadd.s32 1, %s9143_s26 }
   0x5   : > { %s176_s9 = ssub.s32 %s9147_s27, %s9221_s30  ;;  %p189_p0 = scmp.ne.s32.totalorder %s9143_s26, %s9139_s25 }
   0x6   : > { %p177_p1 = scmp.eq.s32.totalorder %s176_s9, 0  ;;  %p190_p2 = scmp.eq.s32.totalorder %s9217_s28, 1 }
   0x7   : > { %p195_p3 = scmp.ne.s32.totalorder %s9139_s25, %s9135_s24  ;;  %p196_p4 = scmp.eq.s32.totalorder %s7889_s29, 1 }
   0x8   : > { %s9232_s10 = scalar_select %p177_p1, %s9143_s26, %s179_s8  }
   0x9   : > { %p9234_p5 = por %p190_p2, %p189_p0  ;;  %p9238_p6 = por %p196_p4, %p195_p3 }
   0xa   : > { %p7892_p7 = scmp.ge.s32.totalorder %s9147_s27, 1  ;;  %p242_p8 = scmp.lt.s32.totalorder %s9147_s27, 3 }
   0xc   : > { %p243_p9 = pnand %p7892_p7, %p242_p8 }
   0xe   : > { %246 = sbr.rel (%p243_p9) target bundleno = 1793 (0x701), region = 48 }
  0x13   : > { %v8398_v0 = vld [vmem:[%s13054_s1 + $0xe4] ss:$16 sps:$4 sm:$0xff]   ;;  %v8400_v1 = vld [vmem:[%s13054_s1 + $0xe0] ss:$16 sps:$4 sm:$0xff]   ;;  %s275_s21 = smul.u32 104, %s9217_s28  ;;  %vm2099_vm0 = vcmask 211968  }
  0x14   : > { %2269 = vmatprep.subr.bf16.mxu0 %v8398_v0  ;;  %v8401_v2 = vld [vmem:[%s13054_s1 + $0xc4] ss:$16 sps:$4 sm:$0xff]   ;;  %v8403_v3 = vld [vmem:[%s13054_s1 + $0xc0] ss:$16 sps:$4 sm:$0xff]   ;;  %vm2256_vm1 = vcmask 1044480   ;;  %vm4585_vm2 = vcmask 1040384  }
  0x15   : > { %2270 = vmatpush1.bf16.msra.mxu0 %v8400_v1  ;;  %v8404_v4 = vld [vmem:[%s13054_s1 + $0xa4] ss:$16 sps:$4 sm:$0xff]   ;;  %v8406_v5 = vld [vmem:[%s13054_s1 + $0xa0] ss:$16 sps:$4 sm:$0xff]   ;;  %p276_p10 = scmp.lt.s32.totalorder %s275_s21, 207  ;;  %vm5106_vm3 = vcmask 1046528  }
  0x16   : > { %2271 = vmatprep.subr.bf16.mxu0 %v8401_v2  ;;  %v8413_v6 = vld [vmem:[%s13054_s1 + $0x2e4] ss:$16 sps:$4 sm:$0xff]   ;;  %v8417_v8 = vld [vmem:[%s13054_s1 + $0x2e0] ss:$16 sps:$4 sm:$0xff]   ;;  %v8484_v47 = vld [vmem:[%s13054_s1 + $0xec] ss:$16 sps:$4 sm:$0xff]  }
  0x17   : > { %v8407_v7 = vld [vmem:[%s13054_s1 + $0x84] ss:$16 sps:$4 sm:$0xff]   ;;  %2822 = vmatprep.subr.bf16.mxu1 %v8413_v6  ;;  %v8409_v10 = vld [vmem:[%s13054_s1 + $0x80] ss:$16 sps:$4 sm:$0xff]   ;;  %s13623_s21 = smov (!%p276_p10, %s275_s21), 207  ;;  %s9149_s14 = smov 12  }
  0x18   : > { %2823 = vmatpush1.bf16.msra.mxu1 %v8417_v8  ;;  %v8419_v9 = vld [vmem:[%s13054_s1 + $0x2c4] ss:$16 sps:$4 sm:$0xff]   ;;  %v8423_v12 = vld [vmem:[%s13054_s1 + $0x2c0] ss:$16 sps:$4 sm:$0xff]   ;;  %s8335_s19 = sshll.u32 %s13623_s21, 4  ;;  %s9151_s21 = smov 116  }
  0x19   : > { %2272 = vmatpush1.bf16.msra.mxu0 %v8403_v3  ;;  %v8410_v11 = vld [vmem:[%s13054_s1 + $0x64] ss:$16 sps:$4 sm:$0xff]   ;;  %2824 = vmatprep.subr.bf16.mxu1 %v8419_v9  ;;  %v8412_v14 = vld [vmem:[%s13054_s1 + $0x60] ss:$16 sps:$4 sm:$0xff]   ;;  %s9347_s15 = scalar_lea.vmem %s13053_s0, %s8335_s19  ;;  %v8482_v50 = vld [vmem:[%s13054_s1 + $0xe8] ss:$16 sps:$4 sm:$0xff]  }
  0x1a   : > { %2273 = vmatprep.subr.bf16.mxu0 %v8404_v4  ;;  %v8425_v13 = vld [vmem:[%s13054_s1 + $0x2a4] ss:$16 sps:$4 sm:$0xff]   ;;  %v8429_v15 = vld [vmem:[%s13054_s1 + $0x2a0] ss:$16 sps:$4 sm:$0xff]   ;;  %v8475_v36 = vld [vmem:[%s9347_s15 + $0xc] ss:$16 sps:$4 sm:$0xff]  }
  0x1b   : > { %v8431_v16 = vld [vmem:[%s13054_s1 + $0x284] ss:$16 sps:$4 sm:$0xff]   ;;  %v8435_v18 = vld [vmem:[%s13054_s1 + $0x280] ss:$16 sps:$4 sm:$0xff]   ;;  %8209 = vmatprep.mubr.msk.bf16.mxu1 %vm2099_vm0, %v8475_v36  ;;  %v8473_v49 = vld [vmem:[%s9347_s15 + $0x8] ss:$16 sps:$4 sm:$0xff]  }
  0x1c   : > { %2825 = vmatpush1.bf16.msra.mxu1 %v8423_v12  ;;  %v8415_v17 = vld [vmem:[%s13054_s1 + $0x44] ss:$16 sps:$4 sm:$0xff]   ;;  %v8418_v19 = vld [vmem:[%s13054_s1 + $0x40] ss:$16 sps:$4 sm:$0xff]   ;;  %v8488_v51 = vld [vmem:[%s9347_s15 + $0x2c] ss:$16 sps:$4 sm:$0xff]  }
  0x1d   : > { %2274 = vmatpush1.bf16.msra.mxu0 %v8406_v5  ;;  %2826 = vmatprep.subr.bf16.mxu1 %v8425_v13  ;;  %v8437_v20 = vld [vmem:[%s13054_s1 + $0x264] ss:$16 sps:$4 sm:$0xff]   ;;  %v8424_v22 = vld [vmem:[%s13054_s1 + $0x20] ss:$16 sps:$4 sm:$0xff]   ;;  %v8508_v54 = vld [vmem:[%s13054_s1 + $0xc8] ss:$16 sps:$4 sm:$0xff]  }
  0x1e   : > { %2275 = vmatprep.subr.bf16.mxu0 %v8407_v7  ;;  %v8421_v21 = vld [vmem:[%s13054_s1 + $0x24] ss:$16 sps:$4 sm:$0xff]   ;;  %v8441_v23 = vld [vmem:[%s13054_s1 + $0x260] ss:$16 sps:$4 sm:$0xff]   ;;  %v8510_v55 = vld [vmem:[%s13054_s1 + $0xcc] ss:$16 sps:$4 sm:$0xff]  }
  0x1f   : > { %v8443_v24 = vld [vmem:[%s13054_s1 + $0x244] ss:$16 sps:$4 sm:$0xff]   ;;  %v8447_v26 = vld [vmem:[%s13054_s1 + $0x240] ss:$16 sps:$4 sm:$0xff]   ;;  %v8490_v58 = vld [vmem:[%s9347_s15 + $0x28] ss:$16 sps:$4 sm:$0xff]  }
  0x20   : > { %2827 = vmatpush1.bf16.msra.mxu1 %v8429_v15  ;;  %v8427_v25 = vld [vmem:[%s13054_s1 + $0x4] ss:$16 sps:$4 sm:$0xff]   ;;  %v8430_v27 = vld [vmem:[%s13054_s1] ss:$16 sps:$4 sm:$0xff]   ;;  %v8494_v59 = vld [vmem:[%s9347_s15 + $0x4c] ss:$16 sps:$4 sm:$0xff]  }
  0x21   : > { %2276 = vmatpush1.bf16.msra.mxu0 %v8409_v10  ;;  %2828 = vmatprep.subr.bf16.mxu1 %v8431_v16  ;;  %v8449_v28 = vld [vmem:[%s13054_s1 + $0x224] ss:$16 sps:$4 sm:$0xff]   ;;  %v8436_v30 = vld [vmem:[%s13054_s1 + $0x1e0] ss:$16 sps:$4 sm:$0xff]   ;;  %v8487_v63 = vld [vmem:[%s13054_s1 + $0x2ec] ss:$16 sps:$4 sm:$0xff]  }
  0x22   : > { %2277 = vmatprep.subr.bf16.mxu0 %v8410_v11  ;;  %v8433_v29 = vld [vmem:[%s13054_s1 + $0x1e4] ss:$16 sps:$4 sm:$0xff]   ;;  %v8453_v31 = vld [vmem:[%s13054_s1 + $0x220] ss:$16 sps:$4 sm:$0xff]   ;;  %v8496_v0 = vld [vmem:[%s9347_s15 + $0x48] ss:$16 sps:$4 sm:$0xff]  }
  0x23   : > { %v8455_v32 = vld [vmem:[%s13054_s1 + $0x204] ss:$16 sps:$4 sm:$0xff]   ;;  %v8459_v34 = vld [vmem:[%s13054_s1 + $0x200] ss:$16 sps:$4 sm:$0xff]   ;;  %v8533_v1 = vld [vmem:[%s13054_s1 + $0xa8] ss:$16 sps:$4 sm:$0xff]  }
  0x24   : > { %2829 = vmatpush1.bf16.msra.mxu1 %v8435_v18  ;;  %v8439_v33 = vld [vmem:[%s13054_s1 + $0x1c4] ss:$16 sps:$4 sm:$0xff]   ;;  %v8442_v37 = vld [vmem:[%s13054_s1 + $0x1c0] ss:$16 sps:$4 sm:$0xff]   ;;  %v8535_v2 = vld [vmem:[%s13054_s1 + $0xac] ss:$16 sps:$4 sm:$0xff]  }
  0x25   : > { %2278 = vmatpush1.bf16.msra.mxu0 %v8412_v14  ;;  %2830 = vmatprep.subr.bf16.mxu1 %v8437_v20  ;;  %v8461_v35 = vld [vmem:[%s13054_s1 + $0x324] ss:$16 sps:$4 sm:$0x1f]   ;;  %v8465_v38 = vld [vmem:[%s13054_s1 + $0x320] ss:$16 sps:$4 sm:$0x1f]  }
  0x26   : > { %2279 = vmatprep.subr.bf16.mxu0 %v8415_v17  ;;  %v8445_v39 = vld [vmem:[%s13054_s1 + $0x1a4] ss:$16 sps:$4 sm:$0xff]   ;;  %v8448_v41 = vld [vmem:[%s13054_s1 + $0x1a0] ss:$16 sps:$4 sm:$0xff]   ;;  %v2258_v42 = vsel %vm2256_vm1, %v8465_v38, 0  ;;  %vm7554_vm6 = vcmask 1041409  }
  0x27   : > { %v8481_v40 = vld [vmem:[%s9347_s15 + $0x4] ss:$16 sps:$4 sm:$0xff]   ;;  %v8471_v45 = vld [vmem:[%s13054_s1 + $0x300] ss:$16 sps:$4 sm:$0xff]   ;;  %v8500_v4 = vld [vmem:[%s9347_s15 + $0x6c] ss:$16 sps:$4 sm:$0xff]  }
  0x28   : > { %2831 = vmatpush1.bf16.msra.mxu1 %v8441_v23  ;;  %v8467_v43 = vld [vmem:[%s13054_s1 + $0x304] ss:$16 sps:$4 sm:$0xff]   ;;  %2301 = vmatprep.mubr.bf16.mxu0 %v8481_v40  ;;  %v8454_v46 = vld [vmem:[%s13054_s1 + $0x180] ss:$16 sps:$4 sm:$0xff]   ;;  %v8485_v5 = vld [vmem:[%s13054_s1 + $0x2e8] ss:$16 sps:$4 sm:$0xff]  }
  0x29   : > { %2280 = vmatpush1.bf16.msra.mxu0 %v8418_v19  ;;  %2832 = vmatprep.subr.bf16.mxu1 %v8443_v24  ;;  %v8451_v44 = vld [vmem:[%s13054_s1 + $0x184] ss:$16 sps:$4 sm:$0xff]   ;;  %v8460_v52 = vld [vmem:[%s13054_s1 + $0x160] ss:$16 sps:$4 sm:$0xff]   ;;  %v8525_v7 = vld [vmem:[%s13054_s1 + $0x2cc] ss:$16 sps:$4 sm:$0xff]  }
  0x2a   : > { %2281 = vmatprep.subr.bf16.mxu0 %v8421_v21  ;;  %v8457_v48 = vld [vmem:[%s13054_s1 + $0x164] ss:$16 sps:$4 sm:$0xff]   ;;  %v8466_v56 = vld [vmem:[%s13054_s1 + $0x140] ss:$16 sps:$4 sm:$0xff]   ;;  %v8523_v8 = vld [vmem:[%s13054_s1 + $0x2c8] ss:$16 sps:$4 sm:$0xff]  }
  0x2b   : > { %v8463_v53 = vld [vmem:[%s13054_s1 + $0x144] ss:$16 sps:$4 sm:$0xff]   ;;  %v8472_v60 = vld [vmem:[%s13054_s1 + $0x120] ss:$16 sps:$4 sm:$0xff]   ;;  %v8502_v10 = vld [vmem:[%s9347_s15 + $0x68] ss:$16 sps:$4 sm:$0xff]  }
  0x2c   : > { %2833 = vmatpush1.bf16.msra.mxu1 %v8447_v26  ;;  %v8469_v57 = vld [vmem:[%s13054_s1 + $0x124] ss:$16 sps:$4 sm:$0xff]   ;;  %v8478_v62 = vld [vmem:[%s13054_s1 + $0x100] ss:$16 sps:$4 sm:$0xff]   ;;  %v8506_v11 = vld [vmem:[%s9347_s15 + $0x8c] ss:$16 sps:$4 sm:$0xff]  }
  0x2d   : > { %2282 = vmatpush1.bf16.msra.mxu0 %v8424_v22  ;;  %2834 = vmatprep.subr.bf16.mxu1 %v8449_v28  ;;  %v8476_v61 = vld [vmem:[%s13054_s1 + $0x104] ss:$16 sps:$4 sm:$0xff]   ;;  %v8479_v3 = vld [vmem:[%s9347_s15] ss:$16 sps:$4 sm:$0xff]   ;;  %v8556_v12 = vld [vmem:[%s13054_s1 + $0x8c] ss:$16 sps:$4 sm:$0xff]  }
  0x2e   : > { %2283 = vmatprep.subr.bf16.mxu0 %v8427_v25  ;;  %v8491_v6 = vld [vmem:[%s9347_s15 + $0x24] ss:$16 sps:$4 sm:$0xff]   ;;  %v8493_v9 = vld [vmem:[%s9347_s15 + $0x20] ss:$16 sps:$4 sm:$0xff]   ;;  %v8554_v14 = vld [vmem:[%s13054_s1 + $0x88] ss:$16 sps:$4 sm:$0xff]  }
  0x2f   : > { %v8497_v13 = vld [vmem:[%s9347_s15 + $0x44] ss:$16 sps:$4 sm:$0xff]   ;;  %v8563_v15 = vld [vmem:[%s13054_s1 + $0x2a8] ss:$16 sps:$4 sm:$0xff]   ;;  %v8565_v16 = vld [vmem:[%s13054_s1 + $0x2ac] ss:$16 sps:$4 sm:$0xff]  }
  0x30   : > { %2835 = vmatpush1.bf16.msra.mxu1 %v8453_v31  ;;  %v8511_v17 = vld [vmem:[%s9347_s15 + $0x88] ss:$16 sps:$4 sm:$0xff]   ;;  %v8499_v18 = vld [vmem:[%s9347_s15 + $0x40] ss:$16 sps:$4 sm:$0xff]   ;;  %v8515_v19 = vld [vmem:[%s9347_s15 + $0xac] ss:$16 sps:$4 sm:$0xff]  }
  0x31   : > { %2284 = vmatpush1.bf16.msra.mxu0 %v8430_v27  ;;  %2836 = vmatprep.subr.bf16.mxu1 %v8455_v32  ;;  %v8503_v20 = vld [vmem:[%s9347_s15 + $0x64] ss:$16 sps:$4 sm:$0xff]   ;;  %v8581_v21 = vld [vmem:[%s13054_s1 + $0x68] ss:$16 sps:$4 sm:$0xff]   ;;  %v8583_v22 = vld [vmem:[%s13054_s1 + $0x6c] ss:$16 sps:$4 sm:$0xff]  }
  0x32   : > { %2285 = vmatprep.subr.bf16.mxu0 %v8433_v29  ;;  %v8517_v23 = vld [vmem:[%s9347_s15 + $0xa8] ss:$16 sps:$4 sm:$0xff]   ;;  %v8505_v24 = vld [vmem:[%s9347_s15 + $0x60] ss:$16 sps:$4 sm:$0xff]   ;;  %v8521_v25 = vld [vmem:[%s9347_s15 + $0xcc] ss:$16 sps:$4 sm:$0xff]  }
  0x33   : > { %v8512_v26 = vld [vmem:[%s9347_s15 + $0x84] ss:$16 sps:$4 sm:$0xff]   ;;  %v8599_v27 = vld [vmem:[%s13054_s1 + $0x288] ss:$16 sps:$4 sm:$0xff]   ;;  %v8601_v28 = vld [vmem:[%s13054_s1 + $0x28c] ss:$16 sps:$4 sm:$0xff]  }
  0x34   : > { %2837 = vmatpush1.bf16.msra.mxu1 %v8459_v34  ;;  %v8514_v29 = vld [vmem:[%s9347_s15 + $0x80] ss:$16 sps:$4 sm:$0xff]   ;;  %v8530_v31 = vld [vmem:[%s9347_s15 + $0xec] ss:$16 sps:$4 sm:$0xff]   ;;  %v8607_v34 = vld [vmem:[%s13054_s1 + $0x48] ss:$16 sps:$4 sm:$0xff]  }
  0x35   : > { %2286 = vmatpush2.bf16.msra.mxu0 %v8436_v30  ;;  %8208 = vmatprep.subr.msk.bf16.mxu1 %vm2256_vm1, %v8461_v35  ;;  %v8526_v30 = vld [vmem:[%s9347_s15 + $0xc8] ss:$16 sps:$4 sm:$0xff]   ;;  %v8609_v32 = vld [vmem:[%s13054_s1 + $0x4c] ss:$16 sps:$4 sm:$0xff]   ;;  %v8520_v35 = vld [vmem:[%s9347_s15 + $0xa0] ss:$16 sps:$4 sm:$0xff]  }
  0x36   : > { %2287 = vmatprep.subr.bf16.mxu0 %v8439_v33  ;;  %v8518_v33 = vld [vmem:[%s9347_s15 + $0xa4] ss:$16 sps:$4 sm:$0xff]   ;;  %v8532_v36 = vld [vmem:[%s9347_s15 + $0xe8] ss:$16 sps:$4 sm:$0xff]   ;;  %v8539_v38 = vld [vmem:[%s9347_s15 + $0x10c] ss:$16 sps:$4 sm:$0xff]  }
  0x37   : > { %v8631_v40 = vld [vmem:[%s13054_s1 + $0x2c] ss:$16 sps:$4 sm:$0xff]   ;;  %vm7556_vm7 = vcmask 1042434   ;;  %vm7297_vm8 = vcmask 195680   ;;  %vm7558_vm9 = vcmask 1043459   ;;  %vm7560_vm10 = vcmask 1044484  }
  0x38   : > { %2851 = vmatpush2.bf16.msra.mxu1 %v2258_v42  ;;  %v8642_v42 = vld [vmem:[%s13054_s1 + $0x26c] ss:$16 sps:$4 sm:$0xff]   ;;  %vm7562_vm11 = vcmask 1045509   ;;  %vm7564_vm12 = vcmask 1046534   ;;  %vm7566_vm13 = vcmask 1047559   ;;  %vm7687_vm14 = vcmask 1045504  }
  0x39   : > { %2288 = vmatpush2.bf16.msra.mxu0 %v8442_v37  ;;  %2852 = vmatprep.subr.bf16.mxu1 %v8467_v43  ;;  %v8527_v37 = vld [vmem:[%s9347_s15 + $0xc4] ss:$16 sps:$4 sm:$0xff]   ;;  %v8541_v43 = vld [vmem:[%s9347_s15 + $0x108] ss:$16 sps:$4 sm:$0xff]   ;;  %vm7683_vm15 = vcmask 97280   ;;  %s272_s20 = sand.u32 1, %s9139_s25  }
  0x3a   : > { %2289 = vmatprep.subr.bf16.mxu0 %v8445_v39  ;;  %v8629_v39 = vld [vmem:[%s13054_s1 + $0x28] ss:$16 sps:$4 sm:$0xff]   ;;  %s8332_s23 = sshll.u32 %s9217_s28, 7  ;;  %s9155_s28 = smov [#allocation2]  }
  0x3b   : > { %s13012_s13 = scalar_lea.hbm %s13060_s7, %s8332_s23  ;;  %s9091_s17 = sshll.u32 %s9155_s28, 4  ;;  %s9092_s17 = int_to_ptr.vmem [resolvable:$false] %s9091_s17 }
  0x3c   : > { %2853 = vmatpush2.bf16.msra.mxu1 %v8471_v45  ;;  %v8545_v45 = vld [vmem:[%s9347_s15 + $0x12c] ss:$16 sps:$4 sm:$0xff]   ;;  %s9093_s18 = scalar_lea.vmem %s9092_s17, 256 }
  0x3d   : > { %2290 = vmatpush2.bf16.msra.mxu0 %v8448_v41  ;;  %3375 = vmatprep.subr.bf16.mxu1 %v8484_v47  ;;  %v8640_v41 = vld [vmem:[%s13054_s1 + $0x268] ss:$16 sps:$4 sm:$0xff]  }
  0x3e   : > { %2291 = vmatprep.subr.bf16.mxu0 %v8451_v44  ;;  %v8529_v44 = vld [vmem:[%s9347_s15 + $0xc0] ss:$16 sps:$4 sm:$0xff]   ;;  %v8653_v47 = vld [vmem:[%s13054_s1 + $0x8] ss:$16 sps:$4 sm:$0xff]  }
  0x3f   : > { %2855 = vmatmul.mubr.bf16.vlgmr.msra.gmra.mxu1 %v8473_v49  ;;  %v8547_v49 = vld [vmem:[%s9347_s15 + $0x128] ss:$16 sps:$4 sm:$0xff]  }
  0x40   : > { %3376 = vmatpush1.bf16.msra.mxu1 %v8482_v50  ;;  %8210 = vmatprep.mubr.msk.bf16.mxu1 %vm2099_vm0, %v8488_v51  ;;  %v8538_v50 = vld [vmem:[%s9347_s15 + $0xe0] ss:$16 sps:$4 sm:$0xff]   ;;  %v8551_v51 = vld [vmem:[%s9347_s15 + $0x14c] ss:$16 sps:$4 sm:$0xff]  }
  0x41   : > { %2292 = vmatpush2.bf16.msra.mxu0 %v8454_v46  ;;  %3377 = vmatprep.subr.bf16.mxu1 %v8510_v55  ;;  %v8536_v46 = vld [vmem:[%s9347_s15 + $0xe4] ss:$16 sps:$4 sm:$0xff]   ;;  %v8560_v55 = vld [vmem:[%s9347_s15 + $0x16c] ss:$16 sps:$4 sm:$0xff]  }
  0x42   : > { %2293 = vmatprep.subr.bf16.mxu0 %v8457_v48  ;;  %v8655_v48 = vld [vmem:[%s13054_s1 + $0xc] ss:$16 sps:$4 sm:$0xff]  }
  0x44   : > { %3378 = vmatpush1.bf16.msra.mxu1 %v8508_v54  ;;  %v8544_v54 = vld [vmem:[%s9347_s15 + $0x100] ss:$16 sps:$4 sm:$0xff]  }
  0x45   : > { %2294 = vmatpush2.bf16.msra.mxu0 %v8460_v52  ;;  %3379 = vmatprep.subr.bf16.mxu1 %v8535_v2  ;;  %v8542_v52 = vld [vmem:[%s9347_s15 + $0x104] ss:$16 sps:$4 sm:$0xff]   ;;  %v8568_v2 = vld [vmem:[%s9347_s15 + $0x160] ss:$16 sps:$4 sm:$0xff]  }
  0x46   : > { %2295 = vmatprep.subr.bf16.mxu0 %v8463_v53  ;;  %v8553_v53 = vld [vmem:[%s9347_s15 + $0x148] ss:$16 sps:$4 sm:$0xff]  }
  0x47   : > { %2865 = vmatmul.mubr.bf16.gmra.mxu1 %v8490_v58  ;;  %v8550_v58 = vld [vmem:[%s9347_s15 + $0x120] ss:$16 sps:$4 sm:$0xff]  }
  0x48   : > { %8211 = vmatprep.mubr.msk.bf16.mxu1 %vm2099_vm0, %v8494_v59  ;;  %3380 = vmatpush1.bf16.msra.mxu1 %v8533_v1  ;;  %v8569_v59 = vld [vmem:[%s9347_s15 + $0x18c] ss:$16 sps:$4 sm:$0xff]   ;;  %v8577_v1 = vld [vmem:[%s9347_s15 + $0x1a8] ss:$16 sps:$4 sm:$0xff]  }
  0x49   : > { %2296 = vmatpush2.bf16.msra.mxu0 %v8466_v56  ;;  %3381 = vmatprep.subr.bf16.mxu1 %v8556_v12  ;;  %v8548_v56 = vld [vmem:[%s9347_s15 + $0x124] ss:$16 sps:$4 sm:$0xff]  }
  0x4a   : > { %2297 = vmatprep.subr.bf16.mxu0 %v8469_v57  ;;  %v8562_v57 = vld [vmem:[%s9347_s15 + $0x168] ss:$16 sps:$4 sm:$0xff]   ;;  %v8578_v12 = vld [vmem:[%s9347_s15 + $0x1a4] ss:$16 sps:$4 sm:$0xff]  }
  0x4c   : > { %3382 = vmatpush1.bf16.msra.mxu1 %v8554_v14  ;;  %v8580_v14 = vld [vmem:[%s9347_s15 + $0x1a0] ss:$16 sps:$4 sm:$0xff]  }
  0x4d   : > { %2298 = vmatpush2.bf16.msra.mxu0 %v8472_v60  ;;  %3383 = vmatprep.subr.bf16.mxu1 %v8583_v22  ;;  %v8557_v60 = vld [vmem:[%s9347_s15 + $0x144] ss:$16 sps:$4 sm:$0xff]   ;;  %v8705_v22 = vld [vmem:[%s13054_s1 + $0x1cc] ss:$16 sps:$4 sm:$0xff]  }
  0x4e   : > { %2299 = vmatprep.subr.bf16.mxu0 %v8476_v61  ;;  %v8571_v61 = vld [vmem:[%s9347_s15 + $0x188] ss:$16 sps:$4 sm:$0xff]  }
  0x4f   : > { %2875 = vmatmul.mubr.bf16.gmra.mxu1 %v8496_v0  ;;  %v8566_v0 = vld [vmem:[%s9347_s15 + $0x164] ss:$16 sps:$4 sm:$0xff]  }
  0x50   : > { %8212 = vmatprep.mubr.msk.bf16.mxu1 %vm2099_vm0, %v8500_v4  ;;  %3384 = vmatpush1.bf16.msra.mxu1 %v8581_v21  ;;  %v8677_v4 = vld [vmem:[%s13054_s1 + $0x1e8] ss:$16 sps:$4 sm:$0xff]  }
  0x51   : > { %2300 = vmatpush2.bf16.msra.mxu0 %v8478_v62  ;;  %3385 = vmatprep.subr.bf16.mxu1 %v8609_v32  ;;  %v8559_v62 = vld [vmem:[%s9347_s15 + $0x140] ss:$16 sps:$4 sm:$0xff]   ;;  %v8703_v21 = vld [vmem:[%s13054_s1 + $0x1c8] ss:$16 sps:$4 sm:$0xff]   ;;  %v8720_v32 = vld [vmem:[%s13054_s1 + $0x22c] ss:$16 sps:$4 sm:$0xff]  }
  0x52   : > { %3928 = vmatprep.subr.bf16.mxu0 %v8487_v63  ;;  %v8575_v63 = vld [vmem:[%s9347_s15 + $0x1ac] ss:$16 sps:$4 sm:$0xff]  }
  0x54   : > { %2302 = vmatmul.mubr.bf16.vlgmr.msra.gmra.mxu0 %v8479_v3  ;;  %3386 = vmatpush1.bf16.msra.mxu1 %v8607_v34  ;;  %v8584_v3 = vld [vmem:[%s9347_s15 + $0x1cc] ss:$16 sps:$4 sm:$0xff]   ;;  %v8613_v34 = vld [vmem:[%s9347_s15 + $0x220] ss:$16 sps:$4 sm:$0xff]  }
  0x55   : > { %3929 = vmatpush1.bf16.msra.mxu0 %v8485_v5  ;;  %2311 = vmatprep.mubr.bf16.mxu0 %v8491_v6  ;;  %v8679_v5 = vld [vmem:[%s13054_s1 + $0x1ec] ss:$16 sps:$4 sm:$0xff]   ;;  %v8680_v6 = vld [vmem:[%s13054_s1 + $0x248] ss:$16 sps:$4 sm:$0xff]  }
  0x56   : > { %3930 = vmatprep.subr.bf16.mxu0 %v8525_v7  ;;  %3387 = vmatprep.subr.bf16.mxu1 %v8631_v40  ;;  %v8682_v7 = vld [vmem:[%s13054_s1 + $0x24c] ss:$16 sps:$4 sm:$0xff]   ;;  %v8619_v40 = vld [vmem:[%s9347_s15 + $0x240] ss:$16 sps:$4 sm:$0xff]  }
  0x57   : > { %2885 = vmatmul.mubr.bf16.gmra.mxu1 %v8502_v10  ;;  %v8574_v10 = vld [vmem:[%s9347_s15 + $0x180] ss:$16 sps:$4 sm:$0xff]  }
  0x58   : > { %8213 = vmatprep.mubr.msk.bf16.mxu1 %vm2099_vm0, %v8506_v11  ;;  %3388 = vmatpush1.bf16.msra.mxu1 %v8629_v39  ;;  %v8590_v11 = vld [vmem:[%s9347_s15 + $0x1ec] ss:$16 sps:$4 sm:$0xff]   ;;  %v8628_v39 = vld [vmem:[%s9347_s15 + $0x288] ss:$16 sps:$4 sm:$0xff]  }
  0x59   : > { %3931 = vmatpush1.bf16.msra.mxu0 %v8523_v8  ;;  %3389 = vmatprep.subr.bf16.mxu1 %v8655_v48  ;;  %v8572_v8 = vld [vmem:[%s9347_s15 + $0x184] ss:$16 sps:$4 sm:$0xff]   ;;  %v8634_v48 = vld [vmem:[%s9347_s15 + $0x280] ss:$16 sps:$4 sm:$0xff]  }
  0x5a   : > { %3932 = vmatprep.subr.bf16.mxu0 %v8565_v16  ;;  %v8587_v16 = vld [vmem:[%s9347_s15 + $0x1c4] ss:$16 sps:$4 sm:$0xff]  }
  0x5c   : > { %2312 = vmatmul.mubr.bf16.gmra.mxu0 %v8493_v9  ;;  %3390 = vmatpush1.bf16.msra.mxu1 %v8653_v47  ;;  %v8586_v9 = vld [vmem:[%s9347_s15 + $0x1c8] ss:$16 sps:$4 sm:$0xff]  }
  0x5d   : > { %2321 = vmatprep.mubr.bf16.mxu0 %v8497_v13  ;;  %3933 = vmatpush1.bf16.msra.mxu0 %v8563_v15  ;;  %v8592_v13 = vld [vmem:[%s9347_s15 + $0x1e8] ss:$16 sps:$4 sm:$0xff]   ;;  %v8596_v15 = vld [vmem:[%s9347_s15 + $0x20c] ss:$16 sps:$4 sm:$0xff]  }
  0x5e   : > { %3934 = vmatprep.subr.bf16.mxu0 %v8601_v28  ;;  %3391 = vmatprep.subr.bf16.mxu1 %v8679_v5  ;;  %v8604_v28 = vld [vmem:[%s9347_s15 + $0x200] ss:$16 sps:$4 sm:$0xff]   ;;  %v8646_v47 = vld [vmem:[%s9347_s15 + $0x2c8] ss:$16 sps:$4 sm:$0xff]   ;;  %v8662_v5 = vld [vmem:[%s9347_s15 + $0x304] ss:$16 sps:$4 sm:$0xff]  }
  0x5f   : > { %2895 = vmatmul.mubr.bf16.gmra.mxu1 %v8511_v17  ;;  %v8598_v17 = vld [vmem:[%s9347_s15 + $0x208] ss:$16 sps:$4 sm:$0xff]  }
  0x60   : > { %8214 = vmatprep.mubr.msk.bf16.mxu1 %vm2099_vm0, %v8515_v19  ;;  %3392 = vmatpush2.bf16.msra.mxu1 %v8677_v4  ;;  %v8605_v19 = vld [vmem:[%s9347_s15 + $0x22c] ss:$16 sps:$4 sm:$0xff]  }
  0x61   : > { %3935 = vmatpush1.bf16.msra.mxu0 %v8599_v27  ;;  %3393 = vmatprep.subr.bf16.mxu1 %v8705_v22  ;;  %v8616_v27 = vld [vmem:[%s9347_s15 + $0x248] ss:$16 sps:$4 sm:$0xff]   ;;  %v8671_v4 = vld [vmem:[%s9347_s15 + $0x34c] ss:$16 sps:$4 sm:$0xff]  }
  0x62   : > { %3936 = vmatprep.subr.bf16.mxu0 %v8642_v42  ;;  %v8623_v42 = vld [vmem:[%s9347_s15 + $0x264] ss:$16 sps:$4 sm:$0xff]  }
  0x64   : > { %2322 = vmatmul.mubr.bf16.gmra.mxu0 %v8499_v18  ;;  %v8589_v18 = vld [vmem:[%s9347_s15 + $0x1c0] ss:$16 sps:$4 sm:$0xff]   ;;  %3394 = vmatpush2.bf16.msra.mxu1 %v8703_v21 }
  0x65   : > { %2331 = vmatprep.mubr.bf16.mxu0 %v8503_v20  ;;  %3937 = vmatpush1.bf16.msra.mxu0 %v8640_v41  ;;  %v8593_v20 = vld [vmem:[%s9347_s15 + $0x1e4] ss:$16 sps:$4 sm:$0xff]   ;;  %v8635_v41 = vld [vmem:[%s9347_s15 + $0x2ac] ss:$16 sps:$4 sm:$0xff]  }
  0x66   : > { %3938 = vmatprep.subr.bf16.mxu0 %v8682_v7 }
  0x67   : > { %2905 = vmatmul.mubr.bf16.gmra.mxu1 %v8517_v23  ;;  %v8610_v23 = vld [vmem:[%s9347_s15 + $0x228] ss:$16 sps:$4 sm:$0xff]  }
  0x68   : > { %8215 = vmatprep.mubr.msk.bf16.mxu1 %vm2099_vm0, %v8521_v25  ;;  %v8614_v25 = vld [vmem:[%s9347_s15 + $0x24c] ss:$16 sps:$4 sm:$0xff]  }
  0x69   : > { %3939 = vmatpush1.bf16.msra.mxu0 %v8680_v6 }
  0x6a   : > { %3940 = vmatprep.subr.bf16.mxu0 %v8720_v32 }
  0x6c   : > { %2332 = vmatmul.mubr.bf16.gmra.mxu0 %v8505_v24  ;;  %v8595_v24 = vld [vmem:[%s9347_s15 + $0x1e0] ss:$16 sps:$4 sm:$0xff]  }
  0x6d   : > { %2341 = vmatprep.mubr.bf16.mxu0 %v8512_v26  ;;  %v8602_v26 = vld [vmem:[%s9347_s15 + $0x204] ss:$16 sps:$4 sm:$0xff]  }
  0x6f   : > { %2915 = vmatmul.mubr.bf16.gmra.mxu1 %v8526_v30  ;;  %v8611_v30 = vld [vmem:[%s9347_s15 + $0x224] ss:$16 sps:$4 sm:$0xff]  }
  0x70   : > { %8216 = vmatprep.mubr.msk.bf16.mxu1 %vm2099_vm0, %v8530_v31  ;;  %v8718_v31 = vld [vmem:[%s13054_s1 + $0x228] ss:$16 sps:$4 sm:$0xff]  }
  0x71   : > { %3941 = vmatpush1.bf16.msra.mxu0 %v8718_v31  ;;  %v8674_v31 = vld [vmem:[%s9347_s15 + $0x344] ss:$16 sps:$4 sm:$0xff]  }
  0x74   : > { %2342 = vmatmul.mubr.bf16.gmra.mxu0 %v8514_v29  ;;  %v8620_v29 = vld [vmem:[%s9347_s15 + $0x26c] ss:$16 sps:$4 sm:$0xff]  }
  0x75   : > { %2351 = vmatprep.mubr.bf16.mxu0 %v8518_v33  ;;  %v8622_v33 = vld [vmem:[%s9347_s15 + $0x268] ss:$16 sps:$4 sm:$0xff]  }
  0x77   : > { %2925 = vmatmul.mubr.bf16.gmra.mxu1 %v8532_v36  ;;  %v8617_v36 = vld [vmem:[%s9347_s15 + $0x244] ss:$16 sps:$4 sm:$0xff]  }
  0x78   : > { %8217 = vmatprep.mubr.msk.bf16.mxu1 %vm2099_vm0, %v8539_v38  ;;  %v8730_v38 = vld [vmem:[%s13054_s1 + $0x1ac] ss:$16 sps:$4 sm:$0xff]  }
  0x79   : > { %3395 = vmatprep.subr.bf16.mxu1 %v8730_v38 }
  0x7c   : > { %2352 = vmatmul.mubr.bf16.gmra.mxu0 %v8520_v35  ;;  %v8626_v35 = vld [vmem:[%s9347_s15 + $0x28c] ss:$16 sps:$4 sm:$0xff]  }
  0x7d   : > { %2361 = vmatprep.mubr.bf16.mxu0 %v8527_v37  ;;  %v8728_v37 = vld [vmem:[%s13054_s1 + $0x1a8] ss:$16 sps:$4 sm:$0xff]  }
  0x7e   : > { %3396 = vmatpush2.bf16.msra.mxu1 %v8728_v37 }
  0x7f   : > { %2935 = vmatmul.mubr.bf16.gmra.mxu1 %v8541_v43  ;;  %v8637_v43 = vld [vmem:[%s9347_s15 + $0x2a8] ss:$16 sps:$4 sm:$0xff]  }
  0x80   : > { %8218 = vmatprep.mubr.msk.bf16.mxu1 %vm2099_vm0, %v8545_v45  ;;  %v8644_v45 = vld [vmem:[%s9347_s15 + $0x2cc] ss:$16 sps:$4 sm:$0xff]  }
  0x84   : > { %2362 = vmatmul.mubr.bf16.gmra.mxu0 %v8529_v44  ;;  %v8625_v44 = vld [vmem:[%s9347_s15 + $0x260] ss:$16 sps:$4 sm:$0xff]  }
  0x85   : > { %2371 = vmatprep.mubr.bf16.mxu0 %v8536_v46  ;;  %v8632_v46 = vld [vmem:[%s9347_s15 + $0x284] ss:$16 sps:$4 sm:$0xff]  }
  0x87   : > { %2945 = vmatmul.mubr.bf16.gmra.mxu1 %v8547_v49  ;;  %v8650_v49 = vld [vmem:[%s9347_s15 + $0x2ec] ss:$16 sps:$4 sm:$0xff]  }
  0x88   : > { %8219 = vmatprep.mubr.msk.bf16.mxu1 %vm2099_vm0, %v8551_v51  ;;  %v8749_v51 = vld [vmem:[%s13054_s1 + $0x188] ss:$16 sps:$4 sm:$0xff]  }
  0x8c   : > { %2372 = vmatmul.mubr.bf16.gmra.mxu0 %v8538_v50  ;;  %v8638_v50 = vld [vmem:[%s9347_s15 + $0x2a4] ss:$16 sps:$4 sm:$0xff]  }
  0x8d   : > { %2381 = vmatprep.mubr.bf16.mxu0 %v8542_v52  ;;  %v8751_v52 = vld [vmem:[%s13054_s1 + $0x18c] ss:$16 sps:$4 sm:$0xff]  }
  0x8e   : > { %3397 = vmatprep.subr.bf16.mxu1 %v8751_v52 }
  0x8f   : > { %2955 = vmatmul.mubr.bf16.gmra.mxu1 %v8553_v53  ;;  %v8652_v53 = vld [vmem:[%s9347_s15 + $0x2e8] ss:$16 sps:$4 sm:$0xff]  }
  0x90   : > { %8220 = vmatprep.mubr.msk.bf16.mxu1 %vm2099_vm0, %v8560_v55  ;;  %v8659_v55 = vld [vmem:[%s9347_s15 + $0x30c] ss:$16 sps:$4 sm:$0xff]   ;;  %3398 = vmatpush2.bf16.msra.mxu1 %v8749_v51 }
  0x94   : > { %2382 = vmatmul.mubr.bf16.gmra.mxu0 %v8544_v54  ;;  %v8643_v54 = vld [vmem:[%s9347_s15 + $0x2a0] ss:$16 sps:$4 sm:$0xff]  }
  0x95   : > { %2391 = vmatprep.mubr.bf16.mxu0 %v8548_v56  ;;  %v8647_v56 = vld [vmem:[%s9347_s15 + $0x2c4] ss:$16 sps:$4 sm:$0xff]  }
  0x97   : > { %2965 = vmatmul.mubr.bf16.gmra.mxu1 %v8562_v57  ;;  %v8758_v57 = vld [vmem:[%s13054_s1 + $0x208] ss:$16 sps:$4 sm:$0xff]  }
  0x98   : > { %8221 = vmatprep.mubr.msk.bf16.mxu1 %vm2099_vm0, %v8569_v59  ;;  %v8661_v59 = vld [vmem:[%s9347_s15 + $0x308] ss:$16 sps:$4 sm:$0xff]  }
  0x9c   : > { %2392 = vmatmul.mubr.bf16.gmra.mxu0 %v8550_v58  ;;  %v8760_v58 = vld [vmem:[%s13054_s1 + $0x20c] ss:$16 sps:$4 sm:$0xff]  }
  0x9d   : > { %2401 = vmatprep.mubr.bf16.mxu0 %v8557_v60  ;;  %3942 = vmatprep.subr.bf16.mxu0 %v8760_v58  ;;  %v8649_v60 = vld [vmem:[%s9347_s15 + $0x2c0] ss:$16 sps:$4 sm:$0xff]  }
  0x9e   : > { %3943 = vmatpush1.bf16.msra.mxu0 %v8758_v57 }
  0x9f   : > { %2975 = vmatmul.mubr.bf16.gmra.mxu1 %v8571_v61  ;;  %v8665_v61 = vld [vmem:[%s9347_s15 + $0x32c] ss:$16 sps:$4 sm:$0xff]  }
  0xa0   : > { %8222 = vmatprep.mubr.msk.bf16.mxu1 %vm2099_vm0, %v8575_v63 }
  0xa4   : > { %2402 = vmatmul.mubr.bf16.gmra.mxu0 %v8559_v62  ;;  %v8656_v62 = vld [vmem:[%s9347_s15 + $0x2e4] ss:$16 sps:$4 sm:$0xff]  }
  0xa5   : > { %2411 = vmatprep.mubr.bf16.mxu0 %v8566_v0 }
  0xa7   : > { %2985 = vmatmul.mubr.bf16.gmra.mxu1 %v8577_v1 }
  0xa8   : > { %8223 = vmatprep.mubr.msk.bf16.mxu1 %vm2099_vm0, %v8584_v3  ;;  %v8658_v3 = vld [vmem:[%s9347_s15 + $0x2e0] ss:$16 sps:$4 sm:$0xff]  }
  0xac   : > { %2412 = vmatmul.mubr.bf16.gmra.mxu0 %v8568_v2  ;;  %v8667_v2 = vld [vmem:[%s9347_s15 + $0x328] ss:$16 sps:$4 sm:$0xff]  }
  0xad   : > { %2421 = vmatprep.mubr.bf16.mxu0 %v8572_v8 }
  0xaf   : > { %2995 = vmatmul.mubr.bf16.gmra.mxu1 %v8586_v9 }
  0xb0   : > { %8224 = vmatprep.mubr.msk.bf16.mxu1 %vm2099_vm0, %v8590_v11  ;;  %v8776_v11 = vld [vmem:[%s13054_s1 + $0x168] ss:$16 sps:$4 sm:$0xff]  }
  0xb4   : > { %2422 = vmatmul.mubr.bf16.gmra.mxu0 %v8574_v10  ;;  %v8673_v10 = vld [vmem:[%s9347_s15 + $0x348] ss:$16 sps:$4 sm:$0xff]  }
  0xb5   : > { %2431 = vmatprep.mubr.bf16.mxu0 %v8578_v12  ;;  %v8778_v12 = vld [vmem:[%s13054_s1 + $0x16c] ss:$16 sps:$4 sm:$0xff]  }
  0xb6   : > { %3399 = vmatprep.subr.bf16.mxu1 %v8778_v12 }
  0xb7   : > { %3005 = vmatmul.mubr.bf16.gmra.mxu1 %v8592_v13  ;;  %v8664_v13 = vld [vmem:[%s9347_s15 + $0x300] ss:$16 sps:$4 sm:$0xff]  }
  0xb8   : > { %8225 = vmatprep.mubr.msk.bf16.mxu1 %vm2099_vm0, %v8596_v15  ;;  %v8668_v15 = vld [vmem:[%s9347_s15 + $0x324] ss:$16 sps:$4 sm:$0xff]   ;;  %3400 = vmatpush2.bf16.msra.mxu1 %v8776_v11 }
  0xbc   : > { %2432 = vmatmul.mubr.bf16.gmra.mxu0 %v8580_v14  ;;  %v8683_v14 = vld [vmem:[%s9347_s15 + $0x36c] ss:$16 sps:$4 sm:$0xff]  }
  0xbd   : > { %2441 = vmatprep.mubr.bf16.mxu0 %v8587_v16 }
  0xbf   : > { %3015 = vmatmul.mubr.bf16.gmra.mxu1 %v8598_v17 }
  0xc0   : > { %8226 = vmatprep.mubr.msk.bf16.mxu1 %vm2099_vm0, %v8605_v19 }
  0xc4   : > { %2442 = vmatmul.mubr.bf16.gmra.mxu0 %v8589_v18 }
  0xc5   : > { %2451 = vmatprep.mubr.bf16.mxu0 %v8593_v20 }
  0xc7   : > { %3025 = vmatmul.mubr.bf16.gmra.mxu1 %v8610_v23 }
  0xc8   : > { %8227 = vmatprep.mubr.msk.bf16.mxu1 %vm2099_vm0, %v8614_v25  ;;  %v8685_v25 = vld [vmem:[%s9347_s15 + $0x368] ss:$16 sps:$4 sm:$0xff]  }
  0xcc   : > { %2452 = vmatmul.mubr.bf16.gmra.mxu0 %v8595_v24 }
  0xcd   : > { %2461 = vmatprep.mubr.bf16.mxu0 %v8602_v26 }
  0xcf   : > { %3035 = vmatmul.mubr.bf16.gmra.mxu1 %v8616_v27  ;;  %v8670_v27 = vld [vmem:[%s9347_s15 + $0x320] ss:$16 sps:$4 sm:$0xff]  }
  0xd0   : > { %8228 = vmatprep.mubr.msk.bf16.mxu1 %vm2099_vm0, %v8620_v29 }
  0xd4   : > { %2462 = vmatmul.mubr.bf16.gmra.mxu0 %v8604_v28  ;;  %v8689_v28 = vld [vmem:[%s9347_s15 + $0x38c] ss:$16 sps:$4 sm:$0xff]  }
  0xd5   : > { %2471 = vmatprep.mubr.bf16.mxu0 %v8611_v30 }
  0xd7   : > { %3045 = vmatmul.mubr.bf16.gmra.mxu1 %v8622_v33 }
  0xd8   : > { %8229 = vmatprep.mubr.msk.bf16.mxu1 %vm2099_vm0, %v8626_v35 }
  0xdc   : > { %2472 = vmatmul.mubr.bf16.gmra.mxu0 %v8613_v34 }
  0xdd   : > { %2481 = vmatprep.mubr.bf16.mxu0 %v8617_v36 }
  0xdf   : > { %3055 = vmatmul.mubr.bf16.gmra.mxu1 %v8628_v39 }
  0xe0   : > { %8230 = vmatprep.mubr.msk.bf16.mxu1 %vm2099_vm0, %v8635_v41 }
  0xe4   : > { %2482 = vmatmul.mubr.bf16.gmra.mxu0 %v8619_v40 }
  0xe5   : > { %2491 = vmatprep.mubr.bf16.mxu0 %v8623_v42 }
  0xe7   : > { %3065 = vmatmul.mubr.bf16.gmra.mxu1 %v8637_v43 }
  0xe8   : > { %8231 = vmatprep.mubr.msk.bf16.mxu1 %vm2099_vm0, %v8644_v45 }
  0xec   : > { %2492 = vmatmul.mubr.bf16.gmra.mxu0 %v8625_v44 }
  0xed   : > { %2501 = vmatprep.mubr.bf16.mxu0 %v8632_v46 }
  0xef   : > { %3075 = vmatmul.mubr.bf16.gmra.mxu1 %v8646_v47  ;;  %v8691_v47 = vld [vmem:[%s9347_s15 + $0x388] ss:$16 sps:$4 sm:$0xff]  }
  0xf0   : > { %8232 = vmatprep.mubr.msk.bf16.mxu1 %vm2099_vm0, %v8650_v49  ;;  %v8676_v49 = vld [vmem:[%s9347_s15 + $0x340] ss:$16 sps:$4 sm:$0xff]  }
  0xf4   : > { %2502 = vmatmul.mubr.bf16.gmra.mxu0 %v8634_v48 }
  0xf5   : > { %2511 = vmatprep.mubr.bf16.mxu0 %v8638_v50  ;;  %v8695_v50 = vld [vmem:[%s9347_s15 + $0x3ac] ss:$16 sps:$4 sm:$0xff]  }
  0xf7   : > { %3085 = vmatmul.mubr.bf16.gmra.mxu1 %v8652_v53  ;;  %v8686_v53 = vld [vmem:[%s9347_s15 + $0x364] ss:$16 sps:$4 sm:$0xff]  }
  0xf8   : > { %8233 = vmatprep.mubr.msk.bf16.mxu1 %vm2099_vm0, %v8659_v55 }
  0xfc   : > { %2512 = vmatmul.mubr.bf16.gmra.mxu0 %v8643_v54 }
  0xfd   : > { %2521 = vmatprep.mubr.bf16.mxu0 %v8647_v56 }
  0xff   : > { %v2856_v63 = vpop.f32.mrf.mxu1  ;;  %3095 = vmatmul.mubr.bf16.gmra.mxu1 %v8661_v59 }
 0x100   : > { %8234 = vmatprep.mubr.msk.bf16.mxu1 %vm2099_vm0, %v8665_v61 }
 0x101   : > { %v2858_v0 = vpop.f32.mrf.mxu1 }
 0x103   : > { %v2860_v1 = vpop.f32.mrf.mxu1 }
 0x104   : > { %2522 = vmatmul.mubr.bf16.gmra.mxu0 %v8649_v60  ;;  %v8794_v60 = vld [vmem:[%s13054_s1 + $0x32c] ss:$16 sps:$4 sm:$0x1f]  }
 0x105   : > { %2531 = vmatprep.mubr.bf16.mxu0 %v8656_v62  ;;  %v2862_v6 = vpop.f32.mrf.mxu1  ;;  %8261 = vmatprep.subr.msk.bf16.mxu0 %vm2256_vm1, %v8794_v60  ;;  %v8698_v60 = vld [vmem:[%s9347_s15 + $0x3a0] ss:$16 sps:$4 sm:$0xff]  }
 0x107   : > { %v2866_v7 = vpop.f32.mrf.mxu1  ;;  %3105 = vmatmul.mubr.bf16.gmra.mxu1 %v8667_v2 }
 0x108   : > { %8235 = vmatprep.mubr.msk.bf16.mxu1 %vm2099_vm0, %v8671_v4 }
 0x109   : > { %v2868_v8 = vpop.f32.mrf.mxu1 }
 0x10b   : > { %v2870_v9 = vpop.f32.mrf.mxu1 }
 0x10c   : > { %2532 = vmatmul.mubr.bf16.gmra.mxu0 %v8658_v3  ;;  %v8796_v3 = vld [vmem:[%s13054_s1 + $0x328] ss:$16 sps:$4 sm:$0x1f]  }
 0x10d   : > { %2541 = vmatprep.mubr.bf16.mxu0 %v8662_v5  ;;  %v2872_v16 = vpop.f32.mrf.mxu1  ;;  %v2264_v11 = vsel %vm2256_vm1, %v8796_v3, 0  ;;  %vm7768_vm1 = vcmask 408576  }
 0x10e   : > { %3957 = vmatpush2.bf16.msra.mxu0 %v2264_v11 }
 0x10f   : > { %v2876_v17 = vpop.f32.mrf.mxu1  ;;  %3115 = vmatmul.mubr.bf16.gmra.mxu1 %v8673_v10  ;;  %v8701_v10 = vld [vmem:[%s9347_s15 + $0x3cc] ss:$16 sps:$4 sm:$0xff]  }
 0x110   : > { %8236 = vmatprep.mubr.msk.bf16.mxu1 %vm2099_vm0, %v8683_v14  ;;  %v8694_v14 = vld [vmem:[%s9347_s15 + $0x384] ss:$16 sps:$4 sm:$0xff]  }
 0x111   : > { %v2878_v20 = vpop.f32.mrf.mxu1 }
 0x113   : > { %v9668_v24 = vpop.f32.mrf.mxu1 }
 0x114   : > { %v2303_v18 = vpop.f32.mrf.mxu0  ;;  %2542 = vmatmul.mubr.bf16.gmra.mxu0 %v8664_v13 }
 0x115   : > { %v2857_v19 = vadd.f32 %v2856_v63, %v2303_v18  ;;  %2551 = vmatprep.mubr.bf16.mxu0 %v8668_v15  ;;  %v9675_v32 = vpop.f32.mrf.mxu1  ;;  %v8802_v18 = vld [vmem:[%s13054_s1 + $0x148] ss:$16 sps:$4 sm:$0xff]  }
 0x116   : > { %v2305_v21 = vpop.f32.mrf.mxu0 }
 0x117   : > { %v4586_v22 = vrot.slane %v2857_v19, 7  ;;  %v2859_v23 = vadd.f32 %v2858_v0, %v2305_v21  ;;  %v9679_v37 = vpop.f32.mrf.mxu1  ;;  %3125 = vmatmul.mubr.bf16.gmra.mxu1 %v8685_v25  ;;  %v8804_v19 = vld [vmem:[%s13054_s1 + $0x14c] ss:$16 sps:$4 sm:$0xff]  }
 0x118   : > { %v2307_v26 = vpop.f32.mrf.mxu0  ;;  %8237 = vmatprep.mubr.msk.bf16.mxu1 %vm2099_vm0, %v8689_v28  ;;  %3401 = vmatprep.subr.bf16.mxu1 %v8804_v19  ;;  %v8707_v19 = vld [vmem:[%s9347_s15 + $0x3c0] ss:$16 sps:$4 sm:$0xff]  }
 0x119   : > { %v4897_v29 = vsel %vm4585_vm2, 0.0, %v4586_v22  ;;  %v2861_v30 = vadd.f32 %v2860_v1, %v2307_v26  ;;  %v9683_v41 = vpop.f32.mrf.mxu1  ;;  %3402 = vmatpush2.bf16.msra.mxu1 %v8802_v18 }
 0x11a   : > { %v9677_v33 = vadd.f32 %v4897_v29, %v2859_v23  ;;  %v2309_v34 = vpop.f32.mrf.mxu0 }
 0x11b   : > { %v4587_v35 = vrot.slane %v2861_v30, 7  ;;  %v2863_v36 = vadd.f32 %v2862_v6, %v2309_v34  ;;  %v9687_v46 = vpop.f32.mrf.mxu1 }
 0x11c   : > { %v2313_v38 = vpop.f32.mrf.mxu0  ;;  %2552 = vmatmul.mubr.bf16.gmra.mxu0 %v8670_v27 }
 0x11d   : > { %v4588_v39 = vsel %vm4585_vm2, %v4586_v22, %v4587_v35  ;;  %v2867_v40 = vadd.f32 %v2866_v7, %v2313_v38  ;;  %2561 = vmatprep.mubr.bf16.mxu0 %v8674_v31  ;;  %v9694_v54 = vpop.f32.mrf.mxu1  ;;  %v8697_v7 = vld [vmem:[%s9347_s15 + $0x3a8] ss:$16 sps:$4 sm:$0xff]  }
 0x11e   : > { %v9685_v42 = vadd.f32 %v4588_v39, %v2863_v36  ;;  %v2315_v43 = vpop.f32.mrf.mxu0  ;;  %v8710_v36 = vld [vmem:[%s9347_s15 + $0x3ec] ss:$16 sps:$4 sm:$0xff]   ;;  %v8700_v39 = vld [vmem:[%s9347_s15 + $0x3a4] ss:$16 sps:$4 sm:$0xff]  }
 0x11f   : > { %v4589_v44 = vrot.slane %v2867_v40, 7  ;;  %v2869_v45 = vadd.f32 %v2868_v8, %v2315_v43  ;;  %v9698_v59 = vpop.f32.mrf.mxu1  ;;  %3135 = vmatmul.mubr.bf16.gmra.mxu1 %v8691_v47 }
 0x120   : > { %v2317_v48 = vpop.f32.mrf.mxu0  ;;  %8238 = vmatprep.mubr.msk.bf16.mxu1 %vm2099_vm0, %v8695_v50 }
 0x121   : > { %v4590_v51 = vsel %vm4585_vm2, %v4587_v35, %v4589_v44  ;;  %v2871_v52 = vadd.f32 %v2870_v9, %v2317_v48  ;;  %v9705_v0 = vpop.f32.mrf.mxu1  ;;  %v8688_v9 = vld [vmem:[%s9347_s15 + $0x360] ss:$16 sps:$4 sm:$0xff]  }
 0x122   : > { %v9696_v55 = vadd.f32 %v4590_v51, %v2869_v45  ;;  %v2319_v56 = vpop.f32.mrf.mxu0  ;;  %v8692_v35 = vld [vmem:[%s9347_s15 + $0x380] ss:$16 sps:$4 sm:$0xff]  }
 0x123   : > { %v4591_v57 = vrot.slane %v2871_v52, 7  ;;  %v2873_v58 = vadd.f32 %v2872_v16, %v2319_v56  ;;  %v9713_v6 = vpop.f32.mrf.mxu1 }
 0x124   : > { %v2323_v61 = vpop.f32.mrf.mxu0  ;;  %2562 = vmatmul.mubr.bf16.gmra.mxu0 %v8676_v49 }
 0x125   : > { %v4592_v62 = vsel %vm4585_vm2, %v4589_v44, %v4591_v57  ;;  %v2877_v63 = vadd.f32 %v2876_v17, %v2323_v61  ;;  %2571 = vmatprep.mubr.bf16.mxu0 %v8686_v53  ;;  %v2902_v15 = vpop.f32.mrf.mxu1  ;;  %v8716_v61 = vld [vmem:[%s9347_s15 + $0x40c] ss:$16 sps:$4 sm:$0xff]  }
 0x126   : > { %v9708_v1 = vadd.f32 %v4592_v62, %v2873_v58  ;;  %v2325_v2 = vpop.f32.mrf.mxu0 }
 0x127   : > { %v4593_v4 = vrot.slane %v2877_v63, 7  ;;  %v2879_v5 = vadd.f32 %v2878_v20, %v2325_v2  ;;  %v2906_v22 = vpop.f32.mrf.mxu1  ;;  %3145 = vmatmul.mubr.bf16.gmra.mxu1 %v8697_v7  ;;  %v8709_v2 = vld [vmem:[%s9347_s15 + $0x3c4] ss:$16 sps:$4 sm:$0xff]  }
 0x128   : > { %v2327_v8 = vpop.f32.mrf.mxu0  ;;  %8239 = vmatprep.mubr.msk.bf16.mxu1 %vm2099_vm0, %v8701_v10 }
 0x129   : > { %v4594_v12 = vsel %vm4585_vm2, %v4591_v57, %v4593_v4  ;;  %v2881_v13 = vadd.f32 %v9668_v24, %v2327_v8  ;;  %v2908_v26 = vpop.f32.mrf.mxu1  ;;  %v8712_v57 = vld [vmem:[%s9347_s15 + $0x3e8] ss:$16 sps:$4 sm:$0xff]  }
 0x12a   : > { %v9722_v16 = vadd.f32 %v4594_v12, %v2879_v5  ;;  %v2329_v17 = vpop.f32.mrf.mxu0 }
 0x12b   : > { %v4595_v20 = vrot.slane %v2881_v13, 7  ;;  %v2883_v21 = vadd.f32 %v9675_v32, %v2329_v17  ;;  %v2910_v31 = vpop.f32.mrf.mxu1  ;;  %v8706_v32 = vld [vmem:[%s9347_s15 + $0x3c8] ss:$16 sps:$4 sm:$0xff]  }
 0x12c   : > { %v2333_v23 = vpop.f32.mrf.mxu0  ;;  %2572 = vmatmul.mubr.bf16.gmra.mxu0 %v8688_v9  ;;  %v8721_v17 = vld [vmem:[%s9347_s15 + $0x408] ss:$16 sps:$4 sm:$0xff]  }
 0x12d   : > { %v4596_v24 = vsel %vm4585_vm2, %v4593_v4, %v4595_v20  ;;  %v2887_v25 = vadd.f32 %v9679_v37, %v2333_v23  ;;  %2581 = vmatprep.mubr.bf16.mxu0 %v8694_v14  ;;  %v2912_v40 = vpop.f32.mrf.mxu1 }
 0x12e   : > { %v9734_v27 = vadd.f32 %v4596_v24, %v2883_v21  ;;  %v2335_v28 = vpop.f32.mrf.mxu0  ;;  %v8715_v24 = vld [vmem:[%s9347_s15 + $0x3e4] ss:$16 sps:$4 sm:$0xff]  }
 0x12f   : > { %v4597_v29 = vrot.slane %v2887_v25, 7  ;;  %v2889_v30 = vadd.f32 %v9683_v41, %v2335_v28  ;;  %v2916_v48 = vpop.f32.mrf.mxu1  ;;  %3155 = vmatmul.mubr.bf16.gmra.mxu1 %v8706_v32 }
 0x130   : > { %v2337_v34 = vpop.f32.mrf.mxu0  ;;  %8240 = vmatprep.mubr.msk.bf16.mxu1 %vm2099_vm0, %v8710_v36 }
 0x131   : > { %v4598_v38 = vsel %vm4585_vm2, %v4595_v20, %v4597_v29  ;;  %v2891_v37 = vadd.f32 %v9687_v46, %v2337_v34  ;;  %v2918_v50 = vpop.f32.mrf.mxu1  ;;  %v8725_v20 = vld [vmem:[%s9347_s15 + $0x42c] ss:$16 sps:$4 sm:$0xff]  }
 0x132   : > { %v9743_v43 = vadd.f32 %v4598_v38, %v2889_v30  ;;  %v2339_v44 = vpop.f32.mrf.mxu0 }
 0x133   : > { %v4599_v45 = vrot.slane %v2891_v37, 7  ;;  %v2893_v47 = vadd.f32 %v9694_v54, %v2339_v44  ;;  %v9752_v56 = vpop.f32.mrf.mxu1 }
 0x134   : > { %v2343_v41 = vpop.f32.mrf.mxu0  ;;  %2582 = vmatmul.mubr.bf16.gmra.mxu0 %v8692_v35 }
 0x135   : > { %v4600_v46 = vsel %vm4585_vm2, %v4597_v29, %v4599_v45  ;;  %v2897_v49 = vadd.f32 %v9698_v59, %v2343_v41  ;;  %2591 = vmatprep.mubr.bf16.mxu0 %v8700_v39  ;;  %v2922_v59 = vpop.f32.mrf.mxu1 }
 0x136   : > { %v9749_v51 = vadd.f32 %v4600_v46, %v2893_v47  ;;  %v2345_v52 = vpop.f32.mrf.mxu0  ;;  %v8727_v47 = vld [vmem:[%s9347_s15 + $0x428] ss:$16 sps:$4 sm:$0xff]   ;;  %v8713_v46 = vld [vmem:[%s9347_s15 + $0x3e0] ss:$16 sps:$4 sm:$0xff]  }
 0x137   : > { %v4601_v53 = vrot.slane %v2897_v49, 7  ;;  %v2899_v54 = vadd.f32 %v9705_v0, %v2345_v52  ;;  %v9762_v8 = vpop.f32.mrf.mxu1  ;;  %3165 = vmatmul.mubr.bf16.gmra.mxu1 %v8712_v57  ;;  %v8734_v49 = vld [vmem:[%s9347_s15 + $0x44c] ss:$16 sps:$4 sm:$0xff]  }
 0x138   : > { %v2347_v58 = vpop.f32.mrf.mxu0  ;;  %8241 = vmatprep.mubr.msk.bf16.mxu1 %vm2099_vm0, %v8716_v61 }
 0x139   : > { %v4602_v62 = vsel %vm4585_vm2, %v4599_v45, %v4601_v53  ;;  %v2901_v63 = vadd.f32 %v9713_v6, %v2347_v58  ;;  %v2928_v10 = vpop.f32.mrf.mxu1 }
 0x13a   : > { %v9760_v3 = vadd.f32 %v4602_v62, %v2899_v54  ;;  %v2349_v4 = vpop.f32.mrf.mxu0 }
 0x13b   : > { %v4603_v5 = vrot.slane %v2901_v63, 7  ;;  %v2903_v7 = vadd.f32 %v2902_v15, %v2349_v4  ;;  %v9768_v15 = vpop.f32.mrf.mxu1 }
 0x13c   : > { %v2353_v0 = vpop.f32.mrf.mxu0  ;;  %2592 = vmatmul.mubr.bf16.gmra.mxu0 %v8698_v60 }
 0x13d   : > { %v4604_v6 = vsel %vm4585_vm2, %v4601_v53, %v4603_v5  ;;  %v2907_v9 = vadd.f32 %v2906_v22, %v2353_v0  ;;  %2601 = vmatprep.mubr.bf16.mxu0 %v8709_v2  ;;  %v9775_v25 = vpop.f32.mrf.mxu1  ;;  %v8724_v53 = vld [vmem:[%s9347_s15 + $0x404] ss:$16 sps:$4 sm:$0xff]  }
 0x13e   : > { %v9766_v11 = vadd.f32 %v4604_v6, %v2903_v7  ;;  %v2355_v12 = vpop.f32.mrf.mxu0  ;;  %v8838_v7 = vld [vmem:[%s13054_s1 + $0x30c] ss:$16 sps:$4 sm:$0xff]  }
 0x13f   : > { %v4605_v13 = vrot.slane %v2907_v9, 7  ;;  %v2909_v14 = vadd.f32 %v2908_v26, %v2355_v12  ;;  %v9779_v32 = vpop.f32.mrf.mxu1  ;;  %3175 = vmatmul.mubr.bf16.gmra.mxu1 %v8721_v17  ;;  %v8824_v26 = vld [vmem:[%s13054_s1 + $0x128] ss:$16 sps:$4 sm:$0xff]   ;;  %3958 = vmatprep.subr.bf16.mxu0 %v8838_v7 }
 0x140   : > { %v2357_v18 = vpop.f32.mrf.mxu0  ;;  %8242 = vmatprep.mubr.msk.bf16.mxu1 %vm2099_vm0, %v8725_v20  ;;  %v8736_v12 = vld [vmem:[%s9347_s15 + $0x448] ss:$16 sps:$4 sm:$0xff]  }
 0x141   : > { %v4606_v21 = vsel %vm4585_vm2, %v4603_v5, %v4605_v13  ;;  %v2911_v23 = vadd.f32 %v2910_v31, %v2357_v18  ;;  %v8826_v31 = vld [vmem:[%s13054_s1 + $0x12c] ss:$16 sps:$4 sm:$0xff]   ;;  %v2938_v38 = vpop.f32.mrf.mxu1  ;;  %v8836_v5 = vld [vmem:[%s13054_s1 + $0x308] ss:$16 sps:$4 sm:$0xff]  }
 0x142   : > { %v9777_v22 = vadd.f32 %v4606_v21, %v2909_v14  ;;  %v2359_v28 = vpop.f32.mrf.mxu0  ;;  %3403 = vmatprep.subr.bf16.mxu1 %v8826_v31  ;;  %v8740_v14 = vld [vmem:[%s9347_s15 + $0x46c] ss:$16 sps:$4 sm:$0xff]   ;;  %3959 = vmatpush2.bf16.msra.mxu0 %v8836_v5 }
 0x143   : > { %v4607_v29 = vrot.slane %v2911_v23, 7  ;;  %v2913_v30 = vadd.f32 %v2912_v40, %v2359_v28  ;;  %3404 = vmatpush2.bf16.msra.mxu1 %v8824_v26  ;;  %v9791_v45 = vpop.f32.mrf.mxu1 }
 0x144   : > { %v2363_v34 = vpop.f32.mrf.mxu0  ;;  %2602 = vmatmul.mubr.bf16.gmra.mxu0 %v8707_v19  ;;  %v8733_v19 = vld [vmem:[%s9347_s15 + $0x424] ss:$16 sps:$4 sm:$0xff]  }
 0x145   : > { %v4608_v35 = vsel %vm4585_vm2, %v4605_v13, %v4607_v29  ;;  %v2917_v36 = vadd.f32 %v2916_v48, %v2363_v34  ;;  %2611 = vmatprep.mubr.bf16.mxu0 %v8715_v24  ;;  %v2942_v54 = vpop.f32.mrf.mxu1  ;;  %v8722_v13 = vld [vmem:[%s9347_s15 + $0x400] ss:$16 sps:$4 sm:$0xff]  }
 0x146   : > { %v9789_v37 = vadd.f32 %v4608_v35, %v2913_v30  ;;  %v2365_v39 = vpop.f32.mrf.mxu0 }
 0x147   : > { %v4609_v40 = vrot.slane %v2917_v36, 7  ;;  %v2919_v44 = vadd.f32 %v2918_v50, %v2365_v39  ;;  %v9801_v62 = vpop.f32.mrf.mxu1  ;;  %3185 = vmatmul.mubr.bf16.gmra.mxu1 %v8727_v47  ;;  %v8742_v39 = vld [vmem:[%s9347_s15 + $0x468] ss:$16 sps:$4 sm:$0xff]   ;;  %v8746_v47 = vld [vmem:[%s9347_s15 + $0x48c] ss:$16 sps:$4 sm:$0xff]  }
 0x148   : > { %v2367_v41 = vpop.f32.mrf.mxu0  ;;  %8243 = vmatprep.mubr.msk.bf16.mxu1 %vm2099_vm0, %v8734_v49  ;;  %v8739_v49 = vld [vmem:[%s9347_s15 + $0x444] ss:$16 sps:$4 sm:$0xff]  }
 0x149   : > { %v4610_v52 = vsel %vm4585_vm2, %v4607_v29, %v4609_v40  ;;  %v2921_v48 = vadd.f32 %v9752_v56, %v2367_v41  ;;  %v2948_v2 = vpop.f32.mrf.mxu1 }
 0x14a   : > { %v9799_v57 = vadd.f32 %v4610_v52, %v2919_v44  ;;  %v2369_v58 = vpop.f32.mrf.mxu0  ;;  %v8731_v44 = vld [vmem:[%s9347_s15 + $0x420] ss:$16 sps:$4 sm:$0xff]  }
 0x14b   : > { %v4611_v60 = vrot.slane %v2921_v48, 7  ;;  %v2923_v61 = vadd.f32 %v2922_v59, %v2369_v58  ;;  %v9814_v9 = vpop.f32.mrf.mxu1 }
 0x14c   : > { %v2373_v50 = vpop.f32.mrf.mxu0  ;;  %2612 = vmatmul.mubr.bf16.gmra.mxu0 %v8713_v46 }
 0x14d   : > { %v4612_v63 = vsel %vm4585_vm2, %v4609_v40, %v4611_v60  ;;  %v2927_v56 = vadd.f32 %v9762_v8, %v2373_v50  ;;  %2621 = vmatprep.mubr.bf16.mxu0 %v8724_v53  ;;  %v2952_v20 = vpop.f32.mrf.mxu1 }
 0x14e   : > { %v9806_v4 = vadd.f32 %v4612_v63, %v2923_v61  ;;  %v2375_v59 = vpop.f32.mrf.mxu0 }
 0x14f   : > { %v4613_v0 = vrot.slane %v2927_v56, 7  ;;  %v2929_v6 = vadd.f32 %v2928_v10, %v2375_v59  ;;  %v9825_v28 = vpop.f32.mrf.mxu1  ;;  %3195 = vmatmul.mubr.bf16.gmra.mxu1 %v8736_v12  ;;  %v8848_v56 = vld [vmem:[%s13054_s1 + $0x108] ss:$16 sps:$4 sm:$0xff]   ;;  %v8850_v59 = vld [vmem:[%s13054_s1 + $0x10c] ss:$16 sps:$4 sm:$0xff]  }
 0x150   : > { %v2377_v8 = vpop.f32.mrf.mxu0  ;;  %8244 = vmatprep.mubr.msk.bf16.mxu1 %vm2099_vm0, %v8740_v14  ;;  %3405 = vmatprep.subr.bf16.mxu1 %v8850_v59 }
 0x151   : > { %v4614_v17 = vsel %vm4585_vm2, %v4611_v60, %v4613_v0  ;;  %v2931_v18 = vadd.f32 %v9768_v15, %v2377_v8  ;;  %v2958_v26 = vpop.f32.mrf.mxu1  ;;  %v8755_v8 = vld [vmem:[%s9347_s15 + $0x4ac] ss:$16 sps:$4 sm:$0xff]   ;;  %3406 = vmatpush2.bf16.msra.mxu1 %v8848_v56 }
 0x152   : > { %v9822_v21 = vadd.f32 %v4614_v17, %v2929_v6  ;;  %v2379_v23 = vpop.f32.mrf.mxu0  ;;  %v8748_v6 = vld [vmem:[%s9347_s15 + $0x488] ss:$16 sps:$4 sm:$0xff]   ;;  %v8745_v17 = vld [vmem:[%s9347_s15 + $0x464] ss:$16 sps:$4 sm:$0xff]  }
 0x153   : > { %v4615_v24 = vrot.slane %v2931_v18, 7  ;;  %v2933_v10 = vadd.f32 %v9775_v25, %v2379_v23  ;;  %v9832_v36 = vpop.f32.mrf.mxu1 }
 0x154   : > { %v2383_v29 = vpop.f32.mrf.mxu0  ;;  %2622 = vmatmul.mubr.bf16.gmra.mxu0 %v8722_v13 }
 0x155   : > { %v4616_v15 = vsel %vm4585_vm2, %v4613_v0, %v4615_v24  ;;  %v2937_v30 = vadd.f32 %v9779_v32, %v2383_v29  ;;  %2631 = vmatprep.mubr.bf16.mxu0 %v8733_v19  ;;  %v2962_v52 = vpop.f32.mrf.mxu1 }
 0x156   : > { %v9830_v31 = vadd.f32 %v4616_v15, %v2933_v10  ;;  %v2385_v34 = vpop.f32.mrf.mxu0 }
 0x157   : > { %v4617_v25 = vrot.slane %v2937_v30, 7  ;;  %v2939_v35 = vadd.f32 %v2938_v38, %v2385_v34  ;;  %v9842_v60 = vpop.f32.mrf.mxu1  ;;  %3205 = vmatmul.mubr.bf16.gmra.mxu1 %v8742_v39 }
 0x158   : > { %v2387_v40 = vpop.f32.mrf.mxu0  ;;  %8245 = vmatprep.mubr.msk.bf16.mxu1 %vm2099_vm0, %v8746_v47  ;;  %v8743_v47 = vld [vmem:[%s9347_s15 + $0x460] ss:$16 sps:$4 sm:$0xff]  }
 0x159   : > { %v4618_v41 = vsel %vm4585_vm2, %v4615_v24, %v4617_v25  ;;  %v2941_v46 = vadd.f32 %v9791_v45, %v2387_v40  ;;  %v2968_v50 = vpop.f32.mrf.mxu1  ;;  %v8757_v40 = vld [vmem:[%s9347_s15 + $0x4a8] ss:$16 sps:$4 sm:$0xff]  }
 0x15a   : > { %v9840_v32 = vadd.f32 %v4618_v41, %v2939_v35  ;;  %v2389_v48 = vpop.f32.mrf.mxu0  ;;  %v8764_v41 = vld [vmem:[%s9347_s15 + $0x4cc] ss:$16 sps:$4 sm:$0xff]  }
 0x15b   : > { %v4619_v53 = vrot.slane %v2941_v46, 7  ;;  %v2943_v58 = vadd.f32 %v2942_v54, %v2389_v48  ;;  %v2970_v0 = vpop.f32.mrf.mxu1  ;;  %v8754_v48 = vld [vmem:[%s9347_s15 + $0x484] ss:$16 sps:$4 sm:$0xff]  }
 0x15c   : > { %v2393_v38 = vpop.f32.mrf.mxu0  ;;  %2632 = vmatmul.mubr.bf16.gmra.mxu0 %v8731_v44 }
 0x15d   : > { %v4620_v61 = vsel %vm4585_vm2, %v4617_v25, %v4619_v53  ;;  %v2947_v45 = vadd.f32 %v9801_v62, %v2393_v38  ;;  %2641 = vmatprep.mubr.bf16.mxu0 %v8739_v49  ;;  %v8737_v62 = vld [vmem:[%s9347_s15 + $0x440] ss:$16 sps:$4 sm:$0xff]   ;;  %v2972_v18 = vpop.f32.mrf.mxu1 }
 0x15e   : > { %v9847_v63 = vadd.f32 %v4620_v61, %v2943_v58  ;;  %v2395_v54 = vpop.f32.mrf.mxu0 }
 0x15f   : > { %v4621_v5 = vrot.slane %v2947_v45, 7  ;;  %v2949_v7 = vadd.f32 %v2948_v2, %v2395_v54  ;;  %v2976_v2 = vpop.f32.mrf.mxu1  ;;  %3215 = vmatmul.mubr.bf16.gmra.mxu1 %v8748_v6 }
 0x160   : > { %v2397_v12 = vpop.f32.mrf.mxu0  ;;  %8246 = vmatprep.mubr.msk.bf16.mxu1 %vm2099_vm0, %v8755_v8  ;;  %v8752_v8 = vld [vmem:[%s9347_s15 + $0x480] ss:$16 sps:$4 sm:$0xff]  }
 0x161   : > { %v4622_v13 = vsel %vm4585_vm2, %v4619_v53, %v4621_v5  ;;  %v2951_v14 = vadd.f32 %v9814_v9, %v2397_v12  ;;  %v2978_v30 = vpop.f32.mrf.mxu1  ;;  %v8766_v12 = vld [vmem:[%s9347_s15 + $0x4c8] ss:$16 sps:$4 sm:$0xff]  }
 0x162   : > { %v9861_v19 = vadd.f32 %v4622_v13, %v2949_v7  ;;  %v2399_v23 = vpop.f32.mrf.mxu0  ;;  %v8770_v13 = vld [vmem:[%s9347_s15 + $0x4ec] ss:$16 sps:$4 sm:$0xff]  }
 0x163   : > { %v4623_v24 = vrot.slane %v2951_v14, 7  ;;  %v2953_v10 = vadd.f32 %v2952_v20, %v2399_v23  ;;  %v2980_v39 = vpop.f32.mrf.mxu1  ;;  %v8763_v23 = vld [vmem:[%s9347_s15 + $0x4a4] ss:$16 sps:$4 sm:$0xff]  }
 0x164   : > { %v2403_v29 = vpop.f32.mrf.mxu0  ;;  %2642 = vmatmul.mubr.bf16.gmra.mxu0 %v8737_v62 }
 0x165   : > { %v4624_v9 = vsel %vm4585_vm2, %v4621_v5, %v4623_v24  ;;  %v2957_v15 = vadd.f32 %v9825_v28, %v2403_v29  ;;  %2651 = vmatprep.mubr.bf16.mxu0 %v8745_v17  ;;  %v2982_v53 = vpop.f32.mrf.mxu1 }
 0x166   : > { %v9866_v34 = vadd.f32 %v4624_v9, %v2953_v10  ;;  %v2405_v25 = vpop.f32.mrf.mxu0 }
 0x167   : > { %v4625_v35 = vrot.slane %v2957_v15, 7  ;;  %v2959_v20 = vadd.f32 %v2958_v26, %v2405_v25  ;;  %v2986_v45 = vpop.f32.mrf.mxu1  ;;  %3225 = vmatmul.mubr.bf16.gmra.mxu1 %v8757_v40 }
 0x168   : > { %v2407_v44 = vpop.f32.mrf.mxu0  ;;  %8247 = vmatprep.mubr.msk.bf16.mxu1 %vm2099_vm0, %v8764_v41  ;;  %v8772_v41 = vld [vmem:[%s9347_s15 + $0x4e8] ss:$16 sps:$4 sm:$0xff]  }
 0x169   : > { %v4626_v46 = vsel %vm4585_vm2, %v4623_v24, %v4625_v35  ;;  %v2961_v49 = vadd.f32 %v9832_v36, %v2407_v44  ;;  %v2988_v56 = vpop.f32.mrf.mxu1 }
 0x16a   : > { %v9874_v58 = vadd.f32 %v4626_v46, %v2959_v20  ;;  %v2409_v28 = vpop.f32.mrf.mxu0 }
 0x16b   : > { %v4627_v38 = vrot.slane %v2961_v49, 7  ;;  %v2963_v61 = vadd.f32 %v2962_v52, %v2409_v28  ;;  %v2990_v6 = vpop.f32.mrf.mxu1  ;;  %v8761_v49 = vld [vmem:[%s9347_s15 + $0x4a0] ss:$16 sps:$4 sm:$0xff]  }
 0x16c   : > { %v2413_v26 = vpop.f32.mrf.mxu0  ;;  %2652 = vmatmul.mubr.bf16.gmra.mxu0 %v8743_v47 }
 0x16d   : > { %v4628_v54 = vsel %vm4585_vm2, %v4625_v35, %v4627_v38  ;;  %v2967_v36 = vadd.f32 %v9842_v60, %v2413_v26  ;;  %2661 = vmatprep.mubr.bf16.mxu0 %v8754_v48  ;;  %v2992_v24 = vpop.f32.mrf.mxu1  ;;  %v8779_v48 = vld [vmem:[%s9347_s15 + $0x50c] ss:$16 sps:$4 sm:$0xff]  }
 0x16e   : > { %v9879_v59 = vadd.f32 %v4628_v54, %v2963_v61  ;;  %v2415_v5 = vpop.f32.mrf.mxu0  ;;  %v8769_v61 = vld [vmem:[%s9347_s15 + $0x4c4] ss:$16 sps:$4 sm:$0xff]  }
 0x16f   : > { %v4629_v7 = vrot.slane %v2967_v36, 7  ;;  %v2969_v52 = vadd.f32 %v2968_v50, %v2415_v5  ;;  %v2996_v15 = vpop.f32.mrf.mxu1  ;;  %3235 = vmatmul.mubr.bf16.gmra.mxu1 %v8766_v12 }
 0x170   : > { %v2417_v62 = vpop.f32.mrf.mxu0  ;;  %8248 = vmatprep.mubr.msk.bf16.mxu1 %vm2099_vm0, %v8770_v13 }
 0x171   : > { %v4630_v14 = vsel %vm4585_vm2, %v4627_v38, %v4629_v7  ;;  %v2971_v17 = vadd.f32 %v2970_v0, %v2417_v62  ;;  %v2998_v35 = vpop.f32.mrf.mxu1 }
 0x172   : > { %v9886_v10 = vadd.f32 %v4630_v14, %v2969_v52  ;;  %v2419_v60 = vpop.f32.mrf.mxu0 }
 0x173   : > { %v4631_v29 = vrot.slane %v2971_v17, 7  ;;  %v2973_v9 = vadd.f32 %v2972_v18, %v2419_v60  ;;  %v3000_v18 = vpop.f32.mrf.mxu1  ;;  %v8781_v17 = vld [vmem:[%s9347_s15 + $0x508] ss:$16 sps:$4 sm:$0xff]   ;;  %v8767_v60 = vld [vmem:[%s9347_s15 + $0x4c0] ss:$16 sps:$4 sm:$0xff]  }
 0x174   : > { %v2423_v50 = vpop.f32.mrf.mxu0  ;;  %2662 = vmatmul.mubr.bf16.gmra.mxu0 %v8752_v8 }
 0x175   : > { %v4632_v25 = vsel %vm4585_vm2, %v4629_v7, %v4631_v29  ;;  %v2977_v0 = vadd.f32 %v2976_v2, %v2423_v50  ;;  %2671 = vmatprep.mubr.bf16.mxu0 %v8763_v23  ;;  %v3002_v26 = vpop.f32.mrf.mxu1 }
 0x176   : > { %v9890_v20 = vadd.f32 %v4632_v25, %v2973_v9  ;;  %v2425_v40 = vpop.f32.mrf.mxu0  ;;  %v8775_v25 = vld [vmem:[%s9347_s15 + $0x4e4] ss:$16 sps:$4 sm:$0xff]  }
 0x177   : > { %v4633_v44 = vrot.slane %v2977_v0, 7  ;;  %v2979_v47 = vadd.f32 %v2978_v30, %v2425_v40  ;;  %v3006_v7 = vpop.f32.mrf.mxu1  ;;  %3245 = vmatmul.mubr.bf16.gmra.mxu1 %v8772_v41 }
 0x178   : > { %v2427_v46 = vpop.f32.mrf.mxu0  ;;  %8249 = vmatprep.mubr.msk.bf16.mxu1 %vm2099_vm0, %v8779_v48 }
 0x179   : > { %v4634_v28 = vsel %vm4585_vm2, %v4631_v29, %v4633_v44  ;;  %v2981_v38 = vadd.f32 %v2980_v39, %v2427_v46  ;;  %v3008_v12 = vpop.f32.mrf.mxu1  ;;  %v8785_v29 = vld [vmem:[%s9347_s15 + $0x52c] ss:$16 sps:$4 sm:$0xff]  }
 0x17a   : > { %v9897_v54 = vadd.f32 %v4634_v28, %v2979_v47  ;;  %v2429_v2 = vpop.f32.mrf.mxu0 }
 0x17b   : > { %v4635_v36 = vrot.slane %v2981_v38, 7  ;;  %v2983_v5 = vadd.f32 %v2982_v53, %v2429_v2  ;;  %v3010_v53 = vpop.f32.mrf.mxu1  ;;  %v8787_v2 = vld [vmem:[%s9347_s15 + $0x528] ss:$16 sps:$4 sm:$0xff]  }
 0x17c   : > { %v2433_v30 = vpop.f32.mrf.mxu0  ;;  %2672 = vmatmul.mubr.bf16.gmra.mxu0 %v8761_v49 }
 0x17d   : > { %v4636_v52 = vsel %vm4585_vm2, %v4633_v44, %v4635_v36  ;;  %v2987_v39 = vadd.f32 %v2986_v45, %v2433_v30  ;;  %2681 = vmatprep.mubr.bf16.mxu0 %v8769_v61  ;;  %v3012_v0 = vpop.f32.mrf.mxu1  ;;  %v8791_v30 = vld [vmem:[%s9347_s15 + $0x54c] ss:$16 sps:$4 sm:$0xff]  }
 0x17e   : > { %v9901_v62 = vadd.f32 %v4636_v52, %v2983_v5  ;;  %v2435_v8 = vpop.f32.mrf.mxu0  ;;  %v8773_v5 = vld [vmem:[%s9347_s15 + $0x4e0] ss:$16 sps:$4 sm:$0xff]  }
 0x17f   : > { %v4637_v13 = vrot.slane %v2987_v39, 7  ;;  %v2989_v14 = vadd.f32 %v2988_v56, %v2435_v8  ;;  %v3016_v41 = vpop.f32.mrf.mxu1  ;;  %3255 = vmatmul.mubr.bf16.gmra.mxu1 %v8781_v17  ;;  %v8784_v8 = vld [vmem:[%s9347_s15 + $0x504] ss:$16 sps:$4 sm:$0xff]  }
 0x180   : > { %v2437_v23 = vpop.f32.mrf.mxu0  ;;  %8250 = vmatprep.mubr.msk.bf16.mxu1 %vm2099_vm0, %v8785_v29 }
 0x181   : > { %v4638_v9 = vsel %vm4585_vm2, %v4635_v36, %v4637_v13  ;;  %v2991_v50 = vadd.f32 %v2990_v6, %v2437_v23  ;;  %v3018_v49 = vpop.f32.mrf.mxu1 }
 0x182   : > { %v9908_v40 = vadd.f32 %v4638_v9, %v2989_v14  ;;  %v2439_v45 = vpop.f32.mrf.mxu0 }
 0x183   : > { %v4639_v44 = vrot.slane %v2991_v50, 7  ;;  %v2993_v47 = vadd.f32 %v2992_v24, %v2439_v45  ;;  %v3020_v24 = vpop.f32.mrf.mxu1 }
 0x184   : > { %v2443_v56 = vpop.f32.mrf.mxu0  ;;  %2682 = vmatmul.mubr.bf16.gmra.mxu0 %v8767_v60 }
 0x185   : > { %v4640_v46 = vsel %vm4585_vm2, %v4637_v13, %v4639_v44  ;;  %v2997_v6 = vadd.f32 %v2996_v15, %v2443_v56  ;;  %2691 = vmatprep.mubr.bf16.mxu0 %v8775_v25  ;;  %v3022_v14 = vpop.f32.mrf.mxu1 }
 0x186   : > { %v9912_v48 = vadd.f32 %v4640_v46, %v2993_v47  ;;  %v2445_v28 = vpop.f32.mrf.mxu0  ;;  %v8793_v47 = vld [vmem:[%s9347_s15 + $0x548] ss:$16 sps:$4 sm:$0xff]   ;;  %v8782_v46 = vld [vmem:[%s9347_s15 + $0x500] ss:$16 sps:$4 sm:$0xff]  }
 0x187   : > { %v4641_v38 = vrot.slane %v2997_v6, 7  ;;  %v2999_v61 = vadd.f32 %v2998_v35, %v2445_v28  ;;  %v3026_v60 = vpop.f32.mrf.mxu1  ;;  %3265 = vmatmul.mubr.bf16.gmra.mxu1 %v8787_v2  ;;  %v8800_v6 = vld [vmem:[%s9347_s15 + $0x56c] ss:$16 sps:$4 sm:$0xff]   ;;  %v8790_v2 = vld [vmem:[%s9347_s15 + $0x524] ss:$16 sps:$4 sm:$0xff]  }
 0x188   : > { %v2447_v36 = vpop.f32.mrf.mxu0  ;;  %8251 = vmatprep.mubr.msk.bf16.mxu1 %vm2099_vm0, %v8791_v30 }
 0x189   : > { %v4642_v52 = vsel %vm4585_vm2, %v4639_v44, %v4641_v38  ;;  %v3001_v39 = vadd.f32 %v3000_v18, %v2447_v36  ;;  %v3028_v9 = vpop.f32.mrf.mxu1 }
 0x18a   : > { %v9919_v17 = vadd.f32 %v4642_v52, %v2999_v61  ;;  %v2449_v15 = vpop.f32.mrf.mxu0 }
 0x18b   : > { %v4643_v13 = vrot.slane %v3001_v39, 7  ;;  %v3003_v23 = vadd.f32 %v3002_v26, %v2449_v15  ;;  %v3030_v26 = vpop.f32.mrf.mxu1 }
 0x18c   : > { %v2453_v35 = vpop.f32.mrf.mxu0  ;;  %2692 = vmatmul.mubr.bf16.gmra.mxu0 %v8773_v5 }
 0x18d   : > { %v4644_v29 = vsel %vm4585_vm2, %v4641_v38, %v4643_v13  ;;  %v3007_v18 = vadd.f32 %v3006_v7, %v2453_v35  ;;  %2701 = vmatprep.mubr.bf16.mxu0 %v8784_v8  ;;  %v3032_v36 = vpop.f32.mrf.mxu1 }
 0x18e   : > { %v9923_v50 = vadd.f32 %v4644_v29, %v3003_v23  ;;  %v2455_v25 = vpop.f32.mrf.mxu0  ;;  %v8805_v29 = vld [vmem:[%s9347_s15 + $0x568] ss:$16 sps:$4 sm:$0xff]  }
 0x18f   : > { %v4645_v45 = vrot.slane %v3007_v18, 7  ;;  %v3009_v44 = vadd.f32 %v3008_v12, %v2455_v25  ;;  %v3036_v52 = vpop.f32.mrf.mxu1  ;;  %3275 = vmatmul.mubr.bf16.gmra.mxu1 %v8793_v47  ;;  %v8788_v25 = vld [vmem:[%s9347_s15 + $0x520] ss:$16 sps:$4 sm:$0xff]  }
 0x190   : > { %v2457_v56 = vpop.f32.mrf.mxu0  ;;  %8252 = vmatprep.mubr.msk.bf16.mxu1 %vm2099_vm0, %v8800_v6 }
 0x191   : > { %v4646_v28 = vsel %vm4585_vm2, %v4643_v13, %v4645_v45  ;;  %v3011_v61 = vadd.f32 %v3010_v53, %v2457_v56  ;;  %v3038_v8 = vpop.f32.mrf.mxu1 }
 0x192   : > { %v9930_v5 = vadd.f32 %v4646_v28, %v3009_v44  ;;  %v2459_v7 = vpop.f32.mrf.mxu0  ;;  %v8809_v44 = vld [vmem:[%s9347_s15 + $0x58c] ss:$16 sps:$4 sm:$0xff]  }
 0x193   : > { %v4647_v38 = vrot.slane %v3011_v61, 7  ;;  %v3013_v30 = vadd.f32 %v3012_v0, %v2459_v7  ;;  %v3040_v0 = vpop.f32.mrf.mxu1 }
 0x194   : > { %v2463_v12 = vpop.f32.mrf.mxu0  ;;  %2702 = vmatmul.mubr.bf16.gmra.mxu0 %v8782_v46  ;;  %v8799_v46 = vld [vmem:[%s9347_s15 + $0x544] ss:$16 sps:$4 sm:$0xff]  }
 0x195   : > { %v4648_v39 = vsel %vm4585_vm2, %v4645_v45, %v4647_v38  ;;  %v3017_v53 = vadd.f32 %v3016_v41, %v2463_v12  ;;  %2711 = vmatprep.mubr.bf16.mxu0 %v8790_v2  ;;  %v3042_v6 = vpop.f32.mrf.mxu1 }
 0x196   : > { %v9934_v15 = vadd.f32 %v4648_v39, %v3013_v30  ;;  %v2465_v13 = vpop.f32.mrf.mxu0 }
 0x197   : > { %v4649_v23 = vrot.slane %v3017_v53, 7  ;;  %v3019_v35 = vadd.f32 %v3018_v49, %v2465_v13  ;;  %v3046_v2 = vpop.f32.mrf.mxu1  ;;  %3285 = vmatmul.mubr.bf16.gmra.mxu1 %v8805_v29  ;;  %v8811_v13 = vld [vmem:[%s9347_s15 + $0x588] ss:$16 sps:$4 sm:$0xff]   ;;  %v8797_v29 = vld [vmem:[%s9347_s15 + $0x540] ss:$16 sps:$4 sm:$0xff]  }
 0x198   : > { %v2467_v18 = vpop.f32.mrf.mxu0  ;;  %8253 = vmatprep.mubr.msk.bf16.mxu1 %vm2099_vm0, %v8809_v44  ;;  %v8808_v44 = vld [vmem:[%s9347_s15 + $0x564] ss:$16 sps:$4 sm:$0xff]  }
 0x199   : > { %v4650_v47 = vsel %vm4585_vm2, %v4647_v38, %v4649_v23  ;;  %v3021_v56 = vadd.f32 %v3020_v24, %v2467_v18  ;;  %v3048_v38 = vpop.f32.mrf.mxu1  ;;  %v8815_v18 = vld [vmem:[%s9347_s15 + $0x5ac] ss:$16 sps:$4 sm:$0xff]  }
 0x19a   : > { %v9941_v28 = vadd.f32 %v4650_v47, %v3019_v35  ;;  %v2469_v41 = vpop.f32.mrf.mxu0 }
 0x19b   : > { %v4651_v45 = vrot.slane %v3021_v56, 7  ;;  %v3023_v61 = vadd.f32 %v3022_v14, %v2469_v41  ;;  %v3050_v14 = vpop.f32.mrf.mxu1 }
 0x19c   : > { %v2473_v49 = vpop.f32.mrf.mxu0  ;;  %2712 = vmatmul.mubr.bf16.gmra.mxu0 %v8788_v25 }
 0x19d   : > { %v4652_v7 = vsel %vm4585_vm2, %v4649_v23, %v4651_v45  ;;  %v3027_v24 = vadd.f32 %v3026_v60, %v2473_v49  ;;  %2721 = vmatprep.mubr.bf16.mxu0 %v8799_v46  ;;  %v3052_v56 = vpop.f32.mrf.mxu1 }
 0x19e   : > { %v9945_v30 = vadd.f32 %v4652_v7, %v3023_v61  ;;  %v2475_v12 = vpop.f32.mrf.mxu0 }
 0x19f   : > { %v4653_v39 = vrot.slane %v3027_v24, 7  ;;  %v3029_v53 = vadd.f32 %v3028_v9, %v2475_v12  ;;  %v3056_v61 = vpop.f32.mrf.mxu1  ;;  %3295 = vmatmul.mubr.bf16.gmra.mxu1 %v8811_v13  ;;  %v8806_v13 = vld [vmem:[%s9347_s15 + $0x560] ss:$16 sps:$4 sm:$0xff]  }
 0x1a0   : > { %13166 = vst [vmem:[#allocation5_spill] sm:$0xff] %v9945_v30  ;;  %v2477_v35 = vpop.f32.mrf.mxu0  ;;  %8254 = vmatprep.mubr.msk.bf16.mxu1 %vm2099_vm0, %v8815_v18  ;;  %v8814_v18 = vld [vmem:[%s9347_s15 + $0x584] ss:$16 sps:$4 sm:$0xff]  }
 0x1a1   : > { %v4654_v25 = vsel %vm4585_vm2, %v4651_v45, %v4653_v39  ;;  %v3031_v47 = vadd.f32 %v3030_v26, %v2477_v35  ;;  %v3058_v49 = vpop.f32.mrf.mxu1  ;;  %v8817_v35 = vld [vmem:[%s9347_s15 + $0x5a8] ss:$16 sps:$4 sm:$0xff]  }
 0x1a2   : > { %v9952_v41 = vadd.f32 %v4654_v25, %v3029_v53  ;;  %v2479_v60 = vpop.f32.mrf.mxu0 }
 0x1a3   : > { %v4655_v23 = vrot.slane %v3031_v47, 7  ;;  %v3033_v46 = vadd.f32 %v3032_v36, %v2479_v60  ;;  %v3060_v36 = vpop.f32.mrf.mxu1  ;;  %v8821_v47 = vld [vmem:[%s9347_s15 + $0x5cc] ss:$16 sps:$4 sm:$0xff]  }
 0x1a4   : > { %13167 = vst [vmem:[#allocation6_spill] sm:$0xff] %v9952_v41  ;;  %v2483_v9 = vpop.f32.mrf.mxu0  ;;  %2722 = vmatmul.mubr.bf16.gmra.mxu0 %v8797_v29 }
 0x1a5   : > { %v4656_v45 = vsel %vm4585_vm2, %v4653_v39, %v4655_v23  ;;  %v3037_v26 = vadd.f32 %v3036_v52, %v2483_v9  ;;  %2731 = vmatprep.mubr.bf16.mxu0 %v8808_v44  ;;  %v3062_v41 = vpop.f32.mrf.mxu1 }
 0x1a6   : > { %v9956_v7 = vadd.f32 %v4656_v45, %v3033_v46  ;;  %v2485_v24 = vpop.f32.mrf.mxu0 }
 0x1a7   : > { %v4657_v12 = vrot.slane %v3037_v26, 7  ;;  %v3039_v53 = vadd.f32 %v3038_v8, %v2485_v24  ;;  %v3066_v46 = vpop.f32.mrf.mxu1  ;;  %3305 = vmatmul.mubr.bf16.gmra.mxu1 %v8817_v35  ;;  %v8812_v35 = vld [vmem:[%s9347_s15 + $0x580] ss:$16 sps:$4 sm:$0xff]  }
 0x1a8   : > { %13168 = vst [vmem:[#allocation7_spill] sm:$0xff] %v9956_v7  ;;  %v2487_v25 = vpop.f32.mrf.mxu0  ;;  %8255 = vmatprep.mubr.msk.bf16.mxu1 %vm2099_vm0, %v8821_v47  ;;  %v8820_v47 = vld [vmem:[%s9347_s15 + $0x5a4] ss:$16 sps:$4 sm:$0xff]  }
 0x1a9   : > { %v4658_v29 = vsel %vm4585_vm2, %v4655_v23, %v4657_v12  ;;  %v3041_v60 = vadd.f32 %v3040_v0, %v2487_v25  ;;  %v3068_v9 = vpop.f32.mrf.mxu1  ;;  %v8823_v25 = vld [vmem:[%s9347_s15 + $0x5c8] ss:$16 sps:$4 sm:$0xff]  }
 0x1aa   : > { %v9963_v30 = vadd.f32 %v4658_v29, %v3039_v53  ;;  %v2489_v52 = vpop.f32.mrf.mxu0 }
 0x1ab   : > { %v4659_v39 = vrot.slane %v3041_v60, 7  ;;  %v3043_v44 = vadd.f32 %v3042_v6, %v2489_v52  ;;  %v3070_v6 = vpop.f32.mrf.mxu1  ;;  %v8830_v60 = vld [vmem:[%s9347_s15 + $0x5ec] ss:$16 sps:$4 sm:$0xff]  }
 0x1ac   : > { %13169 = vst [vmem:[#allocation8_spill] sm:$0xff] %v9963_v30  ;;  %v2493_v8 = vpop.f32.mrf.mxu0  ;;  %2732 = vmatmul.mubr.bf16.gmra.mxu0 %v8806_v13 }
 0x1ad   : > { %v4660_v23 = vsel %vm4585_vm2, %v4657_v12, %v4659_v39  ;;  %v3047_v0 = vadd.f32 %v3046_v2, %v2493_v8  ;;  %2741 = vmatprep.mubr.bf16.mxu0 %v8814_v18  ;;  %v3072_v30 = vpop.f32.mrf.mxu1 }
 0x1ae   : > { %v9967_v45 = vadd.f32 %v4660_v23, %v3043_v44  ;;  %v2495_v26 = vpop.f32.mrf.mxu0 }
 0x1af   : > { %v4661_v24 = vrot.slane %v3047_v0, 7  ;;  %v3049_v53 = vadd.f32 %v3048_v38, %v2495_v26  ;;  %v3076_v44 = vpop.f32.mrf.mxu1  ;;  %3315 = vmatmul.mubr.bf16.gmra.mxu1 %v8823_v25  ;;  %v8818_v25 = vld [vmem:[%s9347_s15 + $0x5a0] ss:$16 sps:$4 sm:$0xff]  }
 0x1b0   : > { %13170 = vst [vmem:[#allocation9_spill] sm:$0xff] %v9967_v45  ;;  %v2497_v29 = vpop.f32.mrf.mxu0  ;;  %8256 = vmatprep.mubr.msk.bf16.mxu1 %vm2099_vm0, %v8830_v60  ;;  %v8829_v60 = vld [vmem:[%s9347_s15 + $0x5c4] ss:$16 sps:$4 sm:$0xff]  }
 0x1b1   : > { %v4662_v13 = vsel %vm4585_vm2, %v4659_v39, %v4661_v24  ;;  %v3051_v52 = vadd.f32 %v3050_v14, %v2497_v29  ;;  %v3078_v8 = vpop.f32.mrf.mxu1  ;;  %v8832_v29 = vld [vmem:[%s9347_s15 + $0x5e8] ss:$16 sps:$4 sm:$0xff]  }
 0x1b2   : > { %v9974_v7 = vadd.f32 %v4662_v13, %v3049_v53  ;;  %v2499_v2 = vpop.f32.mrf.mxu0 }
 0x1b3   : > { %v4663_v12 = vrot.slane %v3051_v52, 7  ;;  %v3053_v18 = vadd.f32 %v3052_v56, %v2499_v2  ;;  %v3080_v56 = vpop.f32.mrf.mxu1  ;;  %v8839_v52 = vld [vmem:[%s9347_s15 + $0x60c] ss:$16 sps:$4 sm:$0xff]  }
 0x1b4   : > { %13171 = vst [vmem:[#allocation10_spill] sm:$0xff] %v9974_v7  ;;  %v2503_v38 = vpop.f32.mrf.mxu0  ;;  %2742 = vmatmul.mubr.bf16.gmra.mxu0 %v8812_v35 }
 0x1b5   : > { %v4664_v39 = vsel %vm4585_vm2, %v4661_v24, %v4663_v12  ;;  %v3057_v14 = vadd.f32 %v3056_v61, %v2503_v38  ;;  %2751 = vmatprep.mubr.bf16.mxu0 %v8820_v47  ;;  %v3082_v7 = vpop.f32.mrf.mxu1 }
 0x1b6   : > { %v9978_v23 = vadd.f32 %v4664_v39, %v3053_v18  ;;  %v2505_v0 = vpop.f32.mrf.mxu0 }
 0x1b7   : > { %v4665_v26 = vrot.slane %v3057_v14, 7  ;;  %v3059_v53 = vadd.f32 %v3058_v49, %v2505_v0  ;;  %v3086_v18 = vpop.f32.mrf.mxu1  ;;  %3325 = vmatmul.mubr.bf16.gmra.mxu1 %v8832_v29  ;;  %v8827_v29 = vld [vmem:[%s9347_s15 + $0x5c0] ss:$16 sps:$4 sm:$0xff]  }
 0x1b8   : > { %13172 = vst [vmem:[#allocation11_spill] sm:$0xff] %v9978_v23  ;;  %v2507_v13 = vpop.f32.mrf.mxu0  ;;  %8257 = vmatprep.mubr.msk.bf16.mxu1 %vm2099_vm0, %v8839_v52  ;;  %v8835_v52 = vld [vmem:[%s9347_s15 + $0x5e4] ss:$16 sps:$4 sm:$0xff]  }
 0x1b9   : > { %v4666_v35 = vsel %vm4585_vm2, %v4663_v12, %v4665_v26  ;;  %v3061_v2 = vadd.f32 %v3060_v36, %v2507_v13  ;;  %v3088_v38 = vpop.f32.mrf.mxu1  ;;  %v8841_v13 = vld [vmem:[%s9347_s15 + $0x608] ss:$16 sps:$4 sm:$0xff]  }
 0x1ba   : > { %v9985_v45 = vadd.f32 %v4666_v35, %v3059_v53  ;;  %v2509_v61 = vpop.f32.mrf.mxu0 }
 0x1bb   : > { %v4667_v24 = vrot.slane %v3061_v2, 7  ;;  %v3063_v47 = vadd.f32 %v3062_v41, %v2509_v61  ;;  %v3090_v41 = vpop.f32.mrf.mxu1  ;;  %v8845_v2 = vld [vmem:[%s9347_s15 + $0x62c] ss:$16 sps:$4 sm:$0xff]  }
 0x1bc   : > { %13173 = vst [vmem:[#allocation12_spill] sm:$0xff] %v9985_v45  ;;  %v2513_v49 = vpop.f32.mrf.mxu0  ;;  %2752 = vmatmul.mubr.bf16.gmra.mxu0 %v8818_v25 }
 0x1bd   : > { %v4668_v12 = vsel %vm4585_vm2, %v4665_v26, %v4667_v24  ;;  %v3067_v36 = vadd.f32 %v3066_v46, %v2513_v49  ;;  %2761 = vmatprep.mubr.bf16.mxu0 %v8829_v60  ;;  %v3092_v45 = vpop.f32.mrf.mxu1 }
 0x1be   : > { %v9989_v39 = vadd.f32 %v4668_v12, %v3063_v47  ;;  %v2515_v14 = vpop.f32.mrf.mxu0 }
 0x1bf   : > { %v4669_v0 = vrot.slane %v3067_v36, 7  ;;  %v3069_v53 = vadd.f32 %v3068_v9, %v2515_v14  ;;  %v3096_v47 = vpop.f32.mrf.mxu1  ;;  %3335 = vmatmul.mubr.bf16.gmra.mxu1 %v8841_v13  ;;  %v8833_v13 = vld [vmem:[%s9347_s15 + $0x5e0] ss:$16 sps:$4 sm:$0xff]  }
 0x1c0   : > { %13174 = vst [vmem:[#allocation13_spill] sm:$0xff] %v9989_v39  ;;  %v2517_v35 = vpop.f32.mrf.mxu0  ;;  %8258 = vmatprep.mubr.msk.bf16.mxu1 %vm2099_vm0, %v8845_v2  ;;  %v8844_v2 = vld [vmem:[%s9347_s15 + $0x604] ss:$16 sps:$4 sm:$0xff]  }
 0x1c1   : > { %v4670_v25 = vsel %vm4585_vm2, %v4667_v24, %v4669_v0  ;;  %v3071_v61 = vadd.f32 %v3070_v6, %v2517_v35  ;;  %v3098_v49 = vpop.f32.mrf.mxu1  ;;  %v8847_v35 = vld [vmem:[%s9347_s15 + $0x628] ss:$16 sps:$4 sm:$0xff]  }
 0x1c2   : > { %v9996_v23 = vadd.f32 %v4670_v25, %v3069_v53  ;;  %v2519_v46 = vpop.f32.mrf.mxu0 }
 0x1c3   : > { %v4671_v26 = vrot.slane %v3071_v61, 7  ;;  %v3073_v60 = vadd.f32 %v3072_v30, %v2519_v46  ;;  %v3100_v30 = vpop.f32.mrf.mxu1  ;;  %v8854_v61 = vld [vmem:[%s9347_s15 + $0x64c] ss:$16 sps:$4 sm:$0xff]  }
 0x1c4   : > { %13175 = vst [vmem:[#allocation14_spill] sm:$0xff] %v9996_v23  ;;  %v2523_v9 = vpop.f32.mrf.mxu0  ;;  %2762 = vmatmul.mubr.bf16.gmra.mxu0 %v8827_v29 }
 0x1c5   : > { %v4672_v24 = vsel %vm4585_vm2, %v4669_v0, %v4671_v26  ;;  %v3077_v6 = vadd.f32 %v3076_v44, %v2523_v9  ;;  %2771 = vmatprep.mubr.bf16.mxu0 %v8835_v52  ;;  %v3102_v23 = vpop.f32.mrf.mxu1 }
 0x1c6   : > { %v10000_v12 = vadd.f32 %v4672_v24, %v3073_v60  ;;  %v2525_v36 = vpop.f32.mrf.mxu0 }
 0x1c7   : > { %v4673_v14 = vrot.slane %v3077_v6, 7  ;;  %v3079_v53 = vadd.f32 %v3078_v8, %v2525_v36  ;;  %v3106_v60 = vpop.f32.mrf.mxu1  ;;  %3345 = vmatmul.mubr.bf16.gmra.mxu1 %v8847_v35  ;;  %v8842_v35 = vld [vmem:[%s9347_s15 + $0x600] ss:$16 sps:$4 sm:$0xff]  }
 0x1c8   : > { %13176 = vst [vmem:[#allocation15_spill] sm:$0xff] %v10000_v12  ;;  %v2527_v25 = vpop.f32.mrf.mxu0  ;;  %8259 = vmatprep.mubr.msk.bf16.mxu1 %vm2099_vm0, %v8854_v61  ;;  %v8853_v61 = vld [vmem:[%s9347_s15 + $0x624] ss:$16 sps:$4 sm:$0xff]  }
 0x1c9   : > { %v4674_v29 = vsel %vm4585_vm2, %v4671_v26, %v4673_v14  ;;  %v3081_v46 = vadd.f32 %v3080_v56, %v2527_v25  ;;  %v3108_v9 = vpop.f32.mrf.mxu1  ;;  %v8856_v25 = vld [vmem:[%s9347_s15 + $0x648] ss:$16 sps:$4 sm:$0xff]  }
 0x1ca   : > { %v10007_v39 = vadd.f32 %v4674_v29, %v3079_v53  ;;  %v2529_v44 = vpop.f32.mrf.mxu0 }
 0x1cb   : > { %v4675_v0 = vrot.slane %v3081_v46, 7  ;;  %v3083_v52 = vadd.f32 %v3082_v7, %v2529_v44  ;;  %v3110_v7 = vpop.f32.mrf.mxu1  ;;  %v8860_v46 = vld [vmem:[%s9347_s15 + $0x66c] ss:$16 sps:$4 sm:$0xff]  }
 0x1cc   : > { %13177 = vst [vmem:[#allocation16_spill] sm:$0xff] %v10007_v39  ;;  %v2533_v8 = vpop.f32.mrf.mxu0  ;;  %2772 = vmatmul.mubr.bf16.gmra.mxu0 %v8833_v13 }
 0x1cd   : > { %v4676_v26 = vsel %vm4585_vm2, %v4673_v14, %v4675_v0  ;;  %v3087_v56 = vadd.f32 %v3086_v18, %v2533_v8  ;;  %2781 = vmatprep.mubr.bf16.mxu0 %v8844_v2  ;;  %v3112_v39 = vpop.f32.mrf.mxu1 }
 0x1ce   : > { %v10011_v24 = vadd.f32 %v4676_v26, %v3083_v52  ;;  %v2535_v6 = vpop.f32.mrf.mxu0 }
 0x1cf   : > { %v4677_v36 = vrot.slane %v3087_v56, 7  ;;  %v3089_v53 = vadd.f32 %v3088_v38, %v2535_v6  ;;  %v3116_v52 = vpop.f32.mrf.mxu1  ;;  %3355 = vmatmul.mubr.bf16.gmra.mxu1 %v8856_v25  ;;  %v8851_v25 = vld [vmem:[%s9347_s15 + $0x620] ss:$16 sps:$4 sm:$0xff]  }
 0x1d0   : > { %v2537_v29 = vpop.f32.mrf.mxu0  ;;  %8260 = vmatprep.mubr.msk.bf16.mxu1 %vm2099_vm0, %v8860_v46 }
 0x1d1   : > { %v4678_v13 = vsel %vm4585_vm2, %v4675_v0, %v4677_v36  ;;  %v3091_v44 = vadd.f32 %v3090_v41, %v2537_v29  ;;  %v3118_v41 = vpop.f32.mrf.mxu1 }
 0x1d2   : > { %v10018_v12 = vadd.f32 %v4678_v13, %v3089_v53  ;;  %v2539_v18 = vpop.f32.mrf.mxu0 }
 0x1d3   : > { %v4679_v14 = vrot.slane %v3091_v44, 7  ;;  %v3093_v2 = vadd.f32 %v3092_v45, %v2539_v18  ;;  %v3120_v29 = vpop.f32.mrf.mxu1  ;;  %v8862_v45 = vld [vmem:[%s9347_s15 + $0x668] ss:$16 sps:$4 sm:$0xff]   ;;  %v8859_v18 = vld [vmem:[%s9347_s15 + $0x644] ss:$16 sps:$4 sm:$0xff]  }
 0x1d4   : > { %13178 = vst [vmem:[#allocation17_spill] sm:$0xff] %v10018_v12  ;;  %v2543_v38 = vpop.f32.mrf.mxu0  ;;  %2782 = vmatmul.mubr.bf16.gmra.mxu0 %v8842_v35 }
 0x1d5   : > { %v4680_v8 = vsel %vm4585_vm2, %v4677_v36, %v4679_v14  ;;  %v3097_v0 = vadd.f32 %v3096_v47, %v2543_v38  ;;  %2791 = vmatprep.mubr.bf16.mxu0 %v8853_v61  ;;  %v3122_v46 = vpop.f32.mrf.mxu1 }
 0x1d6   : > { %v10022_v26 = vadd.f32 %v4680_v8, %v3093_v2  ;;  %v2545_v56 = vpop.f32.mrf.mxu0 }
 0x1d7   : > { %v4681_v6 = vrot.slane %v3097_v0, 7  ;;  %v3099_v53 = vadd.f32 %v3098_v49, %v2545_v56  ;;  %v3126_v2 = vpop.f32.mrf.mxu1  ;;  %3365 = vmatmul.mubr.bf16.gmra.mxu1 %v8862_v45  ;;  %v8879_v49 = vld [vmem:[%s9347_s15 + $0x4] ss:$16 sps:$4 sm:$0xff]   ;;  %v8857_v45 = vld [vmem:[%s9347_s15 + $0x640] ss:$16 sps:$4 sm:$0xff]  }
 0x1d8   : > { %v2547_v13 = vpop.f32.mrf.mxu0  ;;  %3407 = vmatprep.mubr.bf16.mxu1 %v8879_v49 }
 0x1d9   : > { %v4682_v35 = vsel %vm4585_vm2, %v4679_v14, %v4681_v6  ;;  %v3101_v44 = vadd.f32 %v3100_v30, %v2547_v13  ;;  %v3128_v30 = vpop.f32.mrf.mxu1 }
 0x1da   : > { %v10028_v12 = vadd.f32 %v4682_v35, %v3099_v53  ;;  %v2549_v47 = vpop.f32.mrf.mxu0 }
 0x1db   : > { %v4683_v36 = vrot.slane %v3101_v44, 7  ;;  %v3103_v61 = vadd.f32 %v3102_v23, %v2549_v47  ;;  %v3130_v23 = vpop.f32.mrf.mxu1  ;;  %v8865_v47 = vld [vmem:[%s9347_s15 + $0x664] ss:$16 sps:$4 sm:$0xff]  }
 0x1dc   : > { %13179 = vst [vmem:[#allocation18_spill] sm:$0xff] %v10028_v12  ;;  %v2553_v38 = vpop.f32.mrf.mxu0  ;;  %2792 = vmatmul.mubr.bf16.gmra.mxu0 %v8851_v25 }
 0x1dd   : > { %v4684_v8 = vsel %vm4585_vm2, %v4681_v6, %v4683_v36  ;;  %v3107_v0 = vadd.f32 %v3106_v60, %v2553_v38  ;;  %2801 = vmatprep.mubr.bf16.mxu0 %v8859_v18  ;;  %v3132_v49 = vpop.f32.mrf.mxu1  ;;  %v8880_v38 = vld [vmem:[%s9347_s15] ss:$16 sps:$4 sm:$0xff]  }
 0x1de   : > { %v10032_v14 = vadd.f32 %v4684_v8, %v3103_v61  ;;  %v2555_v56 = vpop.f32.mrf.mxu0 }
 0x1df   : > { %v4685_v53 = vrot.slane %v3107_v0, 7  ;;  %v3109_v13 = vadd.f32 %v3108_v9, %v2555_v56  ;;  %v3136_v61 = vpop.f32.mrf.mxu1  ;;  %3408 = vmatmul.mubr.bf16.vlgmr.msra.gmra.mxu1 %v8880_v38  ;;  %v8881_v9 = vld [vmem:[%s9347_s15 + $0x24] ss:$16 sps:$4 sm:$0xff]  }
 0x1e0   : > { %13180 = vst [vmem:[#allocation19_spill] sm:$0xff] %v10032_v14  ;;  %v2557_v35 = vpop.f32.mrf.mxu0  ;;  %3417 = vmatprep.mubr.bf16.mxu1 %v8881_v9 }
 0x1e1   : > { %v4686_v25 = vsel %vm4585_vm2, %v4683_v36, %v4685_v53  ;;  %v3111_v44 = vadd.f32 %v3110_v7, %v2557_v35  ;;  %v3138_v7 = vpop.f32.mrf.mxu1 }
 0x1e2   : > { %v10037_v12 = vadd.f32 %v4686_v25, %v3109_v13  ;;  %v2559_v60 = vpop.f32.mrf.mxu0 }
 0x1e3   : > { %v4687_v6 = vrot.slane %v3111_v44, 7  ;;  %v3113_v18 = vadd.f32 %v3112_v39, %v2559_v60  ;;  %v3140_v39 = vpop.f32.mrf.mxu1  ;;  %v8863_v60 = vld [vmem:[%s9347_s15 + $0x660] ss:$16 sps:$4 sm:$0xff]  }
 0x1e4   : > { %13181 = vst [vmem:[#allocation20_spill] sm:$0xff] %v10037_v12  ;;  %v2563_v8 = vpop.f32.mrf.mxu0  ;;  %2802 = vmatmul.mubr.bf16.gmra.mxu0 %v8857_v45 }
 0x1e5   : > { %v4688_v0 = vsel %vm4585_vm2, %v4685_v53, %v4687_v6  ;;  %v3117_v56 = vadd.f32 %v3116_v52, %v2563_v8  ;;  %2811 = vmatprep.mubr.bf16.mxu0 %v8865_v47  ;;  %v3142_v9 = vpop.f32.mrf.mxu1 }
 0x1e6   : > { %v10042_v36 = vadd.f32 %v4688_v0, %v3113_v18  ;;  %v2565_v13 = vpop.f32.mrf.mxu0  ;;  %v8882_v18 = vld [vmem:[%s9347_s15 + $0x20] ss:$16 sps:$4 sm:$0xff]  }
 0x1e7   : > { %v4689_v35 = vrot.slane %v3117_v56, 7  ;;  %v3119_v25 = vadd.f32 %v3118_v41, %v2565_v13  ;;  %v3146_v8 = vpop.f32.mrf.mxu1  ;;  %3418 = vmatmul.mubr.bf16.gmra.mxu1 %v8882_v18  ;;  %v8883_v41 = vld [vmem:[%s9347_s15 + $0x44] ss:$16 sps:$4 sm:$0xff]  }
 0x1e8   : > { %13182 = vst [vmem:[#allocation21_spill] sm:$0xff] %v10042_v36  ;;  %v2567_v44 = vpop.f32.mrf.mxu0  ;;  %3427 = vmatprep.mubr.bf16.mxu1 %v8883_v41  ;;  %v8884_v36 = vld [vmem:[%s9347_s15 + $0xc] ss:$16 sps:$4 sm:$0xff]  }
 0x1e9   : > { %v4690_v38 = vsel %vm4585_vm2, %v4687_v6, %v4689_v35  ;;  %v3121_v45 = vadd.f32 %v3120_v29, %v2567_v44  ;;  %v3148_v29 = vpop.f32.mrf.mxu1 }
 0x1ea   : > { %v10046_v12 = vadd.f32 %v4690_v38, %v3119_v25  ;;  %v2569_v52 = vpop.f32.mrf.mxu0 }
 0x1eb   : > { %v4691_v53 = vrot.slane %v3121_v45, 7  ;;  %v3123_v47 = vadd.f32 %v3122_v46, %v2569_v52  ;;  %v3150_v38 = vpop.f32.mrf.mxu1 }
 0x1ec   : > { %13183 = vst [vmem:[#allocation22_spill] sm:$0xff] %v10046_v12  ;;  %v2573_v0 = vpop.f32.mrf.mxu0  ;;  %2812 = vmatmul.mubr.bf16.gmra.mxu0 %v8863_v60 }
 0x1ed   : > { %v4692_v56 = vsel %vm4585_vm2, %v4689_v35, %v4691_v53  ;;  %v3127_v13 = vadd.f32 %v3126_v2, %v2573_v0  ;;  %8262 = vmatprep.mubr.msk.bf16.mxu0 %vm2099_vm0, %v8884_v36  ;;  %v3152_v35 = vpop.f32.mrf.mxu1 }
 0x1ee   : > { %v10053_v6 = vadd.f32 %v4692_v56, %v3123_v47  ;;  %v2575_v25 = vpop.f32.mrf.mxu0  ;;  %v8885_v47 = vld [vmem:[%s9347_s15 + $0x40] ss:$16 sps:$4 sm:$0xff]  }
 0x1ef   : > { %v4693_v46 = vrot.slane %v3127_v13, 7  ;;  %v3129_v44 = vadd.f32 %v3128_v30, %v2575_v25  ;;  %v3156_v41 = vpop.f32.mrf.mxu1  ;;  %3428 = vmatmul.mubr.bf16.gmra.mxu1 %v8885_v47  ;;  %v8887_v30 = vld [vmem:[%s9347_s15 + $0x64] ss:$16 sps:$4 sm:$0xff]  }
 0x1f0   : > { %13184 = vst [vmem:[#allocation23_spill] sm:$0xff] %v10053_v6  ;;  %v2577_v45 = vpop.f32.mrf.mxu0  ;;  %v8886_v6 = vld [vmem:[%s9347_s15 + $0x8] ss:$16 sps:$4 sm:$0xff]   ;;  %3437 = vmatprep.mubr.bf16.mxu1 %v8887_v30 }
 0x1f1   : > { %v4694_v60 = vsel %vm4585_vm2, %v4691_v53, %v4693_v46  ;;  %v3131_v52 = vadd.f32 %v3130_v23, %v2577_v45  ;;  %v8888_v53 = vld [vmem:[%s9347_s15 + $0x2c] ss:$16 sps:$4 sm:$0xff]   ;;  %v3158_v23 = vpop.f32.mrf.mxu1 }
 0x1f2   : > { %v10056_v2 = vadd.f32 %v4694_v60, %v3129_v44  ;;  %v2579_v18 = vpop.f32.mrf.mxu0 }
 0x1f3   : > { %v4695_v36 = vrot.slane %v3131_v52, 7  ;;  %v3133_v0 = vadd.f32 %v3132_v49, %v2579_v18  ;;  %v3160_v52 = vpop.f32.mrf.mxu1 }
 0x1f4   : > { %13185 = vst [vmem:[#allocation24_spill] sm:$0xff] %v10056_v2  ;;  %v2583_v56 = vpop.f32.mrf.mxu0  ;;  %3961 = vmatmul.mubr.bf16.vlgmr.msra.gmra.mxu0 %v8886_v6 }
 0x1f5   : > { %v4696_v13 = vsel %vm4585_vm2, %v4693_v46, %v4695_v36  ;;  %v3137_v25 = vadd.f32 %v3136_v61, %v2583_v56  ;;  %8263 = vmatprep.mubr.msk.bf16.mxu0 %vm2099_vm0, %v8888_v53  ;;  %v3162_v46 = vpop.f32.mrf.mxu1 }
 0x1f6   : > { %v10064_v44 = vadd.f32 %v4696_v13, %v3133_v0  ;;  %v2585_v45 = vpop.f32.mrf.mxu0  ;;  %v8889_v0 = vld [vmem:[%s9347_s15 + $0x60] ss:$16 sps:$4 sm:$0xff]  }
 0x1f7   : > { %v4697_v49 = vrot.slane %v3137_v25, 7  ;;  %v3139_v60 = vadd.f32 %v3138_v7, %v2585_v45  ;;  %v3166_v2 = vpop.f32.mrf.mxu1  ;;  %3438 = vmatmul.mubr.bf16.gmra.mxu1 %v8889_v0  ;;  %v8891_v7 = vld [vmem:[%s9347_s15 + $0x84] ss:$16 sps:$4 sm:$0xff]  }
 0x1f8   : > { %13186 = vst [vmem:[#allocation25_spill] sm:$0xff] %v10064_v44  ;;  %v2587_v18 = vpop.f32.mrf.mxu0  ;;  %v8890_v44 = vld [vmem:[%s9347_s15 + $0x28] ss:$16 sps:$4 sm:$0xff]   ;;  %3447 = vmatprep.mubr.bf16.mxu1 %v8891_v7 }
 0x1f9   : > { %v4698_v6 = vsel %vm4585_vm2, %v4695_v36, %v4697_v49  ;;  %v3141_v47 = vadd.f32 %v3140_v39, %v2587_v18  ;;  %v8892_v36 = vld [vmem:[%s9347_s15 + $0x4c] ss:$16 sps:$4 sm:$0xff]   ;;  %v3168_v39 = vpop.f32.mrf.mxu1 }
 0x1fa   : > { %v10067_v61 = vadd.f32 %v4698_v6, %v3139_v60  ;;  %v2589_v56 = vpop.f32.mrf.mxu0 }
 0x1fb   : > { %v4699_v30 = vrot.slane %v3141_v47, 7  ;;  %v3143_v53 = vadd.f32 %v3142_v9, %v2589_v56  ;;  %v3170_v47 = vpop.f32.mrf.mxu1 }
 0x1fc   : > { %13187 = vst [vmem:[#allocation26_spill] sm:$0xff] %v10067_v61  ;;  %v2593_v13 = vpop.f32.mrf.mxu0  ;;  %3971 = vmatmul.mubr.bf16.gmra.mxu0 %v8890_v44 }
 0x1fd   : > { %v4700_v25 = vsel %vm4585_vm2, %v4697_v49, %v4699_v30  ;;  %v3147_v45 = vadd.f32 %v3146_v8, %v2593_v13  ;;  %8264 = vmatprep.mubr.msk.bf16.mxu0 %vm2099_vm0, %v8892_v36  ;;  %v3172_v49 = vpop.f32.mrf.mxu1 }
 0x1fe   : > { %v10075_v60 = vadd.f32 %v4700_v25, %v3143_v53  ;;  %v2595_v18 = vpop.f32.mrf.mxu0  ;;  %v8893_v53 = vld [vmem:[%s9347_s15 + $0x80] ss:$16 sps:$4 sm:$0xff]  }
 0x1ff   : > { %v4701_v9 = vrot.slane %v3147_v45, 7  ;;  %v3149_v6 = vadd.f32 %v3148_v29, %v2595_v18  ;;  %v3176_v61 = vpop.f32.mrf.mxu1  ;;  %3448 = vmatmul.mubr.bf16.gmra.mxu1 %v8893_v53  ;;  %v8895_v29 = vld [vmem:[%s9347_s15 + $0xa4] ss:$16 sps:$4 sm:$0xff]  }
 0x200   : > { %13188 = vst [vmem:[#allocation27_spill] sm:$0xff] %v10075_v60  ;;  %v2597_v56 = vpop.f32.mrf.mxu0  ;;  %v8894_v60 = vld [vmem:[%s9347_s15 + $0x48] ss:$16 sps:$4 sm:$0xff]   ;;  %3457 = vmatprep.mubr.bf16.mxu1 %v8895_v29 }
 0x201   : > { %v4702_v44 = vsel %vm4585_vm2, %v4699_v30, %v4701_v9  ;;  %v3151_v0 = vadd.f32 %v3150_v38, %v2597_v56  ;;  %v8896_v30 = vld [vmem:[%s9347_s15 + $0x6c] ss:$16 sps:$4 sm:$0xff]   ;;  %v3178_v38 = vpop.f32.mrf.mxu1 }
 0x202   : > { %v10078_v8 = vadd.f32 %v4702_v44, %v3149_v6  ;;  %v2599_v13 = vpop.f32.mrf.mxu0 }
 0x203   : > { %v4703_v7 = vrot.slane %v3151_v0, 7  ;;  %v3153_v36 = vadd.f32 %v3152_v35, %v2599_v13  ;;  %v3180_v0 = vpop.f32.mrf.mxu1 }
 0x204   : > { %13189 = vst [vmem:[#allocation28_spill] sm:$0xff] %v10078_v8  ;;  %v2603_v25 = vpop.f32.mrf.mxu0  ;;  %3981 = vmatmul.mubr.bf16.gmra.mxu0 %v8894_v60 }
 0x205   : > { %v4704_v45 = vsel %vm4585_vm2, %v4701_v9, %v4703_v7  ;;  %v3157_v18 = vadd.f32 %v3156_v41, %v2603_v25  ;;  %8265 = vmatprep.mubr.msk.bf16.mxu0 %vm2099_vm0, %v8896_v30  ;;  %v3182_v9 = vpop.f32.mrf.mxu1 }
 0x206   : > { %v10086_v6 = vadd.f32 %v4704_v45, %v3153_v36  ;;  %v2605_v56 = vpop.f32.mrf.mxu0  ;;  %v8897_v36 = vld [vmem:[%s9347_s15 + $0xa0] ss:$16 sps:$4 sm:$0xff]  }
 0x207   : > { %v4705_v35 = vrot.slane %v3157_v18, 7  ;;  %v3159_v44 = vadd.f32 %v3158_v23, %v2605_v56  ;;  %v3186_v8 = vpop.f32.mrf.mxu1  ;;  %3458 = vmatmul.mubr.bf16.gmra.mxu1 %v8897_v36  ;;  %v8899_v23 = vld [vmem:[%s9347_s15 + $0xc4] ss:$16 sps:$4 sm:$0xff]  }
 0x208   : > { %13190 = vst [vmem:[#allocation29_spill] sm:$0xff] %v10086_v6  ;;  %v2607_v13 = vpop.f32.mrf.mxu0  ;;  %v8898_v6 = vld [vmem:[%s9347_s15 + $0x68] ss:$16 sps:$4 sm:$0xff]   ;;  %3467 = vmatprep.mubr.bf16.mxu1 %v8899_v23 }
 0x209   : > { %v4706_v60 = vsel %vm4585_vm2, %v4703_v7, %v4705_v35  ;;  %v3161_v53 = vadd.f32 %v3160_v52, %v2607_v13  ;;  %v8900_v7 = vld [vmem:[%s9347_s15 + $0x8c] ss:$16 sps:$4 sm:$0xff]   ;;  %v3188_v52 = vpop.f32.mrf.mxu1 }
 0x20a   : > { %v10089_v41 = vadd.f32 %v4706_v60, %v3159_v44  ;;  %v2609_v25 = vpop.f32.mrf.mxu0 }
 0x20b   : > { %v4707_v29 = vrot.slane %v3161_v53, 7  ;;  %v3163_v30 = vadd.f32 %v3162_v46, %v2609_v25  ;;  %v3190_v53 = vpop.f32.mrf.mxu1 }
 0x20c   : > { %13191 = vst [vmem:[#allocation30_spill] sm:$0xff] %v10089_v41  ;;  %v2613_v45 = vpop.f32.mrf.mxu0  ;;  %3991 = vmatmul.mubr.bf16.gmra.mxu0 %v8898_v6 }
 0x20d   : > { %v4708_v18 = vsel %vm4585_vm2, %v4705_v35, %v4707_v29  ;;  %v3167_v56 = vadd.f32 %v3166_v2, %v2613_v45  ;;  %8266 = vmatprep.mubr.msk.bf16.mxu0 %vm2099_vm0, %v8900_v7  ;;  %v3192_v35 = vpop.f32.mrf.mxu1 }
 0x20e   : > { %v10097_v44 = vadd.f32 %v4708_v18, %v3163_v30  ;;  %v2615_v13 = vpop.f32.mrf.mxu0  ;;  %v8901_v30 = vld [vmem:[%s9347_s15 + $0xc0] ss:$16 sps:$4 sm:$0xff]  }
 0x20f   : > { %v4709_v46 = vrot.slane %v3167_v56, 7  ;;  %v3169_v60 = vadd.f32 %v3168_v39, %v2615_v13  ;;  %v3196_v41 = vpop.f32.mrf.mxu1  ;;  %3468 = vmatmul.mubr.bf16.gmra.mxu1 %v8901_v30  ;;  %v8903_v39 = vld [vmem:[%s9347_s15 + $0xe4] ss:$16 sps:$4 sm:$0xff]  }
 0x210   : > { %13192 = vst [vmem:[#allocation31_spill] sm:$0xff] %v10097_v44  ;;  %v2617_v25 = vpop.f32.mrf.mxu0  ;;  %v8902_v44 = vld [vmem:[%s9347_s15 + $0x88] ss:$16 sps:$4 sm:$0xff]   ;;  %3477 = vmatprep.mubr.bf16.mxu1 %v8903_v39 }
 0x211   : > { %v4710_v6 = vsel %vm4585_vm2, %v4707_v29, %v4709_v46  ;;  %v3171_v36 = vadd.f32 %v3170_v47, %v2617_v25  ;;  %v8904_v29 = vld [vmem:[%s9347_s15 + $0xac] ss:$16 sps:$4 sm:$0xff]   ;;  %v3198_v47 = vpop.f32.mrf.mxu1 }
 0x212   : > { %v10100_v2 = vadd.f32 %v4710_v6, %v3169_v60  ;;  %v2619_v45 = vpop.f32.mrf.mxu0 }
 0x213   : > { %v4711_v23 = vrot.slane %v3171_v36, 7  ;;  %v3173_v7 = vadd.f32 %v3172_v49, %v2619_v45  ;;  %v3200_v36 = vpop.f32.mrf.mxu1 }
 0x214   : > { %13193 = vst [vmem:[#allocation32_spill] sm:$0xff] %v10100_v2  ;;  %v2623_v18 = vpop.f32.mrf.mxu0  ;;  %4001 = vmatmul.mubr.bf16.gmra.mxu0 %v8902_v44 }
 0x215   : > { %v4712_v56 = vsel %vm4585_vm2, %v4709_v46, %v4711_v23  ;;  %v3177_v13 = vadd.f32 %v3176_v61, %v2623_v18  ;;  %8267 = vmatprep.mubr.msk.bf16.mxu0 %vm2099_vm0, %v8904_v29  ;;  %v3202_v46 = vpop.f32.mrf.mxu1 }
 0x216   : > { %v10108_v60 = vadd.f32 %v4712_v56, %v3173_v7  ;;  %v2625_v25 = vpop.f32.mrf.mxu0  ;;  %v8905_v7 = vld [vmem:[%s9347_s15 + $0xe0] ss:$16 sps:$4 sm:$0xff]  }
 0x217   : > { %v4713_v49 = vrot.slane %v3177_v13, 7  ;;  %v3179_v6 = vadd.f32 %v3178_v38, %v2625_v25  ;;  %v3206_v2 = vpop.f32.mrf.mxu1  ;;  %3478 = vmatmul.mubr.bf16.gmra.mxu1 %v8905_v7  ;;  %v8907_v38 = vld [vmem:[%s9347_s15 + $0x104] ss:$16 sps:$4 sm:$0xff]  }
 0x218   : > { %13194 = vst [vmem:[#allocation33_spill] sm:$0xff] %v10108_v60  ;;  %v2627_v45 = vpop.f32.mrf.mxu0  ;;  %v8906_v60 = vld [vmem:[%s9347_s15 + $0xa8] ss:$16 sps:$4 sm:$0xff]   ;;  %3487 = vmatprep.mubr.bf16.mxu1 %v8907_v38 }
 0x219   : > { %v4714_v44 = vsel %vm4585_vm2, %v4711_v23, %v4713_v49  ;;  %v3181_v30 = vadd.f32 %v3180_v0, %v2627_v45  ;;  %v8908_v23 = vld [vmem:[%s9347_s15 + $0xcc] ss:$16 sps:$4 sm:$0xff]   ;;  %v3208_v0 = vpop.f32.mrf.mxu1 }
 0x21a   : > { %v10111_v61 = vadd.f32 %v4714_v44, %v3179_v6  ;;  %v2629_v18 = vpop.f32.mrf.mxu0 }
 0x21b   : > { %v4715_v39 = vrot.slane %v3181_v30, 7  ;;  %v3183_v29 = vadd.f32 %v3182_v9, %v2629_v18  ;;  %v3210_v30 = vpop.f32.mrf.mxu1 }
 0x21c   : > { %13195 = vst [vmem:[#allocation34_spill] sm:$0xff] %v10111_v61  ;;  %v2633_v56 = vpop.f32.mrf.mxu0  ;;  %4011 = vmatmul.mubr.bf16.gmra.mxu0 %v8906_v60 }
 0x21d   : > { %v4716_v13 = vsel %vm4585_vm2, %v4713_v49, %v4715_v39  ;;  %v3187_v25 = vadd.f32 %v3186_v8, %v2633_v56  ;;  %8268 = vmatprep.mubr.msk.bf16.mxu0 %vm2099_vm0, %v8908_v23  ;;  %v3212_v49 = vpop.f32.mrf.mxu1 }
 0x21e   : > { %v10119_v6 = vadd.f32 %v4716_v13, %v3183_v29  ;;  %v2635_v45 = vpop.f32.mrf.mxu0  ;;  %v8909_v29 = vld [vmem:[%s9347_s15 + $0x100] ss:$16 sps:$4 sm:$0xff]  }
 0x21f   : > { %v4717_v9 = vrot.slane %v3187_v25, 7  ;;  %v3189_v44 = vadd.f32 %v3188_v52, %v2635_v45  ;;  %v3216_v61 = vpop.f32.mrf.mxu1  ;;  %3488 = vmatmul.mubr.bf16.gmra.mxu1 %v8909_v29  ;;  %v8911_v52 = vld [vmem:[%s9347_s15 + $0x124] ss:$16 sps:$4 sm:$0xff]  }
 0x220   : > { %13196 = vst [vmem:[#allocation35_spill] sm:$0xff] %v10119_v6  ;;  %v2637_v18 = vpop.f32.mrf.mxu0  ;;  %v8910_v6 = vld [vmem:[%s9347_s15 + $0xc8] ss:$16 sps:$4 sm:$0xff]   ;;  %3497 = vmatprep.mubr.bf16.mxu1 %v8911_v52 }
 0x221   : > { %v4718_v60 = vsel %vm4585_vm2, %v4715_v39, %v4717_v9  ;;  %v3191_v7 = vadd.f32 %v3190_v53, %v2637_v18  ;;  %v8912_v39 = vld [vmem:[%s9347_s15 + $0xec] ss:$16 sps:$4 sm:$0xff]   ;;  %v3218_v53 = vpop.f32.mrf.mxu1 }
 0x222   : > { %v10122_v8 = vadd.f32 %v4718_v60, %v3189_v44  ;;  %v2639_v56 = vpop.f32.mrf.mxu0 }
 0x223   : > { %v4719_v38 = vrot.slane %v3191_v7, 7  ;;  %v3193_v23 = vadd.f32 %v3192_v35, %v2639_v56  ;;  %v3220_v7 = vpop.f32.mrf.mxu1 }
 0x224   : > { %13197 = vst [vmem:[#allocation36_spill] sm:$0xff] %v10122_v8  ;;  %v2643_v13 = vpop.f32.mrf.mxu0  ;;  %4021 = vmatmul.mubr.bf16.gmra.mxu0 %v8910_v6 }
 0x225   : > { %v4720_v25 = vsel %vm4585_vm2, %v4717_v9, %v4719_v38  ;;  %v3197_v45 = vadd.f32 %v3196_v41, %v2643_v13  ;;  %8269 = vmatprep.mubr.msk.bf16.mxu0 %vm2099_vm0, %v8912_v39  ;;  %v3222_v9 = vpop.f32.mrf.mxu1 }
 0x226   : > { %v10130_v44 = vadd.f32 %v4720_v25, %v3193_v23  ;;  %v2645_v18 = vpop.f32.mrf.mxu0  ;;  %v8913_v23 = vld [vmem:[%s9347_s15 + $0x120] ss:$16 sps:$4 sm:$0xff]  }
 0x227   : > { %v4721_v35 = vrot.slane %v3197_v45, 7  ;;  %v3199_v60 = vadd.f32 %v3198_v47, %v2645_v18  ;;  %v3226_v8 = vpop.f32.mrf.mxu1  ;;  %3498 = vmatmul.mubr.bf16.gmra.mxu1 %v8913_v23  ;;  %v8915_v47 = vld [vmem:[%s9347_s15 + $0x144] ss:$16 sps:$4 sm:$0xff]  }
 0x228   : > { %13198 = vst [vmem:[#allocation37_spill] sm:$0xff] %v10130_v44  ;;  %v2647_v56 = vpop.f32.mrf.mxu0  ;;  %v8914_v44 = vld [vmem:[%s9347_s15 + $0xe8] ss:$16 sps:$4 sm:$0xff]   ;;  %3507 = vmatprep.mubr.bf16.mxu1 %v8915_v47 }
 0x229   : > { %v4722_v6 = vsel %vm4585_vm2, %v4719_v38, %v4721_v35  ;;  %v3201_v29 = vadd.f32 %v3200_v36, %v2647_v56  ;;  %v8916_v38 = vld [vmem:[%s9347_s15 + $0x10c] ss:$16 sps:$4 sm:$0xff]   ;;  %v3228_v36 = vpop.f32.mrf.mxu1 }
 0x22a   : > { %v10133_v41 = vadd.f32 %v4722_v6, %v3199_v60  ;;  %v2649_v13 = vpop.f32.mrf.mxu0 }
 0x22b   : > { %v4723_v52 = vrot.slane %v3201_v29, 7  ;;  %v3203_v39 = vadd.f32 %v3202_v46, %v2649_v13  ;;  %v3230_v29 = vpop.f32.mrf.mxu1 }
 0x22c   : > { %13199 = vst [vmem:[#allocation38_spill] sm:$0xff] %v10133_v41  ;;  %v2653_v25 = vpop.f32.mrf.mxu0  ;;  %4031 = vmatmul.mubr.bf16.gmra.mxu0 %v8914_v44 }
 0x22d   : > { %v4724_v45 = vsel %vm4585_vm2, %v4721_v35, %v4723_v52  ;;  %v3207_v18 = vadd.f32 %v3206_v2, %v2653_v25  ;;  %8270 = vmatprep.mubr.msk.bf16.mxu0 %vm2099_vm0, %v8916_v38  ;;  %v3232_v35 = vpop.f32.mrf.mxu1 }
 0x22e   : > { %v10141_v60 = vadd.f32 %v4724_v45, %v3203_v39  ;;  %v2655_v56 = vpop.f32.mrf.mxu0  ;;  %v8917_v39 = vld [vmem:[%s9347_s15 + $0x140] ss:$16 sps:$4 sm:$0xff]  }
 0x22f   : > { %v4725_v46 = vrot.slane %v3207_v18, 7  ;;  %v3209_v6 = vadd.f32 %v3208_v0, %v2655_v56  ;;  %v3236_v41 = vpop.f32.mrf.mxu1  ;;  %3508 = vmatmul.mubr.bf16.gmra.mxu1 %v8917_v39  ;;  %v8919_v0 = vld [vmem:[%s9347_s15 + $0x164] ss:$16 sps:$4 sm:$0xff]  }
 0x230   : > { %13200 = vst [vmem:[#allocation39_spill] sm:$0xff] %v10141_v60  ;;  %v2657_v13 = vpop.f32.mrf.mxu0  ;;  %v8918_v60 = vld [vmem:[%s9347_s15 + $0x108] ss:$16 sps:$4 sm:$0xff]   ;;  %3517 = vmatprep.mubr.bf16.mxu1 %v8919_v0 }
 0x231   : > { %v4726_v44 = vsel %vm4585_vm2, %v4723_v52, %v4725_v46  ;;  %v3211_v23 = vadd.f32 %v3210_v30, %v2657_v13  ;;  %v8920_v52 = vld [vmem:[%s9347_s15 + $0x12c] ss:$16 sps:$4 sm:$0xff]   ;;  %v3238_v30 = vpop.f32.mrf.mxu1 }
 0x232   : > { %v10144_v2 = vadd.f32 %v4726_v44, %v3209_v6  ;;  %v2659_v25 = vpop.f32.mrf.mxu0 }
 0x233   : > { %v4727_v47 = vrot.slane %v3211_v23, 7  ;;  %v3213_v38 = vadd.f32 %v3212_v49, %v2659_v25  ;;  %v3240_v23 = vpop.f32.mrf.mxu1 }
 0x234   : > { %13201 = vst [vmem:[#allocation40_spill] sm:$0xff] %v10144_v2  ;;  %v2663_v45 = vpop.f32.mrf.mxu0  ;;  %4041 = vmatmul.mubr.bf16.gmra.mxu0 %v8918_v60 }
 0x235   : > { %v4728_v18 = vsel %vm4585_vm2, %v4725_v46, %v4727_v47  ;;  %v3217_v56 = vadd.f32 %v3216_v61, %v2663_v45  ;;  %8271 = vmatprep.mubr.msk.bf16.mxu0 %vm2099_vm0, %v8920_v52  ;;  %v3242_v46 = vpop.f32.mrf.mxu1 }
 0x236   : > { %v10152_v6 = vadd.f32 %v4728_v18, %v3213_v38  ;;  %v2665_v13 = vpop.f32.mrf.mxu0  ;;  %v8921_v38 = vld [vmem:[%s9347_s15 + $0x160] ss:$16 sps:$4 sm:$0xff]  }
 0x237   : > { %v4729_v49 = vrot.slane %v3217_v56, 7  ;;  %v3219_v44 = vadd.f32 %v3218_v53, %v2665_v13  ;;  %v3246_v2 = vpop.f32.mrf.mxu1  ;;  %3518 = vmatmul.mubr.bf16.gmra.mxu1 %v8921_v38  ;;  %v8923_v53 = vld [vmem:[%s9347_s15 + $0x184] ss:$16 sps:$4 sm:$0xff]  }
 0x238   : > { %13202 = vst [vmem:[#allocation41_spill] sm:$0xff] %v10152_v6  ;;  %v2667_v25 = vpop.f32.mrf.mxu0  ;;  %v8922_v6 = vld [vmem:[%s9347_s15 + $0x128] ss:$16 sps:$4 sm:$0xff]   ;;  %3527 = vmatprep.mubr.bf16.mxu1 %v8923_v53 }
 0x239   : > { %v4730_v60 = vsel %vm4585_vm2, %v4727_v47, %v4729_v49  ;;  %v3221_v39 = vadd.f32 %v3220_v7, %v2667_v25  ;;  %v8924_v47 = vld [vmem:[%s9347_s15 + $0x14c] ss:$16 sps:$4 sm:$0xff]   ;;  %v3248_v7 = vpop.f32.mrf.mxu1 }
 0x23a   : > { %v10155_v61 = vadd.f32 %v4730_v60, %v3219_v44  ;;  %v2669_v45 = vpop.f32.mrf.mxu0 }
 0x23b   : > { %v4731_v0 = vrot.slane %v3221_v39, 7  ;;  %v3223_v52 = vadd.f32 %v3222_v9, %v2669_v45  ;;  %v3250_v39 = vpop.f32.mrf.mxu1 }
 0x23c   : > { %13203 = vst [vmem:[#allocation42_spill] sm:$0xff] %v10155_v61  ;;  %v2673_v18 = vpop.f32.mrf.mxu0  ;;  %4051 = vmatmul.mubr.bf16.gmra.mxu0 %v8922_v6 }
 0x23d   : > { %v4732_v56 = vsel %vm4585_vm2, %v4729_v49, %v4731_v0  ;;  %v3227_v13 = vadd.f32 %v3226_v8, %v2673_v18  ;;  %8272 = vmatprep.mubr.msk.bf16.mxu0 %vm2099_vm0, %v8924_v47  ;;  %v3252_v49 = vpop.f32.mrf.mxu1 }
 0x23e   : > { %v10163_v44 = vadd.f32 %v4732_v56, %v3223_v52  ;;  %v2675_v25 = vpop.f32.mrf.mxu0  ;;  %v8925_v52 = vld [vmem:[%s9347_s15 + $0x180] ss:$16 sps:$4 sm:$0xff]  }
 0x23f   : > { %v4733_v9 = vrot.slane %v3227_v13, 7  ;;  %v3229_v60 = vadd.f32 %v3228_v36, %v2675_v25  ;;  %v3256_v61 = vpop.f32.mrf.mxu1  ;;  %3528 = vmatmul.mubr.bf16.gmra.mxu1 %v8925_v52  ;;  %v8927_v36 = vld [vmem:[%s9347_s15 + $0x1a4] ss:$16 sps:$4 sm:$0xff]  }
 0x240   : > { %13204 = vst [vmem:[#allocation43_spill] sm:$0xff] %v10163_v44  ;;  %v2677_v45 = vpop.f32.mrf.mxu0  ;;  %v8926_v44 = vld [vmem:[%s9347_s15 + $0x148] ss:$16 sps:$4 sm:$0xff]   ;;  %3537 = vmatprep.mubr.bf16.mxu1 %v8927_v36 }
 0x241   : > { %v4734_v6 = vsel %vm4585_vm2, %v4731_v0, %v4733_v9  ;;  %v3231_v38 = vadd.f32 %v3230_v29, %v2677_v45  ;;  %v8928_v0 = vld [vmem:[%s9347_s15 + $0x16c] ss:$16 sps:$4 sm:$0xff]   ;;  %v3258_v29 = vpop.f32.mrf.mxu1 }
 0x242   : > { %v10166_v8 = vadd.f32 %v4734_v6, %v3229_v60  ;;  %v2679_v18 = vpop.f32.mrf.mxu0 }
 0x243   : > { %v4735_v53 = vrot.slane %v3231_v38, 7  ;;  %v3233_v47 = vadd.f32 %v3232_v35, %v2679_v18  ;;  %v3260_v38 = vpop.f32.mrf.mxu1 }
 0x244   : > { %13205 = vst [vmem:[#allocation44_spill] sm:$0xff] %v10166_v8  ;;  %v2683_v56 = vpop.f32.mrf.mxu0  ;;  %4061 = vmatmul.mubr.bf16.gmra.mxu0 %v8926_v44 }
 0x245   : > { %v4736_v13 = vsel %vm4585_vm2, %v4733_v9, %v4735_v53  ;;  %v3237_v25 = vadd.f32 %v3236_v41, %v2683_v56  ;;  %8273 = vmatprep.mubr.msk.bf16.mxu0 %vm2099_vm0, %v8928_v0  ;;  %v3262_v9 = vpop.f32.mrf.mxu1 }
 0x246   : > { %v10174_v60 = vadd.f32 %v4736_v13, %v3233_v47  ;;  %v2685_v45 = vpop.f32.mrf.mxu0  ;;  %v8929_v47 = vld [vmem:[%s9347_s15 + $0x1a0] ss:$16 sps:$4 sm:$0xff]  }
 0x247   : > { %v4737_v35 = vrot.slane %v3237_v25, 7  ;;  %v3239_v6 = vadd.f32 %v3238_v30, %v2685_v45  ;;  %v3266_v8 = vpop.f32.mrf.mxu1  ;;  %3538 = vmatmul.mubr.bf16.gmra.mxu1 %v8929_v47  ;;  %v8931_v30 = vld [vmem:[%s9347_s15 + $0x1c4] ss:$16 sps:$4 sm:$0xff]  }
 0x248   : > { %13206 = vst [vmem:[#allocation45_spill] sm:$0xff] %v10174_v60  ;;  %v2687_v18 = vpop.f32.mrf.mxu0  ;;  %v8930_v60 = vld [vmem:[%s9347_s15 + $0x168] ss:$16 sps:$4 sm:$0xff]   ;;  %3547 = vmatprep.mubr.bf16.mxu1 %v8931_v30 }
 0x249   : > { %v4738_v44 = vsel %vm4585_vm2, %v4735_v53, %v4737_v35  ;;  %v3241_v52 = vadd.f32 %v3240_v23, %v2687_v18  ;;  %v8932_v53 = vld [vmem:[%s9347_s15 + $0x18c] ss:$16 sps:$4 sm:$0xff]   ;;  %v3268_v23 = vpop.f32.mrf.mxu1 }
 0x24a   : > { %v10177_v41 = vadd.f32 %v4738_v44, %v3239_v6  ;;  %v2689_v56 = vpop.f32.mrf.mxu0 }
 0x24b   : > { %v4739_v36 = vrot.slane %v3241_v52, 7  ;;  %v3243_v0 = vadd.f32 %v3242_v46, %v2689_v56  ;;  %v3270_v52 = vpop.f32.mrf.mxu1 }
 0x24c   : > { %13207 = vst [vmem:[#allocation46_spill] sm:$0xff] %v10177_v41  ;;  %v2693_v13 = vpop.f32.mrf.mxu0  ;;  %4071 = vmatmul.mubr.bf16.gmra.mxu0 %v8930_v60 }
 0x24d   : > { %v4740_v25 = vsel %vm4585_vm2, %v4737_v35, %v4739_v36  ;;  %v3247_v45 = vadd.f32 %v3246_v2, %v2693_v13  ;;  %8274 = vmatprep.mubr.msk.bf16.mxu0 %vm2099_vm0, %v8932_v53  ;;  %v3272_v35 = vpop.f32.mrf.mxu1 }
 0x24e   : > { %v10185_v6 = vadd.f32 %v4740_v25, %v3243_v0  ;;  %v2695_v18 = vpop.f32.mrf.mxu0  ;;  %v8933_v0 = vld [vmem:[%s9347_s15 + $0x1c0] ss:$16 sps:$4 sm:$0xff]  }
 0x24f   : > { %v4741_v46 = vrot.slane %v3247_v45, 7  ;;  %v3249_v44 = vadd.f32 %v3248_v7, %v2695_v18  ;;  %v3276_v41 = vpop.f32.mrf.mxu1  ;;  %3548 = vmatmul.mubr.bf16.gmra.mxu1 %v8933_v0  ;;  %v8935_v7 = vld [vmem:[%s9347_s15 + $0x1e4] ss:$16 sps:$4 sm:$0xff]  }
 0x250   : > { %13208 = vst [vmem:[#allocation47_spill] sm:$0xff] %v10185_v6  ;;  %v2697_v56 = vpop.f32.mrf.mxu0  ;;  %v8934_v6 = vld [vmem:[%s9347_s15 + $0x188] ss:$16 sps:$4 sm:$0xff]   ;;  %3557 = vmatprep.mubr.bf16.mxu1 %v8935_v7 }
 0x251   : > { %v4742_v60 = vsel %vm4585_vm2, %v4739_v36, %v4741_v46  ;;  %v3251_v47 = vadd.f32 %v3250_v39, %v2697_v56  ;;  %v8936_v36 = vld [vmem:[%s9347_s15 + $0x1ac] ss:$16 sps:$4 sm:$0xff]   ;;  %v3278_v39 = vpop.f32.mrf.mxu1 }
 0x252   : > { %v10188_v2 = vadd.f32 %v4742_v60, %v3249_v44  ;;  %v2699_v13 = vpop.f32.mrf.mxu0 }
 0x253   : > { %v4743_v30 = vrot.slane %v3251_v47, 7  ;;  %v3253_v53 = vadd.f32 %v3252_v49, %v2699_v13  ;;  %v3280_v47 = vpop.f32.mrf.mxu1 }
 0x254   : > { %13209 = vst [vmem:[#allocation48_spill] sm:$0xff] %v10188_v2  ;;  %v2703_v25 = vpop.f32.mrf.mxu0  ;;  %4081 = vmatmul.mubr.bf16.gmra.mxu0 %v8934_v6 }
 0x255   : > { %v4744_v45 = vsel %vm4585_vm2, %v4741_v46, %v4743_v30  ;;  %v3257_v18 = vadd.f32 %v3256_v61, %v2703_v25  ;;  %8275 = vmatprep.mubr.msk.bf16.mxu0 %vm2099_vm0, %v8936_v36  ;;  %v3282_v46 = vpop.f32.mrf.mxu1 }
 0x256   : > { %v10196_v44 = vadd.f32 %v4744_v45, %v3253_v53  ;;  %v2705_v56 = vpop.f32.mrf.mxu0  ;;  %v8937_v53 = vld [vmem:[%s9347_s15 + $0x1e0] ss:$16 sps:$4 sm:$0xff]  }
 0x257   : > { %v4745_v49 = vrot.slane %v3257_v18, 7  ;;  %v3259_v60 = vadd.f32 %v3258_v29, %v2705_v56  ;;  %v3286_v2 = vpop.f32.mrf.mxu1  ;;  %3558 = vmatmul.mubr.bf16.gmra.mxu1 %v8937_v53  ;;  %v8939_v29 = vld [vmem:[%s9347_s15 + $0x204] ss:$16 sps:$4 sm:$0xff]  }
 0x258   : > { %13210 = vst [vmem:[#allocation49_spill] sm:$0xff] %v10196_v44  ;;  %v2707_v13 = vpop.f32.mrf.mxu0  ;;  %v8938_v44 = vld [vmem:[%s9347_s15 + $0x1a8] ss:$16 sps:$4 sm:$0xff]   ;;  %3567 = vmatprep.mubr.bf16.mxu1 %v8939_v29 }
 0x259   : > { %v4746_v6 = vsel %vm4585_vm2, %v4743_v30, %v4745_v49  ;;  %v3261_v0 = vadd.f32 %v3260_v38, %v2707_v13  ;;  %v8940_v30 = vld [vmem:[%s9347_s15 + $0x1cc] ss:$16 sps:$4 sm:$0xff]   ;;  %v3288_v38 = vpop.f32.mrf.mxu1 }
 0x25a   : > { %v10199_v61 = vadd.f32 %v4746_v6, %v3259_v60  ;;  %v2709_v25 = vpop.f32.mrf.mxu0 }
 0x25b   : > { %v4747_v7 = vrot.slane %v3261_v0, 7  ;;  %v3263_v36 = vadd.f32 %v3262_v9, %v2709_v25  ;;  %v3290_v0 = vpop.f32.mrf.mxu1 }
 0x25c   : > { %13211 = vst [vmem:[#allocation50_spill] sm:$0xff] %v10199_v61  ;;  %v2713_v45 = vpop.f32.mrf.mxu0  ;;  %4091 = vmatmul.mubr.bf16.gmra.mxu0 %v8938_v44 }
 0x25d   : > { %v4748_v18 = vsel %vm4585_vm2, %v4745_v49, %v4747_v7  ;;  %v3267_v56 = vadd.f32 %v3266_v8, %v2713_v45  ;;  %8276 = vmatprep.mubr.msk.bf16.mxu0 %vm2099_vm0, %v8940_v30  ;;  %v3292_v49 = vpop.f32.mrf.mxu1 }
 0x25e   : > { %v10207_v60 = vadd.f32 %v4748_v18, %v3263_v36  ;;  %v2715_v13 = vpop.f32.mrf.mxu0  ;;  %v8941_v36 = vld [vmem:[%s9347_s15 + $0x200] ss:$16 sps:$4 sm:$0xff]  }
 0x25f   : > { %v4749_v9 = vrot.slane %v3267_v56, 7  ;;  %v3269_v6 = vadd.f32 %v3268_v23, %v2715_v13  ;;  %v3296_v61 = vpop.f32.mrf.mxu1  ;;  %3568 = vmatmul.mubr.bf16.gmra.mxu1 %v8941_v36  ;;  %v8943_v23 = vld [vmem:[%s9347_s15 + $0x224] ss:$16 sps:$4 sm:$0xff]  }
 0x260   : > { %13212 = vst [vmem:[#allocation51_spill] sm:$0xff] %v10207_v60  ;;  %v2717_v25 = vpop.f32.mrf.mxu0  ;;  %v8942_v60 = vld [vmem:[%s9347_s15 + $0x1c8] ss:$16 sps:$4 sm:$0xff]   ;;  %3577 = vmatprep.mubr.bf16.mxu1 %v8943_v23 }
 0x261   : > { %v4750_v44 = vsel %vm4585_vm2, %v4747_v7, %v4749_v9  ;;  %v3271_v53 = vadd.f32 %v3270_v52, %v2717_v25  ;;  %v8944_v7 = vld [vmem:[%s9347_s15 + $0x1ec] ss:$16 sps:$4 sm:$0xff]   ;;  %v3298_v52 = vpop.f32.mrf.mxu1 }
 0x262   : > { %v10210_v8 = vadd.f32 %v4750_v44, %v3269_v6  ;;  %v2719_v45 = vpop.f32.mrf.mxu0 }
 0x263   : > { %v4751_v29 = vrot.slane %v3271_v53, 7  ;;  %v3273_v30 = vadd.f32 %v3272_v35, %v2719_v45  ;;  %v3300_v53 = vpop.f32.mrf.mxu1 }
 0x264   : > { %13213 = vst [vmem:[#allocation52_spill] sm:$0xff] %v10210_v8  ;;  %v2723_v18 = vpop.f32.mrf.mxu0  ;;  %4101 = vmatmul.mubr.bf16.gmra.mxu0 %v8942_v60 }
 0x265   : > { %v4752_v56 = vsel %vm4585_vm2, %v4749_v9, %v4751_v29  ;;  %v3277_v13 = vadd.f32 %v3276_v41, %v2723_v18  ;;  %8277 = vmatprep.mubr.msk.bf16.mxu0 %vm2099_vm0, %v8944_v7  ;;  %v3302_v9 = vpop.f32.mrf.mxu1 }
 0x266   : > { %v10218_v6 = vadd.f32 %v4752_v56, %v3273_v30  ;;  %v2725_v25 = vpop.f32.mrf.mxu0  ;;  %v8945_v30 = vld [vmem:[%s9347_s15 + $0x220] ss:$16 sps:$4 sm:$0xff]  }
 0x267   : > { %v4753_v35 = vrot.slane %v3277_v13, 7  ;;  %v3279_v44 = vadd.f32 %v3278_v39, %v2725_v25  ;;  %v3306_v8 = vpop.f32.mrf.mxu1  ;;  %3578 = vmatmul.mubr.bf16.gmra.mxu1 %v8945_v30  ;;  %v8947_v39 = vld [vmem:[%s9347_s15 + $0x244] ss:$16 sps:$4 sm:$0xff]  }
 0x268   : > { %13214 = vst [vmem:[#allocation53_spill] sm:$0xff] %v10218_v6  ;;  %v2727_v45 = vpop.f32.mrf.mxu0  ;;  %v8946_v6 = vld [vmem:[%s9347_s15 + $0x1e8] ss:$16 sps:$4 sm:$0xff]   ;;  %3587 = vmatprep.mubr.bf16.mxu1 %v8947_v39 }
 0x269   : > { %v4754_v60 = vsel %vm4585_vm2, %v4751_v29, %v4753_v35  ;;  %v3281_v36 = vadd.f32 %v3280_v47, %v2727_v45  ;;  %v8948_v29 = vld [vmem:[%s9347_s15 + $0x20c] ss:$16 sps:$4 sm:$0xff]   ;;  %v3308_v47 = vpop.f32.mrf.mxu1 }
 0x26a   : > { %v10221_v41 = vadd.f32 %v4754_v60, %v3279_v44  ;;  %v2729_v18 = vpop.f32.mrf.mxu0 }
 0x26b   : > { %v4755_v23 = vrot.slane %v3281_v36, 7  ;;  %v3283_v7 = vadd.f32 %v3282_v46, %v2729_v18  ;;  %v3310_v36 = vpop.f32.mrf.mxu1 }
 0x26c   : > { %13215 = vst [vmem:[#allocation54_spill] sm:$0xff] %v10221_v41  ;;  %v2733_v56 = vpop.f32.mrf.mxu0  ;;  %4111 = vmatmul.mubr.bf16.gmra.mxu0 %v8946_v6 }
 0x26d   : > { %v4756_v13 = vsel %vm4585_vm2, %v4753_v35, %v4755_v23  ;;  %v3287_v25 = vadd.f32 %v3286_v2, %v2733_v56  ;;  %8278 = vmatprep.mubr.msk.bf16.mxu0 %vm2099_vm0, %v8948_v29  ;;  %v3312_v35 = vpop.f32.mrf.mxu1 }
 0x26e   : > { %v10229_v44 = vadd.f32 %v4756_v13, %v3283_v7  ;;  %v2735_v45 = vpop.f32.mrf.mxu0  ;;  %v8949_v7 = vld [vmem:[%s9347_s15 + $0x240] ss:$16 sps:$4 sm:$0xff]  }
 0x26f   : > { %v4757_v46 = vrot.slane %v3287_v25, 7  ;;  %v3289_v60 = vadd.f32 %v3288_v38, %v2735_v45  ;;  %v3316_v41 = vpop.f32.mrf.mxu1  ;;  %3588 = vmatmul.mubr.bf16.gmra.mxu1 %v8949_v7  ;;  %v8951_v38 = vld [vmem:[%s9347_s15 + $0x264] ss:$16 sps:$4 sm:$0xff]  }
 0x270   : > { %13216 = vst [vmem:[#allocation55_spill] sm:$0xff] %v10229_v44  ;;  %v2737_v18 = vpop.f32.mrf.mxu0  ;;  %v8950_v44 = vld [vmem:[%s9347_s15 + $0x208] ss:$16 sps:$4 sm:$0xff]   ;;  %3597 = vmatprep.mubr.bf16.mxu1 %v8951_v38 }
 0x271   : > { %v4758_v6 = vsel %vm4585_vm2, %v4755_v23, %v4757_v46  ;;  %v3291_v30 = vadd.f32 %v3290_v0, %v2737_v18  ;;  %v8952_v23 = vld [vmem:[%s9347_s15 + $0x22c] ss:$16 sps:$4 sm:$0xff]   ;;  %v3318_v0 = vpop.f32.mrf.mxu1 }
 0x272   : > { %v10232_v2 = vadd.f32 %v4758_v6, %v3289_v60  ;;  %v2739_v56 = vpop.f32.mrf.mxu0 }
 0x273   : > { %v4759_v39 = vrot.slane %v3291_v30, 7  ;;  %v3293_v29 = vadd.f32 %v3292_v49, %v2739_v56  ;;  %v3320_v30 = vpop.f32.mrf.mxu1 }
 0x274   : > { %13217 = vst [vmem:[#allocation56_spill] sm:$0xff] %v10232_v2  ;;  %v2743_v13 = vpop.f32.mrf.mxu0  ;;  %4121 = vmatmul.mubr.bf16.gmra.mxu0 %v8950_v44 }
 0x275   : > { %v4760_v25 = vsel %vm4585_vm2, %v4757_v46, %v4759_v39  ;;  %v3297_v45 = vadd.f32 %v3296_v61, %v2743_v13  ;;  %8279 = vmatprep.mubr.msk.bf16.mxu0 %vm2099_vm0, %v8952_v23  ;;  %v3322_v46 = vpop.f32.mrf.mxu1 }
 0x276   : > { %v10240_v60 = vadd.f32 %v4760_v25, %v3293_v29  ;;  %v2745_v18 = vpop.f32.mrf.mxu0  ;;  %v8953_v29 = vld [vmem:[%s9347_s15 + $0x260] ss:$16 sps:$4 sm:$0xff]  }
 0x277   : > { %v4761_v49 = vrot.slane %v3297_v45, 7  ;;  %v3299_v6 = vadd.f32 %v3298_v52, %v2745_v18  ;;  %v3326_v2 = vpop.f32.mrf.mxu1  ;;  %3598 = vmatmul.mubr.bf16.gmra.mxu1 %v8953_v29  ;;  %v8955_v52 = vld [vmem:[%s9347_s15 + $0x284] ss:$16 sps:$4 sm:$0xff]  }
 0x278   : > { %13218 = vst [vmem:[#allocation57_spill] sm:$0xff] %v10240_v60  ;;  %v2747_v56 = vpop.f32.mrf.mxu0  ;;  %v8954_v60 = vld [vmem:[%s9347_s15 + $0x228] ss:$16 sps:$4 sm:$0xff]   ;;  %3607 = vmatprep.mubr.bf16.mxu1 %v8955_v52 }
 0x279   : > { %v4762_v44 = vsel %vm4585_vm2, %v4759_v39, %v4761_v49  ;;  %v3301_v7 = vadd.f32 %v3300_v53, %v2747_v56  ;;  %v8956_v39 = vld [vmem:[%s9347_s15 + $0x24c] ss:$16 sps:$4 sm:$0xff]   ;;  %v3328_v53 = vpop.f32.mrf.mxu1 }
 0x27a   : > { %v10243_v61 = vadd.f32 %v4762_v44, %v3299_v6  ;;  %v2749_v13 = vpop.f32.mrf.mxu0 }
 0x27b   : > { %v4763_v38 = vrot.slane %v3301_v7, 7  ;;  %v3303_v23 = vadd.f32 %v3302_v9, %v2749_v13  ;;  %v3330_v7 = vpop.f32.mrf.mxu1 }
 0x27c   : > { %13219 = vst [vmem:[#allocation58_spill] sm:$0xff] %v10243_v61  ;;  %v2753_v25 = vpop.f32.mrf.mxu0  ;;  %4131 = vmatmul.mubr.bf16.gmra.mxu0 %v8954_v60 }
 0x27d   : > { %v4764_v45 = vsel %vm4585_vm2, %v4761_v49, %v4763_v38  ;;  %v3307_v18 = vadd.f32 %v3306_v8, %v2753_v25  ;;  %8280 = vmatprep.mubr.msk.bf16.mxu0 %vm2099_vm0, %v8956_v39  ;;  %v3332_v49 = vpop.f32.mrf.mxu1 }
 0x27e   : > { %v10251_v6 = vadd.f32 %v4764_v45, %v3303_v23  ;;  %v2755_v56 = vpop.f32.mrf.mxu0  ;;  %v8957_v23 = vld [vmem:[%s9347_s15 + $0x280] ss:$16 sps:$4 sm:$0xff]  }
 0x27f   : > { %v4765_v9 = vrot.slane %v3307_v18, 7  ;;  %v3309_v44 = vadd.f32 %v3308_v47, %v2755_v56  ;;  %v3336_v61 = vpop.f32.mrf.mxu1  ;;  %3608 = vmatmul.mubr.bf16.gmra.mxu1 %v8957_v23  ;;  %v8959_v47 = vld [vmem:[%s9347_s15 + $0x2a4] ss:$16 sps:$4 sm:$0xff]  }
 0x280   : > { %13220 = vst [vmem:[#allocation59_spill] sm:$0xff] %v10251_v6  ;;  %v2757_v13 = vpop.f32.mrf.mxu0  ;;  %v8958_v6 = vld [vmem:[%s9347_s15 + $0x248] ss:$16 sps:$4 sm:$0xff]   ;;  %3617 = vmatprep.mubr.bf16.mxu1 %v8959_v47 }
 0x281   : > { %v4766_v60 = vsel %vm4585_vm2, %v4763_v38, %v4765_v9  ;;  %v3311_v29 = vadd.f32 %v3310_v36, %v2757_v13  ;;  %v8960_v38 = vld [vmem:[%s9347_s15 + $0x26c] ss:$16 sps:$4 sm:$0xff]   ;;  %v3338_v36 = vpop.f32.mrf.mxu1 }
 0x282   : > { %v10254_v8 = vadd.f32 %v4766_v60, %v3309_v44  ;;  %v2759_v25 = vpop.f32.mrf.mxu0 }
 0x283   : > { %v4767_v52 = vrot.slane %v3311_v29, 7  ;;  %v3313_v39 = vadd.f32 %v3312_v35, %v2759_v25  ;;  %v3340_v29 = vpop.f32.mrf.mxu1 }
 0x284   : > { %13221 = vst [vmem:[#allocation60_spill] sm:$0xff] %v10254_v8  ;;  %v2763_v45 = vpop.f32.mrf.mxu0  ;;  %4141 = vmatmul.mubr.bf16.gmra.mxu0 %v8958_v6 }
 0x285   : > { %v4768_v18 = vsel %vm4585_vm2, %v4765_v9, %v4767_v52  ;;  %v3317_v56 = vadd.f32 %v3316_v41, %v2763_v45  ;;  %8281 = vmatprep.mubr.msk.bf16.mxu0 %vm2099_vm0, %v8960_v38  ;;  %v3342_v9 = vpop.f32.mrf.mxu1 }
 0x286   : > { %v10262_v44 = vadd.f32 %v4768_v18, %v3313_v39  ;;  %v2765_v13 = vpop.f32.mrf.mxu0  ;;  %v8961_v39 = vld [vmem:[%s9347_s15 + $0x2a0] ss:$16 sps:$4 sm:$0xff]  }
 0x287   : > { %v4769_v35 = vrot.slane %v3317_v56, 7  ;;  %v3319_v60 = vadd.f32 %v3318_v0, %v2765_v13  ;;  %v3346_v8 = vpop.f32.mrf.mxu1  ;;  %3618 = vmatmul.mubr.bf16.gmra.mxu1 %v8961_v39  ;;  %v8963_v0 = vld [vmem:[%s9347_s15 + $0x2c4] ss:$16 sps:$4 sm:$0xff]  }
 0x288   : > { %13222 = vst [vmem:[#allocation61_spill] sm:$0xff] %v10262_v44  ;;  %v2767_v25 = vpop.f32.mrf.mxu0  ;;  %v8962_v44 = vld [vmem:[%s9347_s15 + $0x268] ss:$16 sps:$4 sm:$0xff]   ;;  %3627 = vmatprep.mubr.bf16.mxu1 %v8963_v0 }
 0x289   : > { %v4770_v6 = vsel %vm4585_vm2, %v4767_v52, %v4769_v35  ;;  %v3321_v23 = vadd.f32 %v3320_v30, %v2767_v25  ;;  %v8964_v52 = vld [vmem:[%s9347_s15 + $0x28c] ss:$16 sps:$4 sm:$0xff]   ;;  %v3348_v30 = vpop.f32.mrf.mxu1 }
 0x28a   : > { %v10265_v41 = vadd.f32 %v4770_v6, %v3319_v60  ;;  %v2769_v45 = vpop.f32.mrf.mxu0 }
 0x28b   : > { %v4771_v47 = vrot.slane %v3321_v23, 7  ;;  %v3323_v38 = vadd.f32 %v3322_v46, %v2769_v45  ;;  %v3350_v23 = vpop.f32.mrf.mxu1 }
 0x28c   : > { %13223 = vst [vmem:[#allocation62_spill] sm:$0xff] %v10265_v41  ;;  %v2773_v18 = vpop.f32.mrf.mxu0  ;;  %4151 = vmatmul.mubr.bf16.gmra.mxu0 %v8962_v44 }
 0x28d   : > { %v4772_v56 = vsel %vm4585_vm2, %v4769_v35, %v4771_v47  ;;  %v3327_v13 = vadd.f32 %v3326_v2, %v2773_v18  ;;  %8282 = vmatprep.mubr.msk.bf16.mxu0 %vm2099_vm0, %v8964_v52  ;;  %v3352_v35 = vpop.f32.mrf.mxu1 }
 0x28e   : > { %v10273_v60 = vadd.f32 %v4772_v56, %v3323_v38  ;;  %v2775_v25 = vpop.f32.mrf.mxu0  ;;  %v8965_v38 = vld [vmem:[%s9347_s15 + $0x2c0] ss:$16 sps:$4 sm:$0xff]  }
 0x28f   : > { %v4773_v46 = vrot.slane %v3327_v13, 7  ;;  %v3329_v6 = vadd.f32 %v3328_v53, %v2775_v25  ;;  %v3356_v41 = vpop.f32.mrf.mxu1  ;;  %3628 = vmatmul.mubr.bf16.gmra.mxu1 %v8965_v38  ;;  %v8967_v53 = vld [vmem:[%s9347_s15 + $0x2e4] ss:$16 sps:$4 sm:$0xff]  }
 0x290   : > { %13224 = vst [vmem:[#allocation63_spill] sm:$0xff] %v10273_v60  ;;  %v2777_v45 = vpop.f32.mrf.mxu0  ;;  %v8966_v60 = vld [vmem:[%s9347_s15 + $0x288] ss:$16 sps:$4 sm:$0xff]   ;;  %3637 = vmatprep.mubr.bf16.mxu1 %v8967_v53 }
 0x291   : > { %v4774_v44 = vsel %vm4585_vm2, %v4771_v47, %v4773_v46  ;;  %v3331_v39 = vadd.f32 %v3330_v7, %v2777_v45  ;;  %v8968_v47 = vld [vmem:[%s9347_s15 + $0x2ac] ss:$16 sps:$4 sm:$0xff]   ;;  %v3358_v7 = vpop.f32.mrf.mxu1 }
 0x292   : > { %v10276_v2 = vadd.f32 %v4774_v44, %v3329_v6  ;;  %v2779_v18 = vpop.f32.mrf.mxu0 }
 0x293   : > { %v4775_v0 = vrot.slane %v3331_v39, 7  ;;  %v3333_v52 = vadd.f32 %v3332_v49, %v2779_v18  ;;  %v3360_v39 = vpop.f32.mrf.mxu1 }
 0x294   : > { %13225 = vst [vmem:[#allocation64_spill] sm:$0xff] %v10276_v2  ;;  %v2783_v56 = vpop.f32.mrf.mxu0  ;;  %4161 = vmatmul.mubr.bf16.gmra.mxu0 %v8966_v60 }
 0x295   : > { %v4776_v13 = vsel %vm4585_vm2, %v4773_v46, %v4775_v0  ;;  %v3337_v25 = vadd.f32 %v3336_v61, %v2783_v56  ;;  %8283 = vmatprep.mubr.msk.bf16.mxu0 %vm2099_vm0, %v8968_v47  ;;  %v3362_v46 = vpop.f32.mrf.mxu1 }
 0x296   : > { %v10284_v6 = vadd.f32 %v4776_v13, %v3333_v52  ;;  %v2785_v45 = vpop.f32.mrf.mxu0  ;;  %v8969_v52 = vld [vmem:[%s9347_s15 + $0x2e0] ss:$16 sps:$4 sm:$0xff]  }
 0x297   : > { %v4777_v49 = vrot.slane %v3337_v25, 7  ;;  %v3339_v44 = vadd.f32 %v3338_v36, %v2785_v45  ;;  %v3366_v2 = vpop.f32.mrf.mxu1  ;;  %3638 = vmatmul.mubr.bf16.gmra.mxu1 %v8969_v52  ;;  %v8971_v36 = vld [vmem:[%s9347_s15 + $0x304] ss:$16 sps:$4 sm:$0xff]  }
 0x298   : > { %13226 = vst [vmem:[#allocation65_spill] sm:$0xff] %v10284_v6  ;;  %v2787_v18 = vpop.f32.mrf.mxu0  ;;  %v8970_v6 = vld [vmem:[%s9347_s15 + $0x2a8] ss:$16 sps:$4 sm:$0xff]   ;;  %3647 = vmatprep.mubr.bf16.mxu1 %v8971_v36 }
 0x299   : > { %v4778_v60 = vsel %vm4585_vm2, %v4775_v0, %v4777_v49  ;;  %v3341_v38 = vadd.f32 %v3340_v29, %v2787_v18  ;;  %v8972_v0 = vld [vmem:[%s9347_s15 + $0x2cc] ss:$16 sps:$4 sm:$0xff]   ;;  %v3368_v29 = vpop.f32.mrf.mxu1 }
 0x29a   : > { %v10287_v61 = vadd.f32 %v4778_v60, %v3339_v44  ;;  %v2789_v56 = vpop.f32.mrf.mxu0 }
 0x29b   : > { %v4779_v53 = vrot.slane %v3341_v38, 7  ;;  %v3343_v47 = vadd.f32 %v3342_v9, %v2789_v56  ;;  %v3370_v38 = vpop.f32.mrf.mxu1 }
 0x29c   : > { %13227 = vst [vmem:[#allocation66_spill] sm:$0xff] %v10287_v61  ;;  %v2793_v13 = vpop.f32.mrf.mxu0  ;;  %4171 = vmatmul.mubr.bf16.gmra.mxu0 %v8970_v6 }
 0x29d   : > { %v4780_v25 = vsel %vm4585_vm2, %v4777_v49, %v4779_v53  ;;  %v3347_v45 = vadd.f32 %v3346_v8, %v2793_v13  ;;  %8284 = vmatprep.mubr.msk.bf16.mxu0 %vm2099_vm0, %v8972_v0  ;;  %v3372_v49 = vpop.f32.mrf.mxu1 }
 0x29e   : > { %v10295_v44 = vadd.f32 %v4780_v25, %v3343_v47  ;;  %v2795_v18 = vpop.f32.mrf.mxu0  ;;  %v8973_v47 = vld [vmem:[%s9347_s15 + $0x300] ss:$16 sps:$4 sm:$0xff]  }
 0x29f   : > { %v4781_v9 = vrot.slane %v3347_v45, 7  ;;  %v3349_v60 = vadd.f32 %v3348_v30, %v2795_v18  ;;  %v10300_v61 = vpop.f32.mrf.mxu1  ;;  %3648 = vmatmul.mubr.bf16.gmra.mxu1 %v8973_v47  ;;  %v8974_v45 = vld [vmem:[%s9347_s15 + $0x2c8] ss:$16 sps:$4 sm:$0xff]   ;;  %v8975_v30 = vld [vmem:[%s9347_s15 + $0x324] ss:$16 sps:$4 sm:$0xff]  }
 0x2a0   : > { %13228 = vst [vmem:[#allocation67_spill] sm:$0xff] %v10295_v44  ;;  %v2797_v56 = vpop.f32.mrf.mxu0  ;;  %3657 = vmatprep.mubr.bf16.mxu1 %v8975_v30 }
 0x2a1   : > { %v4782_v6 = vsel %vm4585_vm2, %v4779_v53, %v4781_v9  ;;  %v3351_v52 = vadd.f32 %v3350_v23, %v2797_v56  ;;  %v8976_v23 = vld [vmem:[%s9347_s15 + $0x2ec] ss:$16 sps:$4 sm:$0xff]  }
 0x2a2   : > { %v10298_v8 = vadd.f32 %v4782_v6, %v3349_v60  ;;  %v2799_v13 = vpop.f32.mrf.mxu0  ;;  %v3411_v60 = vpop.f32.mrf.mxu1 }
 0x2a3   : > { %v4783_v36 = vrot.slane %v3351_v52, 7  ;;  %v3353_v0 = vadd.f32 %v3352_v35, %v2799_v13 }
 0x2a4   : > { %13229 = vst [vmem:[#allocation68_spill] sm:$0xff] %v10298_v8  ;;  %v2803_v25 = vpop.f32.mrf.mxu0  ;;  %4181 = vmatmul.mubr.bf16.gmra.mxu0 %v8974_v45  ;;  %v3413_v13 = vpop.f32.mrf.mxu1 }
 0x2a5   : > { %v4784_v18 = vsel %vm4585_vm2, %v4781_v9, %v4783_v36  ;;  %v3357_v53 = vadd.f32 %v3356_v41, %v2803_v25  ;;  %8285 = vmatprep.mubr.msk.bf16.mxu0 %vm2099_vm0, %v8976_v23 }
 0x2a6   : > { %v10308_v56 = vadd.f32 %v4784_v18, %v3353_v0  ;;  %v2805_v35 = vpop.f32.mrf.mxu0  ;;  %v3415_v9 = vpop.f32.mrf.mxu1  ;;  %v8977_v0 = vld [vmem:[%s9347_s15 + $0x320] ss:$16 sps:$4 sm:$0xff]  }
 0x2a7   : > { %v4785_v6 = vrot.slane %v3357_v53, 7  ;;  %v3359_v52 = vadd.f32 %v3358_v7, %v2805_v35  ;;  %3658 = vmatmul.mubr.bf16.gmra.mxu1 %v8977_v0  ;;  %v8978_v53 = vld [vmem:[%s9347_s15 + $0x2e8] ss:$16 sps:$4 sm:$0xff]   ;;  %v8979_v7 = vld [vmem:[%s9347_s15 + $0x344] ss:$16 sps:$4 sm:$0xff]  }
 0x2a8   : > { %13230 = vst [vmem:[#allocation69_spill] sm:$0xff] %v10308_v56  ;;  %v2807_v47 = vpop.f32.mrf.mxu0  ;;  %v10313_v44 = vpop.f32.mrf.mxu1  ;;  %3667 = vmatprep.mubr.bf16.mxu1 %v8979_v7  ;;  %v13062_v56 = vmov -1e+30  }
 0x2a9   : > { %v4786_v45 = vsel %vm4585_vm2, %v4783_v36, %v4785_v6  ;;  %v3361_v30 = vadd.f32 %v3360_v39, %v2807_v47  ;;  %v8980_v39 = vld [vmem:[%s9347_s15 + $0x30c] ss:$16 sps:$4 sm:$0xff]  }
 0x2aa   : > { %v10311_v41 = vadd.f32 %v4786_v45, %v3359_v52  ;;  %v2809_v25 = vpop.f32.mrf.mxu0  ;;  %v10321_v52 = vpop.f32.mrf.mxu1 }
 0x2ab   : > { %v4787_v23 = vrot.slane %v3361_v30, 7  ;;  %v3363_v8 = vadd.f32 %v3362_v46, %v2809_v25 }
 0x2ac   : > { %13231 = vst [vmem:[#allocation70_spill] sm:$0xff] %v10311_v41  ;;  %v2813_v18 = vpop.f32.mrf.mxu0  ;;  %4191 = vmatmul.mubr.bf16.gmra.mxu0 %v8978_v53  ;;  %v10325_v25 = vpop.f32.mrf.mxu1  ;;  %v8983_v41 = vld [vmem:[%s9347_s15 + $0x364] ss:$16 sps:$4 sm:$0xff]  }
 0x2ad   : > { %v4788_v35 = vsel %vm4585_vm2, %v4785_v6, %v4787_v23  ;;  %v3367_v36 = vadd.f32 %v3366_v2, %v2813_v18  ;;  %8286 = vmatprep.mubr.msk.bf16.mxu0 %vm2099_vm0, %v8980_v39  ;;  %v6879_v39 = vlaneseq }
 0x2ae   : > { %v10323_v47 = vadd.f32 %v4788_v35, %v3363_v8  ;;  %v2815_v46 = vpop.f32.mrf.mxu0  ;;  %v10328_v2 = vpop.f32.mrf.mxu1 }
 0x2af   : > { %v4789_v45 = vrot.slane %v3367_v36, 7  ;;  %v3369_v30 = vadd.f32 %v3368_v29, %v2815_v46  ;;  %v8981_v36 = vld [vmem:[%s9347_s15 + $0x340] ss:$16 sps:$4 sm:$0xff]   ;;  %v8982_v46 = vld [vmem:[%s9347_s15 + $0x308] ss:$16 sps:$4 sm:$0xff]  }
 0x2b0   : > { %13232 = vst [vmem:[#allocation71_spill] sm:$0xff] %v10323_v47  ;;  %v2817_v0 = vpop.f32.mrf.mxu0  ;;  %v10332_v47 = vpop.f32.mrf.mxu1  ;;  %3668 = vmatmul.mubr.bf16.gmra.mxu1 %v8981_v36 }
 0x2b1   : > { %v4790_v53 = vsel %vm4585_vm2, %v4787_v23, %v4789_v45  ;;  %v3371_v6 = vadd.f32 %v3370_v38, %v2817_v0  ;;  %3677 = vmatprep.mubr.bf16.mxu1 %v8983_v41  ;;  %v8984_v0 = vld [vmem:[%s9347_s15 + $0x32c] ss:$16 sps:$4 sm:$0xff]  }
 0x2b2   : > { %v10330_v18 = vadd.f32 %v4790_v53, %v3369_v30  ;;  %v2819_v7 = vpop.f32.mrf.mxu0  ;;  %v10341_v30 = vpop.f32.mrf.mxu1 }
 0x2b3   : > { %v4791_v8 = vrot.slane %v3371_v6, 7  ;;  %v3373_v35 = vadd.f32 %v3372_v49, %v2819_v7  ;;  %v10345_v6 = vshrl.u32 %v6879_v39, 7 }
 0x2b4   : > { %13233 = vst [vmem:[#allocation72_spill] sm:$0xff] %v10330_v18  ;;  %v3962_v29 = vpop.f32.mrf.mxu0  ;;  %4201 = vmatmul.mubr.bf16.gmra.mxu0 %v8982_v46  ;;  %v10349_v36 = vpop.f32.mrf.mxu1  ;;  %v8988_v18 = vld [vmem:[%s9347_s15 + $0x384] ss:$16 sps:$4 sm:$0xff]  }
 0x2b5   : > { %v4792_v38 = vsel %vm4585_vm2, %v4789_v45, %v4791_v8  ;;  %v3963_v23 = vadd.f32 %v3962_v29, %v10300_v61  ;;  %8287 = vmatprep.mubr.msk.bf16.mxu0 %vm2099_vm0, %v8984_v0  ;;  %13235 = vst [vmem:[#allocation74_spill] sm:$0xff] %v10345_v6  ;;  %vm6893_vm4 = vcmp.ge.s32.totalorder %v10345_v6, 2  ;;  %v8985_v0 = vld [vmem:[%s9347_s15 + $0x360] ss:$16 sps:$4 sm:$0xff]  }
 0x2b6   : > { %v10343_v53 = vadd.f32 %v4792_v38, %v3373_v35  ;;  %v3964_v49 = vpop.f32.mrf.mxu0  ;;  %v10352_v8 = vpop.f32.mrf.mxu1 }
 0x2b7   : > { %v10347_v7 = vadd.f32 %v3964_v49, %v3411_v60  ;;  %v5107_v29 = vrot.slane %v3963_v23, 1 }
 0x2b8   : > { %13234 = vst [vmem:[#allocation73_spill] sm:$0xff] %v10343_v53  ;;  %v3966_v41 = vpop.f32.mrf.mxu0  ;;  %v10358_v38 = vpop.f32.mrf.mxu1  ;;  %3678 = vmatmul.mubr.bf16.gmra.mxu1 %v8985_v0  ;;  %v8987_v53 = vld [vmem:[%s9347_s15 + $0x34c] ss:$16 sps:$4 sm:$0xff]  }
 0x2b9   : > { %13236 = vst [vmem:[#allocation75_spill] sm:$0xff] %v10347_v7  ;;  %v3967_v45 = vadd.f32 %v3966_v41, %v3413_v13  ;;  %v5627_v61 = vrot.slane %v10347_v7, 7  ;;  %v6253_v13 = vrot.slane %v10347_v7, 1  ;;  %v8986_v41 = vld [vmem:[%s9347_s15 + $0x328] ss:$16 sps:$4 sm:$0xff]   ;;  %3687 = vmatprep.mubr.bf16.mxu1 %v8988_v18 }
 0x2ba   : > { %v3968_v35 = vpop.f32.mrf.mxu0  ;;  %v10370_v0 = vpop.f32.mrf.mxu1 }
 0x2bb   : > { %v5108_v46 = vrot.slane %v3967_v45, 1  ;;  %v10355_v39 = vadd.f32 %v3968_v35, %v3415_v9  ;;  %v5835_v60 = vsel %vm4585_vm2, 0.0, %v5627_v61 }
 0x2bc   : > { %v3972_v49 = vpop.f32.mrf.mxu0  ;;  %4211 = vmatmul.mubr.bf16.gmra.mxu0 %v8986_v41  ;;  %5837 = vrot.lane.b32.xlu0 %v5835_v60, %s9149_s14 }
 0x2bd   : > { %13237 = vst [vmem:[#allocation76_spill] sm:$0xff] %v10355_v39  ;;  %v5109_v23 = vsel %vm5106_vm3, %v5107_v29, %v5108_v46  ;;  %v3973_v9 = vadd.f32 %v3972_v49, %v10313_v44  ;;  %v6254_v45 = vrot.slane %v10355_v39, 1  ;;  %v5628_v35 = vrot.slane %v10355_v39, 7  ;;  %8288 = vmatprep.mubr.msk.bf16.mxu0 %vm2099_vm0, %v8987_v53  ;;  %v10384_v39 = vpop.f32.mrf.mxu1 }
 0x2be   : > { %v5419_v41 = vadd.f32 %v5109_v23, %v9677_v33  ;;  %v10377_v29 = vsel %vm6893_vm4, 0.0, %v13062_v56  ;;  %v3974_v44 = vpop.f32.mrf.mxu0 }
 0x2bf   : > { %v5110_v60 = vrot.slane %v3973_v9, 1  ;;  %v10380_v49 = vadd.f32 %v3974_v44, %v10321_v52  ;;  %v6255_v12 = vsel %vm5106_vm3, %v6253_v13, %v6254_v45  ;;  %v5629_v53 = vsel %vm4585_vm2, %v5627_v61, %v5628_v35  ;;  %v10391_v9 = vpop.f32.mrf.mxu1 }
 0x2c0   : > { %v3976_v18 = vpop.f32.mrf.mxu0  ;;  %6463 = vrot.lane.b32.xlu0 %v6255_v12, %s9151_s21  ;;  %5839 = vrot.lane.b32.xlu1 %v5629_v53, %s9149_s14  ;;  %v6945_v61 = vadd.f32 %v10377_v29, %v5419_v41  ;;  %v8990_v41 = vld [vmem:[%s9347_s15 + $0x348] ss:$16 sps:$4 sm:$0xff]  }
 0x2c1   : > { %v5111_v33 = vsel %vm5106_vm3, %v5108_v46, %v5110_v60  ;;  %v5630_v23 = vrot.slane %v10380_v49, 7  ;;  %v3977_v52 = vadd.f32 %v3976_v18, %v10325_v25  ;;  %v6256_v56 = vrot.slane %v10380_v49, 1  ;;  %v10400_v14 = vpop.f32.mrf.mxu1  ;;  %v8989_v25 = vld [vmem:[%s9347_s15 + $0x380] ss:$16 sps:$4 sm:$0xff]  }
 0x2c2   : > { %v5420_v13 = vadd.f32 %v5111_v33, %v9685_v42  ;;  %v3978_v44 = vpop.f32.mrf.mxu0  ;;  %3688 = vmatmul.mubr.bf16.gmra.mxu1 %v8989_v25 }
 0x2c3   : > { %v5112_v12 = vrot.slane %v3977_v52, 1  ;;  %v10397_v53 = vadd.f32 %v3978_v44, %v10328_v2  ;;  %v5631_v46 = vsel %vm4585_vm2, %v5628_v35, %v5630_v23  ;;  %v8991_v52 = vld [vmem:[%s9347_s15 + $0x36c] ss:$16 sps:$4 sm:$0xff]   ;;  %v10410_v35 = vpop.f32.mrf.mxu1  ;;  %v8992_v44 = vld [vmem:[%s9347_s15 + $0x3a4] ss:$16 sps:$4 sm:$0xff]  }
 0x2c4   : > { %v7049_v18 = vmax.f32 %v6945_v61, %v5420_v13  ;;  %v3982_v7 = vpop.f32.mrf.mxu0  ;;  %4221 = vmatmul.mubr.bf16.gmra.mxu0 %v8990_v41  ;;  %5841 = vrot.lane.b32.xlu1 %v5631_v46, %s9149_s14 }
 0x2c5   : > { %13238 = vst [vmem:[#allocation77_spill] sm:$0xff] %v10397_v53  ;;  %v5113_v42 = vsel %vm5106_vm3, %v5110_v60, %v5112_v12  ;;  %v3983_v33 = vadd.f32 %v3982_v7, %v10332_v47  ;;  %v6258_v2 = vrot.slane %v10397_v53, 1  ;;  %8289 = vmatprep.mubr.msk.bf16.mxu0 %vm2099_vm0, %v8991_v52  ;;  %3697 = vmatprep.mubr.bf16.mxu1 %v8992_v44  ;;  %v10419_v7 = vpop.f32.mrf.mxu1 }
 0x2c6   : > { %v5421_v61 = vadd.f32 %v5113_v42, %v9696_v55  ;;  %v3984_v13 = vpop.f32.mrf.mxu0  ;;  %v6257_v47 = vsel %vm5106_vm3, %v6254_v45, %v6256_v56  ;;  %v5632_v55 = vrot.slane %v10397_v53, 7  ;;  %v8994_v53 = vld [vmem:[%s9347_s15 + $0x368] ss:$16 sps:$4 sm:$0xff]  }
 0x2c7   : > { %v5114_v25 = vrot.slane %v3983_v33, 1  ;;  %v10415_v41 = vadd.f32 %v3984_v13, %v10341_v30  ;;  %v6259_v60 = vsel %vm5106_vm3, %v6256_v56, %v6258_v2  ;;  %v10427_v44 = vpop.f32.mrf.mxu1 }
 0x2c8   : > { %v7050_v46 = vmax.f32 %v7049_v18, %v5421_v61  ;;  %v3986_v52 = vpop.f32.mrf.mxu0  ;;  %6467 = vrot.lane.b32.xlu0 %v6259_v60, %s9151_s21  ;;  %6465 = vrot.lane.b32.xlu1 %v6257_v47, %s9151_s21  ;;  %v8993_v47 = vld [vmem:[%s9347_s15 + $0x3a0] ss:$16 sps:$4 sm:$0xff]  }
 0x2c9   : > { %v5115_v42 = vsel %vm5106_vm3, %v5112_v12, %v5114_v25  ;;  %v5634_v30 = vrot.slane %v10415_v41, 7  ;;  %v3987_v33 = vadd.f32 %v3986_v52, %v10349_v36  ;;  %v10434_v60 = vpop.f32.mrf.mxu1  ;;  %v6260_v36 = vrot.slane %v10415_v41, 1 }
 0x2ca   : > { %v5422_v56 = vadd.f32 %v5115_v42, %v9708_v1  ;;  %v3988_v45 = vpop.f32.mrf.mxu0  ;;  %3698 = vmatmul.mubr.bf16.gmra.mxu1 %v8993_v47  ;;  %v5633_v1 = vsel %vm4585_vm2, %v5630_v23, %v5632_v55  ;;  %v8996_v47 = vld [vmem:[%s9347_s15 + $0x3c4] ss:$16 sps:$4 sm:$0xff]  }
 0x2cb   : > { %v5116_v18 = vrot.slane %v3987_v33, 1  ;;  %v10431_v61 = vadd.f32 %v3988_v45, %v10352_v8  ;;  %v5635_v13 = vsel %vm4585_vm2, %v5632_v55, %v5634_v30  ;;  %v8995_v45 = vld [vmem:[%s9347_s15 + $0x38c] ss:$16 sps:$4 sm:$0xff]   ;;  %3707 = vmatprep.mubr.bf16.mxu1 %v8996_v47  ;;  %v8997_v47 = vld [vmem:[%s9347_s15 + $0x3c0] ss:$16 sps:$4 sm:$0xff]  }
 0x2cc   : > { %v7051_v12 = vmax.f32 %v7050_v46, %v5422_v56  ;;  %v3992_v52 = vpop.f32.mrf.mxu0  ;;  %4231 = vmatmul.mubr.bf16.gmra.mxu0 %v8994_v53  ;;  %5845 = vrot.lane.b32.xlu0 %v5635_v13, %s9149_s14  ;;  %v10447_v46 = vpop.f32.mrf.mxu1 }
 0x2cd   : > { %v5117_v8 = vsel %vm5106_vm3, %v5114_v25, %v5116_v18  ;;  %v3993_v42 = vadd.f32 %v3992_v52, %v10358_v38  ;;  %5843 = vrot.lane.b32.xlu1 %v5633_v1, %s9149_s14  ;;  %v5636_v33 = vrot.slane %v10431_v61, 7  ;;  %8290 = vmatprep.mubr.msk.bf16.mxu0 %vm2099_vm0, %v8995_v45  ;;  %v6261_v1 = vsel %vm5106_vm3, %v6258_v2, %v6260_v36 }
 0x2ce   : > { %v5423_v56 = vadd.f32 %v5117_v8, %v9722_v16  ;;  %v3994_v53 = vpop.f32.mrf.mxu0  ;;  %v10455_v25 = vpop.f32.mrf.mxu1  ;;  %v6262_v16 = vrot.slane %v10431_v61, 1 }
 0x2cf   : > { %v5118_v13 = vrot.slane %v3993_v42, 1  ;;  %v10452_v23 = vadd.f32 %v3994_v53, %v10370_v0  ;;  %v5637_v38 = vsel %vm4585_vm2, %v5634_v30, %v5636_v33 }
 0x2d0   : > { %v7052_v55 = vmax.f32 %v7051_v12, %v5423_v56  ;;  %v3996_v52 = vpop.f32.mrf.mxu0  ;;  %5847 = vrot.lane.b32.xlu0 %v5637_v38, %s9149_s14  ;;  %v10464_v30 = vpop.f32.mrf.mxu1 }
 0x2d1   : > { %v5119_v8 = vsel %vm5106_vm3, %v5116_v18, %v5118_v13  ;;  %v5638_v42 = vrot.slane %v10452_v23, 7  ;;  %v3997_v0 = vadd.f32 %v3996_v52, %v10384_v39  ;;  %6469 = vrot.lane.b32.xlu1 %v6261_v1, %s9151_s21  ;;  %v6264_v39 = vrot.slane %v10452_v23, 1  ;;  %v8998_v1 = vld [vmem:[%s9347_s15 + $0x388] ss:$16 sps:$4 sm:$0xff]  }
 0x2d2   : > { %v5424_v12 = vadd.f32 %v5119_v8, %v9734_v27  ;;  %v3998_v45 = vpop.f32.mrf.mxu0  ;;  %v10471_v18 = vpop.f32.mrf.mxu1  ;;  %3708 = vmatmul.mubr.bf16.gmra.mxu1 %v8997_v47  ;;  %v6263_v27 = vsel %vm5106_vm3, %v6260_v36, %v6262_v16  ;;  %v9000_v47 = vld [vmem:[%s9347_s15 + $0x3e4] ss:$16 sps:$4 sm:$0xff]  }
 0x2d3   : > { %v5120_v56 = vrot.slane %v3997_v0, 1  ;;  %v10468_v53 = vadd.f32 %v3998_v45, %v10391_v9  ;;  %v5639_v2 = vsel %vm4585_vm2, %v5636_v33, %v5638_v42  ;;  %v8999_v0 = vld [vmem:[%s9347_s15 + $0x3ac] ss:$16 sps:$4 sm:$0xff]   ;;  %3717 = vmatprep.mubr.bf16.mxu1 %v9000_v47  ;;  %v9001_v47 = vld [vmem:[%s9347_s15 + $0x3e0] ss:$16 sps:$4 sm:$0xff]  }
 0x2d4   : > { %v7053_v38 = vmax.f32 %v7052_v55, %v5424_v12  ;;  %v4002_v52 = vpop.f32.mrf.mxu0  ;;  %4241 = vmatmul.mubr.bf16.gmra.mxu0 %v8998_v1  ;;  %5849 = vrot.lane.b32.xlu0 %v5639_v2, %s9149_s14  ;;  %v10484_v55 = vpop.f32.mrf.mxu1 }
 0x2d5   : > { %v5121_v9 = vsel %vm5106_vm3, %v5118_v13, %v5120_v56  ;;  %v4003_v8 = vadd.f32 %v4002_v52, %v10400_v14  ;;  %6471 = vrot.lane.b32.xlu1 %v6263_v27, %s9151_s21  ;;  %v5640_v33 = vrot.slane %v10468_v53, 7  ;;  %8291 = vmatprep.mubr.msk.bf16.mxu0 %vm2099_vm0, %v8999_v0  ;;  %v6265_v27 = vsel %vm5106_vm3, %v6262_v16, %v6264_v39 }
 0x2d6   : > { %v5425_v12 = vadd.f32 %v5121_v9, %v9743_v43  ;;  %v4004_v45 = vpop.f32.mrf.mxu0  ;;  %v10492_v13 = vpop.f32.mrf.mxu1  ;;  %v6266_v43 = vrot.slane %v10468_v53, 1 }
 0x2d7   : > { %v5122_v2 = vrot.slane %v4003_v8, 1  ;;  %v10489_v36 = vadd.f32 %v4004_v45, %v10410_v35  ;;  %v5641_v14 = vsel %vm4585_vm2, %v5638_v42, %v5640_v33 }
 0x2d8   : > { %v7054_v52 = vmax.f32 %v7053_v38, %v5425_v12  ;;  %v4006_v1 = vpop.f32.mrf.mxu0  ;;  %5851 = vrot.lane.b32.xlu0 %v5641_v14, %s9149_s14  ;;  %v10501_v42 = vpop.f32.mrf.mxu1 }
 0x2d9   : > { %v5123_v9 = vsel %vm5106_vm3, %v5120_v56, %v5122_v2  ;;  %v5642_v8 = vrot.slane %v10489_v36, 7  ;;  %v4007_v35 = vadd.f32 %v4006_v1, %v10419_v7  ;;  %6473 = vrot.lane.b32.xlu1 %v6265_v27, %s9151_s21  ;;  %v6268_v7 = vrot.slane %v10489_v36, 1  ;;  %v9002_v27 = vld [vmem:[%s9347_s15 + $0x3a8] ss:$16 sps:$4 sm:$0xff]  }
 0x2da   : > { %v5426_v38 = vadd.f32 %v5123_v9, %v9749_v51  ;;  %v4008_v0 = vpop.f32.mrf.mxu0  ;;  %v10508_v56 = vpop.f32.mrf.mxu1  ;;  %3718 = vmatmul.mubr.bf16.gmra.mxu1 %v9001_v47  ;;  %v6267_v51 = vsel %vm5106_vm3, %v6264_v39, %v6266_v43  ;;  %v9004_v47 = vld [vmem:[%s9347_s15 + $0x404] ss:$16 sps:$4 sm:$0xff]  }
 0x2db   : > { %v5124_v12 = vrot.slane %v4007_v35, 1  ;;  %v10505_v45 = vadd.f32 %v4008_v0, %v10427_v44  ;;  %v5643_v16 = vsel %vm4585_vm2, %v5640_v33, %v5642_v8  ;;  %v9003_v35 = vld [vmem:[%s9347_s15 + $0x3cc] ss:$16 sps:$4 sm:$0xff]   ;;  %3727 = vmatprep.mubr.bf16.mxu1 %v9004_v47  ;;  %v9005_v47 = vld [vmem:[%s9347_s15 + $0x400] ss:$16 sps:$4 sm:$0xff]  }
 0x2dc   : > { %v7055_v14 = vmax.f32 %v7054_v52, %v5426_v38  ;;  %v4012_v1 = vpop.f32.mrf.mxu0  ;;  %4251 = vmatmul.mubr.bf16.gmra.mxu0 %v9002_v27  ;;  %5853 = vrot.lane.b32.xlu0 %v5643_v16, %s9149_s14  ;;  %v10521_v52 = vpop.f32.mrf.mxu1 }
 0x2dd   : > { %13239 = vst [vmem:[#allocation78_spill] sm:$0xff] %v10505_v45  ;;  %v5125_v44 = vsel %vm5106_vm3, %v5122_v2, %v5124_v12  ;;  %v4013_v9 = vadd.f32 %v4012_v1, %v10434_v60  ;;  %6475 = vrot.lane.b32.xlu1 %v6267_v51, %s9151_s21  ;;  %v5644_v33 = vrot.slane %v10505_v45, 7  ;;  %8292 = vmatprep.mubr.msk.bf16.mxu0 %vm2099_vm0, %v9003_v35 }
 0x2de   : > { %v5427_v38 = vadd.f32 %v5125_v44, %v9760_v3  ;;  %v4014_v0 = vpop.f32.mrf.mxu0  ;;  %v10529_v2 = vpop.f32.mrf.mxu1  ;;  %v6269_v51 = vsel %vm5106_vm3, %v6266_v43, %v6268_v7  ;;  %v6270_v3 = vrot.slane %v10505_v45, 1 }
 0x2df   : > { %v5126_v16 = vrot.slane %v4013_v9, 1  ;;  %v10526_v39 = vadd.f32 %v4014_v0, %v10447_v46  ;;  %v5645_v60 = vsel %vm4585_vm2, %v5642_v8, %v5644_v33 }
 0x2e0   : > { %v7056_v1 = vmax.f32 %v7055_v14, %v5427_v38  ;;  %v4016_v27 = vpop.f32.mrf.mxu0  ;;  %5855 = vrot.lane.b32.xlu0 %v5645_v60, %s9149_s14  ;;  %v10538_v8 = vpop.f32.mrf.mxu1 }
 0x2e1   : > { %13240 = vst [vmem:[#allocation79_spill] sm:$0xff] %v10526_v39  ;;  %v5127_v44 = vsel %vm5106_vm3, %v5124_v12, %v5126_v16  ;;  %v5646_v9 = vrot.slane %v10526_v39, 7  ;;  %v4017_v46 = vadd.f32 %v4016_v27, %v10455_v25  ;;  %6477 = vrot.lane.b32.xlu1 %v6269_v51, %s9151_s21  ;;  %v6272_v25 = vrot.slane %v10526_v39, 1  ;;  %v9006_v51 = vld [vmem:[%s9347_s15 + $0x3c8] ss:$16 sps:$4 sm:$0xff]  }
 0x2e2   : > { %v5428_v14 = vadd.f32 %v5127_v44, %v9766_v11  ;;  %v4018_v35 = vpop.f32.mrf.mxu0  ;;  %v10545_v12 = vpop.f32.mrf.mxu1  ;;  %3728 = vmatmul.mubr.bf16.gmra.mxu1 %v9005_v47  ;;  %v6271_v11 = vsel %vm5106_vm3, %v6268_v7, %v6270_v3  ;;  %v9008_v47 = vld [vmem:[%s9347_s15 + $0x424] ss:$16 sps:$4 sm:$0xff]  }
 0x2e3   : > { %v5128_v38 = vrot.slane %v4017_v46, 1  ;;  %v10542_v0 = vadd.f32 %v4018_v35, %v10464_v30  ;;  %v5647_v43 = vsel %vm4585_vm2, %v5644_v33, %v5646_v9  ;;  %v9007_v46 = vld [vmem:[%s9347_s15 + $0x3ec] ss:$16 sps:$4 sm:$0xff]   ;;  %3737 = vmatprep.mubr.bf16.mxu1 %v9008_v47  ;;  %v9009_v47 = vld [vmem:[%s9347_s15 + $0x420] ss:$16 sps:$4 sm:$0xff]  }
 0x2e4   : > { %v7057_v60 = vmax.f32 %v7056_v1, %v5428_v14  ;;  %v4022_v27 = vpop.f32.mrf.mxu0  ;;  %4261 = vmatmul.mubr.bf16.gmra.mxu0 %v9006_v51  ;;  %5857 = vrot.lane.b32.xlu0 %v5647_v43, %s9149_s14  ;;  %v10558_v1 = vpop.f32.mrf.mxu1  ;;  %v6892_v43 = vadd.s32 96, %v10345_v6 }
 0x2e5   : > { %13241 = vst [vmem:[#allocation80_spill] sm:$0xff] %v10542_v0  ;;  %v5129_v30 = vsel %vm5106_vm3, %v5126_v16, %v5128_v38  ;;  %v4023_v44 = vadd.f32 %v4022_v27, %v10471_v18  ;;  %6479 = vrot.lane.b32.xlu1 %v6271_v11, %s9151_s21  ;;  %v5648_v33 = vrot.slane %v10542_v0, 7  ;;  %8293 = vmatprep.mubr.msk.bf16.mxu0 %vm2099_vm0, %v9007_v46 }
 0x2e6   : > { %v5429_v14 = vadd.f32 %v5129_v30, %v9777_v22  ;;  %v4024_v35 = vpop.f32.mrf.mxu0  ;;  %v10564_v18 = vpop.f32.mrf.mxu1  ;;  %v6273_v22 = vsel %vm5106_vm3, %v6270_v3, %v6272_v25  ;;  %v6274_v30 = vrot.slane %v10542_v0, 1  ;;  %vm6918_vm5 = vcmp.lt.s32.totalorder %v6892_v43, 102 }
 0x2e7   : > { %v5130_v7 = vrot.slane %v4023_v44, 1  ;;  %v5649_v16 = vsel %vm4585_vm2, %v5646_v9, %v5648_v33  ;;  %v10567_v51 = vadd.f32 %v4024_v35, %v10484_v55 }
 0x2e8   : > { %v7058_v27 = vmax.f32 %v7057_v60, %v5429_v14  ;;  %v4026_v11 = vpop.f32.mrf.mxu0  ;;  %5859 = vrot.lane.b32.xlu0 %v5649_v16, %s9149_s14  ;;  %v10575_v9 = vpop.f32.mrf.mxu1 }
 0x2e9   : > { %13242 = vst [vmem:[#allocation81_spill] sm:$0xff] %v10567_v51  ;;  %v5131_v46 = vsel %vm5106_vm3, %v5128_v38, %v5130_v7  ;;  %v4027_v44 = vadd.f32 %v4026_v11, %v10492_v13  ;;  %6481 = vrot.lane.b32.xlu1 %v6273_v22, %s9151_s21  ;;  %v5650_v13 = vrot.slane %v10567_v51, 7  ;;  %v9010_v11 = vld [vmem:[%s9347_s15 + $0x3e8] ss:$16 sps:$4 sm:$0xff]   ;;  %v6275_v22 = vsel %vm5106_vm3, %v6272_v25, %v6274_v30 }
 0x2ea   : > { %v5430_v55 = vadd.f32 %v5131_v46, %v9789_v37  ;;  %v4028_v60 = vpop.f32.mrf.mxu0  ;;  %v10581_v3 = vpop.f32.mrf.mxu1  ;;  %3738 = vmatmul.mubr.bf16.gmra.mxu1 %v9009_v47  ;;  %v9011_v37 = vld [vmem:[%s9347_s15 + $0x444] ss:$16 sps:$4 sm:$0xff]  }
 0x2eb   : > { %v5132_v14 = vrot.slane %v4027_v44, 1  ;;  %v10579_v35 = vadd.f32 %v4028_v60, %v10501_v42  ;;  %3747 = vmatprep.mubr.bf16.mxu1 %v9011_v37  ;;  %v13244_v44 = vmov -1e+30  }
 0x2ec   : > { %v7059_v38 = vmax.f32 %v7058_v27, %v5430_v55  ;;  %v4032_v16 = vpop.f32.mrf.mxu0  ;;  %4271 = vmatmul.mubr.bf16.gmra.mxu0 %v9010_v11  ;;  %v10591_v42 = vsel %vm6918_vm5, 0.0, %v13244_v44  ;;  %v9012_v55 = vld [vmem:[%s9347_s15 + $0x40c] ss:$16 sps:$4 sm:$0xff]   ;;  %v10598_v47 = vpop.f32.mrf.mxu1 }
 0x2ed   : > { %13243 = vst [vmem:[#allocation82_spill] sm:$0xff] %v10579_v35  ;;  %v5133_v46 = vsel %vm5106_vm3, %v5130_v7, %v5132_v14  ;;  %13245 = vst [vmem:[#allocation83_spill] sm:$0xff] %v10591_v42  ;;  %v4033_v60 = vadd.f32 %v4032_v16, %v10508_v56  ;;  %6483 = vrot.lane.b32.xlu1 %v6275_v22, %s9151_s21  ;;  %v5652_v27 = vrot.slane %v10579_v35, 7  ;;  %8294 = vmatprep.mubr.msk.bf16.mxu0 %vm2099_vm0, %v9012_v55 }
 0x2ee   : > { %v5431_v25 = vadd.f32 %v5133_v46, %v9799_v57  ;;  %v4034_v11 = vpop.f32.mrf.mxu0  ;;  %v6278_v56 = vrot.slane %v10579_v35, 1  ;;  %v10606_v16 = vpop.f32.mrf.mxu1  ;;  %v6276_v22 = vrot.slane %v10567_v51, 1  ;;  %v5651_v57 = vsel %vm4585_vm2, %v5648_v33, %v5650_v13 }
 0x2ef   : > { %v5134_v37 = vrot.slane %v4033_v60, 1  ;;  %v10602_v7 = vadd.f32 %v4034_v11, %v10521_v52  ;;  %v5653_v43 = vsel %vm4585_vm2, %v5650_v13, %v5652_v27 }
 0x2f0   : > { %v6957_v44 = vadd.f32 %v10591_v42, %v5431_v25  ;;  %v4036_v55 = vpop.f32.mrf.mxu0  ;;  %5863 = vrot.lane.b32.xlu0 %v5653_v43, %s9149_s14  ;;  %v10615_v60 = vpop.f32.mrf.mxu1 }
 0x2f1   : > { %13246 = vst [vmem:[#allocation84_spill] sm:$0xff] %v10602_v7  ;;  %v5135_v46 = vsel %vm5106_vm3, %v5132_v14, %v5134_v37  ;;  %v4037_v52 = vadd.f32 %v4036_v55, %v10529_v2  ;;  %5861 = vrot.lane.b32.xlu1 %v5651_v57, %s9149_s14  ;;  %v5654_v35 = vrot.slane %v10602_v7, 7  ;;  %v6279_v14 = vsel %vm5106_vm3, %v6276_v22, %v6278_v56  ;;  %v9013_v2 = vld [vmem:[%s9347_s15 + $0x440] ss:$16 sps:$4 sm:$0xff]   ;;  %v9014_v55 = vld [vmem:[%s9347_s15 + $0x408] ss:$16 sps:$4 sm:$0xff]  }
 0x2f2   : > { %v10617_v11 = vmax.f32 %v7059_v38, %v6957_v44  ;;  %v5432_v6 = vadd.f32 %v5135_v46, %v9806_v4  ;;  %v4038_v25 = vpop.f32.mrf.mxu0  ;;  %v10625_v13 = vpop.f32.mrf.mxu1  ;;  %3748 = vmatmul.mubr.bf16.gmra.mxu1 %v9013_v2  ;;  %v6280_v38 = vrot.slane %v10602_v7, 1  ;;  %v6277_v4 = vsel %vm5106_vm3, %v6274_v30, %v6276_v22  ;;  %v9015_v46 = vld [vmem:[%s9347_s15 + $0x42c] ss:$16 sps:$4 sm:$0xff]   ;;  %v9016_v7 = vld [vmem:[%s9347_s15 + $0x464] ss:$16 sps:$4 sm:$0xff]  }
 0x2f3   : > { %v5136_v43 = vrot.slane %v4037_v52, 1  ;;  %v10622_v33 = vadd.f32 %v4038_v25, %v10538_v8  ;;  %3757 = vmatprep.mubr.bf16.mxu1 %v9016_v7 }
 0x2f4   : > { %v4042_v44 = vpop.f32.mrf.mxu0  ;;  %4281 = vmatmul.mubr.bf16.gmra.mxu0 %v9014_v55  ;;  %6487 = vrot.lane.b32.xlu0 %v6279_v14, %s9151_s21  ;;  %v10637_v52 = vpop.f32.mrf.mxu1  ;;  %v6958_v25 = vadd.f32 %v10377_v29, %v5432_v6 }
 0x2f5   : > { %13247 = vst [vmem:[#allocation85_spill] sm:$0xff] %v10622_v33  ;;  %v5137_v57 = vsel %vm5106_vm3, %v5134_v37, %v5136_v43  ;;  %v4043_v8 = vadd.f32 %v4042_v44, %v10545_v12  ;;  %6485 = vrot.lane.b32.xlu1 %v6277_v4, %s9151_s21  ;;  %8295 = vmatprep.mubr.msk.bf16.mxu0 %vm2099_vm0, %v9015_v46  ;;  %v5656_v37 = vrot.slane %v10622_v33, 7 }
 0x2f6   : > { %v5433_v2 = vadd.f32 %v5137_v57, %v9822_v21  ;;  %v4044_v55 = vpop.f32.mrf.mxu0  ;;  %v5655_v12 = vsel %vm4585_vm2, %v5652_v27, %v5654_v35  ;;  %v10647_v22 = vpop.f32.mrf.mxu1  ;;  %v6281_v21 = vsel %vm5106_vm3, %v6278_v56, %v6280_v38  ;;  %v6282_v27 = vrot.slane %v10622_v33, 1  ;;  %v9062_v33 = vld [vmem:[%s9347_s15 + $0x588] ss:$16 sps:$4 sm:$0xff]  }
 0x2f7   : > { %v5138_v14 = vrot.slane %v4043_v8, 1  ;;  %v10643_v30 = vadd.f32 %v4044_v55, %v10558_v1  ;;  %v5657_v56 = vsel %vm4585_vm2, %v5654_v35, %v5656_v37  ;;  %v9017_v55 = vld [vmem:[%s9347_s15 + $0x460] ss:$16 sps:$4 sm:$0xff]  }
 0x2f8   : > { %v7067_v44 = vmax.f32 %v6958_v25, %v5433_v2  ;;  %v4046_v4 = vpop.f32.mrf.mxu0  ;;  %5865 = vrot.lane.b32.xlu0 %v5655_v12, %s9149_s14  ;;  %v10656_v57 = vpop.f32.mrf.mxu1 }
 0x2f9   : > { %13248 = vst [vmem:[#allocation86_spill] sm:$0xff] %v10643_v30  ;;  %v5139_v6 = vsel %vm5106_vm3, %v5136_v43, %v5138_v14  ;;  %v6284_v7 = vrot.slane %v10643_v30, 1  ;;  %v4047_v1 = vadd.f32 %v4046_v4, %v10564_v18  ;;  %6489 = vrot.lane.b32.xlu1 %v6281_v21, %s9151_s21 }
 0x2fa   : > { %v5434_v8 = vadd.f32 %v5139_v6, %v9830_v31  ;;  %v4048_v46 = vpop.f32.mrf.mxu0  ;;  %v10666_v43 = vpop.f32.mrf.mxu1  ;;  %3758 = vmatmul.mubr.bf16.gmra.mxu1 %v9017_v55  ;;  %v9018_v31 = vld [vmem:[%s9347_s15 + $0x428] ss:$16 sps:$4 sm:$0xff]   ;;  %v9020_v55 = vld [vmem:[%s9347_s15 + $0x484] ss:$16 sps:$4 sm:$0xff]  }
 0x2fb   : > { %v5140_v25 = vrot.slane %v4047_v1, 1  ;;  %v10660_v2 = vadd.f32 %v4048_v46, %v10575_v9  ;;  %v6285_v18 = vsel %vm5106_vm3, %v6282_v27, %v6284_v7  ;;  %v5658_v9 = vrot.slane %v10643_v30, 7  ;;  %v9019_v1 = vld [vmem:[%s9347_s15 + $0x44c] ss:$16 sps:$4 sm:$0xff]   ;;  %3767 = vmatprep.mubr.bf16.mxu1 %v9020_v55  ;;  %v9064_v30 = vld [vmem:[%s9347_s15 + $0x5e4] ss:$16 sps:$4 sm:$0xff]  }
 0x2fc   : > { %v7068_v12 = vmax.f32 %v7067_v44, %v5434_v8  ;;  %v4052_v4 = vpop.f32.mrf.mxu0  ;;  %4291 = vmatmul.mubr.bf16.gmra.mxu0 %v9018_v31  ;;  %5867 = vrot.lane.b32.xlu0 %v5657_v56, %s9149_s14  ;;  %v10678_v46 = vpop.f32.mrf.mxu1 }
 0x2fd   : > { %13249 = vst [vmem:[#allocation87_spill] sm:$0xff] %v10660_v2  ;;  %v5141_v21 = vsel %vm5106_vm3, %v5138_v14, %v5140_v25  ;;  %v4053_v35 = vadd.f32 %v4052_v4, %v10581_v3  ;;  %6493 = vrot.lane.b32.xlu1 %v6285_v18, %s9151_s21  ;;  %v5660_v6 = vrot.slane %v10660_v2, 7  ;;  %8296 = vmatprep.mubr.msk.bf16.mxu0 %vm2099_vm0, %v9019_v1  ;;  %v6286_v55 = vrot.slane %v10660_v2, 1 }
 0x2fe   : > { %v5435_v44 = vadd.f32 %v5141_v21, %v9840_v32  ;;  %v4054_v8 = vpop.f32.mrf.mxu0  ;;  %v6283_v3 = vsel %vm5106_vm3, %v6280_v38, %v6282_v27  ;;  %v10687_v18 = vpop.f32.mrf.mxu1 }
 0x2ff   : > { %v5142_v56 = vrot.slane %v4053_v35, 1  ;;  %v10683_v31 = vadd.f32 %v4054_v8, %v10598_v47  ;;  %v5661_v14 = vsel %vm4585_vm2, %v5658_v9, %v5660_v6 }
 0x300   : > { %v7069_v4 = vmax.f32 %v7068_v12, %v5435_v44  ;;  %v4056_v1 = vpop.f32.mrf.mxu0  ;;  %6491 = vrot.lane.b32.xlu0 %v6283_v3, %s9151_s21  ;;  %v10694_v47 = vpop.f32.mrf.mxu1  ;;  %v5659_v12 = vsel %vm4585_vm2, %v5656_v37, %v5658_v9 }
 0x301   : > { %13250 = vst [vmem:[#allocation88_spill] sm:$0xff] %v10683_v31  ;;  %v5143_v32 = vsel %vm5106_vm3, %v5140_v25, %v5142_v56  ;;  %v5662_v21 = vrot.slane %v10683_v31, 7  ;;  %v4057_v35 = vadd.f32 %v4056_v1, %v10606_v16  ;;  %5871 = vrot.lane.b32.xlu1 %v5661_v14, %s9149_s14  ;;  %v9021_v16 = vld [vmem:[%s9347_s15 + $0x480] ss:$16 sps:$4 sm:$0xff]  }
 0x302   : > { %v5436_v38 = vadd.f32 %v5143_v32, %v9847_v63  ;;  %v4058_v27 = vpop.f32.mrf.mxu0  ;;  %v10703_v3 = vpop.f32.mrf.mxu1  ;;  %3768 = vmatmul.mubr.bf16.gmra.mxu1 %v9021_v16  ;;  %v9022_v63 = vld [vmem:[%s9347_s15 + $0x448] ss:$16 sps:$4 sm:$0xff]  }
 0x303   : > { %v5144_v44 = vrot.slane %v4057_v35, 1  ;;  %v10699_v8 = vadd.f32 %v4058_v27, %v10615_v60  ;;  %v5663_v25 = vsel %vm4585_vm2, %v5660_v6, %v5662_v21  ;;  %v9023_v6 = vld [vmem:[%s9347_s15 + $0x46c] ss:$16 sps:$4 sm:$0xff]   ;;  %v9024_v27 = vld [vmem:[%s9347_s15 + $0x4a4] ss:$16 sps:$4 sm:$0xff]  }
 0x304   : > { %v7070_v14 = vmax.f32 %v7069_v4, %v5436_v38  ;;  %v4062_v1 = vpop.f32.mrf.mxu0  ;;  %4301 = vmatmul.mubr.bf16.gmra.mxu0 %v9022_v63  ;;  %5869 = vrot.lane.b32.xlu0 %v5659_v12, %s9149_s14  ;;  %v10714_v32 = vpop.f32.mrf.mxu1  ;;  %v6288_v4 = vrot.slane %v10683_v31, 1 }
 0x305   : > { %13251 = vst [vmem:[#allocation89_spill] sm:$0xff] %v10699_v8  ;;  %v5145_v37 = vsel %vm5106_vm3, %v5142_v56, %v5144_v44  ;;  %v4063_v60 = vadd.f32 %v4062_v1, %v10625_v13  ;;  %5873 = vrot.lane.b32.xlu1 %v5663_v25, %s9149_s14  ;;  %v5664_v9 = vrot.slane %v10699_v8, 7  ;;  %8297 = vmatprep.mubr.msk.bf16.mxu0 %vm2099_vm0, %v9023_v6 }
 0x306   : > { %v5437_v35 = vadd.f32 %v5145_v37, %v9861_v19  ;;  %v4064_v38 = vpop.f32.mrf.mxu0  ;;  %3777 = vmatprep.mubr.bf16.mxu1 %v9024_v27  ;;  %v6287_v13 = vsel %vm5106_vm3, %v6284_v7, %v6286_v55  ;;  %v10726_v16 = vpop.f32.mrf.mxu1 }
 0x307   : > { %v5146_v12 = vrot.slane %v4063_v60, 1  ;;  %v10720_v56 = vadd.f32 %v4064_v38, %v10637_v52  ;;  %v5665_v25 = vsel %vm4585_vm2, %v5662_v21, %v5664_v9  ;;  %v6290_v38 = vrot.slane %v10699_v8, 1 }
 0x308   : > { %v7071_v1 = vmax.f32 %v7070_v14, %v5437_v35  ;;  %v4066_v63 = vpop.f32.mrf.mxu0  ;;  %6495 = vrot.lane.b32.xlu0 %v6287_v13, %s9151_s21  ;;  %v10733_v60 = vpop.f32.mrf.mxu1  ;;  %v6289_v14 = vsel %vm5106_vm3, %v6286_v55, %v6288_v4 }
 0x309   : > { %13252 = vst [vmem:[#allocation90_spill] sm:$0xff] %v10720_v56  ;;  %v5147_v19 = vsel %vm5106_vm3, %v5144_v44, %v5146_v12  ;;  %v5666_v37 = vrot.slane %v10720_v56, 7  ;;  %v4067_v52 = vadd.f32 %v4066_v63, %v10647_v22  ;;  %5875 = vrot.lane.b32.xlu1 %v5665_v25, %s9149_s14  ;;  %v9025_v22 = vld [vmem:[%s9347_s15 + $0x4a0] ss:$16 sps:$4 sm:$0xff]   ;;  %v9027_v63 = vld [vmem:[%s9347_s15 + $0x48c] ss:$16 sps:$4 sm:$0xff]  }
 0x30a   : > { %v5438_v7 = vadd.f32 %v5147_v19, %v9866_v34  ;;  %v4068_v21 = vpop.f32.mrf.mxu0  ;;  %v10742_v27 = vpop.f32.mrf.mxu1  ;;  %3778 = vmatmul.mubr.bf16.gmra.mxu1 %v9025_v22  ;;  %v9026_v34 = vld [vmem:[%s9347_s15 + $0x468] ss:$16 sps:$4 sm:$0xff]  }
 0x30b   : > { %v5148_v6 = vrot.slane %v4067_v52, 1  ;;  %v10738_v35 = vadd.f32 %v4068_v21, %v10656_v57  ;;  %v5667_v44 = vsel %vm4585_vm2, %v5664_v9, %v5666_v37  ;;  %v9028_v21 = vld [vmem:[%s9347_s15 + $0x4c4] ss:$16 sps:$4 sm:$0xff]  }
 0x30c   : > { %v7072_v13 = vmax.f32 %v7071_v1, %v5438_v7  ;;  %v4072_v25 = vpop.f32.mrf.mxu0  ;;  %4311 = vmatmul.mubr.bf16.gmra.mxu0 %v9026_v34  ;;  %6497 = vrot.lane.b32.xlu0 %v6289_v14, %s9151_s21  ;;  %v10753_v19 = vpop.f32.mrf.mxu1  ;;  %v6292_v1 = vrot.slane %v10720_v56, 1  ;;  %v9058_v56 = vld [vmem:[%s9347_s15 + $0x568] ss:$16 sps:$4 sm:$0xff]  }
 0x30d   : > { %13253 = vst [vmem:[#allocation91_spill] sm:$0xff] %v10738_v35  ;;  %v5149_v55 = vsel %vm5106_vm3, %v5146_v12, %v5148_v6  ;;  %v4073_v57 = vadd.f32 %v4072_v25, %v10666_v43  ;;  %5877 = vrot.lane.b32.xlu1 %v5667_v44, %s9149_s14  ;;  %v5668_v9 = vrot.slane %v10738_v35, 7  ;;  %8298 = vmatprep.mubr.msk.bf16.mxu0 %vm2099_vm0, %v9027_v63 }
 0x30e   : > { %v5439_v52 = vadd.f32 %v5149_v55, %v9874_v58  ;;  %v4074_v7 = vpop.f32.mrf.mxu0  ;;  %3787 = vmatprep.mubr.bf16.mxu1 %v9028_v21  ;;  %v6291_v43 = vsel %vm5106_vm3, %v6288_v4, %v6290_v38  ;;  %v10763_v22 = vpop.f32.mrf.mxu1 }
 0x30f   : > { %v5150_v14 = vrot.slane %v4073_v57, 1  ;;  %v10759_v12 = vadd.f32 %v4074_v7, %v10678_v46  ;;  %v5669_v44 = vsel %vm4585_vm2, %v5666_v37, %v5668_v9  ;;  %v6294_v7 = vrot.slane %v10738_v35, 1 }
 0x310   : > { %v7073_v25 = vmax.f32 %v7072_v13, %v5439_v52  ;;  %v4076_v34 = vpop.f32.mrf.mxu0  ;;  %6499 = vrot.lane.b32.xlu0 %v6291_v43, %s9151_s21  ;;  %v10770_v46 = vpop.f32.mrf.mxu1  ;;  %v6293_v13 = vsel %vm5106_vm3, %v6290_v38, %v6292_v1 }
 0x311   : > { %13254 = vst [vmem:[#allocation92_spill] sm:$0xff] %v10759_v12  ;;  %v5151_v58 = vsel %vm5106_vm3, %v5148_v6, %v5150_v14  ;;  %v5670_v55 = vrot.slane %v10759_v12, 7  ;;  %v4077_v57 = vadd.f32 %v4076_v34, %v10687_v18  ;;  %5879 = vrot.lane.b32.xlu1 %v5669_v44, %s9149_s14  ;;  %v9029_v18 = vld [vmem:[%s9347_s15 + $0x4c0] ss:$16 sps:$4 sm:$0xff]   ;;  %v9031_v34 = vld [vmem:[%s9347_s15 + $0x4ac] ss:$16 sps:$4 sm:$0xff]  }
 0x312   : > { %v5440_v4 = vadd.f32 %v5151_v58, %v9879_v59  ;;  %v4078_v37 = vpop.f32.mrf.mxu0  ;;  %v10779_v21 = vpop.f32.mrf.mxu1  ;;  %3788 = vmatmul.mubr.bf16.gmra.mxu1 %v9029_v18  ;;  %v9030_v59 = vld [vmem:[%s9347_s15 + $0x488] ss:$16 sps:$4 sm:$0xff]  }
 0x313   : > { %v5152_v63 = vrot.slane %v4077_v57, 1  ;;  %v10775_v52 = vadd.f32 %v4078_v37, %v10694_v47  ;;  %v5671_v6 = vsel %vm4585_vm2, %v5668_v9, %v5670_v55  ;;  %v6296_v37 = vrot.slane %v10759_v12, 1  ;;  %v9054_v12 = vld [vmem:[%s9347_s15 + $0x548] ss:$16 sps:$4 sm:$0xff]  }
 0x314   : > { %v7074_v43 = vmax.f32 %v7073_v25, %v5440_v4  ;;  %v4082_v44 = vpop.f32.mrf.mxu0  ;;  %4321 = vmatmul.mubr.bf16.gmra.mxu0 %v9030_v59  ;;  %6501 = vrot.lane.b32.xlu0 %v6293_v13, %s9151_s21  ;;  %v10790_v58 = vpop.f32.mrf.mxu1  ;;  %v9032_v4 = vld [vmem:[%s9347_s15 + $0x4e4] ss:$16 sps:$4 sm:$0xff]  }
 0x315   : > { %13255 = vst [vmem:[#allocation93_spill] sm:$0xff] %v10775_v52  ;;  %v5153_v38 = vsel %vm5106_vm3, %v5150_v14, %v5152_v63  ;;  %v4083_v47 = vadd.f32 %v4082_v44, %v10703_v3  ;;  %5881 = vrot.lane.b32.xlu1 %v5671_v6, %s9149_s14  ;;  %v5672_v9 = vrot.slane %v10775_v52, 7  ;;  %8299 = vmatprep.mubr.msk.bf16.mxu0 %vm2099_vm0, %v9031_v34 }
 0x316   : > { %v5441_v25 = vadd.f32 %v5153_v38, %v9886_v10  ;;  %v4084_v57 = vpop.f32.mrf.mxu0  ;;  %3797 = vmatprep.mubr.bf16.mxu1 %v9032_v4  ;;  %v6295_v14 = vsel %vm5106_vm3, %v6292_v1, %v6294_v7  ;;  %v10799_v6 = vpop.f32.mrf.mxu1 }
 0x317   : > { %v5154_v13 = vrot.slane %v4083_v47, 1  ;;  %v5673_v3 = vsel %vm4585_vm2, %v5670_v55, %v5672_v9  ;;  %v10804_v59 = vadd.f32 %v4084_v57, %v10714_v32 }
 0x318   : > { %v7075_v18 = vmax.f32 %v7074_v43, %v5441_v25  ;;  %v4086_v44 = vpop.f32.mrf.mxu0  ;;  %6503 = vrot.lane.b32.xlu0 %v6295_v14, %s9151_s21  ;;  %v10808_v1 = vpop.f32.mrf.mxu1  ;;  %v13069_v25 = vrot.slane %v10775_v52, 1  ;;  %v9034_v14 = vld [vmem:[%s9347_s15 + $0x4a8] ss:$16 sps:$4 sm:$0xff]  }
 0x319   : > { %v5155_v10 = vsel %vm5106_vm3, %v5152_v63, %v5154_v13  ;;  %13256 = vst [vmem:[#allocation94_spill] sm:$0xff] %v10804_v59  ;;  %v4087_v38 = vadd.f32 %v4086_v44, %v10726_v16  ;;  %5883 = vrot.lane.b32.xlu1 %v5673_v3, %s9149_s14  ;;  %v6297_v63 = vsel %vm5106_vm3, %v6294_v7, %v6296_v37  ;;  %v9033_v16 = vld [vmem:[%s9347_s15 + $0x4e0] ss:$16 sps:$4 sm:$0xff]   ;;  %v9035_v44 = vld [vmem:[%s9347_s15 + $0x4cc] ss:$16 sps:$4 sm:$0xff]  }
 0x31a   : > { %v5442_v55 = vadd.f32 %v5155_v10, %v9890_v20  ;;  %v4088_v47 = vpop.f32.mrf.mxu0  ;;  %v10816_v32 = vpop.f32.mrf.mxu1  ;;  %3798 = vmatmul.mubr.bf16.gmra.mxu1 %v9033_v16  ;;  %v5674_v20 = vrot.slane %v10804_v59, 7  ;;  %v7061_v16 = vrot.slane %v10617_v11, 4 }
 0x31b   : > { %v5156_v34 = vrot.slane %v4087_v38, 1  ;;  %v10812_v43 = vadd.f32 %v4088_v47, %v10733_v60  ;;  %v9036_v38 = vld [vmem:[%s9347_s15 + $0x504] ss:$16 sps:$4 sm:$0xff]  }
 0x31c   : > { %v7076_v57 = vmax.f32 %v7075_v18, %v5442_v55  ;;  %v4092_v4 = vpop.f32.mrf.mxu0  ;;  %4331 = vmatmul.mubr.bf16.gmra.mxu0 %v9034_v14  ;;  %6505 = vrot.lane.b32.xlu0 %v6297_v63, %s9151_s21  ;;  %v10827_v10 = vpop.f32.mrf.mxu1  ;;  %v6299_v63 = vsel %vm5106_vm3, %v6296_v37, %v13069_v25 }
 0x31d   : > { %13257 = vst [vmem:[#allocation95_spill] sm:$0xff] %v10812_v43  ;;  %v5157_v60 = vsel %vm5106_vm3, %v5154_v13, %v5156_v34  ;;  %v4093_v3 = vadd.f32 %v4092_v4, %v10742_v27  ;;  %v5676_v7 = vrot.slane %v10812_v43, 7  ;;  %8300 = vmatprep.mubr.msk.bf16.mxu0 %vm2099_vm0, %v9035_v44  ;;  %3807 = vmatprep.mubr.bf16.mxu1 %v9036_v38  ;;  %v6300_v38 = vrot.slane %v10804_v59, 1 }
 0x31e   : > { %v5443_v18 = vadd.f32 %v5157_v60, %v9897_v54  ;;  %v4094_v55 = vpop.f32.mrf.mxu0  ;;  %v10835_v27 = vpop.f32.mrf.mxu1  ;;  %v6302_v54 = vrot.slane %v10812_v43, 1  ;;  %v9042_v43 = vld [vmem:[%s9347_s15 + $0x4e8] ss:$16 sps:$4 sm:$0xff]  }
 0x31f   : > { %v5158_v47 = vrot.slane %v4093_v3, 1  ;;  %v5677_v13 = vsel %vm4585_vm2, %v5674_v20, %v5676_v7  ;;  %v10839_v14 = vadd.f32 %v4094_v55, %v10753_v19  ;;  %v5675_v55 = vsel %vm4585_vm2, %v5672_v9, %v5674_v20 }
 0x320   : > { %v7077_v4 = vmax.f32 %v7076_v57, %v5443_v18  ;;  %v4096_v44 = vpop.f32.mrf.mxu0  ;;  %6507 = vrot.lane.b32.xlu0 %v6299_v63, %s9151_s21  ;;  %5887 = vrot.lane.b32.xlu1 %v5677_v13, %s9149_s14  ;;  %v10846_v3 = vpop.f32.mrf.mxu1  ;;  %v9037_v13 = vld [vmem:[%s9347_s15 + $0x500] ss:$16 sps:$4 sm:$0xff]  }
 0x321   : > { %13258 = vst [vmem:[#allocation96_spill] sm:$0xff] %v10839_v14  ;;  %v5159_v37 = vsel %vm5106_vm3, %v5156_v34, %v5158_v47  ;;  %v4097_v60 = vadd.f32 %v4096_v44, %v10763_v22  ;;  %v7062_v34 = vmax.f32 %v10617_v11, %v7061_v16  ;;  %v9039_v11 = vld [vmem:[%s9347_s15 + $0x4ec] ss:$16 sps:$4 sm:$0xff]   ;;  %v9040_v44 = vld [vmem:[%s9347_s15 + $0x524] ss:$16 sps:$4 sm:$0xff]  }
 0x322   : > { %v5444_v57 = vadd.f32 %v5159_v37, %v9901_v62  ;;  %v4098_v19 = vpop.f32.mrf.mxu0  ;;  %v10853_v63 = vpop.f32.mrf.mxu1  ;;  %3808 = vmatmul.mubr.bf16.gmra.mxu1 %v9037_v13  ;;  %v9038_v62 = vld [vmem:[%s9347_s15 + $0x4c8] ss:$16 sps:$4 sm:$0xff]   ;;  %v6303_v37 = vsel %vm5106_vm3, %v6300_v38, %v6302_v54  ;;  %v6304_v13 = vrot.slane %v10839_v14, 1 }
 0x323   : > { %v5160_v18 = vrot.slane %v4097_v60, 1  ;;  %v10864_v20 = vadd.f32 %v4098_v19, %v10770_v46  ;;  %3817 = vmatprep.mubr.bf16.mxu1 %v9040_v44 }
 0x324   : > { %v6970_v22 = vadd.f32 %v10591_v42, %v5444_v57  ;;  %v4102_v25 = vpop.f32.mrf.mxu0  ;;  %4341 = vmatmul.mubr.bf16.gmra.mxu0 %v9038_v62  ;;  %5885 = vrot.lane.b32.xlu0 %v5675_v55, %s9149_s14  ;;  %v10870_v16 = vpop.f32.mrf.mxu1 }
 0x325   : > { %v5161_v9 = vsel %vm5106_vm3, %v5158_v47, %v5160_v18  ;;  %13259 = vst [vmem:[#allocation97_spill] sm:$0xff] %v10864_v20  ;;  %v4103_v60 = vadd.f32 %v4102_v25, %v10779_v21  ;;  %6511 = vrot.lane.b32.xlu1 %v6303_v37, %s9151_s21  ;;  %8301 = vmatprep.mubr.msk.bf16.mxu0 %vm2099_vm0, %v9039_v11  ;;  %v13261_v21 = vrot.slane %v10775_v52, 1  ;;  %v7063_v37 = vrot.slane %v7062_v34, 2  ;;  %v9053_v52 = vld [vmem:[%s9347_s15 + $0x580] ss:$16 sps:$4 sm:$0xff]  }
 0x326   : > { %v7078_v57 = vmax.f32 %v7077_v4, %v6970_v22  ;;  %v5445_v55 = vadd.f32 %v5161_v9, %v9908_v40  ;;  %v4104_v62 = vpop.f32.mrf.mxu0  ;;  %v10881_v19 = vpop.f32.mrf.mxu1  ;;  %v13262_v40 = vrot.slane %v10839_v14, 7 }
 0x327   : > { %v5162_v47 = vrot.slane %v4103_v60, 1  ;;  %v10876_v46 = vadd.f32 %v4104_v62, %v10790_v58  ;;  %v6301_v25 = vsel %vm5106_vm3, %v13261_v21, %v6300_v38  ;;  %v6306_v38 = vrot.slane %v10864_v20, 1 }
 0x328   : > { %v7079_v11 = vrot.slane %v7078_v57, 4  ;;  %v4106_v4 = vpop.f32.mrf.mxu0  ;;  %6509 = vrot.lane.b32.xlu0 %v6301_v25, %s9151_s21  ;;  %v5679_v22 = vsel %vm4585_vm2, %v5676_v7, %v13262_v40  ;;  %v10892_v60 = vpop.f32.mrf.mxu1  ;;  %v6971_v21 = vadd.f32 %v10377_v29, %v5445_v55  ;;  %v7064_v55 = vmax.f32 %v7062_v34, %v7063_v37 }
 0x329   : > { %13260 = vst [vmem:[#allocation98_spill] sm:$0xff] %v10876_v46  ;;  %v5163_v44 = vsel %vm5106_vm3, %v5160_v18, %v5162_v47  ;;  %v6308_v58 = vrot.slane %v10876_v46, 1  ;;  %v4107_v9 = vadd.f32 %v4106_v4, %v10799_v6  ;;  %5889 = vrot.lane.b32.xlu1 %v5679_v22, %s9149_s14  ;;  %v6305_v18 = vsel %vm5106_vm3, %v6302_v54, %v6304_v13 }
 0x32a   : > { %v7080_v62 = vmax.f32 %v7078_v57, %v7079_v11  ;;  %v5446_v25 = vadd.f32 %v5163_v44, %v9912_v48  ;;  %v4108_v7 = vpop.f32.mrf.mxu0  ;;  %v13072_v22 = vrot.slane %v10864_v20, 7  ;;  %v10904_v57 = vpop.f32.mrf.mxu1  ;;  %v9041_v11 = vld [vmem:[%s9347_s15 + $0x520] ss:$16 sps:$4 sm:$0xff]  }
 0x32b   : > { %v5164_v40 = vrot.slane %v4107_v9, 1  ;;  %v10900_v6 = vadd.f32 %v4108_v7, %v10808_v1  ;;  %v6309_v4 = vsel %vm5106_vm3, %v6306_v38, %v6308_v58  ;;  %3818 = vmatmul.mubr.bf16.gmra.mxu1 %v9041_v11  ;;  %v9043_v7 = vld [vmem:[%s9347_s15 + $0x50c] ss:$16 sps:$4 sm:$0xff]  }
 0x32c   : > { %v7081_v48 = vrot.slane %v7080_v62, 2  ;;  %v7085_v44 = vmax.f32 %v6971_v21, %v5446_v25  ;;  %v4112_v59 = vpop.f32.mrf.mxu0  ;;  %4351 = vmatmul.mubr.bf16.gmra.mxu0 %v9042_v43  ;;  %6513 = vrot.lane.b32.xlu0 %v6305_v18, %s9151_s21  ;;  %v10915_v34 = vpop.f32.mrf.mxu1  ;;  %v9044_v43 = vld [vmem:[%s9347_s15 + $0x544] ss:$16 sps:$4 sm:$0xff]  }
 0x32d   : > { %13263 = vst [vmem:[#allocation99_spill] sm:$0xff] %v10900_v6  ;;  %v5165_v1 = vsel %vm5106_vm3, %v5162_v47, %v5164_v40  ;;  %v4113_v54 = vadd.f32 %v4112_v59, %v10816_v32  ;;  %6517 = vrot.lane.b32.xlu1 %v6309_v4, %s9151_s21  ;;  %v6310_v9 = vrot.slane %v10900_v6, 1  ;;  %8302 = vmatprep.mubr.msk.bf16.mxu0 %vm2099_vm0, %v9043_v7  ;;  %v13265_v59 = vrot.slane %v10839_v14, 7 }
 0x32e   : > { %v7082_v37 = vmax.f32 %v7080_v62, %v7081_v48  ;;  %v5447_v21 = vadd.f32 %v5165_v1, %v9919_v17  ;;  %v4114_v25 = vpop.f32.mrf.mxu0  ;;  %3827 = vmatprep.mubr.bf16.mxu1 %v9044_v43  ;;  %v10928_v11 = vpop.f32.mrf.mxu1  ;;  %v7065_v62 = vrot.slane %v7064_v55, 1 }
 0x32f   : > { %v5166_v18 = vrot.slane %v4113_v54, 1  ;;  %v10920_v47 = vadd.f32 %v4114_v25, %v10827_v10  ;;  %v5681_v32 = vsel %vm4585_vm2, %v13265_v59, %v13072_v22  ;;  %v6311_v4 = vsel %vm5106_vm3, %v6308_v58, %v6310_v9  ;;  %v10930_v1 = vpop.permute.xlu0 %5837 }
 0x330   : > { %v7083_v48 = vrot.slane %v7082_v37, 1  ;;  %v7086_v17 = vmax.f32 %v7085_v44, %v5447_v21  ;;  %v4116_v7 = vpop.f32.mrf.mxu0  ;;  %5891 = vrot.lane.b32.xlu0 %v5681_v32, %s9149_s14  ;;  %v10937_v58 = vpop.f32.mrf.mxu1  ;;  %v6307_v59 = vsel %vm5106_vm3, %v6304_v13, %v6306_v38  ;;  %v9046_v38 = vld [vmem:[%s9347_s15 + $0x508] ss:$16 sps:$4 sm:$0xff]  }
 0x331   : > { %13264 = vst [vmem:[#allocation100_spill] sm:$0xff] %v10920_v47  ;;  %v5167_v10 = vsel %vm5106_vm3, %v5164_v40, %v5166_v18  ;;  %v6312_v54 = vrot.slane %v10920_v47, 1  ;;  %v4117_v25 = vadd.f32 %v4116_v7, %v10835_v27  ;;  %6519 = vrot.lane.b32.xlu1 %v6311_v4, %s9151_s21  ;;  %v5682_v40 = vrot.slane %v10876_v46, 7  ;;  %v9050_v46 = vld [vmem:[%s9347_s15 + $0x528] ss:$16 sps:$4 sm:$0xff]  }
 0x332   : > { %v7084_v43 = vmax.f32 %v7082_v37, %v7083_v48  ;;  %v5448_v44 = vadd.f32 %v5167_v10, %v9923_v50  ;;  %v4118_v21 = vpop.f32.mrf.mxu0  ;;  %v10947_v27 = vpop.permute.xlu1 %5839  ;;  %v9045_v50 = vld [vmem:[%s9347_s15 + $0x540] ss:$16 sps:$4 sm:$0xff]   ;;  %v7066_v48 = vmax.f32 %v7064_v55, %v7065_v62 }
 0x333   : > { %v5168_v32 = vrot.slane %v4117_v25, 1  ;;  %v10945_v22 = vadd.f32 %v4118_v21, %v10846_v3  ;;  %v6313_v37 = vsel %vm5106_vm3, %v6310_v9, %v6312_v54  ;;  %v10950_v4 = vpop.f32.mrf.mxu1  ;;  %3828 = vmatmul.mubr.bf16.gmra.mxu1 %v9045_v50  ;;  %v9047_v25 = vld [vmem:[%s9347_s15 + $0x52c] ss:$16 sps:$4 sm:$0xff]   ;;  %v10964_v62 = vpop.permute.xlu0 %6463 }
 0x334   : > { %v7087_v7 = vmax.f32 %v7086_v17, %v5448_v44  ;;  %v4122_v13 = vpop.f32.mrf.mxu0  ;;  %4361 = vmatmul.mubr.bf16.gmra.mxu0 %v9046_v38  ;;  %6515 = vrot.lane.b32.xlu0 %v6307_v59, %s9151_s21  ;;  %v5684_v44 = vrot.slane %v10900_v6, 7  ;;  %v9048_v59 = vld [vmem:[%s9347_s15 + $0x564] ss:$16 sps:$4 sm:$0xff]  }
 0x335   : > { %13266 = vst [vmem:[#allocation101_spill] sm:$0xff] %v10945_v22  ;;  %v5169_v3 = vsel %vm5106_vm3, %v5166_v18, %v5168_v32  ;;  %v4123_v10 = vadd.f32 %v4122_v13, %v10853_v63  ;;  %6521 = vrot.lane.b32.xlu1 %v6313_v37, %s9151_s21  ;;  %v6314_v9 = vrot.slane %v10945_v22, 1  ;;  %8303 = vmatprep.mubr.msk.bf16.mxu0 %vm2099_vm0, %v9047_v25  ;;  %v10961_v21 = vpop.f32.mrf.mxu1  ;;  %v13268_v13 = vrot.slane %v10864_v20, 7 }
 0x336   : > { %v5449_v55 = vadd.f32 %v5169_v3, %v9930_v5  ;;  %v4124_v17 = vpop.f32.mrf.mxu0  ;;  %3837 = vmatprep.mubr.bf16.mxu1 %v9048_v59  ;;  %v10969_v63 = vsel %vm7554_vm6, %v7084_v43, %v7066_v48  ;;  %v10974_v50 = vpop.permute.xlu1 %5841 }
 0x337   : > { %v5170_v18 = vrot.slane %v4123_v10, 1  ;;  %v10972_v37 = vadd.f32 %v4124_v17, %v10870_v16  ;;  %v5683_v5 = vsel %vm4585_vm2, %v13268_v13, %v5682_v40  ;;  %v6315_v38 = vsel %vm5106_vm3, %v6312_v54, %v6314_v9  ;;  %v10980_v3 = vpop.f32.mrf.mxu1 }
 0x338   : > { %v7088_v25 = vmax.f32 %v7087_v7, %v5449_v55  ;;  %v4126_v6 = vpop.f32.mrf.mxu0  ;;  %5893 = vrot.lane.b32.xlu0 %v5683_v5, %s9149_s14  ;;  %v5685_v7 = vsel %vm4585_vm2, %v5682_v40, %v5684_v44  ;;  %v5686_v55 = vrot.slane %v10920_v47, 7 }
 0x339   : > { %13267 = vst [vmem:[#allocation102_spill] sm:$0xff] %v10972_v37  ;;  %v5171_v43 = vsel %vm5106_vm3, %v5168_v32, %v5170_v18  ;;  %v6316_v16 = vrot.slane %v10972_v37, 1  ;;  %v4127_v48 = vadd.f32 %v4126_v6, %v10881_v19  ;;  %6523 = vrot.lane.b32.xlu1 %v6315_v38, %s9151_s21  ;;  %v10987_v10 = vpop.f32.mrf.mxu1  ;;  %v9049_v38 = vld [vmem:[%s9347_s15 + $0x560] ss:$16 sps:$4 sm:$0xff]  }
 0x33a   : > { %v5450_v54 = vadd.f32 %v5171_v43, %v9934_v15  ;;  %v4128_v17 = vpop.f32.mrf.mxu0  ;;  %v10990_v59 = vpop.permute.xlu0 %6467 }
 0x33b   : > { %v5172_v13 = vrot.slane %v4127_v48, 1  ;;  %v10995_v32 = vadd.f32 %v4128_v17, %v10892_v60  ;;  %v10997_v19 = vpop.permute.xlu1 %6465  ;;  %v6317_v6 = vsel %vm5106_vm3, %v6314_v9, %v6316_v16  ;;  %v11000_v5 = vpop.f32.mrf.mxu1  ;;  %3838 = vmatmul.mubr.bf16.gmra.mxu1 %v9049_v38  ;;  %v9051_v9 = vld [vmem:[%s9347_s15 + $0x54c] ss:$16 sps:$4 sm:$0xff]  }
 0x33c   : > { %v7089_v15 = vmax.f32 %v7088_v25, %v5450_v54  ;;  %v4132_v43 = vpop.f32.mrf.mxu0  ;;  %4371 = vmatmul.mubr.bf16.gmra.mxu0 %v9050_v46  ;;  %5895 = vrot.lane.b32.xlu0 %v5685_v7, %s9149_s14  ;;  %v5688_v46 = vrot.slane %v10945_v22, 7  ;;  %v9052_v7 = vld [vmem:[%s9347_s15 + $0x584] ss:$16 sps:$4 sm:$0xff]  }
 0x33d   : > { %13269 = vst [vmem:[#allocation103_spill] sm:$0xff] %v10995_v32  ;;  %v5173_v40 = vsel %vm5106_vm3, %v5170_v18, %v5172_v13  ;;  %v4133_v60 = vadd.f32 %v4132_v43, %v10904_v57  ;;  %6525 = vrot.lane.b32.xlu1 %v6317_v6, %s9151_s21  ;;  %v6318_v48 = vrot.slane %v10995_v32, 1  ;;  %8304 = vmatprep.mubr.msk.bf16.mxu0 %vm2099_vm0, %v9051_v9  ;;  %v11011_v17 = vpop.f32.mrf.mxu1 }
 0x33e   : > { %v5451_v25 = vadd.f32 %v5173_v40, %v9941_v28  ;;  %v4134_v54 = vpop.f32.mrf.mxu0  ;;  %v11014_v38 = vpop.permute.xlu0 %5845  ;;  %3847 = vmatprep.mubr.bf16.mxu1 %v9052_v7  ;;  %v5687_v43 = vsel %vm4585_vm2, %v5684_v44, %v5686_v55  ;;  %v13271_v44 = vld [vmem:[#allocation5_spill] sm:$0xff] }
 0x33f   : > { %v5174_v18 = vrot.slane %v4133_v60, 1  ;;  %v11019_v57 = vadd.f32 %v4134_v54, %v10915_v34  ;;  %v11021_v6 = vpop.permute.xlu1 %5843  ;;  %v11024_v9 = vpop.f32.mrf.mxu1  ;;  %v6319_v28 = vsel %vm5106_vm3, %v6316_v16, %v6318_v48  ;;  %v5690_v16 = vrot.slane %v10972_v37, 7 }
 0x340   : > { %v7090_v47 = vmax.f32 %v7089_v15, %v5451_v25  ;;  %v4136_v20 = vpop.f32.mrf.mxu0  ;;  %5897 = vrot.lane.b32.xlu0 %v5687_v43, %s9149_s14  ;;  %v5689_v43 = vsel %vm4585_vm2, %v5686_v55, %v5688_v46 }
 0x341   : > { %13270 = vst [vmem:[#allocation104_spill] sm:$0xff] %v11019_v57  ;;  %v5175_v40 = vsel %vm5106_vm3, %v5172_v13, %v5174_v18  ;;  %v6320_v60 = vrot.slane %v11019_v57, 1  ;;  %v4137_v34 = vadd.f32 %v4136_v20, %v10928_v11  ;;  %6527 = vrot.lane.b32.xlu1 %v6319_v28, %s9151_s21  ;;  %v11032_v54 = vpop.f32.mrf.mxu1 }
 0x342   : > { %v5452_v7 = vadd.f32 %v5175_v40, %v13271_v44  ;;  %v4138_v15 = vpop.f32.mrf.mxu0  ;;  %v11035_v25 = vpop.permute.xlu0 %5847 }
 0x343   : > { %v5176_v22 = vrot.slane %v4137_v34, 1  ;;  %v11040_v13 = vadd.f32 %v4138_v15, %v10937_v58  ;;  %v11042_v20 = vpop.permute.xlu1 %6469  ;;  %v6321_v11 = vsel %vm5106_vm3, %v6318_v48, %v6320_v60  ;;  %v11045_v28 = vpop.f32.mrf.mxu1  ;;  %3848 = vmatmul.mubr.bf16.gmra.mxu1 %v9053_v52  ;;  %v9055_v48 = vld [vmem:[%s9347_s15 + $0x56c] ss:$16 sps:$4 sm:$0xff]  }
 0x344   : > { %v7091_v40 = vmax.f32 %v7090_v47, %v5452_v7  ;;  %v4142_v44 = vpop.f32.mrf.mxu0  ;;  %4381 = vmatmul.mubr.bf16.gmra.mxu0 %v9054_v12  ;;  %5899 = vrot.lane.b32.xlu0 %v5689_v43, %s9149_s14  ;;  %v13273_v52 = vld [vmem:[#allocation6_spill] sm:$0xff]  ;;  %v9056_v12 = vld [vmem:[%s9347_s15 + $0x5a4] ss:$16 sps:$4 sm:$0xff]  }
 0x345   : > { %13272 = vst [vmem:[#allocation5_spill] sm:$0xff] %v11040_v13  ;;  %v5177_v55 = vsel %vm5106_vm3, %v5174_v18, %v5176_v22  ;;  %v4143_v58 = vadd.f32 %v4142_v44, %v10950_v4  ;;  %6529 = vrot.lane.b32.xlu1 %v6321_v11, %s9151_s21  ;;  %v6322_v34 = vrot.slane %v11040_v13, 1  ;;  %8305 = vmatprep.mubr.msk.bf16.mxu0 %vm2099_vm0, %v9055_v48  ;;  %v11056_v15 = vpop.f32.mrf.mxu1  ;;  %v5692_v44 = vrot.slane %v10995_v32, 7 }
 0x346   : > { %v5453_v47 = vadd.f32 %v5177_v55, %v13273_v52  ;;  %v4144_v7 = vpop.f32.mrf.mxu0  ;;  %v11059_v37 = vpop.permute.xlu0 %5849  ;;  %3857 = vmatprep.mubr.bf16.mxu1 %v9056_v12  ;;  %v5691_v11 = vsel %vm4585_vm2, %v5688_v46, %v5690_v16 }
 0x347   : > { %v5178_v43 = vrot.slane %v4143_v58, 1  ;;  %v11063_v18 = vadd.f32 %v4144_v7, %v10961_v21  ;;  %v11065_v4 = vpop.permute.xlu1 %6471  ;;  %v11069_v48 = vpop.f32.mrf.mxu1  ;;  %v6323_v55 = vsel %vm5106_vm3, %v6320_v60, %v6322_v34  ;;  %v13275_v7 = vld [vmem:[#allocation7_spill] sm:$0xff] }
 0x348   : > { %v7092_v14 = vmax.f32 %v7091_v40, %v5453_v47  ;;  %v4146_v35 = vpop.f32.mrf.mxu0  ;;  %5901 = vrot.lane.b32.xlu0 %v5691_v11, %s9149_s14  ;;  %v5694_v11 = vrot.slane %v11019_v57, 7 }
 0x349   : > { %13274 = vst [vmem:[#allocation6_spill] sm:$0xff] %v11063_v18  ;;  %v5179_v58 = vsel %vm5106_vm3, %v5176_v22, %v5178_v43  ;;  %v4147_v52 = vadd.f32 %v4146_v35, %v10980_v3  ;;  %6531 = vrot.lane.b32.xlu1 %v6323_v55, %s9151_s21  ;;  %v11077_v46 = vpop.f32.mrf.mxu1  ;;  %v5693_v22 = vsel %vm4585_vm2, %v5690_v16, %v5692_v44  ;;  %v9057_v35 = vld [vmem:[%s9347_s15 + $0x5a0] ss:$16 sps:$4 sm:$0xff]   ;;  %v9059_v16 = vld [vmem:[%s9347_s15 + $0x58c] ss:$16 sps:$4 sm:$0xff]  }
 0x34a   : > { %v5454_v12 = vadd.f32 %v5179_v58, %v13275_v7  ;;  %v4148_v40 = vpop.f32.mrf.mxu0  ;;  %v11080_v47 = vpop.permute.xlu0 %5851  ;;  %v13276_v58 = vrot.slane %v11063_v18, 1 }
 0x34b   : > { %v5180_v60 = vrot.slane %v4147_v52, 1  ;;  %v11083_v32 = vpop.permute.xlu1 %6473  ;;  %v11086_v21 = vpop.f32.mrf.mxu1  ;;  %3858 = vmatmul.mubr.bf16.gmra.mxu1 %v9057_v35 }
 0x34c   : > { %v7093_v3 = vmax.f32 %v7092_v14, %v5454_v12  ;;  %v4152_v55 = vpop.f32.mrf.mxu0  ;;  %4391 = vmatmul.mubr.bf16.gmra.mxu0 %v9058_v56  ;;  %5903 = vrot.lane.b32.xlu0 %v5693_v22, %s9149_s14  ;;  %v6325_v7 = vsel %vm5106_vm3, %v6322_v34, %v13276_v58  ;;  %v13277_v12 = vld [vmem:[#allocation8_spill] sm:$0xff]  ;;  %v11103_v56 = vadd.f32 %v4148_v40, %v10987_v10  ;;  %v9060_v34 = vld [vmem:[%s9347_s15 + $0x5c4] ss:$16 sps:$4 sm:$0xff]  }
 0x34d   : > { %v5181_v52 = vsel %vm5106_vm3, %v5178_v43, %v5180_v60  ;;  %v4153_v57 = vadd.f32 %v4152_v55, %v11000_v5  ;;  %6533 = vrot.lane.b32.xlu1 %v6325_v7, %s9151_s21  ;;  %8306 = vmatprep.mubr.msk.bf16.mxu0 %vm2099_vm0, %v9059_v16  ;;  %v11099_v14 = vpop.f32.mrf.mxu1  ;;  %v5695_v58 = vsel %vm4585_vm2, %v5692_v44, %v5694_v11  ;;  %v5696_v7 = vrot.slane %v11040_v13, 7 }
 0x34e   : > { %v5455_v35 = vadd.f32 %v5181_v52, %v13277_v12  ;;  %13278 = vst [vmem:[#allocation7_spill] sm:$0xff] %v11103_v56  ;;  %v4154_v22 = vpop.f32.mrf.mxu0  ;;  %v11105_v8 = vpop.permute.xlu0 %5853  ;;  %3867 = vmatprep.mubr.bf16.mxu1 %v9060_v34 }
 0x34f   : > { %v5182_v43 = vrot.slane %v4153_v57, 1  ;;  %v11109_v5 = vadd.f32 %v4154_v22, %v11011_v17  ;;  %v11111_v55 = vpop.permute.xlu1 %6475  ;;  %v11115_v16 = vpop.f32.mrf.mxu1  ;;  %v13280_v22 = vld [vmem:[#allocation9_spill] sm:$0xff] }
 0x350   : > { %v7094_v52 = vmax.f32 %v7093_v3, %v5455_v35  ;;  %v4156_v10 = vpop.f32.mrf.mxu0  ;;  %5905 = vrot.lane.b32.xlu0 %v5695_v58, %s9149_s14  ;;  %v5700_v3 = vrot.slane %v11103_v56, 7  ;;  %v8866_v35 = vld [vmem:[%s13056_s3 + $0x38] sm:$0xff]  }
 0x351   : > { %13279 = vst [vmem:[#allocation8_spill] sm:$0xff] %v11109_v5  ;;  %v5183_v40 = vsel %vm5106_vm3, %v5180_v60, %v5182_v43  ;;  %v4157_v17 = vadd.f32 %v4156_v10, %v11024_v9  ;;  %v11121_v12 = vpop.f32.mrf.mxu1  ;;  %v5698_v60 = vrot.slane %v11063_v18, 7  ;;  %v5697_v9 = vsel %vm4585_vm2, %v5694_v11, %v5696_v7 }
 0x352   : > { %v5456_v34 = vadd.f32 %v5183_v40, %v13280_v22  ;;  %v4158_v44 = vpop.f32.mrf.mxu0  ;;  %v11124_v31 = vpop.permute.xlu0 %5855  ;;  %v9061_v40 = vld [vmem:[%s9347_s15 + $0x5c0] ss:$16 sps:$4 sm:$0xff]   ;;  %v13093_v22 = vmov 0   ;;  %v13283_v11 = vrot.slane %v11109_v5, 7 }
 0x353   : > { %13281 = vst [vmem:[#allocation9_spill] sm:$0xff] %v11124_v31  ;;  %v5184_v58 = vrot.slane %v4157_v17, 1  ;;  %v11131_v57 = vpop.permute.xlu1 %6477  ;;  %v11134_v10 = vpop.f32.mrf.mxu1  ;;  %3868 = vmatmul.mubr.bf16.gmra.mxu1 %v9061_v40  ;;  %7691 = vmatprep.subr.bf16.mxu1 %v13093_v22  ;;  %v11140_v2 = vadd.f32 %v4158_v44, %v11032_v54 }
 0x354   : > { %v7095_v13 = vmax.f32 %v7094_v52, %v5456_v34  ;;  %v4162_v17 = vpop.f32.mrf.mxu0  ;;  %4401 = vmatmul.mubr.bf16.gmra.mxu0 %v9062_v33  ;;  %5907 = vrot.lane.b32.xlu0 %v5697_v9, %s9149_s14  ;;  %v5703_v51 = vsel %vm4585_vm2, %v5700_v3, %v13283_v11  ;;  %v9063_v52 = vld [vmem:[%s9347_s15 + $0x5ac] ss:$16 sps:$4 sm:$0xff]   ;;  %v6326_v9 = vrot.slane %v11103_v56, 1  ;;  %v13290_v56 = vld [vmem:[#allocation11_spill] sm:$0xff] }
 0x355   : > { %13282 = vst [vmem:[#allocation105_spill] sm:$0xff] %v11140_v2  ;;  %v5185_v40 = vsel %vm5106_vm3, %v5182_v43, %v5184_v58  ;;  %v4163_v22 = vadd.f32 %v4162_v17, %v11045_v28  ;;  %5913 = vrot.lane.b32.xlu1 %v5703_v51, %s9149_s14  ;;  %8307 = vmatprep.mubr.msk.bf16.mxu0 %vm2099_vm0, %v9063_v52  ;;  %v11152_v54 = vpop.f32.mrf.mxu1  ;;  %v13284_v34 = vld [vmem:[#allocation10_spill] sm:$0xff]  ;;  %v13286_v51 = vmov 0  }
 0x356   : > { %v5457_v44 = vadd.f32 %v5185_v40, %v13284_v34  ;;  %v4164_v33 = vpop.f32.mrf.mxu0  ;;  %3877 = vmatprep.mubr.bf16.mxu1 %v9064_v30  ;;  %7692 = vmatpush1.bf16.msra.mxu1 %v8866_v35  ;;  %v5699_v28 = vsel %vm4585_vm2, %v5696_v7, %v5698_v60  ;;  %v11167_v40 = vpop.permute.xlu0 %5857  ;;  %v13289_v30 = vrot.slane %v11109_v5, 1  ;;  %v5704_v7 = vrot.slane %v11140_v2, 7 }
 0x357   : > { %v5186_v11 = vrot.slane %v4163_v22, 1  ;;  %v11157_v0 = vpop.permute.xlu1 %6479  ;;  %v11160_v43 = vpop.f32.mrf.mxu1  ;;  %7693 = vmatprep.subr.bf16.mxu1 %v13286_v51  ;;  %v11165_v52 = vadd.f32 %v4164_v33, %v11056_v15  ;;  %13288 = vst [vmem:[#allocation107_spill] sm:$0xff] %v11167_v40 }
 0x358   : > { %13285 = vst [vmem:[#allocation10_spill] sm:$0xff] %v11157_v0  ;;  %v6983_v17 = vadd.f32 %v10591_v42, %v5457_v44  ;;  %v4166_v34 = vpop.f32.mrf.mxu0  ;;  %5909 = vrot.lane.b32.xlu0 %v5699_v28, %s9149_s14  ;;  %v6329_v35 = vsel %vm5106_vm3, %v6326_v9, %v13289_v30  ;;  %v5701_v30 = vsel %vm4585_vm2, %v5698_v60, %v5700_v3  ;;  %v9067_v60 = vld [vmem:[%s9347_s15 + $0x5cc] ss:$16 sps:$4 sm:$0xff]  }
 0x359   : > { %13287 = vst [vmem:[#allocation106_spill] sm:$0xff] %v11165_v52  ;;  %v5187_v22 = vsel %vm5106_vm3, %v5184_v58, %v5186_v11  ;;  %v4167_v44 = vadd.f32 %v4166_v34, %v11069_v48  ;;  %6537 = vrot.lane.b32.xlu1 %v6329_v35, %s9151_s21  ;;  %v11177_v15 = vpop.f32.mrf.mxu1  ;;  %v9065_v58 = vld [vmem:[%s9347_s15 + $0x5e0] ss:$16 sps:$4 sm:$0xff]   ;;  %v9066_v35 = vld [vmem:[%s9347_s15 + $0x5a8] ss:$16 sps:$4 sm:$0xff]  }
 0x35a   : > { %v7096_v33 = vmax.f32 %v7095_v13, %v6983_v17  ;;  %v5458_v40 = vadd.f32 %v5187_v22, %v13290_v56  ;;  %v4168_v39 = vpop.f32.mrf.mxu0  ;;  %v13292_v13 = vrot.slane %v11109_v5, 7  ;;  %v11201_v48 = vpop.permute.xlu0 %5859 }
 0x35b   : > { %v5188_v28 = vrot.slane %v4167_v44, 1  ;;  %v11180_v31 = vpop.permute.xlu1 %6481  ;;  %v11183_v45 = vpop.f32.mrf.mxu1  ;;  %3878 = vmatmul.mubr.bf16.gmra.mxu1 %v9065_v58 }
 0x35c   : > { %13291 = vst [vmem:[#allocation11_spill] sm:$0xff] %v11180_v31  ;;  %v7097_v0 = vrot.slane %v7096_v33, 4  ;;  %v4172_v34 = vpop.f32.mrf.mxu0  ;;  %4411 = vmatmul.mubr.bf16.gmra.mxu0 %v9066_v35  ;;  %5911 = vrot.lane.b32.xlu0 %v5701_v30, %s9149_s14  ;;  %v5705_v56 = vsel %vm4585_vm2, %v13292_v13, %v5704_v7  ;;  %v6984_v58 = vadd.f32 %v10377_v29, %v5458_v40  ;;  %v13293_v35 = vld [vmem:[#allocation12_spill] sm:$0xff]  ;;  %v9068_v13 = vld [vmem:[%s9347_s15 + $0x604] ss:$16 sps:$4 sm:$0xff]  }
 0x35d   : > { %v5189_v17 = vsel %vm5106_vm3, %v5186_v11, %v5188_v28  ;;  %v4173_v3 = vadd.f32 %v4172_v34, %v11086_v21  ;;  %5915 = vrot.lane.b32.xlu1 %v5705_v56, %s9149_s14  ;;  %8308 = vmatprep.mubr.msk.bf16.mxu0 %vm2099_vm0, %v9067_v60  ;;  %v11197_v22 = vpop.f32.mrf.mxu1  ;;  %13294 = vst [vmem:[#allocation12_spill] sm:$0xff] %v11201_v48  ;;  %v13297_v56 = vrot.slane %v11063_v18, 1 }
 0x35e   : > { %v7098_v44 = vmax.f32 %v7096_v33, %v7097_v0  ;;  %v5459_v30 = vadd.f32 %v5189_v17, %v13293_v35  ;;  %v4174_v31 = vpop.f32.mrf.mxu0  ;;  %3887 = vmatprep.mubr.bf16.mxu1 %v9068_v13  ;;  %v11205_v11 = vadd.f32 %v4168_v39, %v11077_v46  ;;  %v6330_v0 = vrot.slane %v11140_v2, 1  ;;  %v13299_v2 = vld [vmem:[#allocation13_spill] sm:$0xff] }
 0x35f   : > { %v5190_v21 = vrot.slane %v4173_v3, 1  ;;  %v11207_v34 = vpop.permute.xlu1 %6483  ;;  %v6327_v60 = vsel %vm5106_vm3, %v13297_v56, %v6326_v9  ;;  %v11213_v40 = vpop.f32.mrf.mxu1  ;;  %v6332_v17 = vrot.slane %v11165_v52, 1  ;;  %v13298_v39 = vrot.slane %v11165_v52, 7 }
 0x360   : > { %13295 = vst [vmem:[#allocation108_spill] sm:$0xff] %v11205_v11  ;;  %13296 = vst [vmem:[#allocation109_spill] sm:$0xff] %v11207_v34  ;;  %v7099_v33 = vrot.slane %v7098_v44, 2  ;;  %v7103_v35 = vmax.f32 %v6984_v58, %v5459_v30  ;;  %v4176_v48 = vpop.f32.mrf.mxu0  ;;  %6535 = vrot.lane.b32.xlu0 %v6327_v60, %s9151_s21  ;;  %v11229_v60 = vadd.f32 %v4174_v31, %v11099_v14  ;;  %v5708_v14 = vrot.slane %v11205_v11, 7 }
 0x361   : > { %v5707_v46 = vsel %vm4585_vm2, %v5704_v7, %v13298_v39  ;;  %v5191_v3 = vsel %vm5106_vm3, %v5188_v28, %v5190_v21  ;;  %v4177_v9 = vadd.f32 %v4176_v48, %v11115_v16  ;;  %v11223_v13 = vpop.f32.mrf.mxu1  ;;  %v13302_v28 = vrot.slane %v11109_v5, 1  ;;  %v9071_v5 = vld [vmem:[%s9347_s15 + $0x5ec] ss:$16 sps:$4 sm:$0xff]  }
 0x362   : > { %5917 = vrot.lane.b32.xlu1 %v5707_v46, %s9149_s14  ;;  %v7100_v56 = vmax.f32 %v7098_v44, %v7099_v33  ;;  %v5460_v58 = vadd.f32 %v5191_v3, %v13299_v2  ;;  %v4178_v30 = vpop.f32.mrf.mxu0  ;;  %v11226_v18 = vpop.permute.xlu0 %5863  ;;  %13301 = vst [vmem:[#allocation110_spill] sm:$0xff] %v11229_v60  ;;  %v6334_v48 = vrot.slane %v11205_v11, 1  ;;  %v9069_v44 = vld [vmem:[%s9347_s15 + $0x600] ss:$16 sps:$4 sm:$0xff]   ;;  %v9070_v3 = vld [vmem:[%s9347_s15 + $0x5c8] ss:$16 sps:$4 sm:$0xff]   ;;  %v6333_v31 = vsel %vm5106_vm3, %v6330_v0, %v6332_v17 }
 0x363   : > { %13300 = vst [vmem:[#allocation13_spill] sm:$0xff] %v11226_v18  ;;  %v5192_v34 = vrot.slane %v4177_v9, 1  ;;  %v11231_v7 = vpop.permute.xlu1 %5861  ;;  %v6331_v16 = vsel %vm5106_vm3, %v13302_v28, %v6330_v0  ;;  %v11237_v39 = vpop.f32.mrf.mxu1  ;;  %3888 = vmatmul.mubr.bf16.gmra.mxu1 %v9069_v44  ;;  %v13303_v44 = vld [vmem:[#allocation14_spill] sm:$0xff] }
 0x364   : > { %v7101_v2 = vrot.slane %v7100_v56, 1  ;;  %v7104_v33 = vmax.f32 %v7103_v35, %v5460_v58  ;;  %v4182_v46 = vpop.f32.mrf.mxu0  ;;  %4421 = vmatmul.mubr.bf16.gmra.mxu0 %v9070_v3  ;;  %6539 = vrot.lane.b32.xlu0 %v6331_v16, %s9151_s21  ;;  %v11253_v16 = vadd.f32 %v4178_v30, %v11121_v12  ;;  %v13306_v12 = vrot.slane %v11165_v52, 7 }
 0x365   : > { %v5193_v9 = vsel %vm5106_vm3, %v5190_v21, %v5192_v34  ;;  %v4183_v28 = vadd.f32 %v4182_v46, %v11134_v10  ;;  %8309 = vmatprep.mubr.msk.bf16.mxu0 %vm2099_vm0, %v9071_v5  ;;  %v11249_v35 = vpop.f32.mrf.mxu1  ;;  %v9072_v21 = vld [vmem:[%s9347_s15 + $0x624] ss:$16 sps:$4 sm:$0xff]   ;;  %v5710_v10 = vrot.slane %v11229_v60, 7  ;;  %v6335_v5 = vsel %vm5106_vm3, %v6332_v17, %v6334_v48 }
 0x366   : > { %6541 = vrot.lane.b32.xlu1 %v6333_v31, %s9151_s21  ;;  %v7102_v58 = vmax.f32 %v7100_v56, %v7101_v2  ;;  %v5461_v3 = vadd.f32 %v5193_v9, %v13303_v44  ;;  %13304 = vst [vmem:[#allocation14_spill] sm:$0xff] %v11253_v16  ;;  %v4184_v0 = vpop.f32.mrf.mxu0  ;;  %v11255_v11 = vpop.permute.xlu0 %6487  ;;  %3897 = vmatprep.mubr.bf16.mxu1 %v9072_v21  ;;  %v6336_v56 = vrot.slane %v11229_v60, 1 }
 0x367   : > { %v5194_v46 = vrot.slane %v4183_v28, 1  ;;  %v11259_v31 = vpop.permute.xlu1 %6485  ;;  %v11262_v18 = vpop.f32.mrf.mxu1  ;;  %v5709_v30 = vsel %vm4585_vm2, %v13306_v12, %v5708_v14  ;;  %v5712_v12 = vrot.slane %v11253_v16, 7  ;;  %v11283_v52 = vadd.f32 %v4184_v0, %v11152_v54 }
 0x368   : > { %13305 = vst [vmem:[#allocation111_spill] sm:$0xff] %v11259_v31  ;;  %v7105_v2 = vmax.f32 %v7104_v33, %v5461_v3  ;;  %v4186_v9 = vpop.f32.mrf.mxu0  ;;  %6543 = vrot.lane.b32.xlu0 %v6335_v5, %s9151_s21  ;;  %v11271_v28 = vsel %vm7556_vm7, %v7102_v58, %v10969_v63  ;;  %v13307_v33 = vld [vmem:[#allocation15_spill] sm:$0xff]  ;;  %v6337_v54 = vsel %vm5106_vm3, %v6334_v48, %v6336_v56  ;;  %v6338_v0 = vrot.slane %v11253_v16, 1  ;;  %v13312_v16 = vld [vmem:[#allocation16_spill] sm:$0xff] }
 0x369   : > { %v5195_v44 = vsel %vm5106_vm3, %v5192_v34, %v5194_v46  ;;  %v11275_v17 = vpop.f32.mrf.mxu1  ;;  %v4187_v21 = vadd.f32 %v4186_v9, %v11160_v43  ;;  %13309 = vst [vmem:[#allocation112_spill] sm:$0xff] %v11283_v52  ;;  %v5711_v34 = vsel %vm4585_vm2, %v5708_v14, %v5710_v10  ;;  %v9074_v9 = vld [vmem:[%s9347_s15 + $0x5e8] ss:$16 sps:$4 sm:$0xff]   ;;  %v9075_v14 = vld [vmem:[%s9347_s15 + $0x60c] ss:$16 sps:$4 sm:$0xff]   ;;  %v5714_v48 = vrot.slane %v11283_v52, 7 }
 0x36a   : > { %5919 = vrot.lane.b32.xlu1 %v5709_v30, %s9149_s14  ;;  %v5462_v3 = vadd.f32 %v5195_v44, %v13307_v33  ;;  %v4188_v5 = vpop.f32.mrf.mxu0  ;;  %v11279_v60 = vpop.permute.xlu0 %5865  ;;  %v9073_v30 = vld [vmem:[%s9347_s15 + $0x620] ss:$16 sps:$4 sm:$0xff]  }
 0x36b   : > { %13308 = vst [vmem:[#allocation15_spill] sm:$0xff] %v11279_v60  ;;  %v11285_v63 = vpop.permute.xlu1 %6489  ;;  %v11288_v58 = vpop.f32.mrf.mxu1  ;;  %3898 = vmatmul.mubr.bf16.gmra.mxu1 %v9073_v30  ;;  %v5196_v33 = vrot.slane %v4187_v21, 1 }
 0x36c   : > { %13310 = vst [vmem:[#allocation113_spill] sm:$0xff] %v11285_v63  ;;  %v7106_v44 = vmax.f32 %v7105_v2, %v5462_v3  ;;  %v4192_v43 = vpop.f32.mrf.mxu0  ;;  %4431 = vmatmul.mubr.bf16.gmra.mxu0 %v9074_v9  ;;  %5921 = vrot.lane.b32.xlu0 %v5711_v34, %s9149_s14  ;;  %v5713_v34 = vsel %vm4585_vm2, %v5710_v10, %v5712_v12  ;;  %v9076_v9 = vld [vmem:[%s9347_s15 + $0x644] ss:$16 sps:$4 sm:$0xff]  }
 0x36d   : > { %v4193_v60 = vadd.f32 %v4192_v43, %v11183_v45  ;;  %8310 = vmatprep.mubr.msk.bf16.mxu0 %vm2099_vm0, %v9075_v14  ;;  %v11299_v30 = vpop.f32.mrf.mxu1  ;;  %v5197_v2 = vsel %vm5106_vm3, %v5194_v46, %v5196_v33  ;;  %3907 = vmatprep.mubr.bf16.mxu1 %v9076_v9  ;;  %v11309_v43 = vadd.f32 %v4188_v5, %v11177_v15  ;;  %v6340_v46 = vrot.slane %v11283_v52, 1 }
 0x36e   : > { %6545 = vrot.lane.b32.xlu1 %v6337_v54, %s9151_s21  ;;  %v4194_v3 = vpop.f32.mrf.mxu0  ;;  %v11302_v21 = vpop.permute.xlu0 %5867  ;;  %v5463_v45 = vadd.f32 %v5197_v2, %v13312_v16  ;;  %v6339_v10 = vsel %vm5106_vm3, %v6336_v56, %v6338_v0  ;;  %v5715_v56 = vsel %vm4585_vm2, %v5712_v12, %v5714_v48 }
 0x36f   : > { %13311 = vst [vmem:[#allocation114_spill] sm:$0xff] %v11302_v21  ;;  %13313 = vst [vmem:[#allocation16_spill] sm:$0xff] %v11309_v43  ;;  %v5198_v54 = vrot.slane %v4193_v60, 1  ;;  %v11311_v14 = vpop.permute.xlu1 %6493  ;;  %v11313_v63 = vpop.f32.mrf.mxu1  ;;  %v11327_v52 = vadd.f32 %v4194_v3, %v11197_v22  ;;  %v6341_v22 = vsel %vm5106_vm3, %v6338_v0, %v6340_v46  ;;  %v6342_v3 = vrot.slane %v11309_v43, 1  ;;  %v9080_v0 = vld [vmem:[%s9347_s15 + $0x664] ss:$16 sps:$4 sm:$0xff]  }
 0x370   : > { %v4196_v31 = vpop.f32.mrf.mxu0  ;;  %5923 = vrot.lane.b32.xlu0 %v5713_v34, %s9149_s14  ;;  %v7107_v9 = vmax.f32 %v7106_v44, %v5463_v45  ;;  %v5716_v44 = vrot.slane %v11309_v43, 7  ;;  %v9077_v45 = vld [vmem:[%s9347_s15 + $0x640] ss:$16 sps:$4 sm:$0xff]  }
 0x371   : > { %v5199_v21 = vsel %vm5106_vm3, %v5196_v33, %v5198_v54  ;;  %v11320_v15 = vpop.f32.mrf.mxu1  ;;  %v4197_v16 = vadd.f32 %v4196_v31, %v11213_v40  ;;  %13314 = vst [vmem:[#allocation115_spill] sm:$0xff] %v11327_v52  ;;  %v9078_v31 = vld [vmem:[%s9347_s15 + $0x608] ss:$16 sps:$4 sm:$0xff]  }
 0x372   : > { %6547 = vrot.lane.b32.xlu1 %v6339_v10, %s9151_s21  ;;  %v5464_v60 = vadd.f32 %v5199_v21, %v10011_v24  ;;  %v4198_v5 = vpop.f32.mrf.mxu0  ;;  %v11324_v2 = vpop.permute.xlu0 %6491  ;;  %v9079_v10 = vld [vmem:[%s9347_s15 + $0x62c] ss:$16 sps:$4 sm:$0xff]  }
 0x373   : > { %v11329_v34 = vpop.permute.xlu1 %5871  ;;  %v11333_v33 = vpop.f32.mrf.mxu1  ;;  %3908 = vmatmul.mubr.bf16.gmra.mxu1 %v9077_v45  ;;  %v5200_v21 = vrot.slane %v4197_v16, 1 }
 0x374   : > { %13315 = vst [vmem:[#allocation116_spill] sm:$0xff] %v11329_v34  ;;  %v7108_v24 = vmax.f32 %v7107_v9, %v5464_v60  ;;  %v4202_v40 = vpop.f32.mrf.mxu0  ;;  %4441 = vmatmul.mubr.bf16.gmra.mxu0 %v9078_v31  ;;  %5925 = vrot.lane.b32.xlu0 %v5715_v56, %s9149_s14  ;;  %v11348_v60 = vadd.f32 %v4198_v5, %v11223_v13  ;;  %v5718_v31 = vrot.slane %v11327_v52, 7 }
 0x375   : > { %v4203_v12 = vadd.f32 %v4202_v40, %v11237_v39  ;;  %8311 = vmatprep.mubr.msk.bf16.mxu0 %vm2099_vm0, %v9079_v10  ;;  %v11344_v45 = vpop.f32.mrf.mxu1  ;;  %v5201_v9 = vsel %vm5106_vm3, %v5198_v54, %v5200_v21  ;;  %3917 = vmatprep.mubr.bf16.mxu1 %v9080_v0  ;;  %v13318_v39 = vld [vmem:[#allocation17_spill] sm:$0xff]  ;;  %v5717_v10 = vsel %vm4585_vm2, %v5714_v48, %v5716_v44  ;;  %v6344_v54 = vrot.slane %v11327_v52, 1 }
 0x376   : > { %6549 = vrot.lane.b32.xlu1 %v6341_v22, %s9151_s21  ;;  %13316 = vst [vmem:[#allocation117_spill] sm:$0xff] %v11348_v60  ;;  %v4204_v16 = vpop.f32.mrf.mxu0  ;;  %v11350_v56 = vpop.permute.xlu0 %5869  ;;  %v5465_v40 = vadd.f32 %v5201_v9, %v13318_v39  ;;  %v6343_v5 = vsel %vm5106_vm3, %v6340_v46, %v6342_v3  ;;  %v5720_v46 = vrot.slane %v11348_v60, 7 }
 0x377   : > { %13317 = vst [vmem:[#allocation118_spill] sm:$0xff] %v11350_v56  ;;  %v5202_v22 = vrot.slane %v4203_v12, 1  ;;  %v11355_v43 = vpop.permute.xlu1 %5873  ;;  %v11358_v34 = vpop.f32.mrf.mxu1  ;;  %v11369_v9 = vadd.f32 %v4204_v16, %v11249_v35  ;;  %v9082_v16 = vld [vmem:[%s9347_s15 + $0x628] ss:$16 sps:$4 sm:$0xff]  }
 0x378   : > { %13319 = vst [vmem:[#allocation17_spill] sm:$0xff] %v11355_v43  ;;  %v4206_v13 = vpop.f32.mrf.mxu0  ;;  %5927 = vrot.lane.b32.xlu0 %v5717_v10, %s9149_s14  ;;  %v7109_v0 = vmax.f32 %v7108_v24, %v5465_v40  ;;  %v9081_v10 = vld [vmem:[%s9347_s15 + $0x660] ss:$16 sps:$4 sm:$0xff]  }
 0x379   : > { %v5203_v56 = vsel %vm5106_vm3, %v5200_v21, %v5202_v22  ;;  %v11365_v12 = vpop.f32.mrf.mxu1  ;;  %13320 = vst [vmem:[#allocation119_spill] sm:$0xff] %v11369_v9  ;;  %v4207_v39 = vadd.f32 %v4206_v13, %v11262_v18  ;;  %v5719_v21 = vsel %vm4585_vm2, %v5716_v44, %v5718_v31  ;;  %v6345_v18 = vsel %vm5106_vm3, %v6342_v3, %v6344_v54  ;;  %v9083_v44 = vld [vmem:[%s9347_s15 + $0x64c] ss:$16 sps:$4 sm:$0xff]  }
 0x37a   : > { %6551 = vrot.lane.b32.xlu1 %v6343_v5, %s9151_s21  ;;  %v5466_v48 = vadd.f32 %v5203_v56, %v10022_v26  ;;  %v4208_v52 = vpop.f32.mrf.mxu0  ;;  %v11372_v43 = vpop.permute.xlu0 %6495  ;;  %v6346_v13 = vrot.slane %v11348_v60, 1  ;;  %v5721_v3 = vsel %vm4585_vm2, %v5718_v31, %v5720_v46 }
 0x37b   : > { %13321 = vst [vmem:[#allocation120_spill] sm:$0xff] %v11372_v43  ;;  %v11375_v24 = vpop.permute.xlu1 %5875  ;;  %v11378_v40 = vpop.f32.mrf.mxu1  ;;  %3918 = vmatmul.mubr.bf16.gmra.mxu1 %v9081_v10  ;;  %v5204_v56 = vrot.slane %v4207_v39, 1 }
 0x37c   : > { %13322 = vst [vmem:[#allocation121_spill] sm:$0xff] %v11375_v24  ;;  %v7110_v26 = vmax.f32 %v7109_v0, %v5466_v48  ;;  %v4212_v35 = vpop.f32.mrf.mxu0  ;;  %4451 = vmatmul.mubr.bf16.gmra.mxu0 %v9082_v16  ;;  %5929 = vrot.lane.b32.xlu0 %v5719_v21, %s9149_s14  ;;  %v5722_v0 = vrot.slane %v11369_v9, 7  ;;  %v6348_v21 = vrot.slane %v11369_v9, 1  ;;  %v13324_v16 = vld [vmem:[#allocation18_spill] sm:$0xff] }
 0x37d   : > { %v4213_v5 = vadd.f32 %v4212_v35, %v11288_v58  ;;  %8312 = vmatprep.mubr.msk.bf16.mxu0 %vm2099_vm0, %v9083_v44  ;;  %v11389_v24 = vpop.f32.mrf.mxu1  ;;  %v5205_v48 = vsel %vm5106_vm3, %v5202_v22, %v5204_v56  ;;  %v11399_v35 = vadd.f32 %v4208_v52, %v11275_v17  ;;  %v6347_v22 = vsel %vm5106_vm3, %v6344_v54, %v6346_v13  ;;  %v8867_v52 = vld [vmem:[%s13056_s3 + $0x30] sm:$0xff]   ;;  %v13327_v17 = vld [vmem:[#allocation75_spill] sm:$0xff] }
 0x37e   : > { %6553 = vrot.lane.b32.xlu1 %v6345_v18, %s9151_s21  ;;  %v4214_v39 = vpop.f32.mrf.mxu0  ;;  %v11393_v10 = vpop.permute.xlu0 %6497  ;;  %v5467_v58 = vadd.f32 %v5205_v48, %v13324_v16  ;;  %v13328_v48 = vld [vmem:[#allocation19_spill] sm:$0xff]  ;;  %7694 = vmatpush1.bf16.msra.mxu1 %v8867_v52 }
 0x37f   : > { %13323 = vst [vmem:[#allocation122_spill] sm:$0xff] %v11393_v10  ;;  %13325 = vst [vmem:[#allocation18_spill] sm:$0xff] %v11399_v35  ;;  %v5206_v18 = vrot.slane %v4213_v5, 1  ;;  %v11401_v44 = vpop.permute.xlu1 %5877  ;;  %v11403_v60 = vpop.f32.mrf.mxu1  ;;  %v6149_v5 = vadd.f32 %v10930_v1, %v13327_v17  ;;  %v6349_v1 = vsel %vm5106_vm3, %v6346_v13, %v6348_v21  ;;  %7695 = vmatprep.subr.bf16.mxu1 %v13286_v51 }
 0x380   : > { %13326 = vst [vmem:[#allocation123_spill] sm:$0xff] %v11401_v44  ;;  %v4216_v43 = vpop.f32.mrf.mxu0  ;;  %5931 = vrot.lane.b32.xlu0 %v5721_v3, %s9149_s14  ;;  %v7111_v10 = vmax.f32 %v7110_v26, %v5467_v58  ;;  %v5723_v44 = vsel %vm4585_vm2, %v5720_v46, %v5722_v0  ;;  %v9085_v46 = vld [vmem:[%s9347_s15 + $0x66c] ss:$16 sps:$4 sm:$0xff]  }
 0x381   : > { %v5207_v31 = vsel %vm5106_vm3, %v5204_v56, %v5206_v18  ;;  %v11409_v9 = vpop.f32.mrf.mxu1  ;;  %v4217_v3 = vadd.f32 %v4216_v43, %v11313_v63  ;;  %v5724_v56 = vrot.slane %v11399_v35, 7  ;;  %v13111_v63 = vrot.slane %v11399_v35, 1 }
 0x382   : > { %6555 = vrot.lane.b32.xlu1 %v6347_v22, %s9151_s21  ;;  %v5468_v16 = vadd.f32 %v5207_v31, %v13328_v48  ;;  %v4218_v54 = vpop.f32.mrf.mxu0  ;;  %v11418_v26 = vpop.permute.xlu0 %6499  ;;  %v11432_v31 = vadd.f32 %v4214_v39, %v11299_v30 }
 0x383   : > { %13329 = vst [vmem:[#allocation75_spill] sm:$0xff] %v11418_v26  ;;  %v11422_v58 = vadd.f32 %v4218_v54, %v11320_v15  ;;  %v11424_v22 = vpop.permute.xlu1 %5879  ;;  %v11428_v17 = vpop.f32.mrf.mxu1  ;;  %v5208_v48 = vrot.slane %v4217_v3, 1  ;;  %v9084_v15 = vld [vmem:[%s9347_s15 + $0x648] ss:$16 sps:$4 sm:$0xff]  }
 0x384   : > { %13331 = vst [vmem:[#allocation124_spill] sm:$0xff] %v11424_v22  ;;  %v7112_v43 = vmax.f32 %v7111_v10, %v5468_v16  ;;  %13332 = vst [vmem:[#allocation125_spill] sm:$0xff] %v11432_v31  ;;  %v4222_v26 = vpop.f32.mrf.mxu0  ;;  %4461 = vmatmul.mubr.bf16.gmra.mxu0 %v9084_v15  ;;  %5933 = vrot.lane.b32.xlu0 %v5723_v44, %s9149_s14  ;;  %v6775_v10 = vadd.f32 %v10964_v62, %v6149_v5  ;;  %v13333_v16 = vld [vmem:[#allocation20_spill] sm:$0xff]  ;;  %v5726_v15 = vrot.slane %v11432_v31, 7 }
 0x385   : > { %13330 = vst [vmem:[#allocation19_spill] sm:$0xff] %v11422_v58  ;;  %v4223_v54 = vadd.f32 %v4222_v26, %v11333_v33  ;;  %8313 = vmatprep.mubr.msk.bf16.mxu0 %vm2099_vm0, %v9085_v46  ;;  %v11440_v13 = vpop.f32.mrf.mxu1  ;;  %v5209_v30 = vsel %vm5106_vm3, %v5206_v18, %v5208_v48  ;;  %v5725_v26 = vsel %vm4585_vm2, %v5722_v0, %v5724_v56  ;;  %vm9154_vm0 = vmmov 0  }
 0x386   : > { %6557 = vrot.lane.b32.xlu1 %v6349_v1, %s9151_s21  ;;  %v4224_v39 = vpop.f32.mrf.mxu0  ;;  %v11444_v52 = vpop.permute.xlu0 %6501  ;;  %v5469_v44 = vadd.f32 %v5209_v30, %v13333_v16  ;;  %v6351_v62 = vsel %vm5106_vm3, %v6348_v21, %v13111_v63 }
 0x387   : > { %v5210_v3 = vrot.slane %v4223_v54, 1  ;;  %v11450_v1 = vpop.f32.mrf.mxu1  ;;  %v11458_v30 = vpop.permute.xlu1 %5881  ;;  %v7193_v54 = vadd.f32 %v10377_v29, %v6775_v10 }
 0x388   : > { %v4226_v46 = vpop.f32.mrf.mxu0  ;;  %5935 = vrot.lane.b32.xlu0 %v5725_v26, %s9149_s14  ;;  %v7113_v18 = vmax.f32 %v7112_v43, %v5469_v44  ;;  %13334 = vst [vmem:[#allocation20_spill] sm:$0xff] %v11458_v30  ;;  %v13335_v26 = vld [vmem:[#allocation21_spill] sm:$0xff]  ;;  %v13337_v43 = vld [vmem:[#allocation76_spill] sm:$0xff]  ;;  %v6352_v44 = vrot.slane %v11432_v31, 1  ;;  %v13339_v30 = vrot.slane %v11422_v58, 7 }
 0x389   : > { %v5211_v5 = vsel %vm5106_vm3, %v5208_v48, %v5210_v3  ;;  %v11461_v0 = vpop.f32.mrf.mxu1  ;;  %v4227_v22 = vadd.f32 %v4226_v46, %v11358_v34  ;;  %v6150_v48 = vadd.f32 %v10947_v27, %v13337_v43  ;;  %v11482_v34 = vadd.f32 %v4224_v39, %v11344_v45 }
 0x38a   : > { %6559 = vrot.lane.b32.xlu1 %v6351_v62, %s9151_s21  ;;  %v5470_v33 = vadd.f32 %v5211_v5, %v13335_v26  ;;  %v4228_v21 = vpop.f32.mrf.mxu0  ;;  %v11467_v63 = vpop.permute.xlu0 %6503  ;;  %v5729_v10 = vsel %vm4585_vm2, %v5726_v15, %v13339_v30  ;;  %v5727_v27 = vsel %vm4585_vm2, %v5724_v56, %v5726_v15  ;;  %v13341_v43 = vrot.slane %v11422_v58, 1 }
 0x38b   : > { %13336 = vst [vmem:[#allocation21_spill] sm:$0xff] %v11467_v63  ;;  %v11473_v62 = vadd.f32 %v4228_v21, %v11365_v12  ;;  %v11478_v16 = vpop.f32.mrf.mxu1  ;;  %13340 = vst [vmem:[#allocation126_spill] sm:$0xff] %v11482_v34  ;;  %v5212_v46 = vrot.slane %v4227_v22, 1  ;;  %v9086_v63 = vld [vmem:[%s9347_s15 + $0x668] ss:$16 sps:$4 sm:$0xff]   ;;  %v6776_v12 = vadd.f32 %v10997_v19, %v6150_v48  ;;  %v11503_v48 = vpop.permute.xlu1 %5883  ;;  %s7893_s15 = sshll.u32 %s272_s20, 3 }
 0x38c   : > { %v6996_v5 = vadd.f32 %v10591_v42, %v5470_v33  ;;  %v4232_v26 = vpop.f32.mrf.mxu0  ;;  %4471 = vmatmul.mubr.bf16.gmra.mxu0 %v9086_v63  ;;  %5939 = vrot.lane.b32.xlu0 %v5729_v10, %s9149_s14  ;;  %v11493_v33 = vsel %vm7297_vm8, %v7193_v54, -inf  ;;  %v6355_v56 = vsel %vm5106_vm3, %v6352_v44, %v13341_v43  ;;  %v13342_v19 = vld [vmem:[#allocation22_spill] sm:$0xff]  ;;  %s274_s29 = scalar_lea.vmem [#allocation2], %s7893_s15 }
 0x38d   : > { %13338 = vst [vmem:[#allocation76_spill] sm:$0xff] %v11473_v62  ;;  %v4233_v21 = vadd.f32 %v4232_v26, %v11378_v40  ;;  %v11490_v30 = vpop.f32.mrf.mxu1  ;;  %v5213_v22 = vsel %vm5106_vm3, %v5210_v3, %v5212_v46  ;;  %v6358_v40 = vrot.slane %v11473_v62, 1  ;;  %13343 = vst [vmem:[#allocation22_spill] sm:$0xff] %v11503_v48  ;;  %v6151_v3 = vadd.f32 %v10974_v50, %v10380_v49  ;;  %v13346_v26 = vld [vmem:[#allocation23_spill] sm:$0xff]  ;;  %v13348_v48 = vld [vmem:[#allocation77_spill] sm:$0xff] }
 0x38e   : > { %5937 = vrot.lane.b32.xlu1 %v5727_v27, %s9149_s14  ;;  %v7114_v45 = vmax.f32 %v7113_v18, %v6996_v5  ;;  %v4234_v39 = vpop.f32.mrf.mxu0  ;;  %v11496_v63 = vpop.permute.xlu0 %6505  ;;  %v5471_v15 = vadd.f32 %v5213_v22, %v13342_v19  ;;  %v13345_v22 = vrot.slane %v11399_v35, 1 }
 0x38f   : > { %v5214_v10 = vrot.slane %v4233_v21, 1  ;;  %v11506_v54 = vadd.f32 %v4234_v39, %v11389_v24  ;;  %v11508_v18 = vpop.f32.mrf.mxu1  ;;  %v7299_v21 = vsel %vm7297_vm8, %v6776_v12, -inf  ;;  %v6356_v24 = vrot.slane %v11482_v34, 1 }
 0x390   : > { %v7115_v5 = vrot.slane %v7114_v45, 4  ;;  %v4236_v27 = vpop.f32.mrf.mxu0  ;;  %6563 = vrot.lane.b32.xlu0 %v6355_v56, %s9151_s21  ;;  %v6353_v43 = vsel %vm5106_vm3, %v13345_v22, %v6352_v44  ;;  %v6997_v39 = vadd.f32 %v10377_v29, %v5471_v15  ;;  %v6777_v12 = vadd.f32 %v10990_v59, %v6151_v3 }
 0x391   : > { %13344 = vst [vmem:[#allocation127_spill] sm:$0xff] %v11506_v54  ;;  %v5215_v19 = vsel %vm5106_vm3, %v5212_v46, %v5214_v10  ;;  %v11522_v49 = vpop.f32.mrf.mxu1  ;;  %v6360_v56 = vrot.slane %v11506_v54, 1  ;;  %v4237_v35 = vadd.f32 %v4236_v27, %v11403_v60  ;;  %v6152_v15 = vadd.f32 %v11021_v6, %v13348_v48 }
 0x392   : > { %6561 = vrot.lane.b32.xlu1 %v6353_v43, %s9151_s21  ;;  %v7116_v50 = vmax.f32 %v7114_v45, %v7115_v5  ;;  %v5472_v31 = vadd.f32 %v5215_v19, %v13346_v26  ;;  %v4238_v44 = vpop.f32.mrf.mxu0  ;;  %v11527_v22 = vpop.permute.xlu0 %6507  ;;  %v6359_v45 = vsel %vm5106_vm3, %v6356_v24, %v6358_v40  ;;  %v13351_v59 = vrot.slane %v11482_v34, 7 }
 0x393   : > { %13347 = vst [vmem:[#allocation23_spill] sm:$0xff] %v11527_v22  ;;  %v11533_v46 = vadd.f32 %v4238_v44, %v11409_v9  ;;  %v11535_v43 = vpop.permute.xlu1 %5887  ;;  %v11538_v5 = vpop.f32.mrf.mxu1  ;;  %v5216_v60 = vrot.slane %v4237_v35, 1  ;;  %v13352_v3 = vrot.slane %v11422_v58, 7  ;;  %v7300_v9 = vmax.f32 %v11493_v33, %v7299_v21  ;;  %v13353_v21 = vld [vmem:[#allocation24_spill] sm:$0xff] }
 0x394   : > { %13350 = vst [vmem:[#allocation128_spill] sm:$0xff] %v11535_v43  ;;  %v7117_v26 = vrot.slane %v7116_v50, 2  ;;  %v7121_v19 = vmax.f32 %v6997_v39, %v5472_v31  ;;  %v4242_v27 = vpop.f32.mrf.mxu0  ;;  %6567 = vrot.lane.b32.xlu0 %v6359_v45, %s9151_s21  ;;  %v6778_v48 = vadd.f32 %v11042_v20, %v6152_v15  ;;  %v6153_v35 = vadd.f32 %v11014_v38, %v10415_v41 }
 0x395   : > { %13349 = vst [vmem:[#allocation77_spill] sm:$0xff] %v11533_v46  ;;  %v5731_v6 = vsel %vm4585_vm2, %v13352_v3, %v13351_v59  ;;  %v4243_v44 = vadd.f32 %v4242_v27, %v11428_v17  ;;  %v11550_v43 = vpop.f32.mrf.mxu1  ;;  %v5217_v39 = vsel %vm5106_vm3, %v5214_v10, %v5216_v60  ;;  %v6361_v33 = vsel %vm5106_vm3, %v6358_v40, %v6360_v56 }
 0x396   : > { %5941 = vrot.lane.b32.xlu1 %v5731_v6, %s9149_s14  ;;  %v7118_v31 = vmax.f32 %v7116_v50, %v7117_v26  ;;  %v4244_v45 = vpop.f32.mrf.mxu0  ;;  %v11555_v22 = vpop.permute.xlu0 %5885  ;;  %v5473_v20 = vadd.f32 %v5217_v39, %v13353_v21  ;;  %v6362_v17 = vrot.slane %v11533_v46, 1  ;;  %v7301_v41 = vsel %vm7297_vm8, %v6777_v12, -inf  ;;  %v13357_v21 = vld [vmem:[#allocation25_spill] sm:$0xff] }
 0x397   : > { %v5218_v15 = vrot.slane %v4243_v44, 1  ;;  %v11561_v27 = vadd.f32 %v4244_v45, %v11440_v13  ;;  %v11563_v59 = vpop.permute.xlu1 %6511  ;;  %v11565_v3 = vpop.f32.mrf.mxu1  ;;  %v5732_v10 = vrot.slane %v11473_v62, 7  ;;  %v13356_v40 = vrot.slane %v11422_v58, 1 }
 0x398   : > { %13355 = vst [vmem:[#allocation129_spill] sm:$0xff] %v11563_v59  ;;  %v7119_v38 = vrot.slane %v7118_v31, 1  ;;  %v4246_v50 = vpop.f32.mrf.mxu0  ;;  %6569 = vrot.lane.b32.xlu0 %v6361_v33, %s9151_s21  ;;  %v7303_v6 = vsel %vm7297_vm8, %v6778_v48, -inf  ;;  %v6779_v13 = vadd.f32 %v11065_v4, %v6153_v35  ;;  %v7122_v44 = vmax.f32 %v7121_v19, %v5473_v20 }
 0x399   : > { %13354 = vst [vmem:[#allocation24_spill] sm:$0xff] %v11561_v27  ;;  %v6357_v26 = vsel %vm5106_vm3, %v13356_v40, %v6356_v24  ;;  %v5219_v39 = vsel %vm5106_vm3, %v5216_v60, %v5218_v15  ;;  %v11577_v12 = vpop.f32.mrf.mxu1  ;;  %v6364_v33 = vrot.slane %v11561_v27, 1  ;;  %v4247_v58 = vadd.f32 %v4246_v50, %v11450_v1 }
 0x39a   : > { %6565 = vrot.lane.b32.xlu1 %v6357_v26, %s9151_s21  ;;  %v7120_v45 = vmax.f32 %v7118_v31, %v7119_v38  ;;  %v5474_v62 = vadd.f32 %v5219_v39, %v13357_v21  ;;  %v4248_v59 = vpop.f32.mrf.mxu0  ;;  %v11582_v24 = vpop.permute.xlu0 %6509  ;;  %v6154_v4 = vadd.f32 %v11035_v25, %v10431_v61  ;;  %v7302_v19 = vmax.f32 %v7300_v9, %v7301_v41 }
 0x39b   : > { %v11587_v60 = vadd.f32 %v4248_v59, %v11461_v0  ;;  %v11589_v48 = vpop.permute.xlu1 %5889  ;;  %v6363_v35 = vsel %vm5106_vm3, %v6360_v56, %v6362_v17  ;;  %v11592_v31 = vpop.f32.mrf.mxu1  ;;  %v5734_v20 = vrot.slane %v11506_v54, 7  ;;  %v5220_v1 = vrot.slane %v4247_v58, 1 }
 0x39c   : > { %v7123_v38 = vmax.f32 %v7122_v44, %v5474_v62  ;;  %v4252_v50 = vpop.f32.mrf.mxu0  ;;  %6571 = vrot.lane.b32.xlu0 %v6363_v35, %s9151_s21  ;;  %v13359_v40 = vrot.slane %v11482_v34, 7  ;;  %v7304_v25 = vmax.f32 %v7302_v19, %v7303_v6  ;;  %v7305_v0 = vsel %vm7297_vm8, %v6779_v13, -inf  ;;  %v13361_v13 = vld [vmem:[#allocation26_spill] sm:$0xff] }
 0x39d   : > { %13358 = vst [vmem:[#allocation25_spill] sm:$0xff] %v11587_v60  ;;  %v4253_v9 = vadd.f32 %v4252_v50, %v11478_v16  ;;  %v11602_v56 = vpop.f32.mrf.mxu1  ;;  %v6780_v59 = vadd.f32 %v11083_v32, %v6154_v4  ;;  %v5221_v58 = vsel %vm5106_vm3, %v5218_v15, %v5220_v1  ;;  %v6365_v26 = vsel %vm5106_vm3, %v6362_v17, %v6364_v33 }
 0x39e   : > { %v5733_v61 = vsel %vm4585_vm2, %v13359_v40, %v5732_v10  ;;  %v4254_v62 = vpop.f32.mrf.mxu0  ;;  %v11606_v41 = vpop.permute.xlu0 %6513  ;;  %v11611_v6 = vsel %vm7558_vm9, %v7120_v45, %v11271_v28  ;;  %v5475_v44 = vadd.f32 %v5221_v58, %v13361_v13  ;;  %v6366_v16 = vrot.slane %v11587_v60, 1 }
 0x39f   : > { %5943 = vrot.lane.b32.xlu1 %v5733_v61, %s9149_s14  ;;  %13360 = vst [vmem:[#allocation130_spill] sm:$0xff] %v11606_v41  ;;  %v5222_v39 = vrot.slane %v4253_v9, 1  ;;  %v11616_v21 = vadd.f32 %v4254_v62, %v11490_v30  ;;  %v11618_v32 = vpop.permute.xlu1 %6517  ;;  %v11620_v15 = vpop.f32.mrf.mxu1  ;;  %v6155_v4 = vadd.f32 %v11059_v37, %v10452_v23  ;;  %v5736_v17 = vrot.slane %v11533_v46, 7  ;;  %v13363_v61 = vld [vmem:[#allocation27_spill] sm:$0xff] }
 0x3a0   : > { %v4256_v19 = vpop.f32.mrf.mxu0  ;;  %6573 = vrot.lane.b32.xlu0 %v6365_v26, %s9151_s21  ;;  %v5735_v28 = vsel %vm4585_vm2, %v5732_v10, %v5734_v20  ;;  %v7306_v45 = vmax.f32 %v7304_v25, %v7305_v0  ;;  %v6156_v35 = vadd.f32 %v11080_v47, %v10468_v53  ;;  %v7124_v30 = vmax.f32 %v7123_v38, %v5475_v44  ;;  %v13365_v44 = vld [vmem:[#allocation10_spill] sm:$0xff] }
 0x3a1   : > { %13362 = vst [vmem:[#allocation26_spill] sm:$0xff] %v11616_v21  ;;  %v5223_v50 = vsel %vm5106_vm3, %v5220_v1, %v5222_v39  ;;  %v11631_v40 = vpop.f32.mrf.mxu1  ;;  %v7307_v23 = vsel %vm7297_vm8, %v6780_v59, -inf  ;;  %v6781_v37 = vadd.f32 %v11111_v55, %v6155_v4  ;;  %v4257_v58 = vadd.f32 %v4256_v19, %v11508_v18 }
 0x3a2   : > { %v5476_v9 = vadd.f32 %v5223_v50, %v13363_v61  ;;  %v4258_v10 = vpop.f32.mrf.mxu0  ;;  %v11637_v25 = vpop.permute.xlu0 %5891  ;;  %v6157_v53 = vadd.f32 %v11105_v8, %v10489_v36  ;;  %v6368_v47 = vrot.slane %v11616_v21, 1  ;;  %v6367_v0 = vsel %vm5106_vm3, %v6364_v33, %v6366_v16  ;;  %v13366_v61 = vld [vmem:[#allocation28_spill] sm:$0xff] }
 0x3a3   : > { %5945 = vrot.lane.b32.xlu1 %v5735_v28, %s9149_s14  ;;  %v11643_v38 = vadd.f32 %v4258_v10, %v11522_v49  ;;  %v11645_v1 = vpop.permute.xlu1 %6519  ;;  %v11648_v55 = vpop.f32.mrf.mxu1  ;;  %v5738_v59 = vrot.slane %v11561_v27, 7  ;;  %v5224_v62 = vrot.slane %v4257_v58, 1  ;;  %v5737_v36 = vsel %vm4585_vm2, %v5734_v20, %v5736_v17 }
 0x3a4   : > { %v7125_v18 = vmax.f32 %v7124_v30, %v5476_v9  ;;  %v4262_v26 = vpop.f32.mrf.mxu0  ;;  %6575 = vrot.lane.b32.xlu0 %v6367_v0, %s9151_s21  ;;  %v7308_v8 = vmax.f32 %v7306_v45, %v7307_v23  ;;  %v6782_v13 = vadd.f32 %v11131_v57, %v6156_v35  ;;  %v7309_v33 = vsel %vm7297_vm8, %v6781_v37, -inf  ;;  %v13368_v9 = vld [vmem:[#allocation78_spill] sm:$0xff] }
 0x3a5   : > { %13364 = vst [vmem:[#allocation27_spill] sm:$0xff] %v11643_v38  ;;  %v11655_v49 = vpop.f32.mrf.mxu1  ;;  %v6783_v4 = vadd.f32 %v13365_v44, %v6157_v53  ;;  %v5225_v19 = vsel %vm5106_vm3, %v5222_v39, %v5224_v62  ;;  %v4263_v28 = vadd.f32 %v4262_v26, %v11538_v5  ;;  %v6370_v45 = vrot.slane %v11643_v38, 1  ;;  %v13369_v39 = vld [vmem:[#allocation9_spill] sm:$0xff] }
 0x3a6   : > { %v4264_v30 = vpop.f32.mrf.mxu0  ;;  %v11661_v50 = vpop.permute.xlu0 %6515  ;;  %v5477_v20 = vadd.f32 %v5225_v19, %v13366_v61  ;;  %v6369_v23 = vsel %vm5106_vm3, %v6366_v16, %v6368_v47  ;;  %v6158_v58 = vadd.f32 %v13369_v39, %v13368_v9  ;;  %v5740_v5 = vrot.slane %v11587_v60, 7  ;;  %v13370_v19 = vld [vmem:[#allocation11_spill] sm:$0xff] }
 0x3a7   : > { %5947 = vrot.lane.b32.xlu1 %v5737_v36, %s9149_s14  ;;  %v11666_v57 = vadd.f32 %v4264_v30, %v11550_v43  ;;  %v11668_v35 = vpop.permute.xlu1 %6521  ;;  %v11671_v37 = vpop.f32.mrf.mxu1  ;;  %v5226_v10 = vrot.slane %v4263_v28, 1  ;;  %v5739_v0 = vsel %vm4585_vm2, %v5736_v17, %v5738_v59  ;;  %v7310_v26 = vmax.f32 %v7308_v8, %v7309_v33  ;;  %v13371_v17 = vld [vmem:[#allocation29_spill] sm:$0xff] }
 0x3a8   : > { %v4266_v53 = vpop.f32.mrf.mxu0  ;;  %6577 = vrot.lane.b32.xlu0 %v6369_v23, %s9151_s21  ;;  %v7311_v43 = vsel %vm7297_vm8, %v6782_v13, -inf  ;;  %v7126_v36 = vmax.f32 %v7125_v18, %v5477_v20  ;;  %v7313_v44 = vsel %vm7297_vm8, %v6783_v4, -inf  ;;  %v6784_v30 = vadd.f32 %v13370_v19, %v6158_v58 }
 0x3a9   : > { %13367 = vst [vmem:[#allocation10_spill] sm:$0xff] %v11666_v57  ;;  %v11680_v16 = vpop.f32.mrf.mxu1  ;;  %v5227_v61 = vsel %vm5106_vm3, %v5224_v62, %v5226_v10  ;;  %v4267_v28 = vadd.f32 %v4266_v53, %v11565_v3  ;;  %v6372_v13 = vrot.slane %v11666_v57, 1  ;;  %v6371_v4 = vsel %vm5106_vm3, %v6368_v47, %v6370_v45 }
 0x3aa   : > { %v4268_v9 = vpop.f32.mrf.mxu0  ;;  %v11686_v23 = vpop.permute.xlu0 %5893  ;;  %v5478_v8 = vadd.f32 %v5227_v61, %v13371_v17  ;;  %v7312_v39 = vmax.f32 %v7310_v26, %v7311_v43  ;;  %v5742_v62 = vrot.slane %v11616_v21, 7  ;;  %v5741_v53 = vsel %vm4585_vm2, %v5738_v59, %v5740_v5 }
 0x3ab   : > { %5949 = vrot.lane.b32.xlu1 %v5739_v0, %s9149_s14  ;;  %v11691_v18 = vadd.f32 %v4268_v9, %v11577_v12  ;;  %v11693_v33 = vpop.permute.xlu1 %6523  ;;  %v11696_v20 = vpop.f32.mrf.mxu1  ;;  %v5228_v3 = vrot.slane %v4267_v28, 1  ;;  %v11707_v47 = vsel %vm7297_vm8, %v6784_v30, -inf  ;;  %v13373_v9 = vld [vmem:[#allocation30_spill] sm:$0xff] }
 0x3ac   : > { %v4272_v58 = vpop.f32.mrf.mxu0  ;;  %6579 = vrot.lane.b32.xlu0 %v6371_v4, %s9151_s21  ;;  %v7127_v0 = vmax.f32 %v7126_v36, %v5478_v8  ;;  %v11704_v19 = vmax.f32 %v7312_v39, %v7313_v44  ;;  %v6373_v44 = vsel %vm5106_vm3, %v6370_v45, %v6372_v13  ;;  %v13375_v4 = vld [vmem:[#allocation79_spill] sm:$0xff] }
 0x3ad   : > { %13372 = vst [vmem:[#allocation28_spill] sm:$0xff] %v11691_v18  ;;  %v11702_v12 = vpop.f32.mrf.mxu1  ;;  %v5229_v26 = vsel %vm5106_vm3, %v5226_v10, %v5228_v3  ;;  %v4273_v43 = vadd.f32 %v4272_v58, %v11592_v31  ;;  %v13376_v10 = vld [vmem:[#allocation107_spill] sm:$0xff]  ;;  %v5744_v31 = vrot.slane %v11643_v38, 7  ;;  %v13380_v38 = vld [vmem:[#allocation81_spill] sm:$0xff] }
 0x3ae   : > { %v4274_v61 = vpop.f32.mrf.mxu0  ;;  %v11711_v28 = vpop.permute.xlu0 %5895  ;;  %v5479_v17 = vadd.f32 %v5229_v26, %v13373_v9  ;;  %v6159_v39 = vadd.f32 %v13376_v10, %v13375_v4  ;;  %v5743_v26 = vsel %vm4585_vm2, %v5740_v5, %v5742_v62  ;;  %v13377_v9 = vld [vmem:[#allocation80_spill] sm:$0xff]  ;;  %v7316_v59 = vmax.f32 %v11704_v19, %v11707_v47  ;;  %v13379_v4 = vld [vmem:[#allocation109_spill] sm:$0xff] }
 0x3af   : > { %5951 = vrot.lane.b32.xlu1 %v5741_v53, %s9149_s14  ;;  %v11716_v36 = vadd.f32 %v4274_v61, %v11602_v56  ;;  %v11718_v8 = vpop.permute.xlu1 %6525  ;;  %v11721_v30 = vpop.f32.mrf.mxu1  ;;  %v5230_v58 = vrot.slane %v4273_v43, 1  ;;  %v13378_v56 = vld [vmem:[#allocation12_spill] sm:$0xff]  ;;  %v6161_v43 = vadd.f32 %v11231_v7, %v13380_v38 }
 0x3b0   : > { %v4276_v53 = vpop.f32.mrf.mxu0  ;;  %6581 = vrot.lane.b32.xlu0 %v6373_v44, %s9151_s21  ;;  %v6160_v61 = vadd.f32 %v13378_v56, %v13377_v9  ;;  %v7128_v45 = vmax.f32 %v7127_v0, %v5479_v17  ;;  %v6785_v10 = vadd.f32 %v13379_v4, %v6159_v39  ;;  %v13381_v9 = vld [vmem:[#allocation31_spill] sm:$0xff]  ;;  %v13384_v17 = vrot.slane %v11691_v18, 1  ;;  %v13386_v39 = vld [vmem:[#allocation13_spill] sm:$0xff] }
 0x3b1   : > { %13374 = vst [vmem:[#allocation78_spill] sm:$0xff] %v11716_v36  ;;  %v11733_v21 = vpop.f32.mrf.mxu1  ;;  %v5231_v44 = vsel %vm5106_vm3, %v5228_v3, %v5230_v58  ;;  %v4277_v5 = vadd.f32 %v4276_v53, %v11620_v15  ;;  %v5750_v0 = vrot.slane %v11716_v36, 7  ;;  %v8868_v15 = vld [vmem:[%s13056_s3 + $0x28] sm:$0xff]   ;;  %v13385_v3 = vld [vmem:[#allocation82_spill] sm:$0xff] }
 0x3b2   : > { %v4278_v60 = vpop.f32.mrf.mxu0  ;;  %v11740_v27 = vpop.permute.xlu0 %5897  ;;  %v5480_v56 = vadd.f32 %v5231_v44, %v13381_v9  ;;  %v6375_v7 = vsel %vm5106_vm3, %v6372_v13, %v13384_v17  ;;  %v6162_v53 = vadd.f32 %v13386_v39, %v13385_v3  ;;  %v6787_v44 = vadd.f32 %v11255_v11, %v6161_v43  ;;  %v13387_v13 = vld [vmem:[#allocation111_spill] sm:$0xff]  ;;  %7696 = vmatpush1.bf16.msra.mxu1 %v8868_v15 }
 0x3b3   : > { %5953 = vrot.lane.b32.xlu1 %v5743_v26, %s9149_s14  ;;  %v11745_v19 = vadd.f32 %v4278_v60, %v11631_v40  ;;  %v11747_v47 = vpop.permute.xlu1 %6527  ;;  %v11752_v38 = vpop.f32.mrf.mxu1  ;;  %v5746_v26 = vrot.slane %v11666_v57, 7  ;;  %v5232_v4 = vrot.slane %v4277_v5, 1  ;;  %v5745_v40 = vsel %vm4585_vm2, %v5742_v62, %v5744_v31  ;;  %v13388_v5 = vld [vmem:[#allocation113_spill] sm:$0xff]  ;;  %7697 = vmatprep.subr.bf16.mxu1 %v13286_v51 }
 0x3b4   : > { %13383 = vst [vmem:[#allocation11_spill] sm:$0xff] %v11747_v47  ;;  %v4282_v60 = vpop.f32.mrf.mxu0  ;;  %6583 = vrot.lane.b32.xlu0 %v6375_v7, %s9151_s21  ;;  %v6786_v9 = vadd.f32 %v13387_v13, %v6160_v61  ;;  %v5748_v17 = vrot.slane %v11691_v18, 7  ;;  %v7129_v46 = vmax.f32 %v7128_v45, %v5480_v56  ;;  %v7317_v3 = vsel %vm7297_vm8, %v6785_v10, -inf  ;;  %v13389_v61 = vld [vmem:[#allocation32_spill] sm:$0xff] }
 0x3b5   : > { %13382 = vst [vmem:[#allocation9_spill] sm:$0xff] %v11745_v19  ;;  %v11766_v54 = vpop.f32.mrf.mxu1  ;;  %v6788_v39 = vadd.f32 %v13388_v5, %v6162_v53  ;;  %v5233_v7 = vsel %vm5106_vm3, %v5230_v58, %v5232_v4  ;;  %v4283_v62 = vadd.f32 %v4282_v60, %v11648_v55  ;;  %v13392_v58 = vld [vmem:[#allocation84_spill] sm:$0xff]  ;;  %v13393_v55 = vld [vmem:[#allocation15_spill] sm:$0xff]  ;;  %v5747_v5 = vsel %vm4585_vm2, %v5744_v31, %v5746_v26 }
 0x3b6   : > { %v4284_v57 = vpop.f32.mrf.mxu0  ;;  %v11772_v11 = vpop.permute.xlu0 %5899  ;;  %v5481_v45 = vadd.f32 %v5233_v7, %v13389_v61  ;;  %v5751_v10 = vsel %vm4585_vm2, %v5748_v17, %v5750_v0  ;;  %v6163_v60 = vadd.f32 %v13393_v55, %v13392_v58  ;;  %v11789_v7 = vmax.f32 %v7316_v59, %v7317_v3 }
 0x3b7   : > { %5955 = vrot.lane.b32.xlu1 %v5745_v40, %s9149_s14  ;;  %v11778_v56 = vadd.f32 %v4284_v57, %v11655_v49  ;;  %v11780_v15 = vpop.permute.xlu1 %6529  ;;  %v11783_v53 = vpop.f32.mrf.mxu1  ;;  %v5234_v40 = vrot.slane %v4283_v62, 1  ;;  %v7205_v49 = vadd.f32 %v10591_v42, %v6787_v44  ;;  %v11793_v57 = vsel %vm7297_vm8, %v6786_v9, -inf  ;;  %v13396_v44 = vld [vmem:[#allocation33_spill] sm:$0xff] }
 0x3b8   : > { %13391 = vst [vmem:[#allocation30_spill] sm:$0xff] %v11780_v15  ;;  %v4286_v13 = vpop.f32.mrf.mxu0  ;;  %5961 = vrot.lane.b32.xlu0 %v5751_v10, %s9149_s14  ;;  %13394 = vst [vmem:[#allocation79_spill] sm:$0xff] %v11789_v7  ;;  %v7130_v61 = vmax.f32 %v7129_v46, %v5481_v45  ;;  %v7206_v58 = vadd.f32 %v10377_v29, %v6788_v39  ;;  %v6789_v62 = vadd.f32 %v11324_v2, %v6163_v60  ;;  %v13399_v2 = vld [vmem:[#allocation85_spill] sm:$0xff]  ;;  %v13407_v7 = vld [vmem:[#allocation116_spill] sm:$0xff] }
 0x3b9   : > { %13390 = vst [vmem:[#allocation29_spill] sm:$0xff] %v11778_v56  ;;  %13395 = vst [vmem:[#allocation107_spill] sm:$0xff] %v11793_v57  ;;  %v11796_v43 = vpop.f32.mrf.mxu1  ;;  %v5235_v10 = vsel %vm5106_vm3, %v5232_v4, %v5234_v40  ;;  %v4287_v31 = vadd.f32 %v4286_v13, %v11671_v37  ;;  %v13126_v9 = vrot.slane %v11778_v56, 1  ;;  %v13398_v45 = vrot.slane %v11745_v19, 7  ;;  %v13400_v4 = vld [vmem:[#allocation114_spill] sm:$0xff]  ;;  %v13430_v15 = vld [vmem:[#allocation123_spill] sm:$0xff] }
 0x3ba   : > { %v4288_v59 = vpop.f32.mrf.mxu0  ;;  %v11802_v3 = vpop.permute.xlu0 %5901  ;;  %v5482_v55 = vadd.f32 %v5235_v10, %v13396_v44  ;;  %v6164_v60 = vadd.f32 %v13400_v4, %v13399_v2  ;;  %v6376_v37 = vrot.slane %v11716_v36, 1  ;;  %v5749_v10 = vsel %vm4585_vm2, %v5746_v26, %v5748_v17  ;;  %v13403_v4 = vld [vmem:[#allocation34_spill] sm:$0xff] }
 0x3bb   : > { %5957 = vrot.lane.b32.xlu1 %v5747_v5, %s9149_s14  ;;  %v11807_v46 = vadd.f32 %v4288_v59, %v11680_v16  ;;  %v5753_v39 = vsel %vm4585_vm2, %v5750_v0, %v13398_v45  ;;  %v11812_v5 = vpop.f32.mrf.mxu1  ;;  %v5236_v13 = vrot.slane %v4287_v31, 1  ;;  %v11820_v16 = vsel %vm7297_vm8, %v7205_v49, -inf  ;;  %v11823_v0 = vpop.permute.xlu1 %6531 }
 0x3bc   : > { %v4292_v34 = vpop.f32.mrf.mxu0  ;;  %5963 = vrot.lane.b32.xlu0 %v5753_v39, %s9149_s14  ;;  %13401 = vst [vmem:[#allocation12_spill] sm:$0xff] %v11820_v16  ;;  %v6378_v59 = vrot.slane %v11745_v19, 1  ;;  %v7131_v44 = vmax.f32 %v7130_v61, %v5482_v55  ;;  %13402 = vst [vmem:[#allocation109_spill] sm:$0xff] %v11823_v0  ;;  %v7330_v2 = vsel %vm7297_vm8, %v6789_v62, -inf }
 0x3bd   : > { %13397 = vst [vmem:[#allocation80_spill] sm:$0xff] %v11807_v46  ;;  %v11826_v45 = vpop.f32.mrf.mxu1  ;;  %v5237_v39 = vsel %vm5106_vm3, %v5234_v40, %v5236_v13  ;;  %v4293_v26 = vadd.f32 %v4292_v34, %v11696_v20  ;;  %v5756_v55 = vrot.slane %v11807_v46, 7  ;;  %v6790_v40 = vadd.f32 %v11311_v14, %v6164_v60  ;;  %v13409_v60 = vld [vmem:[#allocation118_spill] sm:$0xff] }
 0x3be   : > { %v4294_v17 = vpop.f32.mrf.mxu0  ;;  %v11833_v49 = vpop.permute.xlu0 %5903  ;;  %v5483_v61 = vadd.f32 %v5237_v39, %v13403_v4  ;;  %v6381_v31 = vsel %vm5106_vm3, %v6378_v59, %v13126_v9  ;;  %v7329_v34 = vsel %vm7297_vm8, %v7206_v58, -inf  ;;  %v13405_v39 = vrot.slane %v11691_v18, 1  ;;  %v13408_v58 = vld [vmem:[#allocation86_spill] sm:$0xff]  ;;  %v13415_v18 = vld [vmem:[#allocation17_spill] sm:$0xff] }
 0x3bf   : > { %5959 = vrot.lane.b32.xlu1 %v5749_v10, %s9149_s14  ;;  %v11838_v10 = vadd.f32 %v4294_v17, %v11702_v12  ;;  %v11843_v57 = vpop.f32.mrf.mxu1  ;;  %v5238_v20 = vrot.slane %v4293_v26, 1  ;;  %v7331_v12 = vmax.f32 %v7329_v34, %v7330_v2  ;;  %v13406_v17 = vld [vmem:[#allocation87_spill] sm:$0xff]  ;;  %v5754_v9 = vrot.slane %v11778_v56, 7 }
 0x3c0   : > { %v4296_v62 = vpop.f32.mrf.mxu0  ;;  %6589 = vrot.lane.b32.xlu0 %v6381_v31, %s9151_s21  ;;  %v6377_v4 = vsel %vm5106_vm3, %v13405_v39, %v6376_v37  ;;  %v6166_v16 = vadd.f32 %v13407_v7, %v13406_v17  ;;  %v7009_v36 = vadd.f32 %v10591_v42, %v5483_v61  ;;  %v6165_v26 = vadd.f32 %v13409_v60, %v13408_v58  ;;  %v13411_v17 = vld [vmem:[#allocation35_spill] sm:$0xff]  ;;  %v11866_v61 = vpop.permute.xlu1 %6533  ;;  %v13414_v60 = vld [vmem:[#allocation88_spill] sm:$0xff] }
 0x3c1   : > { %13404 = vst [vmem:[#allocation81_spill] sm:$0xff] %v11838_v10  ;;  %v11856_v14 = vpop.f32.mrf.mxu1  ;;  %v5239_v31 = vsel %vm5106_vm3, %v5236_v13, %v5238_v20  ;;  %v4297_v2 = vadd.f32 %v4296_v62, %v11721_v30  ;;  %13412 = vst [vmem:[#allocation82_spill] sm:$0xff] %v11866_v61  ;;  %v5757_v42 = vsel %vm4585_vm2, %v5754_v9, %v5756_v55  ;;  %v7332_v13 = vsel %vm7297_vm8, %v6790_v40, -inf }
 0x3c2   : > { %v4298_v34 = vpop.f32.mrf.mxu0  ;;  %v11863_v39 = vpop.permute.xlu0 %5905  ;;  %v7132_v7 = vmax.f32 %v7131_v44, %v7009_v36  ;;  %v5484_v0 = vadd.f32 %v5239_v31, %v13411_v17  ;;  %v6167_v30 = vadd.f32 %v13415_v18, %v13414_v60  ;;  %v6379_v36 = vsel %vm5106_vm3, %v6376_v37, %v6378_v59  ;;  %v13416_v44 = vld [vmem:[#allocation120_spill] sm:$0xff] }
 0x3c3   : > { %6585 = vrot.lane.b32.xlu1 %v6377_v4, %s9151_s21  ;;  %13410 = vst [vmem:[#allocation31_spill] sm:$0xff] %v11863_v39  ;;  %v11869_v4 = vadd.f32 %v4298_v34, %v11733_v21  ;;  %v11872_v58 = vpop.f32.mrf.mxu1  ;;  %v5240_v62 = vrot.slane %v4297_v2, 1  ;;  %v6791_v31 = vadd.f32 %v13416_v44, %v6165_v26  ;;  %v7333_v17 = vmax.f32 %v7331_v12, %v7332_v13  ;;  %v13417_v21 = vld [vmem:[#allocation122_spill] sm:$0xff] }
 0x3c4   : > { %v4302_v41 = vpop.f32.mrf.mxu0  ;;  %5967 = vrot.lane.b32.xlu0 %v5757_v42, %s9149_s14  ;;  %v6792_v34 = vadd.f32 %v13417_v21, %v6166_v16  ;;  %v7133_v61 = vrot.slane %v7132_v7, 4  ;;  %v7010_v40 = vadd.f32 %v10377_v29, %v5484_v0  ;;  %v13419_v37 = vrot.slane %v11838_v10, 7  ;;  %v13420_v16 = vld [vmem:[#allocation36_spill] sm:$0xff] }
 0x3c5   : > { %13413 = vst [vmem:[#allocation13_spill] sm:$0xff] %v11869_v4  ;;  %v11882_v39 = vpop.f32.mrf.mxu1  ;;  %v5241_v18 = vsel %vm5106_vm3, %v5238_v20, %v5240_v62  ;;  %v4303_v2 = vadd.f32 %v4302_v41, %v11752_v38  ;;  %v6386_v13 = vrot.slane %v11869_v4, 1  ;;  %v13423_v41 = vld [vmem:[#allocation89_spill] sm:$0xff]  ;;  %v6382_v21 = vrot.slane %v11807_v46, 1 }
 0x3c6   : > { %v4304_v60 = vpop.f32.mrf.mxu0  ;;  %v11887_v42 = vpop.permute.xlu0 %5907  ;;  %v5759_v59 = vsel %vm4585_vm2, %v5756_v55, %v13419_v37  ;;  %v7134_v12 = vmax.f32 %v7132_v7, %v7133_v61  ;;  %v5485_v26 = vadd.f32 %v5241_v18, %v13420_v16  ;;  %v13424_v38 = vld [vmem:[#allocation121_spill] sm:$0xff]  ;;  %v13425_v7 = vrot.slane %v11745_v19, 7 }
 0x3c7   : > { %6587 = vrot.lane.b32.xlu1 %v6379_v36, %s9151_s21  ;;  %13418 = vst [vmem:[#allocation111_spill] sm:$0xff] %v11887_v42  ;;  %v11895_v36 = vadd.f32 %v4304_v60, %v11766_v54  ;;  %v11897_v0 = vpop.permute.xlu1 %5913  ;;  %v11899_v20 = vpop.f32.mrf.mxu1  ;;  %v6168_v44 = vadd.f32 %v13424_v38, %v13423_v41  ;;  %v5242_v42 = vrot.slane %v4303_v2, 1  ;;  %v7334_v54 = vsel %vm7297_vm8, %v6791_v31, -inf }
 0x3c8   : > { %13422 = vst [vmem:[#allocation32_spill] sm:$0xff] %v11897_v0  ;;  %v4306_v55 = vpop.f32.mrf.mxu0  ;;  %5969 = vrot.lane.b32.xlu0 %v5759_v59, %s9149_s14  ;;  %v5755_v61 = vsel %vm4585_vm2, %v13425_v7, %v5754_v9  ;;  %v7135_v18 = vrot.slane %v7134_v12, 2  ;;  %v6384_v60 = vrot.slane %v11838_v10, 1  ;;  %v7139_v37 = vmax.f32 %v7010_v40, %v5485_v26  ;;  %v13426_v7 = vld [vmem:[#allocation37_spill] sm:$0xff]  ;;  %v13429_v0 = vld [vmem:[#allocation90_spill] sm:$0xff] }
 0x3c9   : > { %13421 = vst [vmem:[#allocation113_spill] sm:$0xff] %v11895_v36  ;;  %v11911_v16 = vpop.f32.mrf.mxu1  ;;  %v7336_v41 = vsel %vm7297_vm8, %v6792_v34, -inf  ;;  %v5243_v2 = vsel %vm5106_vm3, %v5240_v62, %v5242_v42  ;;  %v6388_v59 = vrot.slane %v11895_v36, 1  ;;  %v4307_v38 = vadd.f32 %v4306_v55, %v11783_v53 }
 0x3ca   : > { %v4308_v46 = vpop.f32.mrf.mxu0  ;;  %v11917_v9 = vpop.permute.xlu0 %5909  ;;  %v7136_v31 = vmax.f32 %v7134_v12, %v7135_v18  ;;  %v5486_v19 = vadd.f32 %v5243_v2, %v13426_v7  ;;  %v7335_v62 = vmax.f32 %v7333_v17, %v7334_v54  ;;  %v6169_v47 = vadd.f32 %v13430_v15, %v13429_v0 }
 0x3cb   : > { %5965 = vrot.lane.b32.xlu1 %v5755_v61, %s9149_s14  ;;  %v11921_v40 = vadd.f32 %v4308_v46, %v11796_v43  ;;  %v11923_v26 = vpop.permute.xlu1 %6537  ;;  %v6387_v61 = vsel %vm5106_vm3, %v6384_v60, %v6386_v13  ;;  %v11926_v34 = vpop.f32.mrf.mxu1  ;;  %v5244_v53 = vrot.slane %v4307_v38, 1  ;;  %v13431_v12 = vrot.slane %v11778_v56, 1  ;;  %v13432_v43 = vld [vmem:[#allocation75_spill] sm:$0xff] }
 0x3cc   : > { %13428 = vst [vmem:[#allocation15_spill] sm:$0xff] %v11923_v26  ;;  %v4312_v55 = vpop.f32.mrf.mxu0  ;;  %6595 = vrot.lane.b32.xlu0 %v6387_v61, %s9151_s21  ;;  %v6793_v46 = vadd.f32 %v13432_v43, %v6167_v30  ;;  %v6794_v2 = vadd.f32 %v11444_v52, %v6168_v44  ;;  %v7137_v7 = vrot.slane %v7136_v31, 1  ;;  %v7140_v26 = vmax.f32 %v7139_v37, %v5486_v19  ;;  %v13433_v30 = vld [vmem:[#allocation38_spill] sm:$0xff] }
 0x3cd   : > { %13427 = vst [vmem:[#allocation84_spill] sm:$0xff] %v11921_v40  ;;  %v6383_v18 = vsel %vm5106_vm3, %v13431_v12, %v6382_v21  ;;  %v11937_v17 = vpop.f32.mrf.mxu1  ;;  %v7337_v54 = vmax.f32 %v7335_v62, %v7336_v41  ;;  %v5245_v15 = vsel %vm5106_vm3, %v5242_v42, %v5244_v53  ;;  %v4313_v0 = vadd.f32 %v4312_v55, %v11812_v5  ;;  %v13435_v42 = vld [vmem:[#allocation91_spill] sm:$0xff]  ;;  %v13436_v41 = vld [vmem:[#allocation124_spill] sm:$0xff] }
 0x3ce   : > { %v4314_v38 = vpop.f32.mrf.mxu0  ;;  %v11941_v61 = vpop.permute.xlu0 %5911  ;;  %v6389_v12 = vsel %vm5106_vm3, %v6386_v13, %v6388_v59  ;;  %v7138_v56 = vmax.f32 %v7136_v31, %v7137_v7  ;;  %v5487_v43 = vadd.f32 %v5245_v15, %v13433_v30  ;;  %v6390_v52 = vrot.slane %v11921_v40, 1  ;;  %v13437_v7 = vld [vmem:[#allocation21_spill] sm:$0xff] }
 0x3cf   : > { %6591 = vrot.lane.b32.xlu1 %v6383_v18, %s9151_s21  ;;  %v11947_v19 = vadd.f32 %v4314_v38, %v11826_v45  ;;  %v11949_v44 = vpop.permute.xlu1 %5915  ;;  %v11951_v37 = vpop.f32.mrf.mxu1  ;;  %v6170_v5 = vadd.f32 %v13436_v41, %v13435_v42  ;;  %v5760_v62 = vrot.slane %v11869_v4, 7  ;;  %v5246_v55 = vrot.slane %v4313_v0, 1  ;;  %v13438_v42 = vld [vmem:[#allocation96_spill] sm:$0xff] }
 0x3d0   : > { %v4316_v18 = vpop.f32.mrf.mxu0  ;;  %6597 = vrot.lane.b32.xlu0 %v6389_v12, %s9151_s21  ;;  %v6385_v13 = vsel %vm5106_vm3, %v6382_v21, %v6384_v60  ;;  %v7338_v31 = vsel %vm7297_vm8, %v6793_v46, -inf  ;;  %v7340_v45 = vsel %vm7297_vm8, %v6794_v2, -inf  ;;  %v6795_v15 = vadd.f32 %v13437_v7, %v6169_v47  ;;  %v13439_v47 = vld [vmem:[#allocation39_spill] sm:$0xff] }
 0x3d1   : > { %13434 = vst [vmem:[#allocation33_spill] sm:$0xff] %v11947_v19  ;;  %v7141_v38 = vmax.f32 %v7140_v26, %v5487_v43  ;;  %v11962_v30 = vpop.f32.mrf.mxu1  ;;  %v6175_v41 = vadd.f32 %v11589_v48, %v13438_v42  ;;  %v5247_v0 = vsel %vm5106_vm3, %v5244_v53, %v5246_v55  ;;  %v4317_v12 = vadd.f32 %v4316_v18, %v11843_v57  ;;  %v13442_v42 = vld [vmem:[#allocation92_spill] sm:$0xff] }
 0x3d2   : > { %v4318_v4 = vpop.f32.mrf.mxu0  ;;  %v11968_v21 = vpop.permute.xlu0 %6535  ;;  %v11972_v60 = vsel %vm7560_vm10, %v7138_v56, %v11611_v6  ;;  %v5488_v26 = vadd.f32 %v5247_v0, %v13439_v47  ;;  %v6392_v46 = vrot.slane %v11947_v19, 1  ;;  %v6391_v48 = vsel %vm5106_vm3, %v6388_v59, %v6390_v52 }
 0x3d3   : > { %6593 = vrot.lane.b32.xlu1 %v6385_v13, %s9151_s21  ;;  %v11977_v2 = vadd.f32 %v4318_v4, %v11856_v14  ;;  %v11982_v53 = vpop.f32.mrf.mxu1  ;;  %v7339_v57 = vmax.f32 %v7337_v54, %v7338_v31  ;;  %v5762_v18 = vrot.slane %v11895_v36, 7  ;;  %v5248_v13 = vrot.slane %v4317_v12, 1  ;;  %v13443_v14 = vld [vmem:[#allocation20_spill] sm:$0xff] }
 0x3d4   : > { %v11979_v43 = vpop.permute.xlu1 %5917  ;;  %v4322_v7 = vpop.f32.mrf.mxu0  ;;  %6599 = vrot.lane.b32.xlu0 %v6391_v48, %s9151_s21  ;;  %v13441_v6 = vrot.slane %v11838_v10, 7  ;;  %v6171_v4 = vadd.f32 %v13443_v14, %v13442_v42  ;;  %v6796_v0 = vadd.f32 %v11496_v63, %v6170_v5  ;;  %v6801_v59 = vadd.f32 %v11661_v50, %v6175_v41  ;;  %v13445_v42 = vld [vmem:[#allocation40_spill] sm:$0xff] }
 0x3d5   : > { %13440 = vst [vmem:[#allocation85_spill] sm:$0xff] %v11977_v2  ;;  %v7142_v47 = vmax.f32 %v7141_v38, %v5488_v26  ;;  %v11994_v54 = vpop.f32.mrf.mxu1  ;;  %v7341_v31 = vmax.f32 %v7339_v57, %v7340_v45  ;;  %v7342_v12 = vsel %vm7297_vm8, %v6795_v15, -inf  ;;  %v5249_v48 = vsel %vm5106_vm3, %v5246_v55, %v5248_v13  ;;  %v13447_v15 = vld [vmem:[#allocation93_spill] sm:$0xff]  ;;  %v13448_v55 = vld [vmem:[#allocation22_spill] sm:$0xff] }
 0x3d6   : > { %v5761_v56 = vsel %vm4585_vm2, %v13441_v6, %v5760_v62  ;;  %v4323_v36 = vadd.f32 %v4322_v7, %v11872_v58  ;;  %v4324_v6 = vpop.f32.mrf.mxu0  ;;  %v11999_v10 = vpop.permute.xlu0 %6539  ;;  %v5489_v14 = vadd.f32 %v5249_v48, %v13445_v42  ;;  %v6394_v63 = vrot.slane %v11977_v2, 1 }
 0x3d7   : > { %5971 = vrot.lane.b32.xlu1 %v5761_v56, %s9149_s14  ;;  %13444 = vst [vmem:[#allocation114_spill] sm:$0xff] %v11999_v10  ;;  %v12004_v50 = vadd.f32 %v4324_v6, %v11882_v39  ;;  %v6393_v45 = vsel %vm5106_vm3, %v6390_v52, %v6392_v46  ;;  %v12009_v38 = vpop.f32.mrf.mxu1  ;;  %v12013_v41 = vadd.f32 %v13448_v55, %v13447_v15  ;;  %v5764_v58 = vrot.slane %v11921_v40, 7  ;;  %v13449_v56 = vld [vmem:[#allocation97_spill] sm:$0xff]  ;;  %v13450_v55 = vld [vmem:[#allocation98_spill] sm:$0xff] }
 0x3d8   : > { %v12006_v5 = vpop.permute.xlu1 %6541  ;;  %v5250_v26 = vrot.slane %v4323_v36, 1  ;;  %v4326_v57 = vpop.f32.mrf.mxu0  ;;  %6601 = vrot.lane.b32.xlu0 %v6393_v45, %s9151_s21  ;;  %v5763_v7 = vsel %vm4585_vm2, %v5760_v62, %v5762_v18  ;;  %v7344_v39 = vsel %vm7297_vm8, %v6796_v0, -inf  ;;  %v6176_v48 = vadd.f32 %v11637_v25, %v13449_v56  ;;  %v13451_v10 = vld [vmem:[#allocation41_spill] sm:$0xff] }
 0x3d9   : > { %13446 = vst [vmem:[#allocation34_spill] sm:$0xff] %v12004_v50  ;;  %v7219_v52 = vadd.f32 %v10377_v29, %v6801_v59  ;;  %v7143_v6 = vmax.f32 %v7142_v47, %v5489_v14  ;;  %v12023_v42 = vpop.f32.mrf.mxu1  ;;  %v7343_v15 = vmax.f32 %v7341_v31, %v7342_v12  ;;  %v6177_v36 = vadd.f32 %v11686_v23, %v13450_v55 }
 0x3da   : > { %v5251_v45 = vsel %vm5106_vm3, %v5248_v13, %v5250_v26  ;;  %v4327_v62 = vadd.f32 %v4326_v57, %v11899_v20  ;;  %v4328_v40 = vpop.f32.mrf.mxu0  ;;  %v12029_v0 = vpop.permute.xlu0 %6543  ;;  %v6396_v59 = vrot.slane %v12004_v50, 1  ;;  %v6395_v31 = vsel %vm5106_vm3, %v6392_v46, %v6394_v63 }
 0x3db   : > { %5973 = vrot.lane.b32.xlu1 %v5763_v7, %s9149_s14  ;;  %v5490_v25 = vadd.f32 %v5251_v45, %v13451_v10  ;;  %v12034_v47 = vadd.f32 %v4328_v40, %v11911_v16  ;;  %v12039_v12 = vpop.f32.mrf.mxu1  ;;  %v12041_v23 = vmax.f32 %v7343_v15, %v7344_v39  ;;  %v5766_v20 = vrot.slane %v11947_v19, 7  ;;  %v13453_v7 = vld [vmem:[#allocation23_spill] sm:$0xff] }
 0x3dc   : > { %v12036_v14 = vpop.permute.xlu1 %5919  ;;  %v5252_v13 = vrot.slane %v4327_v62, 1  ;;  %v4332_v57 = vpop.f32.mrf.mxu0  ;;  %6603 = vrot.lane.b32.xlu0 %v6395_v31, %s9151_s21  ;;  %v5765_v10 = vsel %vm4585_vm2, %v5762_v18, %v5764_v58  ;;  %v6797_v56 = vadd.f32 %v13453_v7, %v6171_v4  ;;  %v6802_v16 = vadd.f32 %v11618_v32, %v6176_v48  ;;  %v13454_v15 = vld [vmem:[#allocation99_spill] sm:$0xff]  ;;  %v13455_v48 = vld [vmem:[#allocation42_spill] sm:$0xff] }
 0x3dd   : > { %13452 = vst [vmem:[#allocation87_spill] sm:$0xff] %v12034_v47  ;;  %v12049_v40 = vsel %vm7297_vm8, %v7219_v52, -inf  ;;  %v7144_v46 = vmax.f32 %v7143_v6, %v5490_v25  ;;  %v12052_v39 = vpop.f32.mrf.mxu1  ;;  %v6178_v55 = vadd.f32 %v11711_v28, %v13454_v15  ;;  %v6398_v62 = vrot.slane %v12034_v47, 1 }
 0x3de   : > { %v5253_v45 = vsel %vm5106_vm3, %v5250_v26, %v5252_v13  ;;  %v4333_v18 = vadd.f32 %v4332_v57, %v11926_v34  ;;  %v4334_v4 = vpop.f32.mrf.mxu0  ;;  %v12059_v31 = vpop.permute.xlu0 %5921  ;;  %v6803_v32 = vadd.f32 %v11645_v1, %v6177_v36  ;;  %v6397_v28 = vsel %vm5106_vm3, %v6394_v63, %v6396_v59  ;;  %v13457_v26 = vld [vmem:[#allocation100_spill] sm:$0xff]  ;;  %v13458_v36 = vld [vmem:[#allocation95_spill] sm:$0xff] }
 0x3df   : > { %5975 = vrot.lane.b32.xlu1 %v5765_v10, %s9149_s14  ;;  %v5491_v52 = vadd.f32 %v5253_v45, %v13455_v48  ;;  %v12064_v6 = vadd.f32 %v4334_v4, %v11937_v17  ;;  %v12069_v10 = vpop.f32.mrf.mxu1  ;;  %v6179_v7 = vadd.f32 %v11740_v27, %v13457_v26  ;;  %v5768_v34 = vrot.slane %v11977_v2, 7  ;;  %v13459_v17 = vld [vmem:[#allocation128_spill] sm:$0xff] }
 0x3e0   : > { %v12066_v25 = vpop.permute.xlu1 %6545  ;;  %v5254_v57 = vrot.slane %v4333_v18, 1  ;;  %v4336_v15 = vpop.f32.mrf.mxu0  ;;  %6605 = vrot.lane.b32.xlu0 %v6397_v28, %s9151_s21  ;;  %v5767_v1 = vsel %vm4585_vm2, %v5764_v58, %v5766_v20  ;;  %v12078_v45 = vadd.f32 %v13459_v17, %v13458_v36  ;;  %v7361_v4 = vsel %vm7297_vm8, %v6802_v16, -inf  ;;  %v13460_v17 = vld [vmem:[#allocation43_spill] sm:$0xff] }
 0x3e1   : > { %13456 = vst [vmem:[#allocation116_spill] sm:$0xff] %v12064_v6  ;;  %v7145_v63 = vmax.f32 %v7144_v46, %v5491_v52  ;;  %v4337_v48 = vadd.f32 %v4336_v15, %v11951_v37  ;;  %v12083_v27 = vpop.f32.mrf.mxu1  ;;  %v7362_v18 = vmax.f32 %v12049_v40, %v7361_v4  ;;  %v6804_v26 = vadd.f32 %v11668_v35, %v6178_v55  ;;  %v8869_v35 = vld [vmem:[%s13056_s3 + $0x20] sm:$0xff]  }
 0x3e2   : > { %v5255_v28 = vsel %vm5106_vm3, %v5252_v13, %v5254_v57  ;;  %v4338_v58 = vpop.f32.mrf.mxu0  ;;  %v12088_v2 = vpop.permute.xlu0 %5923  ;;  %v6399_v36 = vsel %vm5106_vm3, %v6396_v59, %v6398_v62  ;;  %v6400_v46 = vrot.slane %v12064_v6, 1  ;;  %v7363_v13 = vsel %vm7297_vm8, %v6803_v32, -inf  ;;  %7698 = vmatpush1.bf16.msra.mxu1 %v8869_v35 }
 0x3e3   : > { %5977 = vrot.lane.b32.xlu1 %v5767_v1, %s9149_s14  ;;  %v5492_v16 = vadd.f32 %v5255_v28, %v13460_v17  ;;  %v5256_v37 = vrot.slane %v4337_v48, 1  ;;  %v12094_v52 = vadd.f32 %v4338_v58, %v11962_v30  ;;  %v12098_v40 = vpop.f32.mrf.mxu1  ;;  %v6805_v59 = vadd.f32 %v11693_v33, %v6179_v7  ;;  %v13462_v48 = vld [vmem:[#allocation101_spill] sm:$0xff]  ;;  %v13463_v7 = vld [vmem:[#allocation44_spill] sm:$0xff]  ;;  %7699 = vmatprep.subr.bf16.mxu1 %v13286_v51 }
 0x3e4   : > { %v12096_v15 = vpop.permute.xlu1 %6547  ;;  %v5770_v55 = vrot.slane %v12004_v50, 7  ;;  %v4342_v1 = vpop.f32.mrf.mxu0  ;;  %6607 = vrot.lane.b32.xlu0 %v6399_v36, %s9151_s21  ;;  %v5769_v30 = vsel %vm4585_vm2, %v5766_v20, %v5768_v34  ;;  %v12109_v4 = vsel %vm7297_vm8, %v6797_v56, -inf  ;;  %v6180_v28 = vadd.f32 %v11772_v11, %v13462_v48  ;;  %v13464_v11 = vld [vmem:[#allocation94_spill] sm:$0xff] }
 0x3e5   : > { %13461 = vst [vmem:[#allocation86_spill] sm:$0xff] %v12094_v52  ;;  %v7146_v58 = vmax.f32 %v7145_v63, %v5492_v16  ;;  %v5257_v17 = vsel %vm5106_vm3, %v5254_v57, %v5256_v37  ;;  %v12115_v32 = vpop.f32.mrf.mxu1  ;;  %v7365_v33 = vsel %vm7297_vm8, %v6804_v26, -inf  ;;  %v6402_v20 = vrot.slane %v12094_v52, 1 }
 0x3e6   : > { %v5493_v36 = vadd.f32 %v5257_v17, %v13463_v7  ;;  %v4343_v56 = vadd.f32 %v4342_v1, %v11982_v53  ;;  %v4344_v50 = vpop.f32.mrf.mxu0  ;;  %v12121_v19 = vpop.permute.xlu0 %5925  ;;  %v6173_v57 = vadd.f32 %v11555_v22, %v13464_v11  ;;  %v7364_v63 = vmax.f32 %v7362_v18, %v7363_v13  ;;  %v13466_v13 = vld [vmem:[#allocation102_spill] sm:$0xff] }
 0x3e7   : > { %5979 = vrot.lane.b32.xlu1 %v5769_v30, %s9149_s14  ;;  %v12127_v16 = vadd.f32 %v4344_v50, %v11994_v54  ;;  %v6401_v26 = vsel %vm5106_vm3, %v6398_v62, %v6400_v46  ;;  %v12132_v30 = vpop.f32.mrf.mxu1  ;;  %v5772_v53 = vrot.slane %v12034_v47, 7  ;;  %v5771_v7 = vsel %vm4585_vm2, %v5768_v34, %v5770_v55 }
 0x3e8   : > { %v12129_v35 = vpop.permute.xlu1 %6549  ;;  %v7147_v1 = vmax.f32 %v7146_v58, %v5493_v36  ;;  %v5258_v48 = vrot.slane %v4343_v56, 1  ;;  %v4346_v17 = vpop.f32.mrf.mxu0  ;;  %6609 = vrot.lane.b32.xlu0 %v6401_v26, %s9151_s21  ;;  %v7366_v22 = vmax.f32 %v7364_v63, %v7365_v33  ;;  %v7367_v18 = vsel %vm7297_vm8, %v6805_v59, -inf  ;;  %v13467_v36 = vld [vmem:[#allocation103_spill] sm:$0xff] }
 0x3e9   : > { %13465 = vst [vmem:[#allocation118_spill] sm:$0xff] %v12127_v16  ;;  %v6806_v54 = vadd.f32 %v11718_v8, %v6180_v28  ;;  %v4347_v50 = vadd.f32 %v4346_v17, %v12009_v38  ;;  %v12141_v62 = vpop.f32.mrf.mxu1  ;;  %v6181_v58 = vadd.f32 %v11802_v3, %v13466_v13  ;;  %v6182_v56 = vadd.f32 %v11833_v49, %v13467_v36  ;;  %v13468_v8 = vld [vmem:[#allocation45_spill] sm:$0xff] }
 0x3ea   : > { %v5259_v11 = vsel %vm5106_vm3, %v5256_v37, %v5258_v48  ;;  %v4348_v34 = vpop.f32.mrf.mxu0  ;;  %v12148_v33 = vpop.permute.xlu0 %5927  ;;  %v6403_v59 = vsel %vm5106_vm3, %v6400_v46, %v6402_v20  ;;  %v7347_v49 = vmax.f32 %v12041_v23, %v12109_v4  ;;  %v13470_v37 = vld [vmem:[#allocation129_spill] sm:$0xff]  ;;  %v5774_v46 = vrot.slane %v12064_v6, 7 }
 0x3eb   : > { %5981 = vrot.lane.b32.xlu1 %v5771_v7, %s9149_s14  ;;  %v5494_v28 = vadd.f32 %v5259_v11, %v13468_v8  ;;  %v5260_v63 = vrot.slane %v4347_v50, 1  ;;  %v12154_v26 = vadd.f32 %v4348_v34, %v12023_v42  ;;  %v12158_v3 = vpop.f32.mrf.mxu1  ;;  %v12163_v7 = vadd.f32 %v13470_v37, %v6173_v57  ;;  %v13471_v57 = vld [vmem:[#allocation11_spill] sm:$0xff]  ;;  %v13472_v37 = vld [vmem:[#allocation46_spill] sm:$0xff] }
 0x3ec   : > { %v12156_v17 = vpop.permute.xlu1 %6551  ;;  %v4352_v13 = vpop.f32.mrf.mxu0  ;;  %6611 = vrot.lane.b32.xlu0 %v6403_v59, %s9151_s21  ;;  %v5773_v50 = vsel %vm4585_vm2, %v5770_v55, %v5772_v53  ;;  %v6798_v42 = vadd.f32 %v11582_v24, %v12013_v41  ;;  %v7368_v36 = vmax.f32 %v7366_v22, %v7367_v18  ;;  %v7369_v4 = vsel %vm7297_vm8, %v6806_v54, -inf  ;;  %v13473_v24 = vld [vmem:[#allocation30_spill] sm:$0xff] }
 0x3ed   : > { %13469 = vst [vmem:[#allocation35_spill] sm:$0xff] %v12154_v26  ;;  %v7148_v11 = vmax.f32 %v7147_v1, %v5494_v28  ;;  %v5261_v34 = vsel %vm5106_vm3, %v5258_v48, %v5260_v63  ;;  %v12172_v23 = vpop.f32.mrf.mxu1  ;;  %v6807_v8 = vadd.f32 %v13471_v57, %v6181_v58  ;;  %v4353_v59 = vadd.f32 %v4352_v13, %v12039_v12  ;;  %v13478_v57 = vld [vmem:[#allocation31_spill] sm:$0xff] }
 0x3ee   : > { %v5495_v38 = vadd.f32 %v5261_v34, %v13472_v37  ;;  %v4354_v55 = vpop.f32.mrf.mxu0  ;;  %v12178_v6 = vpop.permute.xlu0 %5929  ;;  %v6808_v41 = vadd.f32 %v13473_v24, %v6182_v56  ;;  %v5780_v1 = vrot.slane %v12154_v26, 7  ;;  %v13476_v18 = vrot.slane %v12127_v16, 1  ;;  %v13477_v34 = vld [vmem:[#allocation104_spill] sm:$0xff] }
 0x3ef   : > { %5983 = vrot.lane.b32.xlu1 %v5773_v50, %s9149_s14  ;;  %v12183_v48 = vadd.f32 %v4354_v55, %v12052_v39  ;;  %v12190_v58 = vpop.f32.mrf.mxu1  ;;  %v5776_v12 = vrot.slane %v12094_v52, 7  ;;  %v5262_v13 = vrot.slane %v4353_v59, 1  ;;  %v5775_v56 = vsel %vm4585_vm2, %v5772_v53, %v5774_v46 }
 0x3f0   : > { %v12185_v22 = vpop.permute.xlu1 %6553  ;;  %v6405_v54 = vsel %vm5106_vm3, %v6402_v20, %v13476_v18  ;;  %v7149_v28 = vmax.f32 %v7148_v11, %v5495_v38  ;;  %v4356_v50 = vpop.f32.mrf.mxu0  ;;  %v7348_v39 = vsel %vm7297_vm8, %v6798_v42, -inf  ;;  %v6183_v37 = vadd.f32 %v13478_v57, %v13477_v34  ;;  %v13479_v38 = vld [vmem:[#allocation130_spill] sm:$0xff]  ;;  %v13481_v34 = vld [vmem:[#allocation47_spill] sm:$0xff] }
 0x3f1   : > { %13474 = vst [vmem:[#allocation88_spill] sm:$0xff] %v12183_v48  ;;  %13475 = vst [vmem:[#allocation17_spill] sm:$0xff] %v12185_v22  ;;  %6613 = vrot.lane.b32.xlu0 %v6405_v54, %s9151_s21  ;;  %v5778_v55 = vrot.slane %v12127_v16, 7  ;;  %v4357_v20 = vadd.f32 %v4356_v50, %v12069_v10  ;;  %v12201_v24 = vpop.f32.mrf.mxu1  ;;  %v6800_v11 = vadd.f32 %v13479_v38, %v12078_v45  ;;  %v7371_v18 = vsel %vm7297_vm8, %v6807_v8, -inf }
 0x3f2   : > { %v7370_v59 = vmax.f32 %v7368_v36, %v7369_v4  ;;  %v5263_v53 = vsel %vm5106_vm3, %v5260_v63, %v5262_v13  ;;  %v4358_v42 = vpop.f32.mrf.mxu0  ;;  %v12207_v54 = vpop.permute.xlu0 %5931  ;;  %v12216_v45 = vmax.f32 %v7347_v49, %v7348_v39  ;;  %v7373_v36 = vsel %vm7297_vm8, %v6808_v41, -inf  ;;  %v13484_v4 = vld [vmem:[#allocation5_spill] sm:$0xff]  ;;  %v13485_v63 = vld [vmem:[#allocation111_spill] sm:$0xff]  ;;  %v13488_v39 = vld [vmem:[#allocation48_spill] sm:$0xff] }
 0x3f3   : > { %5985 = vrot.lane.b32.xlu1 %v5775_v56, %s9149_s14  ;;  %13480 = vst [vmem:[#allocation120_spill] sm:$0xff] %v12207_v54  ;;  %v5496_v57 = vadd.f32 %v5263_v53, %v13481_v34  ;;  %v5264_v10 = vrot.slane %v4357_v20, 1  ;;  %v5781_v56 = vsel %vm4585_vm2, %v5778_v55, %v5780_v1  ;;  %v12214_v47 = vpop.f32.mrf.mxu1  ;;  %v6184_v8 = vadd.f32 %v13485_v63, %v13484_v4  ;;  %v13486_v20 = vld [vmem:[#allocation109_spill] sm:$0xff] }
 0x3f4   : > { %v12211_v50 = vpop.permute.xlu1 %6555  ;;  %13483 = vst [vmem:[#allocation36_spill] sm:$0xff] %v12216_v45  ;;  %v4362_v38 = vpop.f32.mrf.mxu0  ;;  %v5777_v53 = vsel %vm4585_vm2, %v5774_v46, %v5776_v12  ;;  %v7372_v34 = vmax.f32 %v7370_v59, %v7371_v18  ;;  %v6809_v52 = vadd.f32 %v13486_v20, %v6183_v37  ;;  %v12232_v63 = vadd.f32 %v4358_v42, %v12083_v27  ;;  %v13492_v27 = vld [vmem:[#allocation82_spill] sm:$0xff] }
 0x3f5   : > { %13482 = vst [vmem:[#allocation122_spill] sm:$0xff] %v12211_v50  ;;  %5991 = vrot.lane.b32.xlu0 %v5781_v56, %s9149_s14  ;;  %v13487_v50 = vld [vmem:[#allocation83_spill] sm:$0xff]  ;;  %v5265_v22 = vsel %vm5106_vm3, %v5262_v13, %v5264_v10  ;;  %v12227_v49 = vpop.f32.mrf.mxu1  ;;  %v4363_v46 = vadd.f32 %v4362_v38, %v12098_v40  ;;  %v6810_v42 = vadd.f32 %v13492_v27, %v6184_v8  ;;  %v6406_v40 = vrot.slane %v12154_v26, 1 }
 0x3f6   : > { %v7022_v54 = vadd.f32 %v13487_v50, %v5496_v57  ;;  %v5497_v4 = vadd.f32 %v5265_v22, %v13488_v39  ;;  %13489 = vst [vmem:[#allocation89_spill] sm:$0xff] %v12232_v63  ;;  %v4364_v59 = vpop.f32.mrf.mxu0  ;;  %v12235_v18 = vpop.permute.xlu0 %5933  ;;  %v12238_v37 = vadd.f32 %v13487_v50, %v6800_v11  ;;  %v7374_v13 = vmax.f32 %v7372_v34, %v7373_v36  ;;  %v13494_v36 = vld [vmem:[#allocation32_spill] sm:$0xff] }
 0x3f7   : > { %5987 = vrot.lane.b32.xlu1 %v5777_v53, %s9149_s14  ;;  %v13491_v53 = vrot.slane %v12183_v48, 7  ;;  %v12245_v22 = vpop.f32.mrf.mxu1  ;;  %v5266_v38 = vrot.slane %v4363_v46, 1  ;;  %v5779_v11 = vsel %vm4585_vm2, %v5776_v12, %v5778_v55  ;;  %v5784_v46 = vrot.slane %v12232_v63, 7 }
 0x3f8   : > { %13490 = vst [vmem:[#allocation121_spill] sm:$0xff] %v12238_v37  ;;  %v7150_v57 = vmax.f32 %v7149_v28, %v7022_v54  ;;  %v12240_v56 = vpop.permute.xlu1 %6557  ;;  %v4366_v39 = vpop.f32.mrf.mxu0  ;;  %v7375_v28 = vsel %vm7297_vm8, %v6809_v52, -inf  ;;  %v13493_v54 = vld [vmem:[#allocation8_spill] sm:$0xff]  ;;  %v13496_v55 = vrot.slane %v12183_v48, 1 }
 0x3f9   : > { %v5783_v20 = vsel %vm4585_vm2, %v5780_v1, %v13491_v53  ;;  %v12254_v34 = vadd.f32 %v13494_v36, %v13493_v54  ;;  %v4367_v1 = vadd.f32 %v4366_v39, %v12132_v30  ;;  %v12258_v8 = vpop.f32.mrf.mxu1  ;;  %v5267_v53 = vsel %vm5106_vm3, %v5264_v10, %v5266_v38  ;;  %v13497_v39 = vld [vmem:[#allocation49_spill] sm:$0xff] }
 0x3fa   : > { %5993 = vrot.lane.b32.xlu0 %v5783_v20, %s9149_s14  ;;  %v7151_v41 = vrot.slane %v7150_v57, 4  ;;  %v12263_v20 = vadd.f32 %v4364_v59, %v12115_v32  ;;  %v4368_v12 = vpop.f32.mrf.mxu0  ;;  %v12265_v52 = vpop.permute.xlu0 %5935  ;;  %v6409_v27 = vsel %vm5106_vm3, %v6406_v40, %v13496_v55  ;;  %v7023_v30 = vadd.f32 %v10377_v29, %v5497_v4 }
 0x3fb   : > { %5989 = vrot.lane.b32.xlu1 %v5779_v11, %s9149_s14  ;;  %v5498_v11 = vadd.f32 %v5267_v53, %v13497_v39  ;;  %v5268_v36 = vrot.slane %v4367_v1, 1  ;;  %v12274_v37 = vpop.f32.mrf.mxu1  ;;  %v12276_v32 = vmax.f32 %v7374_v13, %v7375_v28  ;;  %v12279_v10 = vsel %vm7297_vm8, %v6810_v42, -inf  ;;  %v13501_v42 = vld [vmem:[#allocation6_spill] sm:$0xff]  ;;  %v13502_v39 = vld [vmem:[#allocation105_spill] sm:$0xff] }
 0x3fc   : > { %13495 = vst [vmem:[#allocation37_spill] sm:$0xff] %v12263_v20  ;;  %v7152_v54 = vmax.f32 %v7150_v57, %v7151_v41  ;;  %v12272_v26 = vpop.permute.xlu1 %6559  ;;  %13499 = vst [vmem:[#allocation123_spill] sm:$0xff] %v12279_v10  ;;  %v6410_v59 = vrot.slane %v12232_v63, 1  ;;  %v4372_v45 = vpop.f32.mrf.mxu0  ;;  %v13500_v41 = vrot.slane %v12127_v16, 1  ;;  %v6185_v28 = vadd.f32 %v11917_v9, %v13501_v42  ;;  %v13503_v63 = vld [vmem:[#allocation50_spill] sm:$0xff] }
 0x3fd   : > { %13498 = vst [vmem:[#allocation90_spill] sm:$0xff] %v12272_v26  ;;  %v7157_v1 = vmax.f32 %v7023_v30, %v5498_v11  ;;  %v5269_v53 = vsel %vm5106_vm3, %v5266_v38, %v5268_v36  ;;  %v4373_v55 = vadd.f32 %v4372_v45, %v12158_v3  ;;  %v12289_v13 = vpop.f32.mrf.mxu1  ;;  %v13504_v30 = vrot.slane %v12183_v48, 7 }
 0x3fe   : > { %6617 = vrot.lane.b32.xlu0 %v6409_v27, %s9151_s21  ;;  %v6407_v4 = vsel %vm5106_vm3, %v13500_v41, %v6406_v40  ;;  %v7153_v57 = vrot.slane %v7152_v54, 2  ;;  %v6188_v27 = vadd.f32 %v11949_v44, %v13502_v39  ;;  %v5499_v16 = vadd.f32 %v5269_v53, %v13503_v63  ;;  %v4374_v26 = vpop.f32.mrf.mxu0  ;;  %v12296_v40 = vpop.permute.xlu0 %5939 }
 0x3ff   : > { %6615 = vrot.lane.b32.xlu1 %v6407_v4, %s9151_s21  ;;  %v5785_v38 = vsel %vm4585_vm2, %v13504_v30, %v5784_v46  ;;  %v5786_v45 = vrot.slane %v12263_v20, 7  ;;  %v12303_v11 = vadd.f32 %v4368_v12, %v12141_v62  ;;  %v5270_v41 = vrot.slane %v4373_v55, 1  ;;  %v12307_v4 = vpop.f32.mrf.mxu1  ;;  %v13507_v62 = vld [vmem:[#allocation7_spill] sm:$0xff] }
 0x400   : > { %v7154_v3 = vmax.f32 %v7152_v54, %v7153_v57  ;;  %v12305_v9 = vpop.permute.xlu1 %5937  ;;  %v6412_v63 = vrot.slane %v12263_v20, 1  ;;  %v7158_v53 = vmax.f32 %v7157_v1, %v5499_v16  ;;  %v4376_v42 = vpop.f32.mrf.mxu0  ;;  %v13506_v54 = vrot.slane %v12183_v48, 1  ;;  %v13508_v1 = vld [vmem:[#allocation106_spill] sm:$0xff]  ;;  %v13509_v20 = vld [vmem:[#allocation51_spill] sm:$0xff] }
 0x401   : > { %13505 = vst [vmem:[#allocation75_spill] sm:$0xff] %v12303_v11  ;;  %v6186_v12 = vadd.f32 %v11941_v61, %v13507_v62  ;;  %v6814_v55 = vadd.f32 %v12006_v5, %v6188_v27  ;;  %v5271_v30 = vsel %vm5106_vm3, %v5268_v36, %v5270_v41  ;;  %v12321_v44 = vpop.f32.mrf.mxu1  ;;  %v6811_v16 = vadd.f32 %v11968_v21, %v6185_v28 }
 0x402   : > { %5995 = vrot.lane.b32.xlu0 %v5785_v38, %s9149_s14  ;;  %v6411_v57 = vsel %vm5106_vm3, %v13506_v54, %v6410_v59  ;;  %v7155_v39 = vrot.slane %v7154_v3, 1  ;;  %v6189_v38 = vadd.f32 %v11979_v43, %v13508_v1  ;;  %v5500_v48 = vadd.f32 %v5271_v30, %v13509_v20  ;;  %v4378_v10 = vpop.f32.mrf.mxu0  ;;  %v12328_v61 = vpop.permute.xlu0 %6563  ;;  %v8870_v43 = vld [vmem:[%s13056_s3 + $0x18] sm:$0xff]  }
 0x403   : > { %6619 = vrot.lane.b32.xlu1 %v6411_v57, %s9151_s21  ;;  %v4377_v54 = vadd.f32 %v4376_v42, %v12190_v58  ;;  %v5788_v5 = vrot.slane %v12303_v11, 7  ;;  %v6414_v36 = vrot.slane %v12303_v11, 1  ;;  %v12333_v27 = vadd.f32 %v4374_v26, %v12172_v23  ;;  %v12338_v28 = vpop.f32.mrf.mxu1  ;;  %7700 = vmatpush1.bf16.msra.mxu1 %v8870_v43  ;;  %v13520_v11 = vld [vmem:[#allocation126_spill] sm:$0xff] }
 0x404   : > { %v12335_v57 = vpop.permute.xlu1 %6561  ;;  %v5787_v21 = vsel %vm4585_vm2, %v5784_v46, %v5786_v45  ;;  %v7159_v58 = vmax.f32 %v7158_v53, %v5500_v48  ;;  %v4382_v42 = vpop.f32.mrf.mxu0  ;;  %v6413_v62 = vsel %vm5106_vm3, %v6410_v59, %v6412_v63  ;;  %v7156_v30 = vmax.f32 %v7154_v3, %v7155_v39  ;;  %v13512_v53 = vld [vmem:[#allocation108_spill] sm:$0xff]  ;;  %7701 = vmatprep.subr.bf16.mxu1 %v13286_v51 }
 0x405   : > { %13510 = vst [vmem:[#allocation38_spill] sm:$0xff] %v12333_v27  ;;  %v5272_v20 = vrot.slane %v4377_v54, 1  ;;  %v12347_v26 = vsel %vm7297_vm8, %v12163_v7, -inf  ;;  %v7232_v23 = vadd.f32 %v10377_v29, %v6814_v55  ;;  %v6815_v46 = vadd.f32 %v12029_v0, %v6189_v38  ;;  %v12353_v48 = vpop.f32.mrf.mxu1  ;;  %v13514_v55 = vld [vmem:[#allocation52_spill] sm:$0xff] }
 0x406   : > { %5997 = vrot.lane.b32.xlu0 %v5787_v21, %s9149_s14  ;;  %13511 = vst [vmem:[#allocation91_spill] sm:$0xff] %v12347_v26  ;;  %v4383_v1 = vadd.f32 %v4382_v42, %v12214_v47  ;;  %v6190_v54 = vadd.f32 %v12036_v14, %v13512_v53  ;;  %v12359_v3 = vadd.f32 %v4378_v10, %v12201_v24  ;;  %v4384_v7 = vpop.f32.mrf.mxu0  ;;  %v12361_v39 = vpop.permute.xlu0 %6567  ;;  %v5790_v47 = vrot.slane %v12333_v27, 7  ;;  %v13515_v24 = vld [vmem:[#allocation15_spill] sm:$0xff] }
 0x407   : > { %6621 = vrot.lane.b32.xlu1 %v6413_v62, %s9151_s21  ;;  %v5273_v59 = vsel %vm5106_vm3, %v5270_v41, %v5272_v20  ;;  %v12366_v0 = vsel %vm7562_vm11, %v7156_v30, %v11972_v60  ;;  %v5789_v41 = vsel %vm4585_vm2, %v5786_v45, %v5788_v5  ;;  %v12371_v43 = vpop.f32.mrf.mxu1  ;;  %v12374_v10 = vadd.f32 %v13515_v24, %v6186_v12 }
 0x408   : > { %13513 = vst [vmem:[#allocation124_spill] sm:$0xff] %v12359_v3  ;;  %v5501_v38 = vadd.f32 %v5273_v59, %v13514_v55  ;;  %v5274_v21 = vrot.slane %v4383_v1, 1  ;;  %v5942_v14 = vpop.permute.xlu1 %5941  ;;  %v12377_v42 = vsel %vm7297_vm8, %v6811_v16, -inf  ;;  %v6416_v62 = vrot.slane %v12333_v27, 1  ;;  %v4386_v60 = vpop.f32.mrf.mxu0  ;;  %v13517_v55 = vld [vmem:[#allocation53_spill] sm:$0xff] }
 0x409   : > { %13516 = vst [vmem:[#allocation21_spill] sm:$0xff] %v12374_v10  ;;  %v6415_v30 = vsel %vm5106_vm3, %v6412_v63, %v6414_v36  ;;  %v7392_v1 = vsel %vm7297_vm8, %v6815_v46, -inf  ;;  %v6816_v53 = vadd.f32 %v12066_v25, %v6190_v54  ;;  %v12386_v12 = vpop.f32.mrf.mxu1  ;;  %v5792_v16 = vrot.slane %v12359_v3, 7  ;;  %v13518_v25 = vld [vmem:[#allocation114_spill] sm:$0xff] }
 0x40a   : > { %5999 = vrot.lane.b32.xlu0 %v5789_v41, %s9149_s14  ;;  %v7160_v45 = vmax.f32 %v7159_v58, %v5501_v38  ;;  %v5275_v59 = vsel %vm5106_vm3, %v5272_v20, %v5274_v21  ;;  %v12391_v27 = vadd.f32 %v4384_v7, %v12227_v49  ;;  %v4387_v63 = vadd.f32 %v4386_v60, %v12245_v22  ;;  %v4388_v41 = vpop.f32.mrf.mxu0  ;;  %v6570_v46 = vpop.permute.xlu0 %6569  ;;  %v13519_v54 = vld [vmem:[#allocation110_spill] sm:$0xff] }
 0x40b   : > { %6623 = vrot.lane.b32.xlu1 %v6415_v30, %s9151_s21  ;;  %v5502_v24 = vadd.f32 %v5275_v59, %v13517_v55  ;;  %v12396_v58 = vadd.f32 %v13518_v25, %v12254_v34  ;;  %v7391_v20 = vsel %vm7297_vm8, %v7232_v23, -inf  ;;  %v6191_v38 = vadd.f32 %v12059_v31, %v13519_v54  ;;  %v12404_v55 = vpop.f32.mrf.mxu1 }
 0x40c   : > { %v12401_v30 = vpop.permute.xlu1 %6565  ;;  %v5791_v59 = vsel %vm4585_vm2, %v5788_v5, %v5790_v47  ;;  %v6418_v49 = vrot.slane %v12359_v3, 1  ;;  %v5276_v7 = vrot.slane %v4387_v63, 1  ;;  %v4392_v60 = vpop.f32.mrf.mxu0  ;;  %v6417_v34 = vsel %vm5106_vm3, %v6414_v36, %v6416_v62 }
 0x40d   : > { %v7161_v22 = vmax.f32 %v7160_v45, %v5502_v24  ;;  %v7393_v25 = vmax.f32 %v7391_v20, %v7392_v1  ;;  %v7394_v23 = vsel %vm7297_vm8, %v6816_v53, -inf  ;;  %v6201_v31 = vadd.f32 %v5942_v14, %v13520_v11  ;;  %v12413_v5 = vpop.f32.mrf.mxu1  ;;  %v13521_v53 = vld [vmem:[#allocation54_spill] sm:$0xff] }
 0x40e   : > { %6001 = vrot.lane.b32.xlu0 %v5791_v59, %s9149_s14  ;;  %v4393_v54 = vadd.f32 %v4392_v60, %v12274_v37  ;;  %v6817_v3 = vadd.f32 %v12096_v15, %v6191_v38  ;;  %v5794_v45 = vrot.slane %v12391_v27, 7  ;;  %v5277_v24 = vsel %vm5106_vm3, %v5274_v21, %v5276_v7  ;;  %v4394_v63 = vpop.f32.mrf.mxu0  ;;  %v6572_v59 = vpop.permute.xlu0 %6571  ;;  %v13523_v38 = vld [vmem:[#allocation14_spill] sm:$0xff] }
 0x40f   : > { %6625 = vrot.lane.b32.xlu1 %v6417_v34, %s9151_s21  ;;  %v5793_v36 = vsel %vm4585_vm2, %v5790_v47, %v5792_v16  ;;  %v6420_v1 = vrot.slane %v12391_v27, 1  ;;  %v5503_v11 = vadd.f32 %v5277_v24, %v13521_v53  ;;  %v12422_v37 = vadd.f32 %v4388_v41, %v12258_v8  ;;  %v12424_v60 = vpop.f32.mrf.mxu1  ;;  %v13524_v34 = vld [vmem:[#allocation76_spill] sm:$0xff] }
 0x410   : > { %v5278_v14 = vrot.slane %v4393_v54, 1  ;;  %v12426_v15 = vmax.f32 %v7393_v25, %v7394_v23  ;;  %v6192_v21 = vadd.f32 %v12088_v2, %v13523_v38  ;;  %v4396_v26 = vpop.f32.mrf.mxu0  ;;  %v6419_v47 = vsel %vm5106_vm3, %v6416_v62, %v6418_v49 }
 0x411   : > { %13522 = vst [vmem:[#allocation96_spill] sm:$0xff] %v12422_v37  ;;  %v5944_v20 = vpop.permute.xlu1 %5943  ;;  %v6827_v24 = vadd.f32 %v12361_v39, %v6201_v31  ;;  %v7162_v8 = vmax.f32 %v7161_v22, %v5503_v11  ;;  %v12436_v54 = vadd.f32 %v4394_v63, %v12289_v13  ;;  %v12439_v25 = vpop.f32.mrf.mxu1  ;;  %v12442_v2 = vsel %vm7297_vm8, %v6817_v3, -inf }
 0x412   : > { %v6202_v10 = vadd.f32 %v5944_v20, %v13524_v34  ;;  %6003 = vrot.lane.b32.xlu0 %v5793_v36, %s9149_s14  ;;  %v5279_v41 = vsel %vm5106_vm3, %v5276_v7, %v5278_v14  ;;  %v6818_v23 = vadd.f32 %v12129_v35, %v6192_v21  ;;  %v13525_v36 = vld [vmem:[#allocation55_spill] sm:$0xff]  ;;  %v4397_v62 = vadd.f32 %v4396_v26, %v12307_v4  ;;  %v4398_v39 = vpop.f32.mrf.mxu0  ;;  %v6574_v22 = vpop.permute.xlu0 %6573 }
 0x413   : > { %6627 = vrot.lane.b32.xlu1 %v6419_v47, %s9151_s21  ;;  %v5504_v53 = vadd.f32 %v5279_v41, %v13525_v36  ;;  %v5796_v7 = vrot.slane %v12422_v37, 7  ;;  %v6422_v13 = vrot.slane %v12422_v37, 1  ;;  %v5795_v63 = vsel %vm4585_vm2, %v5792_v16, %v5794_v45  ;;  %v12451_v20 = vpop.f32.mrf.mxu1  ;;  %v13526_v21 = vld [vmem:[#allocation127_spill] sm:$0xff] }
 0x414   : > { %v6421_v11 = vsel %vm5106_vm3, %v6418_v49, %v6420_v1  ;;  %v6828_v38 = vadd.f32 %v6570_v46, %v6202_v10  ;;  %v5280_v35 = vrot.slane %v4397_v62, 1  ;;  %v4402_v47 = vpop.f32.mrf.mxu0  ;;  %v7245_v26 = vadd.f32 %v10377_v29, %v6827_v24  ;;  %v13528_v10 = vld [vmem:[#allocation112_spill] sm:$0xff] }
 0x415   : > { %v5946_v31 = vpop.permute.xlu1 %5945  ;;  %v7163_v3 = vmax.f32 %v7162_v8, %v5504_v53  ;;  %v13153_v41 = vrot.slane %v12436_v54, 7  ;;  %v12460_v16 = vadd.f32 %v4398_v39, %v12321_v44  ;;  %v12463_v49 = vpop.f32.mrf.mxu1  ;;  %v6193_v46 = vadd.f32 %v12121_v19, %v13528_v10 }
 0x416   : > { %v6203_v34 = vadd.f32 %v5946_v31, %v13526_v21  ;;  %6005 = vrot.lane.b32.xlu0 %v5795_v63, %s9149_s14  ;;  %v5281_v8 = vsel %vm5106_vm3, %v5278_v14, %v5280_v35  ;;  %v4403_v53 = vadd.f32 %v4402_v47, %v12338_v28  ;;  %v4404_v62 = vpop.f32.mrf.mxu0  ;;  %v6576_v31 = vpop.permute.xlu0 %6575  ;;  %v12470_v24 = vsel %vm7297_vm8, %v6818_v23, -inf  ;;  %v13529_v63 = vld [vmem:[#allocation56_spill] sm:$0xff]  ;;  %v13530_v28 = vld [vmem:[#allocation77_spill] sm:$0xff] }
 0x417   : > { %13527 = vst [vmem:[#allocation39_spill] sm:$0xff] %v12460_v16  ;;  %6629 = vrot.lane.b32.xlu1 %v6421_v11, %s9151_s21  ;;  %v5505_v44 = vadd.f32 %v5281_v8, %v13529_v63  ;;  %v5797_v11 = vsel %vm4585_vm2, %v5794_v45, %v5796_v7  ;;  %v6423_v21 = vsel %vm5106_vm3, %v6420_v1, %v6422_v13  ;;  %v12475_v4 = vpop.f32.mrf.mxu1  ;;  %v6424_v19 = vrot.slane %v12436_v54, 1 }
 0x418   : > { %v6829_v36 = vadd.f32 %v6572_v59, %v6203_v34  ;;  %v7423_v59 = vsel %vm7297_vm8, %v6828_v38, -inf  ;;  %v5282_v14 = vrot.slane %v4403_v53, 1  ;;  %v4406_v47 = vpop.f32.mrf.mxu0  ;;  %v7422_v23 = vsel %vm7297_vm8, %v7245_v26, -inf }
 0x419   : > { %v5948_v39 = vpop.permute.xlu1 %5947  ;;  %v7164_v10 = vmax.f32 %v7163_v3, %v5505_v44  ;;  %v5799_v45 = vsel %vm4585_vm2, %v5796_v7, %v13153_v41  ;;  %v12487_v1 = vpop.f32.mrf.mxu1  ;;  %v7424_v3 = vmax.f32 %v7422_v23, %v7423_v59  ;;  %v5800_v44 = vrot.slane %v12460_v16, 7 }
 0x41a   : > { %v6204_v34 = vadd.f32 %v5948_v39, %v13530_v28  ;;  %6007 = vrot.lane.b32.xlu0 %v5797_v11, %s9149_s14  ;;  %v7425_v38 = vsel %vm7297_vm8, %v6829_v36, -inf  ;;  %v5283_v53 = vsel %vm5106_vm3, %v5280_v35, %v5282_v14  ;;  %v4407_v39 = vadd.f32 %v4406_v47, %v12371_v43  ;;  %v4408_v11 = vpop.f32.mrf.mxu0  ;;  %v6578_v26 = vpop.permute.xlu0 %6577  ;;  %v13531_v28 = vld [vmem:[#allocation57_spill] sm:$0xff]  ;;  %v13533_v35 = vld [vmem:[#allocation24_spill] sm:$0xff] }
 0x41b   : > { %6631 = vrot.lane.b32.xlu1 %v6423_v21, %s9151_s21  ;;  %v5506_v21 = vadd.f32 %v5283_v53, %v13531_v28  ;;  %v12495_v8 = vadd.f32 %v4404_v62, %v12353_v48  ;;  %v12497_v41 = vpop.f32.mrf.mxu1  ;;  %v6425_v43 = vsel %vm5106_vm3, %v6422_v13, %v6424_v19  ;;  %v6819_v59 = vadd.f32 %v12156_v17, %v6193_v46 }
 0x41c   : > { %v6830_v63 = vadd.f32 %v6574_v22, %v6204_v34  ;;  %v5284_v37 = vrot.slane %v4407_v39, 1  ;;  %v4412_v34 = vpop.f32.mrf.mxu0  ;;  %v7426_v47 = vmax.f32 %v7424_v3, %v7425_v38  ;;  %v12505_v48 = vadd.f32 %v4408_v11, %v12386_v12  ;;  %v13536_v12 = vld [vmem:[#allocation58_spill] sm:$0xff] }
 0x41d   : > { %13532 = vst [vmem:[#allocation92_spill] sm:$0xff] %v12495_v8  ;;  %v5950_v7 = vpop.permute.xlu1 %5949  ;;  %v7165_v23 = vmax.f32 %v7164_v10, %v5506_v21  ;;  %v12508_v62 = vpop.f32.mrf.mxu1  ;;  %v4413_v39 = vadd.f32 %v4412_v34, %v12404_v55  ;;  %v13535_v13 = vrot.slane %v12460_v16, 1  ;;  %v5802_v46 = vrot.slane %v12495_v8, 7 }
 0x41e   : > { %v7427_v36 = vsel %vm7297_vm8, %v6830_v63, -inf  ;;  %v6205_v22 = vadd.f32 %v5950_v7, %v13533_v35  ;;  %6009 = vrot.lane.b32.xlu0 %v5799_v45, %s9149_s14  ;;  %13534 = vst [vmem:[#allocation20_spill] sm:$0xff] %v12505_v48  ;;  %v5285_v53 = vsel %vm5106_vm3, %v5282_v14, %v5284_v37  ;;  %v4414_v28 = vpop.f32.mrf.mxu0  ;;  %v6580_v45 = vpop.permute.xlu0 %6579  ;;  %v13538_v14 = vld [vmem:[#allocation25_spill] sm:$0xff]  ;;  %v5804_v34 = vrot.slane %v12505_v48, 7 }
 0x41f   : > { %6633 = vrot.lane.b32.xlu1 %v6425_v43, %s9151_s21  ;;  %v6427_v17 = vsel %vm5106_vm3, %v6424_v19, %v13535_v13  ;;  %v7428_v10 = vmax.f32 %v7426_v47, %v7427_v36  ;;  %v5507_v38 = vadd.f32 %v5285_v53, %v13536_v12  ;;  %v12518_v11 = vadd.f32 %v4414_v28, %v12413_v5  ;;  %v12520_v21 = vpop.f32.mrf.mxu1  ;;  %v13540_v12 = vld [vmem:[#allocation59_spill] sm:$0xff] }
 0x420   : > { %v6831_v63 = vadd.f32 %v6576_v31, %v6205_v22  ;;  %v5286_v55 = vrot.slane %v4413_v39, 1  ;;  %v4416_v35 = vpop.f32.mrf.mxu0  ;;  %v13539_v19 = vrot.slane %v12436_v54, 7  ;;  %v13156_v53 = vrot.slane %v12495_v8, 1 }
 0x421   : > { %13537 = vst [vmem:[#allocation40_spill] sm:$0xff] %v12518_v11  ;;  %v5952_v3 = vpop.permute.xlu1 %5951  ;;  %v7166_v22 = vmax.f32 %v7165_v23, %v5507_v38  ;;  %v5806_v43 = vrot.slane %v12518_v11, 7  ;;  %v12531_v47 = vpop.f32.mrf.mxu1  ;;  %v4417_v28 = vadd.f32 %v4416_v35, %v12424_v60 }
 0x422   : > { %v7429_v31 = vsel %vm7297_vm8, %v6831_v63, -inf  ;;  %v6206_v7 = vadd.f32 %v5952_v3, %v13538_v14  ;;  %6635 = vrot.lane.b32.xlu0 %v6427_v17, %s9151_s21  ;;  %v5801_v36 = vsel %vm4585_vm2, %v13539_v19, %v5800_v44  ;;  %v5287_v63 = vsel %vm5106_vm3, %v5284_v37, %v5286_v55  ;;  %v4418_v13 = vpop.f32.mrf.mxu0  ;;  %v6582_v17 = vpop.permute.xlu0 %6581 }
 0x423   : > { %v7430_v5 = vmax.f32 %v7428_v10, %v7429_v31  ;;  %6011 = vrot.lane.b32.xlu1 %v5801_v36, %s9149_s14  ;;  %v5508_v23 = vadd.f32 %v5287_v63, %v13540_v12  ;;  %v12538_v38 = vadd.f32 %v4418_v13, %v12439_v25  ;;  %v5803_v3 = vsel %vm4585_vm2, %v5800_v44, %v5802_v46  ;;  %v12544_v14 = vpop.f32.mrf.mxu1  ;;  %v13542_v25 = vld [vmem:[#allocation26_spill] sm:$0xff]  ;;  %v13543_v36 = vld [vmem:[#allocation16_spill] sm:$0xff] }
 0x424   : > { %v6832_v39 = vadd.f32 %v6578_v26, %v6206_v7  ;;  %v5807_v31 = vsel %vm4585_vm2, %v5804_v34, %v5806_v43  ;;  %v13541_v37 = vmax.f32 %v12426_v15, %v12442_v2  ;;  %v5288_v7 = vrot.slane %v4417_v28, 1  ;;  %v4422_v19 = vpop.f32.mrf.mxu0 }
 0x425   : > { %v5954_v10 = vpop.permute.xlu1 %5953  ;;  %v12557_v44 = vadd.f32 %v12148_v33, %v13543_v36  ;;  %v7167_v63 = vmax.f32 %v7166_v22, %v5508_v23  ;;  %v13155_v12 = vrot.slane %v12538_v38, 7  ;;  %v12561_v15 = vpop.f32.mrf.mxu1  ;;  %v12564_v2 = vsel %vm7297_vm8, %v6819_v59, -inf  ;;  %v13544_v33 = vld [vmem:[#allocation60_spill] sm:$0xff] }
 0x426   : > { %v12550_v60 = vmax.f32 %v13541_v37, %v12470_v24  ;;  %v7431_v26 = vsel %vm7297_vm8, %v6832_v39, -inf  ;;  %v6207_v35 = vadd.f32 %v5954_v10, %v13542_v25  ;;  %6013 = vrot.lane.b32.xlu0 %v5803_v3, %s9149_s14  ;;  %v5289_v24 = vsel %vm5106_vm3, %v5286_v55, %v5288_v7  ;;  %v4424_v10 = vpop.f32.mrf.mxu0  ;;  %v6584_v3 = vpop.permute.xlu0 %6583  ;;  %v13546_v25 = vld [vmem:[#allocation27_spill] sm:$0xff] }
 0x427   : > { %v7432_v13 = vmax.f32 %v7430_v5, %v7431_v26  ;;  %6017 = vrot.lane.b32.xlu1 %v5807_v31, %s9149_s14  ;;  %v4423_v28 = vadd.f32 %v4422_v19, %v12451_v20  ;;  %v5509_v37 = vadd.f32 %v5289_v24, %v13544_v33  ;;  %v6434_v22 = vrot.slane %v12538_v38, 1 }
 0x428   : > { %v6833_v39 = vadd.f32 %v6580_v45, %v6207_v35  ;;  %v13545_v23 = vrot.slane %v12460_v16, 1  ;;  %v5809_v59 = vsel %vm4585_vm2, %v5806_v43, %v13155_v12  ;;  %v12578_v45 = vpop.f32.mrf.mxu1  ;;  %v12582_v26 = vadd.f32 %v4424_v10, %v12463_v49  ;;  %v4426_v19 = vpop.f32.mrf.mxu0  ;;  %v13547_v12 = vld [vmem:[#allocation61_spill] sm:$0xff] }
 0x429   : > { %v5956_v5 = vpop.permute.xlu1 %5955  ;;  %v5290_v55 = vrot.slane %v4423_v28, 1  ;;  %v6430_v36 = vrot.slane %v12505_v48, 1  ;;  %v6432_v24 = vrot.slane %v12518_v11, 1  ;;  %v7035_v33 = vadd.f32 %v13487_v50, %v5509_v37 }
 0x42a   : > { %v6429_v31 = vsel %vm5106_vm3, %v13545_v23, %v13156_v53  ;;  %v7433_v20 = vsel %vm7297_vm8, %v6833_v39, -inf  ;;  %v6208_v35 = vadd.f32 %v5956_v5, %v13546_v25  ;;  %v12590_v23 = vpop.f32.mrf.mxu1  ;;  %v4427_v28 = vadd.f32 %v4426_v19, %v12475_v4  ;;  %v4428_v10 = vpop.f32.mrf.mxu0  ;;  %v13548_v19 = vld [vmem:[#allocation10_spill] sm:$0xff] }
 0x42b   : > { %6637 = vrot.lane.b32.xlu0 %v6429_v31, %s9151_s21  ;;  %v7434_v43 = vmax.f32 %v7432_v13, %v7433_v20  ;;  %6019 = vrot.lane.b32.xlu1 %v5809_v59, %s9149_s14  ;;  %v5291_v39 = vsel %vm5106_vm3, %v5288_v7, %v5290_v55  ;;  %v12594_v5 = vpop.permute.xlu0 %5961  ;;  %v5805_v31 = vsel %vm4585_vm2, %v5802_v46, %v5804_v34  ;;  %v6436_v4 = vrot.slane %v12582_v26, 1 }
 0x42c   : > { %v6834_v49 = vadd.f32 %v6582_v17, %v6208_v35  ;;  %v7168_v25 = vmax.f32 %v7167_v63, %v7035_v33  ;;  %v5510_v37 = vadd.f32 %v5291_v39, %v13547_v12  ;;  %v12601_v13 = vadd.f32 %v4428_v10, %v12487_v1  ;;  %v12604_v7 = vpop.f32.mrf.mxu1  ;;  %v4432_v48 = vpop.f32.mrf.mxu0  ;;  %v13549_v1 = vld [vmem:[#allocation115_spill] sm:$0xff] }
 0x42d   : > { %v5958_v59 = vpop.permute.xlu1 %5957  ;;  %v6435_v20 = vsel %vm5106_vm3, %v6432_v24, %v6434_v22  ;;  %v5292_v35 = vrot.slane %v4427_v28, 1  ;;  %v12614_v34 = vadd.f32 %v12178_v6, %v13549_v1  ;;  %v4433_v28 = vadd.f32 %v4432_v48, %v12497_v41  ;;  %v13551_v1 = vld [vmem:[#allocation62_spill] sm:$0xff] }
 0x42e   : > { %v7435_v17 = vsel %vm7297_vm8, %v6834_v49, -inf  ;;  %v6209_v53 = vadd.f32 %v5958_v59, %v13548_v19  ;;  %v7169_v63 = vrot.slane %v7168_v25, 4  ;;  %v12617_v33 = vpop.f32.mrf.mxu1  ;;  %v4434_v10 = vpop.f32.mrf.mxu0  ;;  %v13550_v59 = vrot.slane %v12495_v8, 1 }
 0x42f   : > { %6015 = vrot.lane.b32.xlu0 %v5805_v31, %s9149_s14  ;;  %v7436_v12 = vmax.f32 %v7434_v43, %v7435_v17  ;;  %6643 = vrot.lane.b32.xlu1 %v6435_v20, %s9151_s21  ;;  %v5293_v39 = vsel %vm5106_vm3, %v5290_v55, %v5292_v35  ;;  %v5964_v31 = vpop.permute.xlu0 %5963  ;;  %v7036_v6 = vadd.f32 %v10377_v29, %v5510_v37  ;;  %v6438_v20 = vrot.slane %v12601_v13, 1  ;;  %v13553_v37 = vld [vmem:[#allocation9_spill] sm:$0xff] }
 0x430   : > { %v6835_v49 = vadd.f32 %v6584_v3, %v6209_v53  ;;  %v6431_v19 = vsel %vm5106_vm3, %v13550_v59, %v6430_v36  ;;  %v7170_v46 = vmax.f32 %v7168_v25, %v7169_v63  ;;  %v5511_v43 = vadd.f32 %v5293_v39, %v13551_v1  ;;  %v12627_v11 = vpop.f32.mrf.mxu1  ;;  %v4436_v48 = vpop.f32.mrf.mxu0  ;;  %v13554_v39 = vld [vmem:[#allocation28_spill] sm:$0xff] }
 0x431   : > { %v5960_v17 = vpop.permute.xlu1 %5959  ;;  %v5294_v3 = vrot.slane %v4433_v28, 1  ;;  %v12631_v41 = vadd.f32 %v4434_v10, %v12508_v62  ;;  %v6437_v55 = vsel %vm5106_vm3, %v6434_v22, %v6436_v4  ;;  %v6212_v63 = vadd.f32 %v5964_v31, %v13553_v37  ;;  %v13555_v22 = vld [vmem:[#allocation63_spill] sm:$0xff] }
 0x432   : > { %v7437_v53 = vsel %vm7297_vm8, %v6835_v49, -inf  ;;  %v7175_v25 = vmax.f32 %v7036_v6, %v5511_v43  ;;  %v6210_v59 = vadd.f32 %v5960_v17, %v13554_v39  ;;  %v6433_v1 = vsel %vm5106_vm3, %v6430_v36, %v6432_v24  ;;  %v4438_v28 = vpop.f32.mrf.mxu0  ;;  %v12644_v37 = vpop.f32.mrf.mxu1 }
 0x433   : > { %13552 = vst [vmem:[#allocation93_spill] sm:$0xff] %v12631_v41  ;;  %6639 = vrot.lane.b32.xlu0 %v6431_v19, %s9151_s21  ;;  %6645 = vrot.lane.b32.xlu1 %v6437_v55, %s9151_s21  ;;  %v7171_v8 = vrot.slane %v7170_v46, 2  ;;  %v5295_v49 = vsel %vm5106_vm3, %v5292_v35, %v5294_v3  ;;  %v4437_v62 = vadd.f32 %v4436_v48, %v12520_v21  ;;  %v6590_v10 = vpop.permute.xlu0 %6589  ;;  %v5810_v19 = vrot.slane %v12582_v26, 7 }
 0x434   : > { %v7438_v16 = vmax.f32 %v7436_v12, %v7437_v53  ;;  %v5512_v6 = vadd.f32 %v5295_v49, %v13555_v22  ;;  %v6838_v43 = vadd.f32 %v6590_v10, %v6212_v63  ;;  %v6439_v17 = vsel %vm5106_vm3, %v6436_v4, %v6438_v20  ;;  %v4442_v48 = vpop.f32.mrf.mxu0  ;;  %v13557_v12 = vld [vmem:[#allocation17_spill] sm:$0xff]  ;;  %v13558_v63 = vld [vmem:[#allocation78_spill] sm:$0xff]  ;;  %v13559_v10 = vld [vmem:[#allocation64_spill] sm:$0xff] }
 0x435   : > { %v6586_v31 = vpop.permute.xlu1 %6585  ;;  %v6440_v36 = vrot.slane %v12631_v41, 1  ;;  %v5296_v24 = vrot.slane %v4437_v62, 1  ;;  %v12648_v35 = vadd.f32 %v4438_v28, %v12531_v47  ;;  %v6820_v53 = vadd.f32 %v13557_v12, %v12557_v44  ;;  %v8871_v44 = vld [vmem:[%s13056_s3 + $0x10] sm:$0xff]  }
 0x436   : > { %v6836_v21 = vadd.f32 %v6586_v31, %v6210_v59  ;;  %v13161_v55 = vrot.slane %v12601_v13, 7  ;;  %v6211_v4 = vadd.f32 %v12594_v5, %v13558_v63  ;;  %v7176_v39 = vmax.f32 %v7175_v25, %v5512_v6  ;;  %v4444_v28 = vpop.f32.mrf.mxu0  ;;  %v12672_v6 = vpop.f32.mrf.mxu1  ;;  %7702 = vmatpush1.bf16.msra.mxu1 %v8871_v44 }
 0x437   : > { %13556 = vst [vmem:[#allocation22_spill] sm:$0xff] %v12648_v35  ;;  %6641 = vrot.lane.b32.xlu0 %v6433_v1, %s9151_s21  ;;  %6647 = vrot.lane.b32.xlu1 %v6439_v17, %s9151_s21  ;;  %v7172_v49 = vmax.f32 %v7170_v46, %v7171_v8  ;;  %v5297_v62 = vsel %vm5106_vm3, %v5294_v3, %v5296_v24  ;;  %v12660_v1 = vpop.permute.xlu0 %5967  ;;  %v13560_v46 = vrot.slane %v12538_v38, 7 }
 0x438   : > { %v7439_v47 = vsel %vm7297_vm8, %v6836_v21, -inf  ;;  %v4443_v59 = vadd.f32 %v4442_v48, %v12544_v14  ;;  %v5513_v22 = vadd.f32 %v5297_v62, %v13559_v10  ;;  %v12667_v25 = vadd.f32 %v4444_v28, %v12561_v15  ;;  %v4446_v21 = vpop.f32.mrf.mxu0  ;;  %7703 = vmatprep.subr.bf16.mxu1 %v13286_v51  ;;  %v13561_v28 = vld [vmem:[#allocation65_spill] sm:$0xff] }
 0x439   : > { %v7440_v5 = vmax.f32 %v7438_v16, %v7439_v47  ;;  %v6588_v8 = vpop.permute.xlu1 %6587  ;;  %v5811_v3 = vsel %vm4585_vm2, %v13560_v46, %v5810_v19  ;;  %v6442_v14 = vrot.slane %v12648_v35, 1  ;;  %v6441_v16 = vsel %vm5106_vm3, %v6438_v20, %v6440_v36 }
 0x43a   : > { %v5298_v31 = vrot.slane %v4443_v59, 1  ;;  %v6837_v17 = vadd.f32 %v6588_v8, %v6211_v4  ;;  %v12678_v15 = vsel %vm7297_vm8, %v6820_v53, -inf  ;;  %v5814_v48 = vrot.slane %v12631_v41, 7  ;;  %v4448_v47 = vpop.f32.mrf.mxu0  ;;  %v12691_v8 = vpop.f32.mrf.mxu1 }
 0x43b   : > { %6021 = vrot.lane.b32.xlu0 %v5811_v3, %s9149_s14  ;;  %v7177_v12 = vmax.f32 %v7176_v39, %v5513_v22  ;;  %v4447_v63 = vadd.f32 %v4446_v21, %v12578_v45  ;;  %6649 = vrot.lane.b32.xlu1 %v6441_v16, %s9151_s21  ;;  %v5970_v59 = vpop.permute.xlu0 %5969  ;;  %v5813_v20 = vsel %vm4585_vm2, %v5810_v19, %v13161_v55  ;;  %v7173_v53 = vrot.slane %v7172_v49, 1  ;;  %v13564_v55 = vld [vmem:[#allocation29_spill] sm:$0xff] }
 0x43c   : > { %v5299_v4 = vsel %vm5106_vm3, %v5296_v24, %v5298_v31  ;;  %v7441_v62 = vsel %vm7297_vm8, %v6837_v17, -inf  ;;  %v6444_v39 = vrot.slane %v12667_v25, 1  ;;  %v5816_v24 = vrot.slane %v12648_v35, 7  ;;  %v4452_v17 = vpop.f32.mrf.mxu0 }
 0x43d   : > { %v5514_v44 = vadd.f32 %v5299_v4, %v13561_v28  ;;  %v7442_v45 = vmax.f32 %v7440_v5, %v7441_v62  ;;  %v5300_v10 = vrot.slane %v4447_v63, 1  ;;  %v5966_v22 = vpop.permute.xlu1 %5965  ;;  %v7443_v46 = vsel %vm7297_vm8, %v6838_v43, -inf  ;;  %v13562_v63 = vld [vmem:[#allocation81_spill] sm:$0xff]  ;;  %v13563_v62 = vld [vmem:[#allocation66_spill] sm:$0xff] }
 0x43e   : > { %v12696_v3 = vadd.f32 %v4448_v47, %v12590_v23  ;;  %v6443_v19 = vsel %vm5106_vm3, %v6440_v36, %v6442_v14  ;;  %v6215_v4 = vadd.f32 %v5970_v59, %v13562_v63  ;;  %v6213_v43 = vadd.f32 %v5966_v22, %v13564_v55  ;;  %v4454_v47 = vpop.f32.mrf.mxu0 }
 0x43f   : > { %6023 = vrot.lane.b32.xlu0 %v5813_v20, %s9149_s14  ;;  %v7178_v21 = vmax.f32 %v7177_v12, %v5514_v44  ;;  %v7444_v16 = vmax.f32 %v7442_v45, %v7443_v46  ;;  %v5301_v5 = vsel %vm5106_vm3, %v5298_v31, %v5300_v10  ;;  %6651 = vrot.lane.b32.xlu1 %v6443_v19, %s9151_s21  ;;  %v6596_v35 = vpop.permute.xlu0 %6595  ;;  %v13565_v31 = vrot.slane %v12601_v13, 7  ;;  %v3913_v45 = vpop.f32.mrf.mxu1  ;;  %v13568_v19 = vld [vmem:[#allocation80_spill] sm:$0xff] }
 0x440   : > { %v5515_v28 = vadd.f32 %v5301_v5, %v13563_v62  ;;  %v4453_v23 = vadd.f32 %v4452_v17, %v12604_v7  ;;  %v7174_v41 = vmax.f32 %v7172_v49, %v7173_v53  ;;  %v12707_v20 = vadd.f32 %v4454_v47, %v12617_v33  ;;  %v4456_v17 = vpop.f32.mrf.mxu0  ;;  %v13566_v49 = vld [vmem:[#allocation117_spill] sm:$0xff]  ;;  %v13567_v33 = vld [vmem:[#allocation120_spill] sm:$0xff] }
 0x441   : > { %v6841_v36 = vadd.f32 %v6596_v35, %v6215_v4  ;;  %v6592_v12 = vpop.permute.xlu1 %6591  ;;  %v5815_v59 = vsel %vm4585_vm2, %v13565_v31, %v5814_v48  ;;  %v6445_v44 = vsel %vm5106_vm3, %v6442_v14, %v6444_v39  ;;  %v6446_v55 = vrot.slane %v12696_v3, 1 }
 0x442   : > { %v7179_v46 = vmax.f32 %v7178_v21, %v5515_v28  ;;  %v5302_v22 = vrot.slane %v4453_v23, 1  ;;  %v6839_v7 = vadd.f32 %v6592_v12, %v6213_v43  ;;  %v6196_v53 = vadd.f32 %v13567_v33, %v13566_v49  ;;  %v4458_v4 = vpop.f32.mrf.mxu0  ;;  %v13569_v23 = vld [vmem:[#allocation67_spill] sm:$0xff] }
 0x443   : > { %6025 = vrot.lane.b32.xlu0 %v5815_v59, %s9149_s14  ;;  %v5818_v35 = vrot.slane %v12667_v25, 7  ;;  %v6214_v5 = vadd.f32 %v12660_v1, %v13568_v19  ;;  %v4457_v63 = vadd.f32 %v4456_v17, %v12627_v11  ;;  %6653 = vrot.lane.b32.xlu1 %v6445_v44, %s9151_s21  ;;  %v6598_v62 = vpop.permute.xlu0 %6597  ;;  %v5817_v28 = vsel %vm4585_vm2, %v5814_v48, %v5816_v24  ;;  %v13570_v59 = vld [vmem:[#allocation122_spill] sm:$0xff] }
 0x444   : > { %v5303_v14 = vsel %vm5106_vm3, %v5300_v10, %v5302_v22  ;;  %v7257_v21 = vadd.f32 %v13487_v50, %v6839_v7  ;;  %v12727_v43 = vsel %vm7564_vm12, %v7174_v41, %v12366_v0  ;;  %v6448_v1 = vrot.slane %v12707_v20, 1  ;;  %v3915_v10 = vpop.f32.mrf.mxu1  ;;  %v4462_v17 = vpop.f32.mrf.mxu0 }
 0x445   : > { %v5516_v47 = vadd.f32 %v5303_v14, %v13569_v23  ;;  %v5304_v12 = vrot.slane %v4457_v63, 1  ;;  %v12732_v11 = vadd.f32 %v4458_v4, %v12644_v37  ;;  %v6594_v31 = vpop.permute.xlu1 %6593  ;;  %v6821_v44 = vadd.f32 %v13570_v59, %v12614_v34  ;;  %v13571_v63 = vld [vmem:[#allocation68_spill] sm:$0xff]  ;;  %v13572_v59 = vld [vmem:[#allocation13_spill] sm:$0xff] }
 0x446   : > { %v7445_v7 = vsel %vm7297_vm8, %v7257_v21, -inf  ;;  %v6840_v48 = vadd.f32 %v6594_v31, %v6214_v5  ;;  %v6447_v0 = vsel %vm5106_vm3, %v6444_v39, %v6446_v55  ;;  %v5819_v37 = vsel %vm4585_vm2, %v5816_v24, %v5818_v35  ;;  %v3919_v19 = vpop.f32.mrf.mxu1  ;;  %v4464_v4 = vpop.f32.mrf.mxu0 }
 0x447   : > { %6027 = vrot.lane.b32.xlu0 %v5817_v28, %s9149_s14  ;;  %v7180_v41 = vmax.f32 %v7179_v46, %v5516_v47  ;;  %v12739_v49 = vmax.f32 %v7444_v16, %v7445_v7  ;;  %v5305_v33 = vsel %vm5106_vm3, %v5302_v22, %v5304_v12  ;;  %6655 = vrot.lane.b32.xlu1 %v6447_v0, %s9151_s21  ;;  %v5820_v34 = vrot.slane %v12696_v3, 7  ;;  %v6600_v39 = vpop.permute.xlu0 %6599 }
 0x448   : > { %v5517_v14 = vadd.f32 %v5305_v33, %v13571_v63  ;;  %v7258_v5 = vadd.f32 %v10377_v29, %v6840_v48  ;;  %v4463_v21 = vadd.f32 %v4462_v17, %v12672_v6  ;;  %v7454_v16 = vsel %vm7297_vm8, %v6841_v36, -inf  ;;  %v4466_v48 = vpop.f32.mrf.mxu0  ;;  %v3921_v0 = vpop.f32.mrf.mxu1 }
 0x449   : > { %v6450_v46 = vrot.slane %v12732_v11, 1  ;;  %v12751_v22 = vadd.f32 %v4464_v4, %v12691_v8  ;;  %v5972_v28 = vpop.permute.xlu1 %5971  ;;  %v6449_v24 = vsel %vm5106_vm3, %v6446_v55, %v6448_v1  ;;  %v13573_v6 = vmax.f32 %v12550_v60, %v12564_v2  ;;  %v13574_v2 = vld [vmem:[#allocation69_spill] sm:$0xff] }
 0x44a   : > { %v7181_v23 = vmax.f32 %v7180_v41, %v5517_v14  ;;  %v7453_v47 = vsel %vm7297_vm8, %v7258_v5, -inf  ;;  %v5306_v31 = vrot.slane %v4463_v21, 1  ;;  %v6216_v7 = vadd.f32 %v5972_v28, %v13572_v59  ;;  %v13576_v59 = vld [vmem:[#allocation119_spill] sm:$0xff] }
 0x44b   : > { %6029 = vrot.lane.b32.xlu0 %v5819_v37, %s9149_s14  ;;  %v12761_v36 = vmax.f32 %v13573_v6, %v12678_v15  ;;  %v12764_v8 = vsel %vm7297_vm8, %v6821_v44, -inf  ;;  %v6822_v55 = vadd.f32 %v12240_v56, %v6196_v53  ;;  %v7455_v17 = vmax.f32 %v7453_v47, %v7454_v16  ;;  %6657 = vrot.lane.b32.xlu1 %v6449_v24, %s9151_s21  ;;  %v4468_v37 = vpop.f32.mrf.mxu0  ;;  %v6602_v14 = vpop.permute.xlu0 %6601 }
 0x44c   : > { %v5307_v41 = vsel %vm5106_vm3, %v5304_v12, %v5306_v31  ;;  %v6842_v33 = vadd.f32 %v6598_v62, %v6216_v7  ;;  %v4467_v63 = vadd.f32 %v4466_v48, %v3913_v45  ;;  %v5821_v5 = vsel %vm4585_vm2, %v5818_v35, %v5820_v34  ;;  %v13575_v62 = vld [vmem:[#allocation113_spill] sm:$0xff] }
 0x44d   : > { %v5822_v60 = vrot.slane %v12707_v20, 7  ;;  %v5518_v15 = vadd.f32 %v5307_v41, %v13574_v2  ;;  %v6452_v44 = vrot.slane %v12751_v22, 1  ;;  %v5974_v21 = vpop.permute.xlu1 %5973  ;;  %v6451_v56 = vsel %vm5106_vm3, %v6448_v1, %v6450_v46  ;;  %v4472_v12 = vpop.f32.mrf.mxu0 }
 0x44e   : > { %v7456_v53 = vsel %vm7297_vm8, %v6842_v33, -inf  ;;  %v5308_v4 = vrot.slane %v4467_v63, 1  ;;  %v12775_v16 = vadd.f32 %v4468_v37, %v3915_v10  ;;  %v6217_v45 = vadd.f32 %v5974_v21, %v13575_v62  ;;  %v3923_v1 = vpop.f32.mrf.mxu1  ;;  %v13577_v37 = vld [vmem:[#allocation70_spill] sm:$0xff] }
 0x44f   : > { %6031 = vrot.lane.b32.xlu0 %v5821_v5, %s9149_s14  ;;  %v7405_v35 = vmax.f32 %v12761_v36, %v12764_v8  ;;  %v5824_v28 = vrot.slane %v12732_v11, 7  ;;  %v7182_v24 = vmax.f32 %v7181_v23, %v5518_v15  ;;  %v7457_v47 = vmax.f32 %v7455_v17, %v7456_v53  ;;  %6659 = vrot.lane.b32.xlu1 %v6451_v56, %s9151_s21  ;;  %v4474_v41 = vpop.f32.mrf.mxu0  ;;  %v6604_v33 = vpop.permute.xlu0 %6603  ;;  %v13579_v56 = vld [vmem:[#allocation18_spill] sm:$0xff] }
 0x450   : > { %v6197_v7 = vadd.f32 %v12235_v18, %v13576_v59  ;;  %v5309_v10 = vsel %vm5106_vm3, %v5306_v31, %v5308_v4  ;;  %v6843_v48 = vadd.f32 %v6600_v39, %v6217_v45  ;;  %v4473_v6 = vadd.f32 %v4472_v12, %v3919_v19  ;;  %v13578_v39 = vld [vmem:[#allocation84_spill] sm:$0xff] }
 0x451   : > { %v7406_v63 = vsel %vm7297_vm8, %v6822_v55, -inf  ;;  %v5519_v5 = vadd.f32 %v5309_v10, %v13577_v37  ;;  %v5976_v2 = vpop.permute.xlu1 %5975  ;;  %v5823_v23 = vsel %vm4585_vm2, %v5820_v34, %v5822_v60  ;;  %v6453_v17 = vsel %vm5106_vm3, %v6450_v46, %v6452_v44  ;;  %v4476_v21 = vpop.f32.mrf.mxu0 }
 0x452   : > { %v5828_v15 = vrot.slane %v12775_v16, 7  ;;  %v7458_v18 = vsel %vm7297_vm8, %v6843_v48, -inf  ;;  %v5310_v31 = vrot.slane %v4473_v6, 1  ;;  %v6218_v19 = vadd.f32 %v5976_v2, %v13578_v39  ;;  %v3925_v55 = vpop.f32.mrf.mxu1  ;;  %v13580_v2 = vld [vmem:[#allocation71_spill] sm:$0xff] }
 0x453   : > { %6033 = vrot.lane.b32.xlu0 %v5823_v23, %s9149_s14  ;;  %v6198_v53 = vadd.f32 %v12265_v52, %v13579_v56  ;;  %v7183_v62 = vmax.f32 %v7182_v24, %v5519_v5  ;;  %v7459_v34 = vmax.f32 %v7457_v47, %v7458_v18  ;;  %6661 = vrot.lane.b32.xlu1 %v6453_v17, %s9151_s21  ;;  %v5826_v45 = vrot.slane %v12751_v22, 7  ;;  %v6606_v48 = vpop.permute.xlu0 %6605  ;;  %v4478_v6 = vpop.f32.mrf.mxu0  ;;  %v13581_v5 = vld [vmem:[#allocation33_spill] sm:$0xff]  ;;  %v13583_v18 = vld [vmem:[#allocation19_spill] sm:$0xff] }
 0x454   : > { %v5825_v46 = vsel %vm4585_vm2, %v5822_v60, %v5824_v28  ;;  %v5311_v12 = vsel %vm5106_vm3, %v5308_v4, %v5310_v31  ;;  %v6844_v59 = vadd.f32 %v6602_v14, %v6218_v19  ;;  %v4477_v10 = vadd.f32 %v4476_v21, %v3923_v1  ;;  %v13582_v4 = vld [vmem:[#allocation90_spill] sm:$0xff] }
 0x455   : > { %v6454_v37 = vrot.slane %v12775_v16, 1  ;;  %v5520_v23 = vadd.f32 %v5311_v12, %v13580_v2  ;;  %v12804_v39 = vadd.f32 %v4474_v41, %v3921_v0  ;;  %v5978_v52 = vpop.permute.xlu1 %5977  ;;  %v12806_v24 = vadd.f32 %v4478_v6, %v3925_v55  ;;  %v13585_v6 = vld [vmem:[#allocation73_spill] sm:$0xff] }
 0x456   : > { %v7460_v47 = vsel %vm7297_vm8, %v6844_v59, -inf  ;;  %v5312_v60 = vrot.slane %v4477_v10, 1  ;;  %v6219_v17 = vadd.f32 %v5978_v52, %v13581_v5  ;;  %v5829_v14 = vsel %vm4585_vm2, %v5826_v45, %v5828_v15  ;;  %v13584_v59 = vld [vmem:[#allocation72_spill] sm:$0xff] }
 0x457   : > { %6035 = vrot.lane.b32.xlu0 %v5825_v46, %s9149_s14  ;;  %v6823_v1 = vadd.f32 %v13582_v4, %v6197_v7  ;;  %v6200_v0 = vadd.f32 %v12296_v40, %v13583_v18  ;;  %v7184_v41 = vmax.f32 %v7183_v62, %v5520_v23  ;;  %v7461_v19 = vmax.f32 %v7459_v34, %v7460_v47  ;;  %v6608_v12 = vpop.permute.xlu0 %6607 }
 0x458   : > { %6039 = vrot.lane.b32.xlu1 %v5829_v14, %s9149_s14  ;;  %v6824_v21 = vadd.f32 %v12335_v57, %v6198_v53  ;;  %v5313_v55 = vsel %vm5106_vm3, %v5310_v31, %v5312_v60  ;;  %v5418_v56 = vsel %vm5106_vm3, %v5312_v60, 0.0  ;;  %v6845_v46 = vadd.f32 %v6604_v33, %v6219_v17  ;;  %v13586_v57 = vld [vmem:[#allocation85_spill] sm:$0xff] }
 0x459   : > { %v5521_v10 = vadd.f32 %v5313_v55, %v13584_v59  ;;  %v5522_v2 = vadd.f32 %v5418_v56, %v13585_v6  ;;  %v5832_v7 = vrot.slane %v12806_v24, 7  ;;  %v5980_v52 = vpop.permute.xlu1 %5979  ;;  %v5827_v40 = vsel %vm4585_vm2, %v5824_v28, %v5826_v45  ;;  %v13587_v60 = vld [vmem:[#allocation125_spill] sm:$0xff]  ;;  %v13589_v55 = vld [vmem:[#allocation123_spill] sm:$0xff] }
 0x45a   : > { %v5830_v62 = vrot.slane %v12804_v39, 7  ;;  %v7462_v34 = vsel %vm7297_vm8, %v6845_v46, -inf  ;;  %v6220_v53 = vadd.f32 %v5980_v52, %v13586_v57  ;;  %v6455_v33 = vsel %vm5106_vm3, %v6452_v44, %v6454_v37  ;;  %v13593_v57 = vld [vmem:[#allocation121_spill] sm:$0xff] }
 0x45b   : > { %6037 = vrot.lane.b32.xlu0 %v5827_v40, %s9149_s14  ;;  %v7407_v31 = vmax.f32 %v7405_v35, %v7406_v63  ;;  %v7048_v28 = vadd.f32 %v13487_v50, %v5522_v2  ;;  %v7185_v45 = vmax.f32 %v7184_v41, %v5521_v10  ;;  %v7463_v23 = vmax.f32 %v7461_v19, %v7462_v34  ;;  %v6610_v4 = vpop.permute.xlu0 %6609 }
 0x45c   : > { %6663 = vrot.lane.b32.xlu1 %v6455_v33, %s9151_s21  ;;  %v7408_v47 = vsel %vm7297_vm8, %v6823_v1, -inf  ;;  %v6199_v5 = vadd.f32 %v12305_v9, %v13587_v60  ;;  %v6826_v17 = vadd.f32 %v12401_v30, %v6200_v0  ;;  %v6846_v14 = vadd.f32 %v6606_v48, %v6220_v53  ;;  %v13588_v1 = vld [vmem:[#allocation34_spill] sm:$0xff] }
 0x45d   : > { %v7410_v44 = vsel %vm7297_vm8, %v6824_v21, -inf  ;;  %v7186_v18 = vmax.f32 %v7185_v45, %v7048_v28  ;;  %v6458_v36 = vrot.slane %v12806_v24, 1  ;;  %v5982_v8 = vpop.permute.xlu1 %5981  ;;  %v5833_v35 = vsel %vm4585_vm2, %v5830_v62, %v5832_v7  ;;  %v13592_v7 = vld [vmem:[#allocation36_spill] sm:$0xff] }
 0x45e   : > { %v6456_v63 = vrot.slane %v12804_v39, 1  ;;  %v7464_v41 = vsel %vm7297_vm8, %v6846_v14, -inf  ;;  %v6221_v19 = vadd.f32 %v5982_v8, %v13588_v1  ;;  %v5831_v9 = vsel %vm4585_vm2, %v5828_v15, %v5830_v62  ;;  %v13591_v15 = vld [vmem:[#allocation91_spill] sm:$0xff] }
 0x45f   : > { %6043 = vrot.lane.b32.xlu0 %v5833_v35, %s9149_s14  ;;  %v7231_v30 = vadd.f32 %v13487_v50, %v12396_v58  ;;  %v7409_v48 = vmax.f32 %v7407_v31, %v7408_v47  ;;  %v7187_v0 = vrot.slane %v7186_v18, 4  ;;  %v7465_v21 = vmax.f32 %v7463_v23, %v7464_v41  ;;  %v6612_v2 = vpop.permute.xlu0 %6611  ;;  %v13596_v41 = vld [vmem:[#allocation116_spill] sm:$0xff] }
 0x460   : > { %6041 = vrot.lane.b32.xlu1 %v5831_v9, %s9149_s14  ;;  %v13590_v56 = vmax.f32 %v12276_v32, %v13589_v55  ;;  %v6825_v59 = vadd.f32 %v12328_v61, %v6199_v5  ;;  %v7244_v10 = vadd.f32 %v13487_v50, %v6826_v17  ;;  %v6847_v6 = vadd.f32 %v6608_v12, %v6221_v19  ;;  %v13595_v12 = vld [vmem:[#allocation21_spill] sm:$0xff]  ;;  %v13597_v9 = vld [vmem:[#allocation12_spill] sm:$0xff]  ;;  %s7817_s14 = scalar_lea.sflag [#allocation3], %s272_s20 }
 0x461   : > { %v7351_v52 = vmax.f32 %v13592_v7, %v13591_v15  ;;  %v7411_v58 = vmax.f32 %v7409_v48, %v7410_v44  ;;  %v7188_v40 = vmax.f32 %v7186_v18, %v7187_v0  ;;  %v5984_v62 = vpop.permute.xlu1 %5983  ;;  %v6459_v34 = vsel %vm5106_vm3, %v6456_v63, %v6458_v36  ;;  %v13599_v48 = vld [vmem:[#allocation107_spill] sm:$0xff] }
 0x462   : > { %v7380_v46 = vmax.f32 %v13590_v56, %v12377_v42  ;;  %v7352_v53 = vsel %vm7297_vm8, %v13593_v57, -inf  ;;  %v7466_v32 = vsel %vm7297_vm8, %v6847_v6, -inf  ;;  %v13594_v42 = vld [vmem:[#allocation87_spill] sm:$0xff]  ;;  %v6457_v61 = vsel %vm5106_vm3, %v6454_v37, %v6456_v63 }
 0x463   : > { %v6222_v33 = vadd.f32 %v5984_v62, %v13594_v42  ;;  %6667 = vrot.lane.b32.xlu0 %v6459_v34, %s9151_s21  ;;  %v7381_v31 = vsel %vm7297_vm8, %v13595_v12, -inf  ;;  %v7383_v28 = vsel %vm7297_vm8, %v7231_v30, -inf  ;;  %v7189_v45 = vrot.slane %v7188_v40, 2  ;;  %v6614_v14 = vpop.permute.xlu0 %6613  ;;  %v13598_v30 = vld [vmem:[#allocation79_spill] sm:$0xff] }
 0x464   : > { %v7467_v23 = vmax.f32 %v7465_v21, %v7466_v32  ;;  %6665 = vrot.lane.b32.xlu1 %v6457_v61, %s9151_s21  ;;  %v7382_v47 = vmax.f32 %v7380_v46, %v7381_v31  ;;  %v7412_v60 = vsel %vm7297_vm8, %v6825_v59, -inf  ;;  %v7414_v5 = vsel %vm7297_vm8, %v7244_v10, -inf }
 0x465   : > { %v6848_v17 = vadd.f32 %v6610_v4, %v6222_v33  ;;  %v7353_v44 = vmax.f32 %v7351_v52, %v7352_v53  ;;  %v7413_v18 = vmax.f32 %v7411_v58, %v7412_v60  ;;  %v7190_v8 = vmax.f32 %v7188_v40, %v7189_v45  ;;  %v5986_v37 = vpop.permute.xlu1 %5985  ;;  %v8872_v4 = vld [vmem:[%s13056_s3 + $0x8] sm:$0xff]   ;;  %v13601_v58 = vld [vmem:[#allocation86_spill] sm:$0xff]  ;;  %v8874_v45 = vld [vmem:[%s13056_s3 + $0x40] sm:$0x3f]  }
 0x466   : > { %v7384_v35 = vmax.f32 %v7382_v47, %v7383_v28  ;;  %v6223_v1 = vadd.f32 %v5986_v37, %v13596_v41  ;;  %v6461_v19 = vsel %vm5106_vm3, %v6458_v36, 0.0  ;;  %v13600_v0 = vmax.f32 %v13598_v30, %v13599_v48  ;;  %7704 = vmatpush1.bf16.msra.mxu1 %v8872_v4  ;;  %v8873_v28 = vld [vmem:[%s13056_s3] sm:$0xff]  }
 0x467   : > { %v7468_v63 = vsel %vm7297_vm8, %v6848_v17, -inf  ;;  %v7415_v55 = vmax.f32 %v7413_v18, %v7414_v5  ;;  %v7191_v46 = vrot.slane %v7190_v8, 1  ;;  %v5992_v10 = vpop.permute.xlu0 %5991  ;;  %v7354_v6 = vrot.slane %v7353_v44, 4  ;;  %7705 = vmatprep.subr.bf16.mxu1 %v13286_v51  ;;  %v13602_v47 = vld [vmem:[#allocation35_spill] sm:$0xff] }
 0x468   : > { %v7322_v21 = vmax.f32 %v13600_v0, %v13597_v9  ;;  %v7469_v56 = vmax.f32 %v7467_v23, %v7468_v63  ;;  %6669 = vrot.lane.b32.xlu1 %v6461_v19, %s9151_s21  ;;  %v6849_v59 = vadd.f32 %v6612_v2, %v6223_v1  ;;  %v7385_v7 = vrot.slane %v7384_v35, 4  ;;  %v13604_v0 = vld [vmem:[#allocation88_spill] sm:$0xff] }
 0x469   : > { %v5988_v15 = vpop.permute.xlu1 %5987  ;;  %v7192_v36 = vmax.f32 %v7190_v8, %v7191_v46  ;;  %v7416_v34 = vrot.slane %v7415_v55, 4  ;;  %v7447_v2 = vrot.slane %v12739_v49, 4  ;;  %v7355_v33 = vmax.f32 %v7353_v44, %v7354_v6 }
 0x46a   : > { %v7470_v52 = vsel %vm7297_vm8, %v6849_v59, -inf  ;;  %v6224_v40 = vadd.f32 %v5988_v15, %v13601_v58  ;;  %v7323_v62 = vrot.slane %v7322_v21, 4  ;;  %v7386_v12 = vmax.f32 %v7384_v35, %v7385_v7  ;;  %7706 = vmatpush1.bf16.msra.mxu1 %v8873_v28 }
 0x46b   : > { %v7471_v57 = vmax.f32 %v7469_v56, %v7470_v52  ;;  %v12895_v53 = vsel %vm7566_vm13, %v7192_v36, %v12727_v43  ;;  %v7417_v23 = vmax.f32 %v7415_v55, %v7416_v34  ;;  %v6226_v60 = vadd.f32 %v5992_v10, %v13602_v47  ;;  %7721 = vmatprep.subr.bf16.mxu1 %v13286_v51  ;;  %v13605_v52 = vld [vmem:[#allocation89_spill] sm:$0xff] }
 0x46c   : > { %v6850_v32 = vadd.f32 %v6614_v14, %v6224_v40  ;;  %v5994_v42 = vpop.permute.xlu0 %5993  ;;  %v7324_v43 = vmax.f32 %v7322_v21, %v7323_v62  ;;  %v7448_v17 = vmax.f32 %v12739_v49, %v7447_v2  ;;  %v13603_v14 = vld [vmem:[#allocation118_spill] sm:$0xff]  ;;  %v7356_v8 = vrot.slane %v7355_v33, 2 }
 0x46d   : > { %v5990_v61 = vpop.permute.xlu1 %5989  ;;  %v7689_v63 = vsel %vm7687_vm14, %v8874_v45, 0  ;;  %v7387_v41 = vrot.slane %v7386_v12, 2  ;;  %v7418_v9 = vrot.slane %v7417_v23, 2  ;;  %v6227_v21 = vadd.f32 %v5994_v42, %v13604_v0 }
 0x46e   : > { %v7472_v31 = vsel %vm7297_vm8, %v6850_v32, -inf  ;;  %v6225_v44 = vadd.f32 %v5990_v61, %v13603_v14  ;;  %v7325_v19 = vrot.slane %v7324_v43, 2  ;;  %v7449_v48 = vrot.slane %v7448_v17, 2  ;;  %7722 = vmatpush2.bf16.msra.mxu1 %v7689_v63 }
 0x46f   : > { %v7473_v5 = vmax.f32 %v7471_v57, %v7472_v31  ;;  %v7357_v56 = vmax.f32 %v7355_v33, %v7356_v8  ;;  %v7388_v51 = vmax.f32 %v7386_v12, %v7387_v41  ;;  %v7419_v15 = vmax.f32 %v7417_v23, %v7418_v9  ;;  %v13606_v12 = vld [vmem:[#allocation37_spill] sm:$0xff]  ;;  %v13607_v41 = vld [vmem:[#allocation75_spill] sm:$0xff] }
 0x470   : > { %v6618_v18 = vpop.permute.xlu0 %6617  ;;  %v7326_v6 = vmax.f32 %v7324_v43, %v7325_v19  ;;  %v7450_v7 = vmax.f32 %v7448_v17, %v7449_v48 }
 0x471   : > { %v6852_v37 = vadd.f32 %v6618_v18, %v6226_v60  ;;  %v6616_v35 = vpop.permute.xlu1 %6615  ;;  %v7358_v34 = vrot.slane %v7357_v56, 1  ;;  %v7389_v32 = vrot.slane %v7388_v51, 1  ;;  %v7420_v61 = vrot.slane %v7419_v15, 1 }
 0x472   : > { %v6851_v1 = vadd.f32 %v6616_v35, %v6225_v44  ;;  %v7327_v33 = vrot.slane %v7326_v6, 1  ;;  %v7451_v28 = vrot.slane %v7450_v7, 1 }
 0x473   : > { %v7270_v30 = vadd.f32 %v13487_v50, %v6852_v37  ;;  %v7359_v60 = vmax.f32 %v7357_v56, %v7358_v34  ;;  %v7390_v44 = vmax.f32 %v7388_v51, %v7389_v32  ;;  %v7421_v37 = vmax.f32 %v7419_v15, %v7420_v61 }
 0x474   : > { %v7474_v49 = vsel %vm7297_vm8, %v6851_v1, -inf  ;;  %v5996_v55 = vpop.permute.xlu0 %5995  ;;  %v7328_v8 = vmax.f32 %v7326_v6, %v7327_v33  ;;  %v7452_v63 = vmax.f32 %v7450_v7, %v7451_v28 }
 0x475   : > { %v7476_v4 = vsel %vm7297_vm8, %v7270_v30, -inf  ;;  %v7475_v46 = vmax.f32 %v7473_v5, %v7474_v49  ;;  %v6620_v59 = vpop.permute.xlu1 %6619  ;;  %v6228_v58 = vadd.f32 %v5996_v55, %v13605_v52 }
 0x476   : > { %v6853_v10 = vadd.f32 %v6620_v59, %v6227_v21  ;;  %v7577_v21 = vsel %vm7554_vm6, %v7359_v60, %v7328_v8 }
 0x477   : > { %v7477_v36 = vmax.f32 %v7475_v46, %v7476_v4  ;;  %v7578_v55 = vsel %vm7556_vm7, %v7390_v44, %v7577_v21  ;;  %v13608_v46 = vld [vmem:[#allocation38_spill] sm:$0xff]  ;;  %v13610_v44 = vld [vmem:[#allocation96_spill] sm:$0xff] }
 0x478   : > { %v7271_v40 = vadd.f32 %v10377_v29, %v6853_v10  ;;  %v5998_v62 = vpop.permute.xlu0 %5997  ;;  %v7579_v4 = vsel %vm7558_vm9, %v7421_v37, %v7578_v55  ;;  %v13612_v21 = vld [vmem:[#allocation92_spill] sm:$0xff] }
 0x479   : > { %v7478_v57 = vrot.slane %v7477_v36, 4  ;;  %v6622_v2 = vpop.permute.xlu1 %6621  ;;  %v6229_v45 = vadd.f32 %v5998_v62, %v13606_v12  ;;  %v7580_v6 = vsel %vm7560_vm10, %v7452_v63, %v7579_v4  ;;  %v13613_v55 = vld [vmem:[#allocation40_spill] sm:$0xff] }
 0x47a   : > { %v6854_v42 = vadd.f32 %v6622_v2, %v6228_v58  ;;  %v7484_v43 = vsel %vm7297_vm8, %v7271_v40, -inf  ;;  %v13609_v58 = vld [vmem:[#allocation124_spill] sm:$0xff] }
 0x47b   : > { %v7479_v31 = vmax.f32 %v7477_v36, %v7478_v57 }
 0x47c   : > { %v7485_v23 = vsel %vm7297_vm8, %v6854_v42, -inf  ;;  %v6000_v47 = vpop.permute.xlu0 %5999 }
 0x47d   : > { %v7480_v5 = vrot.slane %v7479_v31, 2  ;;  %v7486_v17 = vmax.f32 %v7484_v43, %v7485_v23  ;;  %v6624_v14 = vpop.permute.xlu1 %6623  ;;  %v6230_v1 = vadd.f32 %v6000_v47, %v13607_v41  ;;  %v13611_v41 = vld [vmem:[#allocation39_spill] sm:$0xff] }
 0x47e   : > { %v6855_v18 = vadd.f32 %v6624_v14, %v6229_v45 }
 0x47f   : > { %v7481_v35 = vmax.f32 %v7479_v31, %v7480_v5 }
 0x480   : > { %v7487_v19 = vsel %vm7297_vm8, %v6855_v18, -inf  ;;  %v6002_v9 = vpop.permute.xlu0 %6001 }
 0x481   : > { %v7482_v30 = vrot.slane %v7481_v35, 1  ;;  %v7488_v48 = vmax.f32 %v7486_v17, %v7487_v19  ;;  %v6626_v0 = vpop.permute.xlu1 %6625  ;;  %v6231_v59 = vadd.f32 %v6002_v9, %v13608_v46 }
 0x482   : > { %v6856_v49 = vadd.f32 %v6626_v0, %v6230_v1 }
 0x483   : > { %v7483_v56 = vmax.f32 %v7481_v35, %v7482_v30 }
 0x484   : > { %v7489_v51 = vsel %vm7297_vm8, %v6856_v49, -inf  ;;  %v6004_v10 = vpop.permute.xlu0 %6003 }
 0x485   : > { %v7490_v15 = vmax.f32 %v7488_v48, %v7489_v51  ;;  %v6628_v36 = vpop.permute.xlu1 %6627  ;;  %v12927_v7 = vsel %vm7562_vm11, %v7483_v56, %v7580_v6  ;;  %v6232_v40 = vadd.f32 %v6004_v10, %v13609_v58 }
 0x486   : > { %v6857_v52 = vadd.f32 %v6628_v36, %v6231_v59 }
 0x488   : > { %v7491_v62 = vsel %vm7297_vm8, %v6857_v52, -inf  ;;  %v6006_v34 = vpop.permute.xlu0 %6005 }
 0x489   : > { %v7492_v57 = vmax.f32 %v7490_v15, %v7491_v62  ;;  %v6630_v2 = vpop.permute.xlu1 %6629  ;;  %v6233_v42 = vadd.f32 %v6006_v34, %v12391_v27  ;;  %v13614_v15 = vld [vmem:[#allocation20_spill] sm:$0xff] }
 0x48a   : > { %v6858_v32 = vadd.f32 %v6630_v2, %v6232_v40 }
 0x48c   : > { %v7493_v33 = vsel %vm7297_vm8, %v6858_v32, -inf  ;;  %v6008_v61 = vpop.permute.xlu0 %6007 }
 0x48d   : > { %v7494_v31 = vmax.f32 %v7492_v57, %v7493_v33  ;;  %v6632_v28 = vpop.permute.xlu1 %6631  ;;  %v6234_v18 = vadd.f32 %v6008_v61, %v13610_v44 }
 0x48e   : > { %v6859_v12 = vadd.f32 %v6632_v28, %v6233_v42 }
 0x490   : > { %v7495_v45 = vsel %vm7297_vm8, %v6859_v12, -inf  ;;  %v6010_v43 = vpop.permute.xlu0 %6009 }
 0x491   : > { %v7496_v23 = vmax.f32 %v7494_v31, %v7495_v45  ;;  %v6634_v47 = vpop.permute.xlu1 %6633  ;;  %v6235_v27 = vadd.f32 %v6010_v43, %v12436_v54 }
 0x492   : > { %v6860_v37 = vadd.f32 %v6634_v47, %v6234_v18 }
 0x494   : > { %v6636_v60 = vpop.permute.xlu0 %6635  ;;  %v7497_v9 = vsel %vm7297_vm8, %v6860_v37, -inf }
 0x495   : > { %v6012_v5 = vpop.permute.xlu1 %6011  ;;  %v6861_v63 = vadd.f32 %v6636_v60, %v6235_v27  ;;  %v7498_v4 = vmax.f32 %v7496_v23, %v7497_v9 }
 0x496   : > { %v6236_v1 = vadd.f32 %v6012_v5, %v13611_v41 }
 0x497   : > { %v7499_v0 = vsel %vm7297_vm8, %v6861_v63, -inf }
 0x498   : > { %v6014_v17 = vpop.permute.xlu0 %6013  ;;  %v7500_v6 = vmax.f32 %v7498_v4, %v7499_v0 }
 0x499   : > { %v6018_v14 = vpop.permute.xlu1 %6017  ;;  %v6237_v49 = vadd.f32 %v6014_v17, %v13612_v21 }
 0x49a   : > { %v6239_v56 = vadd.f32 %v6018_v14, %v13613_v55 }
 0x49d   : > { %v6638_v8 = vpop.permute.xlu0 %6637  ;;  %v6020_v35 = vpop.permute.xlu1 %6019 }
 0x49e   : > { %v6862_v30 = vadd.f32 %v6638_v8, %v6236_v1  ;;  %v6240_v27 = vadd.f32 %v6020_v35, %v12538_v38  ;;  %v13616_v38 = vld [vmem:[#allocation22_spill] sm:$0xff] }
 0x4a0   : > { %v7501_v54 = vsel %vm7297_vm8, %v6862_v30, -inf }
 0x4a1   : > { %v6016_v19 = vpop.permute.xlu0 %6015  ;;  %v6644_v48 = vpop.permute.xlu1 %6643  ;;  %v7502_v58 = vmax.f32 %v7500_v6, %v7501_v54 }
 0x4a2   : > { %v6865_v59 = vadd.f32 %v6644_v48, %v6239_v56  ;;  %v6238_v36 = vadd.f32 %v6016_v19, %v13614_v15  ;;  %v13615_v48 = vld [vmem:[#allocation93_spill] sm:$0xff] }
 0x4a4   : > { %v7283_v62 = vadd.f32 %v13487_v50, %v6865_v59 }
 0x4a5   : > { %v6640_v46 = vpop.permute.xlu0 %6639  ;;  %v6646_v10 = vpop.permute.xlu1 %6645 }
 0x4a6   : > { %v6863_v51 = vadd.f32 %v6640_v46, %v6237_v49  ;;  %v7507_v61 = vsel %vm7297_vm8, %v7283_v62, -inf  ;;  %v6866_v19 = vadd.f32 %v6646_v10, %v6240_v27 }
 0x4a8   : > { %v7503_v52 = vsel %vm7297_vm8, %v6863_v51, -inf  ;;  %v7284_v55 = vadd.f32 %v10377_v29, %v6866_v19 }
 0x4a9   : > { %v6642_v40 = vpop.permute.xlu0 %6641  ;;  %v6648_v57 = vpop.permute.xlu1 %6647  ;;  %v7504_v2 = vmax.f32 %v7502_v58, %v7503_v52 }
 0x4aa   : > { %v6864_v34 = vadd.f32 %v6642_v40, %v6238_v36  ;;  %v7515_v59 = vsel %vm7297_vm8, %v7284_v55, -inf }
 0x4ac   : > { %v7505_v32 = vsel %vm7297_vm8, %v6864_v34, -inf }
 0x4ad   : > { %v7506_v42 = vmax.f32 %v7504_v2, %v7505_v32  ;;  %v6022_v33 = vpop.permute.xlu0 %6021  ;;  %v6650_v31 = vpop.permute.xlu1 %6649 }
 0x4ae   : > { %v6241_v37 = vadd.f32 %v6022_v33, %v12582_v26 }
 0x4af   : > { %v7508_v28 = vmax.f32 %v7506_v42, %v7507_v61 }
 0x4b0   : > { %v6867_v30 = vadd.f32 %v6648_v57, %v6241_v37 }
 0x4b1   : > { %v7509_v12 = vrot.slane %v7508_v28, 4  ;;  %v6024_v45 = vpop.permute.xlu0 %6023  ;;  %v6652_v43 = vpop.permute.xlu1 %6651 }
 0x4b2   : > { %v6242_v9 = vadd.f32 %v6024_v45, %v12601_v13  ;;  %v7516_v26 = vsel %vm7297_vm8, %v6867_v30, -inf }
 0x4b3   : > { %v7510_v23 = vmax.f32 %v7508_v28, %v7509_v12  ;;  %v7517_v6 = vmax.f32 %v7515_v59, %v7516_v26 }
 0x4b4   : > { %v6868_v56 = vadd.f32 %v6650_v31, %v6242_v9 }
 0x4b5   : > { %v7511_v47 = vrot.slane %v7510_v23, 2  ;;  %v6026_v60 = vpop.permute.xlu0 %6025  ;;  %v6654_v5 = vpop.permute.xlu1 %6653 }
 0x4b6   : > { %v6243_v0 = vadd.f32 %v6026_v60, %v13615_v48  ;;  %v7518_v13 = vsel %vm7297_vm8, %v6868_v56, -inf }
 0x4b7   : > { %v7512_v17 = vmax.f32 %v7510_v23, %v7511_v47  ;;  %v7519_v58 = vmax.f32 %v7517_v6, %v7518_v13 }
 0x4b8   : > { %v6869_v4 = vadd.f32 %v6652_v43, %v6243_v0 }
 0x4b9   : > { %v7513_v14 = vrot.slane %v7512_v17, 1  ;;  %v6028_v44 = vpop.permute.xlu0 %6027  ;;  %v6656_v18 = vpop.permute.xlu1 %6655 }
 0x4ba   : > { %v6244_v35 = vadd.f32 %v6028_v44, %v13616_v38  ;;  %v7520_v29 = vsel %vm7297_vm8, %v6869_v4, -inf }
 0x4bb   : > { %v7514_v8 = vmax.f32 %v7512_v17, %v7513_v14  ;;  %v7521_v57 = vmax.f32 %v7519_v58, %v7520_v29 }
 0x4bc   : > { %v6870_v51 = vadd.f32 %v6654_v5, %v6244_v35 }
 0x4bd   : > { %v6030_v63 = vpop.permute.xlu0 %6029  ;;  %v12951_v41 = vsel %vm7564_vm12, %v7514_v8, %v12927_v7  ;;  %v6658_v1 = vpop.permute.xlu1 %6657 }
 0x4be   : > { %v6245_v7 = vadd.f32 %v6030_v63, %v12667_v25  ;;  %v7522_v25 = vsel %vm7297_vm8, %v6870_v51, -inf }
 0x4c0   : > { %v6871_v15 = vadd.f32 %v6656_v18, %v6245_v7  ;;  %v13617_v7 = vld [vmem:[#allocation74_spill] sm:$0xff] }
 0x4c1   : > { %v6032_v21 = vpop.permute.xlu0 %6031  ;;  %v6660_v49 = vpop.permute.xlu1 %6659 }
 0x4c2   : > { %v6246_v10 = vadd.f32 %v6032_v21, %v12696_v3  ;;  %v7524_v2 = vsel %vm7297_vm8, %v6871_v15, -inf  ;;  %v7523_v3 = vmax.f32 %v7521_v57, %v7522_v25  ;;  %v8878_v25 = vld [vmem:[%s13058_s5] sm:$0xff]  }
 0x4c4   : > { %v6872_v62 = vadd.f32 %v6658_v1, %v6246_v10  ;;  %v7525_v28 = vmax.f32 %v7523_v3, %v7524_v2 }
 0x4c5   : > { %v6034_v46 = vpop.permute.xlu0 %6033  ;;  %v6662_v54 = vpop.permute.xlu1 %6661 }
 0x4c6   : > { %v6247_v36 = vadd.f32 %v6034_v46, %v12707_v20  ;;  %v7526_v31 = vsel %vm7297_vm8, %v6872_v62, -inf  ;;  %v7591_v46 = vsub.s32 0, %v13617_v7  ;;  %v8314_v62 = vld [vmem:[%s13057_s4] ss:$0 sm:$0xff] }
 0x4c7   : > { %v7527_v23 = vmax.f32 %v7525_v28, %v7526_v31 }
 0x4c8   : > { %v6873_v32 = vadd.f32 %v6660_v49, %v6247_v36 }
 0x4c9   : > { %v6036_v52 = vpop.permute.xlu0 %6035 }
 0x4ca   : > { %v6040_v40 = vpop.permute.xlu1 %6039  ;;  %v6248_v34 = vadd.f32 %v6036_v52, %v12732_v11  ;;  %v7528_v12 = vsel %vm7297_vm8, %v6873_v32, -inf }
 0x4cb   : > { %v7529_v60 = vmax.f32 %v7527_v23, %v7528_v12  ;;  %v6250_v5 = vadd.f32 %v6040_v40, %v12775_v16  ;;  %v8877_v40 = vld [vmem:[%s13058_s5 + $0x8] sm:$0xff]  }
 0x4cc   : > { %v6874_v20 = vadd.f32 %v6662_v54, %v6248_v34  ;;  %v7595_v54 = vsub.s32 1, %v13617_v7 }
 0x4cd   : > { %v6038_v42 = vpop.permute.xlu0 %6037 }
 0x4ce   : > { %v6249_v33 = vadd.f32 %v6038_v42, %v12751_v22  ;;  %v6664_v61 = vpop.permute.xlu1 %6663  ;;  %v7530_v11 = vsel %vm7297_vm8, %v6874_v20, -inf }
 0x4cf   : > { %v7531_v14 = vmax.f32 %v7529_v60, %v7530_v11 }
 0x4d0   : > { %v6875_v45 = vadd.f32 %v6664_v61, %v6249_v33  ;;  %v8325_v61 = vld [vmem:[%s13059_s6] ss:$0 sm:$0xff] }
 0x4d1   : > { %v6044_v43 = vpop.permute.xlu0 %6043 }
 0x4d2   : > { %v6042_v47 = vpop.permute.xlu1 %6041  ;;  %v7532_v17 = vsel %vm7297_vm8, %v6875_v45, -inf  ;;  %v6252_v37 = vadd.f32 %v6044_v43, %v12806_v24  ;;  %v9153_v24 = vmov 0.0  }
 0x4d3   : > { %v6251_v18 = vadd.f32 %v6042_v47, %v12804_v39  ;;  %v7533_v27 = vmax.f32 %v7531_v14, %v7532_v17  ;;  %8341 = vmatprep.subr.bf16.mxu1 %v9153_v24 }
 0x4d5   : > { %v6668_v22 = vpop.permute.xlu0 %6667 }
 0x4d6   : > { %v6666_v44 = vpop.permute.xlu1 %6665  ;;  %v6877_v63 = vadd.f32 %v6668_v22, %v6251_v18 }
 0x4d7   : > { %v6876_v8 = vadd.f32 %v6666_v44, %v6250_v5 }
 0x4d8   : > { %v7536_v48 = vsel %vm7297_vm8, %v6877_v63, -inf }
 0x4d9   : > { %v7534_v1 = vsel %vm7297_vm8, %v6876_v8, -inf }
 0x4da   : > { %v7535_v19 = vmax.f32 %v7533_v27, %v7534_v1  ;;  %v6670_v9 = vpop.permute.xlu1 %6669 }
 0x4db   : > { %v6878_v30 = vadd.f32 %v6670_v9, %v6252_v37 }
 0x4dc   : > { %v7537_v0 = vmax.f32 %v7535_v19, %v7536_v48 }
 0x4dd   : > { %v7296_v16 = vadd.f32 %v13487_v50, %v6878_v30  ;;  %v7587_v50 = vld [vmem:[%s13055_s2] sm:$0x3] }
 0x4de   : > { %v7592_v59 = vrot.slane %v7587_v50, %v7591_v46  ;;  %v7596_v13 = vrot.slane %v7587_v50, %v7595_v54 }
 0x4df   : > { %v7538_v21 = vsel %vm7297_vm8, %v7296_v16, -inf }
 0x4e0   : > { %v7539_v49 = vmax.f32 %v7537_v0, %v7538_v21  ;;  %v7599_v51 = vadd.f32 %v7592_v59, %v12895_v53  ;;  %v8876_v53 = vld [vmem:[%s13058_s5 + $0x10] sm:$0xff]  }
 0x4e2   : > { %v7540_v55 = vrot.slane %v7539_v49, 4  ;;  %v7601_v29 = vmax.f32 %v7599_v51, 0.0 }
 0x4e4   : > { %v7541_v39 = vmax.f32 %v7539_v49, %v7540_v55  ;;  %v7603_v52 = vpack.c.bf16 %v7601_v29, %v7601_v29 }
 0x4e6   : > { %v7542_v56 = vrot.slane %v7541_v39, 2 }
 0x4e8   : > { %v7543_v38 = vmax.f32 %v7541_v39, %v7542_v56 }
 0x4ea   : > { %v7544_v35 = vrot.slane %v7543_v38, 1 }
 0x4ec   : > { %v7545_v26 = vmax.f32 %v7543_v38, %v7544_v35 }
 0x4ee   : > { %v7583_v4 = vsel %vm7566_vm13, %v7545_v26, %v12951_v41  ;;  %v8875_v41 = vld [vmem:[%s13058_s5 + $0x18] ss:$0 sps:$4 sm:$0x11]  }
 0x4ef   : > { %7584 = vrot.lane.b32.xlu0 %v7583_v4, %s9151_s21  ;;  %v7773_v58 = vsel %vm4585_vm2, %v8875_v41, 0  ;;  %s7830_s21 = sshll.u32 %s274_s29, 4  ;;  %s13014_s21 = int_to_ptr.vmem [resolvable:$true] %s7830_s21 }
 0x4f0   : > { %s9087_s16 = scalar_lea.vmem %s13014_s21, 128  ;;  %p9094_p0 = scmp.lt.s32.totalorder %s13014_s21, %s9092_s17 }
 0x4f1   : > { %p9088_p11 = scmp.ne.s32.totalorder %s13014_s21, %s9087_s16  ;;  %p9095_p1 = scmp.lt.s32.totalorder %s9093_s18, %s9087_s16 }
 0x4f3   : > { %p9089_p12 = pnand %p9088_p11, %p9234_p5  ;;  %p9096_p2 = por %p9095_p1, %p9094_p0 }
 0x4f5   : > { %p9090_p13 = pneg %p9089_p12 }
 0x4f7   : > { %p9097_p3 = pnand %p9096_p2, %p9090_p13 }
 0x561   : > { %v7585_v10 = vpop.permute.xlu0 %7584 }
 0x562   : > { %v7600_v6 = vadd.f32 %v7596_v13, %v7585_v10 }
 0x564   : > { %v7602_v15 = vmax.f32 %v7600_v6, 0.0 }
 0x566   : > { %v7604_v36 = vpack.c.bf16 %v7602_v15, %v7602_v15 }
 0x568   : > { %8324 = vmatprep.mubr.msk.bf16.mxu1 %vm7683_vm15, %v7604_v36 }
 0x569   : > { %7724 = vmatmul.mubr.bf16.vlgmr.msra.gmra.mxu1 %v7603_v52 }
 0x56a   : > { %8342 = vmatpush3.bf16.msra.mxu1 %v7773_v58  ;;  %8349 = vmatprep.mubr.msk.bf16.mxu1 %vm9154_vm0, %v9153_v24 }
 0x56b   : > { %8343 = vmatprep.subr.bf16.mxu1 %v9153_v24 }
 0x56e   : > { %8344 = vmatpush3.bf16.msra.mxu1 %v8876_v53 }
 0x56f   : > { %8345 = vmatprep.subr.bf16.mxu1 %v9153_v24 }
 0x572   : > { %8346 = vmatpush3.bf16.msra.mxu1 %v8877_v40 }
 0x573   : > { %8347 = vmatprep.subr.bf16.mxu1 %v9153_v24 }
 0x576   : > { %8348 = vmatpush3.bf16.msra.mxu1 %v8878_v25 }
 0x629   : > { %v7725_v34 = vpop.f32.mrf.mxu1 }
 0x62a   : > { %v7726_v57 = vadd.f32 %v8314_v62, %v7725_v34 }
 0x62b   : > { %v7727_v2 = vpop.f32.mrf.mxu1 }
 0x62c   : > { %v7731_v32 = vmax.f32 %v7726_v57, 0.0 }
 0x62d   : > { %v7728_v42 = vpop.f32.mrf.mxu1 }
 0x62e   : > { %v7732_v3 = vpack.c.bf16 %v7731_v32, %v7731_v32 }
 0x62f   : > { %v7729_v33 = vpop.f32.mrf.mxu1 }
 0x630   : > { %8350 = vmatmul.mubr.msk.bf16.vlgmr.msra.gmra.mxu1 %vm7768_vm1, %v7732_v3 }
 0x6f0   : > { %v7809_v31 = vpop.f32.mrf.mxu1 }
 0x6f1   : > { %v7810_v20 = vadd.f32 %v8325_v61, %v7809_v31 }
 0x6f2   : > { %v8351_v28 = vpop.f32.mrf.mxu1 }
 0x6f3   : > { %7815 = vst [vmem:[%s274_s29] sm:$0xff] %v7810_v20 }
 0x6f4   : > { %v7812_v12 = vpop.f32.mrf.mxu1 }
 0x6f5   : > { %9100 = shalt.err (!%p9097_p3)
}
 0x6f6   : > { %s9101_s15 = scalar_lea.hbm %s13012_s13, 128  ;;  %s9105_s19 = scalar_lea.hbm %s13060_s7, 256 }
 0x6f7   : > { %p9102_p4 = scmp.ne.s32.totalorder %s13012_s13, %s9101_s15  ;;  %p9106_p9 = scmp.lt.s32.totalorder %s13012_s13, %s13060_s7 }
 0x6f8   : > { %p9107_p10 = scmp.lt.s32.totalorder %s9105_s19, %s9101_s15 }
 0x6f9   : > { %p9103_p7 = pnand %p9102_p4, %p9234_p5 }
 0x6fa   : > { %p9108_p11 = por %p9107_p10, %p9106_p9 }
 0x6fb   : > { %p9104_p8 = pneg %p9103_p7 }
 0x6fd   : > { %p9109_p12 = pnand %p9108_p11, %p9104_p8 }
 0x6ff   : > { %9112 = shalt.err (!%p9109_p12)
}
 0x700   : > { %8353 = dma.vmem_to_hbm [thread:$0]  (%p9234_p5), %s13014_s21, 128, %s13012_s13, %s7817_s14   ;;  %v8352_v45 = vpop.f32.mrf.mxu1 }
 0x701 PF: > { %p8359_p13 = scmp.ge.s32.totalorder %s9147_s27, 2  ;;  %s7842_s8 = sand.u32 1, %s9135_s24  }
 0x702   : > { %s7843_s9 = scalar_lea.sflag [#allocation3], %s7842_s8 }
 0x703   : > { %p8356_p0 = pnand %p8359_p13, %p9238_p6 }
 0x705   : > { %p8357_p1 = pneg %p8356_p0 }
 0x707   : > { %9130 = dma.done.wait (%p8357_p1), %s7843_s9, 128  }
 0x708   : > { %9132 = vsyncadd (%p8357_p1), %s7843_s9, 4294967168  ;;  %p17_p2 = scmp.ge.s32.totalorder %s9221_s30, 4   ;;  %s13618_s24 = smov %s9139_s25 }
 0x709   : > { %s13619_s25 = smov %s9143_s26  ;;  %s13620_s26 = smov %s9232_s10 }
 0x70a   : > { %s13621_s27 = smov %s9221_s30  ;;  %19 = sbr.rel (!%p17_p2) target bundleno = 3 (0x3), region = 83 }
 0x70f   :  { %7848 = vsyncpa [#allocation3], 1 }
 0x710   :  { %7850 = vsyncpa [#allocation3 + $0x1], 1 }

</bundles_post_ra>
